<compile_context>
chip_gen: v7x
topology: tpu7x:2x2x1
jax: 0.10.0
libtpu: 0.0.40
codegen_flags: <defaults>
</compile_context>

<pallas_src>
import jax
import jax.numpy as jnp
from jax.experimental import pallas as pl
from jax.experimental.pallas import tpu as pltpu

HIDDEN = 50          # true hidden size of the PyTorch model
HPAD = 128           # lane-aligned padded hidden size
FC1_OUT = 8          # true fc1 output size
FC1_PAD = 128        # lane-aligned padded fc1 output size
SEQ_LEN = 23         # fixed by fc2 = nn.Linear(8 * 23, output_dim)


def lstm_forward_kernel(x_ref, wih_ref, whh_ref, b_ref,
                        w1_ref, b1_ref, w2r_ref, b2_ref,
                        out_ref, xp_sc, h_all_sc):
    # x_ref:    (T*Bp, D)        time-major, batch-padded input (lane-dense 2-D)
    # wih_ref:  (D, 4*Hp)        input->gates weights (transposed, gate-padded)
    # whh_ref:  (Hp, 4*Hp)       hidden->gates weights (transposed, gate-padded)
    # b_ref:    (1, 4*Hp)        combined b_ih + b_hh (gate-padded)
    # w1_ref:   (Hp, F1p)        fc1 weight (transposed, zero-padded), b1_ref: (1, F1p)
    # w2r_ref:  (T, F1p, O)      fc2 weight reshaped per-timestep, b2_ref: (1, O)
    # out_ref:  (Bp, O)          softmax probabilities
    # xp_sc:    (T, Bp, 4*Hp)    precomputed input projection (VMEM scratch)
    # h_all_sc: (T, Bp, Hp)      per-timestep ReLU'd hidden states (VMEM scratch)
    T, B, G = xp_sc.shape
    Hp = G // 4
    F1p = w1_ref.shape[1]

    # (1) Input projection for every timestep in a single matmul (off the
    #     recurrence critical path); bias added once here, not per step.
    xp = jnp.dot(x_ref[...], wih_ref[...],
                 preferred_element_type=jnp.float32) + b_ref[...]     # (T*B, 4Hp)
    xp_sc[...] = xp.reshape(T, B, G)

    # (2) Serial recurrence: statically unrolled (T is a compile-time constant),
    #     h/c live as vreg values across iterations (no VMEM round-trip); the
    #     only per-step MXU work is h @ whh.  Gate slices are lane-aligned
    #     128-wide blocks so slicing is a free view.
    h = jnp.zeros((B, Hp), jnp.float32)
    c = jnp.zeros((B, Hp), jnp.float32)
    for t in range(T):
        gates = xp_sc[t] + jnp.dot(h, whh_ref[...],
                                   preferred_element_type=jnp.float32)  # (B, 4Hp)
        i_g = jax.nn.sigmoid(gates[:, 0 * Hp:1 * Hp])
        f_g = jax.nn.sigmoid(gates[:, 1 * Hp:2 * Hp])
        g_g = jnp.tanh(gates[:, 2 * Hp:3 * Hp])
        o_g = jax.nn.sigmoid(gates[:, 3 * Hp:4 * Hp])
        c = f_g * c + i_g * g_g
        h = o_g * jnp.tanh(c)
        # ReLU(lstm_out) fused into the store; dropout == identity in eval mode.
        h_all_sc[t] = jnp.maximum(h, 0.0)

    # (3) fc1 (+bias, +ReLU) for all timesteps at once: one big MXU matmul.
    f1 = jnp.maximum(
        jnp.dot(h_all_sc[...].reshape(T * B, Hp), w1_ref[...],
                preferred_element_type=jnp.float32) + b1_ref[...], 0.0)  # (T*B, F1p)
    f1 = f1.reshape(T, B, F1p)

    # (4) Flatten + fc2 fused as a batched matmul over t followed by a reduce:
    #     logits[b, o] = sum_t f1[t, b, :] @ w2r[t, :, o]
    per_t = jax.lax.dot_general(
        f1, w2r_ref[...],
        dimension_numbers=(((2,), (1,)), ((0,), (0,))),
        preferred_element_type=jnp.float32)                            # (T, B, O)
    logits = jnp.sum(per_t, axis=0) + b2_ref[...]                      # (B, O)

    # (5) Softmax (exact reciprocal so rows sum to 1 within 1e-5).
    m = jnp.max(logits, axis=-1, keepdims=True)
    e = jnp.exp(logits - m)
    out_ref[...] = e * pl.reciprocal(jnp.sum(e, axis=-1, keepdims=True))


def lstm_model_forward(x, params):
    """Mirrors LSTM.forward (inference mode)."""
    w_ih = params['w_ih']                     # (4H, D) as in PyTorch
    input_dim = w_ih.shape[1]
    if x.shape[-1] != input_dim:              # same check as the PyTorch forward
        x = jnp.transpose(x, (0, 2, 1))       # (B, T, D)
    B, T, D = x.shape
    assert T == SEQ_LEN, "fc2 expects seq_len == 23"
    H, Hp, F1p = HIDDEN, HPAD, FC1_PAD
    O = params['w_fc2'].shape[0]
    Bp = max(8, ((B + 7) // 8) * 8)           # pad batch to sublane multiple

    # time-major, batch-padded, flattened to a lane-dense 2-D slab
    x_tbd = jnp.transpose(x, (1, 0, 2)).astype(jnp.float32)            # (T, B, D)
    x_tbd = jnp.pad(x_tbd, ((0, 0), (0, Bp - B), (0, 0)))              # (T, Bp, D)
    x2d = x_tbd.reshape(T * Bp, D)

    def pad_gate_weight(w, in_dim):
        # w: (4H, in_dim) PyTorch layout [i, f, g, o] -> (in_dim, 4*Hp) with
        # gate k occupying columns [k*Hp, k*Hp + H), zeros elsewhere.
        wt = jnp.transpose(w).astype(jnp.float32).reshape(in_dim, 4, H)
        wp = jnp.zeros((in_dim, 4, Hp), jnp.float32).at[:, :, :H].set(wt)
        return wp.reshape(in_dim, 4 * Hp)

    wih_p = pad_gate_weight(w_ih, D)                                   # (D, 4Hp)
    whh_cols = pad_gate_weight(params['w_hh'], H)                      # (H, 4Hp)
    whh_p = jnp.zeros((Hp, 4 * Hp), jnp.float32).at[:H, :].set(whh_cols)

    b = (params['b_ih'] + params['b_hh']).astype(jnp.float32).reshape(4, H)
    b_p = jnp.zeros((4, Hp), jnp.float32).at[:, :H].set(b).reshape(1, 4 * Hp)

    w1t = jnp.transpose(params['w_fc1']).astype(jnp.float32)           # (H, 8)
    w1_p = jnp.zeros((Hp, F1p), jnp.float32).at[:H, :FC1_OUT].set(w1t)
    b1_p = jnp.zeros((1, F1p), jnp.float32).at[0, :FC1_OUT].set(
        params['b_fc1'].astype(jnp.float32))

    # fc2.weight: (O, T*8); flatten order per batch row is (t, k) row-major.
    w2 = params['w_fc2'].astype(jnp.float32).reshape(O, T, FC1_OUT)
    w2r = jnp.transpose(w2, (1, 2, 0))                                 # (T, 8, O)
    w2r_p = jnp.zeros((T, F1p, O), jnp.float32).at[:, :FC1_OUT, :].set(w2r)
    b2 = params['b_fc2'].astype(jnp.float32).reshape(1, O)

    vmem = pl.BlockSpec(memory_space=pltpu.MemorySpace.VMEM)
    out = pl.pallas_call(
        lstm_forward_kernel,
        out_shape=jax.ShapeDtypeStruct((Bp, O), jnp.float32),
        in_specs=[vmem] * 8,
        out_specs=vmem,
        scratch_shapes=[pltpu.VMEM((T, Bp, 4 * Hp), jnp.float32),  # x projection
                        pltpu.VMEM((T, Bp, Hp), jnp.float32)],     # all relu(h_t)
        compiler_params=pltpu.CompilerParams(vmem_limit_bytes=32 * 1024 * 1024),
    )(x2d, wih_p, whh_p, b_p, w1_p, b1_p, w2r_p, b2)
    return out[:B]


def reference_forward(x, params):
    """Pure-JAX reference (mirrors the PyTorch module in eval mode)."""
    w_ih = params['w_ih']
    if x.shape[-1] != w_ih.shape[1]:
        x = jnp.transpose(x, (0, 2, 1))
    x = x.astype(jnp.float32)
    B, T, D = x.shape
    H = HIDDEN
    h = jnp.zeros((B, H), jnp.float32)
    c = jnp.zeros((B, H), jnp.float32)
    b = params['b_ih'] + params['b_hh']
    outs = []
    for t in range(T):
        g = x[:, t, :] @ w_ih.T + h @ params['w_hh'].T + b
        i = jax.nn.sigmoid(g[:, :H])
        f = jax.nn.sigmoid(g[:, H:2 * H])
        gg = jnp.tanh(g[:, 2 * H:3 * H])
        o = jax.nn.sigmoid(g[:, 3 * H:])
        c = f * c + i * gg
        h = o * jnp.tanh(c)
        outs.append(h)
    lstm_out = jnp.stack(outs, axis=1)                                 # (B, T, H)
    z = jnp.maximum(lstm_out, 0.0)
    f1 = jnp.maximum(z @ params['w_fc1'].T + params['b_fc1'], 0.0)     # (B, T, 8)
    flat = f1.reshape(B, T * FC1_OUT)
    logits = flat @ params['w_fc2'].T + params['b_fc2']
    return jax.nn.softmax(logits, axis=1)


def init_params(key, input_dim, output_dim, hidden_dim=HIDDEN):
    """Deterministic init matching LSTM.random_init: U(-0.1, 0.1) weights, zero biases."""
    ks = jax.random.split(key, 4)
    u = lambda k, shape: jax.random.uniform(k, shape, jnp.float32, -0.1, 0.1)
    return {
        'w_ih': u(ks[0], (4 * hidden_dim, input_dim)),
        'w_hh': u(ks[1], (4 * hidden_dim, hidden_dim)),
        'b_ih': jnp.zeros((4 * hidden_dim,), jnp.float32),
        'b_hh': jnp.zeros((4 * hidden_dim,), jnp.float32),
        'w_fc1': u(ks[2], (FC1_OUT, hidden_dim)),
        'b_fc1': jnp.zeros((FC1_OUT,), jnp.float32),
        'w_fc2': u(ks[3], (output_dim, FC1_OUT * SEQ_LEN)),
        'b_fc2': jnp.zeros((output_dim,), jnp.float32),
    }


if __name__ == "__main__":
    key = jax.random.PRNGKey(0)
    pk, xk = jax.random.split(key)

    input_dim, output_dim, batch = 4, 3, 2
    params = init_params(pk, input_dim, output_dim)

    # Channels-first input (B, input_dim, T) — forward transposes it, like PyTorch.
    x = jax.random.normal(xk, (batch, input_dim, SEQ_LEN), jnp.float32)

    out = lstm_model_forward(x, params)
    out = jax.block_until_ready(out)

    ref = reference_forward(x, params)

    assert out.shape == (batch, output_dim)
    assert bool(jnp.all(jnp.isfinite(out)))
    assert bool(jnp.allclose(jnp.sum(out, axis=-1), 1.0, atol=1e-5))
    assert bool(jnp.allclose(out, ref, atol=5e-4))
    print("KERNEL_OK")
</pallas_src>

<mosaic_0001>
module attributes {stable_mosaic.version = 11 : i64} {
  func.func @lstm_forward_kernel(%arg0: memref<184x4xf32, #tpu.memory_space<vmem>>, %arg1: memref<4x512xf32, #tpu.memory_space<vmem>>, %arg2: memref<128x512xf32, #tpu.memory_space<vmem>>, %arg3: memref<1x512xf32, #tpu.memory_space<vmem>>, %arg4: memref<128x128xf32, #tpu.memory_space<vmem>>, %arg5: memref<1x128xf32, #tpu.memory_space<vmem>>, %arg6: memref<23x128x3xf32, #tpu.memory_space<vmem>>, %arg7: memref<1x3xf32, #tpu.memory_space<vmem>>, %arg8: memref<8x3xf32, #tpu.memory_space<vmem>>, %arg9: memref<23x8x512xf32, #tpu.memory_space<vmem>>, %arg10: memref<23x8x128xf32, #tpu.memory_space<vmem>>) attributes {dimension_semantics = [], scalar_prefetch = 0 : i64, scratch_operands = 2 : i64, tpu.core_type = #tpu.core_type<tc>} {
    %c0 = arith.constant 0 : index
    %c0_0 = arith.constant 0 : index
    %0 = vector.load %arg0[%c0, %c0_0] : memref<184x4xf32, #tpu.memory_space<vmem>>, vector<184x4xf32>
    %c0_1 = arith.constant 0 : index
    %c0_2 = arith.constant 0 : index
    %1 = vector.load %arg1[%c0_1, %c0_2] : memref<4x512xf32, #tpu.memory_space<vmem>>, vector<4x512xf32>
    %cst = arith.constant dense<0.000000e+00> : vector<184x512xf32>
    %2 = tpu.matmul %0, %1, %cst {dimension_numbers = #tpu.dot_dimension_numbers<[1], [0], [0], [1], [0, 0, 1, 1], [], []>} : vector<184x4xf32>, vector<4x512xf32>, vector<184x512xf32> -> vector<184x512xf32>
    %c0_3 = arith.constant 0 : index
    %c0_4 = arith.constant 0 : index
    %3 = vector.load %arg3[%c0_3, %c0_4] : memref<1x512xf32, #tpu.memory_space<vmem>>, vector<1x512xf32>
    %4 = vector.broadcast %3 : vector<1x512xf32> to vector<184x512xf32>
    %5 = arith.addf %2, %4 : vector<184x512xf32>
    %6 = vector.shape_cast %5 : vector<184x512xf32> to vector<23x8x512xf32>
    %c0_5 = arith.constant 0 : index
    %c0_6 = arith.constant 0 : index
    %c0_7 = arith.constant 0 : index
    %7 = vector.load %arg9[%c0_5, %c0_6, %c0_7] : memref<23x8x512xf32, #tpu.memory_space<vmem>>, vector<23x8x512xf32>
    tpu.vector_store %arg9[%c0_5, %c0_6, %c0_7], %6 {strides = array<i32>} : memref<23x8x512xf32, #tpu.memory_space<vmem>>, vector<23x8x512xf32>,
    %cst_8 = arith.constant 0.000000e+00 : f32
    %8 = vector.broadcast %cst_8 : f32 to vector<8x128xf32>
    %cst_9 = arith.constant 0.000000e+00 : f32
    %9 = vector.broadcast %cst_9 : f32 to vector<8x128xf32>
    %c0_10 = arith.constant 0 : index
    %c0_11 = arith.constant 0 : index
    %c0_12 = arith.constant 0 : index
    %10 = vector.load %arg9[%c0_10, %c0_11, %c0_12] : memref<23x8x512xf32, #tpu.memory_space<vmem>>, vector<1x8x512xf32>
    %11 = vector.shape_cast %10 : vector<1x8x512xf32> to vector<8x512xf32>
    %c0_13 = arith.constant 0 : index
    %c0_14 = arith.constant 0 : index
    %12 = vector.load %arg2[%c0_13, %c0_14] : memref<128x512xf32, #tpu.memory_space<vmem>>, vector<128x512xf32>
    %cst_15 = arith.constant dense<0.000000e+00> : vector<8x512xf32>
    %13 = tpu.matmul %8, %12, %cst_15 {dimension_numbers = #tpu.dot_dimension_numbers<[1], [0], [0], [1], [0, 0, 1, 1], [], []>} : vector<8x128xf32>, vector<128x512xf32>, vector<8x512xf32> -> vector<8x512xf32>
    %14 = arith.addf %11, %13 : vector<8x512xf32>
    %15 = vector.extract_strided_slice %14 {offsets = [0, 0], sizes = [8, 128], strides = [1, 1]} : vector<8x512xf32> to vector<8x128xf32>
    %16 = arith.negf %15 : vector<8x128xf32>
    %17 = math.exp %16 : vector<8x128xf32>
    %cst_16 = arith.constant 1.000000e+00 : f32
    %18 = vector.broadcast %cst_16 : f32 to vector<8x128xf32>
    %19 = arith.addf %18, %17 : vector<8x128xf32>
    %20 = arith.divf %18, %19 : vector<8x128xf32>
    %21 = vector.extract_strided_slice %14 {offsets = [0, 128], sizes = [8, 128], strides = [1, 1]} : vector<8x512xf32> to vector<8x128xf32>
    %22 = arith.negf %21 : vector<8x128xf32>
    %23 = math.exp %22 : vector<8x128xf32>
    %cst_17 = arith.constant 1.000000e+00 : f32
    %24 = vector.broadcast %cst_17 : f32 to vector<8x128xf32>
    %25 = arith.addf %24, %23 : vector<8x128xf32>
    %26 = arith.divf %24, %25 : vector<8x128xf32>
    %27 = vector.extract_strided_slice %14 {offsets = [0, 256], sizes = [8, 128], strides = [1, 1]} : vector<8x512xf32> to vector<8x128xf32>
    %28 = math.tanh %27 : vector<8x128xf32>
    %29 = vector.extract_strided_slice %14 {offsets = [0, 384], sizes = [8, 128], strides = [1, 1]} : vector<8x512xf32> to vector<8x128xf32>
    %30 = arith.negf %29 : vector<8x128xf32>
    %31 = math.exp %30 : vector<8x128xf32>
    %cst_18 = arith.constant 1.000000e+00 : f32
    %32 = vector.broadcast %cst_18 : f32 to vector<8x128xf32>
    %33 = arith.addf %32, %31 : vector<8x128xf32>
    %34 = arith.divf %32, %33 : vector<8x128xf32>
    %35 = arith.mulf %26, %9 : vector<8x128xf32>
    %36 = arith.mulf %20, %28 : vector<8x128xf32>
    %37 = arith.addf %35, %36 : vector<8x128xf32>
    %38 = math.tanh %37 : vector<8x128xf32>
    %39 = arith.mulf %34, %38 : vector<8x128xf32>
    %cst_19 = arith.constant 0.000000e+00 : f32
    %40 = vector.broadcast %cst_19 : f32 to vector<8x128xf32>
    %41 = arith.maximumf %39, %40 : vector<8x128xf32>
    %c0_20 = arith.constant 0 : index
    %c0_21 = arith.constant 0 : index
    %c0_22 = arith.constant 0 : index
    %42 = vector.load %arg10[%c0_20, %c0_21, %c0_22] : memref<23x8x128xf32, #tpu.memory_space<vmem>>, vector<1x8x128xf32>
    %43 = vector.shape_cast %42 : vector<1x8x128xf32> to vector<8x128xf32>
    %44 = vector.shape_cast %41 : vector<8x128xf32> to vector<1x8x128xf32>
    tpu.vector_store %arg10[%c0_20, %c0_21, %c0_22], %44 {strides = array<i32>} : memref<23x8x128xf32, #tpu.memory_space<vmem>>, vector<1x8x128xf32>,
    %c1 = arith.constant 1 : index
    %c0_23 = arith.constant 0 : index
    %c0_24 = arith.constant 0 : index
    %45 = vector.load %arg9[%c1, %c0_23, %c0_24] : memref<23x8x512xf32, #tpu.memory_space<vmem>>, vector<1x8x512xf32>
    %46 = vector.shape_cast %45 : vector<1x8x512xf32> to vector<8x512xf32>
    %c0_25 = arith.constant 0 : index
    %c0_26 = arith.constant 0 : index
    %47 = vector.load %arg2[%c0_25, %c0_26] : memref<128x512xf32, #tpu.memory_space<vmem>>, vector<128x512xf32>
    %cst_27 = arith.constant dense<0.000000e+00> : vector<8x512xf32>
    %48 = tpu.matmul %39, %47, %cst_27 {dimension_numbers = #tpu.dot_dimension_numbers<[1], [0], [0], [1], [0, 0, 1, 1], [], []>} : vector<8x128xf32>, vector<128x512xf32>, vector<8x512xf32> -> vector<8x512xf32>
    %49 = arith.addf %46, %48 : vector<8x512xf32>
    %50 = vector.extract_strided_slice %49 {offsets = [0, 0], sizes = [8, 128], strides = [1, 1]} : vector<8x512xf32> to vector<8x128xf32>
    %51 = arith.negf %50 : vector<8x128xf32>
    %52 = math.exp %51 : vector<8x128xf32>
    %cst_28 = arith.constant 1.000000e+00 : f32
    %53 = vector.broadcast %cst_28 : f32 to vector<8x128xf32>
    %54 = arith.addf %53, %52 : vector<8x128xf32>
    %55 = arith.divf %53, %54 : vector<8x128xf32>
    %56 = vector.extract_strided_slice %49 {offsets = [0, 128], sizes = [8, 128], strides = [1, 1]} : vector<8x512xf32> to vector<8x128xf32>
    %57 = arith.negf %56 : vector<8x128xf32>
    %58 = math.exp %57 : vector<8x128xf32>
    %cst_29 = arith.constant 1.000000e+00 : f32
    %59 = vector.broadcast %cst_29 : f32 to vector<8x128xf32>
    %60 = arith.addf %59, %58 : vector<8x128xf32>
    %61 = arith.divf %59, %60 : vector<8x128xf32>
    %62 = vector.extract_strided_slice %49 {offsets = [0, 256], sizes = [8, 128], strides = [1, 1]} : vector<8x512xf32> to vector<8x128xf32>
    %63 = math.tanh %62 : vector<8x128xf32>
    %64 = vector.extract_strided_slice %49 {offsets = [0, 384], sizes = [8, 128], strides = [1, 1]} : vector<8x512xf32> to vector<8x128xf32>
    %65 = arith.negf %64 : vector<8x128xf32>
    %66 = math.exp %65 : vector<8x128xf32>
    %cst_30 = arith.constant 1.000000e+00 : f32
    %67 = vector.broadcast %cst_30 : f32 to vector<8x128xf32>
    %68 = arith.addf %67, %66 : vector<8x128xf32>
    %69 = arith.divf %67, %68 : vector<8x128xf32>
    %70 = arith.mulf %61, %37 : vector<8x128xf32>
    %71 = arith.mulf %55, %63 : vector<8x128xf32>
    %72 = arith.addf %70, %71 : vector<8x128xf32>
    %73 = math.tanh %72 : vector<8x128xf32>
    %74 = arith.mulf %69, %73 : vector<8x128xf32>
    %cst_31 = arith.constant 0.000000e+00 : f32
    %75 = vector.broadcast %cst_31 : f32 to vector<8x128xf32>
    %76 = arith.maximumf %74, %75 : vector<8x128xf32>
    %c1_32 = arith.constant 1 : index
    %c0_33 = arith.constant 0 : index
    %c0_34 = arith.constant 0 : index
    %77 = vector.load %arg10[%c1_32, %c0_33, %c0_34] : memref<23x8x128xf32, #tpu.memory_space<vmem>>, vector<1x8x128xf32>
    %78 = vector.shape_cast %77 : vector<1x8x128xf32> to vector<8x128xf32>
    %79 = vector.shape_cast %76 : vector<8x128xf32> to vector<1x8x128xf32>
    tpu.vector_store %arg10[%c1_32, %c0_33, %c0_34], %79 {strides = array<i32>} : memref<23x8x128xf32, #tpu.memory_space<vmem>>, vector<1x8x128xf32>,
    %c2 = arith.constant 2 : index
    %c0_35 = arith.constant 0 : index
    %c0_36 = arith.constant 0 : index
    %80 = vector.load %arg9[%c2, %c0_35, %c0_36] : memref<23x8x512xf32, #tpu.memory_space<vmem>>, vector<1x8x512xf32>
    %81 = vector.shape_cast %80 : vector<1x8x512xf32> to vector<8x512xf32>
    %c0_37 = arith.constant 0 : index
    %c0_38 = arith.constant 0 : index
    %82 = vector.load %arg2[%c0_37, %c0_38] : memref<128x512xf32, #tpu.memory_space<vmem>>, vector<128x512xf32>
    %cst_39 = arith.constant dense<0.000000e+00> : vector<8x512xf32>
    %83 = tpu.matmul %74, %82, %cst_39 {dimension_numbers = #tpu.dot_dimension_numbers<[1], [0], [0], [1], [0, 0, 1, 1], [], []>} : vector<8x128xf32>, vector<128x512xf32>, vector<8x512xf32> -> vector<8x512xf32>
    %84 = arith.addf %81, %83 : vector<8x512xf32>
    %85 = vector.extract_strided_slice %84 {offsets = [0, 0], sizes = [8, 128], strides = [1, 1]} : vector<8x512xf32> to vector<8x128xf32>
    %86 = arith.negf %85 : vector<8x128xf32>
    %87 = math.exp %86 : vector<8x128xf32>
    %cst_40 = arith.constant 1.000000e+00 : f32
    %88 = vector.broadcast %cst_40 : f32 to vector<8x128xf32>
    %89 = arith.addf %88, %87 : vector<8x128xf32>
    %90 = arith.divf %88, %89 : vector<8x128xf32>
    %91 = vector.extract_strided_slice %84 {offsets = [0, 128], sizes = [8, 128], strides = [1, 1]} : vector<8x512xf32> to vector<8x128xf32>
    %92 = arith.negf %91 : vector<8x128xf32>
    %93 = math.exp %92 : vector<8x128xf32>
    %cst_41 = arith.constant 1.000000e+00 : f32
    %94 = vector.broadcast %cst_41 : f32 to vector<8x128xf32>
    %95 = arith.addf %94, %93 : vector<8x128xf32>
    %96 = arith.divf %94, %95 : vector<8x128xf32>
    %97 = vector.extract_strided_slice %84 {offsets = [0, 256], sizes = [8, 128], strides = [1, 1]} : vector<8x512xf32> to vector<8x128xf32>
    %98 = math.tanh %97 : vector<8x128xf32>
    %99 = vector.extract_strided_slice %84 {offsets = [0, 384], sizes = [8, 128], strides = [1, 1]} : vector<8x512xf32> to vector<8x128xf32>
    %100 = arith.negf %99 : vector<8x128xf32>
    %101 = math.exp %100 : vector<8x128xf32>
    %cst_42 = arith.constant 1.000000e+00 : f32
    %102 = vector.broadcast %cst_42 : f32 to vector<8x128xf32>
    %103 = arith.addf %102, %101 : vector<8x128xf32>
    %104 = arith.divf %102, %103 : vector<8x128xf32>
    %105 = arith.mulf %96, %72 : vector<8x128xf32>
    %106 = arith.mulf %90, %98 : vector<8x128xf32>
    %107 = arith.addf %105, %106 : vector<8x128xf32>
    %108 = math.tanh %107 : vector<8x128xf32>
    %109 = arith.mulf %104, %108 : vector<8x128xf32>
    %cst_43 = arith.constant 0.000000e+00 : f32
    %110 = vector.broadcast %cst_43 : f32 to vector<8x128xf32>
    %111 = arith.maximumf %109, %110 : vector<8x128xf32>
    %c2_44 = arith.constant 2 : index
    %c0_45 = arith.constant 0 : index
    %c0_46 = arith.constant 0 : index
    %112 = vector.load %arg10[%c2_44, %c0_45, %c0_46] : memref<23x8x128xf32, #tpu.memory_space<vmem>>, vector<1x8x128xf32>
    %113 = vector.shape_cast %112 : vector<1x8x128xf32> to vector<8x128xf32>
    %114 = vector.shape_cast %111 : vector<8x128xf32> to vector<1x8x128xf32>
    tpu.vector_store %arg10[%c2_44, %c0_45, %c0_46], %114 {strides = array<i32>} : memref<23x8x128xf32, #tpu.memory_space<vmem>>, vector<1x8x128xf32>,
    %c3 = arith.constant 3 : index
    %c0_47 = arith.constant 0 : index
    %c0_48 = arith.constant 0 : index
    %115 = vector.load %arg9[%c3, %c0_47, %c0_48] : memref<23x8x512xf32, #tpu.memory_space<vmem>>, vector<1x8x512xf32>
    %116 = vector.shape_cast %115 : vector<1x8x512xf32> to vector<8x512xf32>
    %c0_49 = arith.constant 0 : index
    %c0_50 = arith.constant 0 : index
    %117 = vector.load %arg2[%c0_49, %c0_50] : memref<128x512xf32, #tpu.memory_space<vmem>>, vector<128x512xf32>
    %cst_51 = arith.constant dense<0.000000e+00> : vector<8x512xf32>
    %118 = tpu.matmul %109, %117, %cst_51 {dimension_numbers = #tpu.dot_dimension_numbers<[1], [0], [0], [1], [0, 0, 1, 1], [], []>} : vector<8x128xf32>, vector<128x512xf32>, vector<8x512xf32> -> vector<8x512xf32>
    %119 = arith.addf %116, %118 : vector<8x512xf32>
    %120 = vector.extract_strided_slice %119 {offsets = [0, 0], sizes = [8, 128], strides = [1, 1]} : vector<8x512xf32> to vector<8x128xf32>
    %121 = arith.negf %120 : vector<8x128xf32>
    %122 = math.exp %121 : vector<8x128xf32>
    %cst_52 = arith.constant 1.000000e+00 : f32
    %123 = vector.broadcast %cst_52 : f32 to vector<8x128xf32>
    %124 = arith.addf %123, %122 : vector<8x128xf32>
    %125 = arith.divf %123, %124 : vector<8x128xf32>
    %126 = vector.extract_strided_slice %119 {offsets = [0, 128], sizes = [8, 128], strides = [1, 1]} : vector<8x512xf32> to vector<8x128xf32>
    %127 = arith.negf %126 : vector<8x128xf32>
    %128 = math.exp %127 : vector<8x128xf32>
    %cst_53 = arith.constant 1.000000e+00 : f32
    %129 = vector.broadcast %cst_53 : f32 to vector<8x128xf32>
    %130 = arith.addf %129, %128 : vector<8x128xf32>
    %131 = arith.divf %129, %130 : vector<8x128xf32>
    %132 = vector.extract_strided_slice %119 {offsets = [0, 256], sizes = [8, 128], strides = [1, 1]} : vector<8x512xf32> to vector<8x128xf32>
    %133 = math.tanh %132 : vector<8x128xf32>
    %134 = vector.extract_strided_slice %119 {offsets = [0, 384], sizes = [8, 128], strides = [1, 1]} : vector<8x512xf32> to vector<8x128xf32>
    %135 = arith.negf %134 : vector<8x128xf32>
    %136 = math.exp %135 : vector<8x128xf32>
    %cst_54 = arith.constant 1.000000e+00 : f32
    %137 = vector.broadcast %cst_54 : f32 to vector<8x128xf32>
    %138 = arith.addf %137, %136 : vector<8x128xf32>
    %139 = arith.divf %137, %138 : vector<8x128xf32>
    %140 = arith.mulf %131, %107 : vector<8x128xf32>
    %141 = arith.mulf %125, %133 : vector<8x128xf32>
    %142 = arith.addf %140, %141 : vector<8x128xf32>
    %143 = math.tanh %142 : vector<8x128xf32>
    %144 = arith.mulf %139, %143 : vector<8x128xf32>
    %cst_55 = arith.constant 0.000000e+00 : f32
    %145 = vector.broadcast %cst_55 : f32 to vector<8x128xf32>
    %146 = arith.maximumf %144, %145 : vector<8x128xf32>
    %c3_56 = arith.constant 3 : index
    %c0_57 = arith.constant 0 : index
    %c0_58 = arith.constant 0 : index
    %147 = vector.load %arg10[%c3_56, %c0_57, %c0_58] : memref<23x8x128xf32, #tpu.memory_space<vmem>>, vector<1x8x128xf32>
    %148 = vector.shape_cast %147 : vector<1x8x128xf32> to vector<8x128xf32>
    %149 = vector.shape_cast %146 : vector<8x128xf32> to vector<1x8x128xf32>
    tpu.vector_store %arg10[%c3_56, %c0_57, %c0_58], %149 {strides = array<i32>} : memref<23x8x128xf32, #tpu.memory_space<vmem>>, vector<1x8x128xf32>,
    %c4 = arith.constant 4 : index
    %c0_59 = arith.constant 0 : index
    %c0_60 = arith.constant 0 : index
    %150 = vector.load %arg9[%c4, %c0_59, %c0_60] : memref<23x8x512xf32, #tpu.memory_space<vmem>>, vector<1x8x512xf32>
    %151 = vector.shape_cast %150 : vector<1x8x512xf32> to vector<8x512xf32>
    %c0_61 = arith.constant 0 : index
    %c0_62 = arith.constant 0 : index
    %152 = vector.load %arg2[%c0_61, %c0_62] : memref<128x512xf32, #tpu.memory_space<vmem>>, vector<128x512xf32>
    %cst_63 = arith.constant dense<0.000000e+00> : vector<8x512xf32>
    %153 = tpu.matmul %144, %152, %cst_63 {dimension_numbers = #tpu.dot_dimension_numbers<[1], [0], [0], [1], [0, 0, 1, 1], [], []>} : vector<8x128xf32>, vector<128x512xf32>, vector<8x512xf32> -> vector<8x512xf32>
    %154 = arith.addf %151, %153 : vector<8x512xf32>
    %155 = vector.extract_strided_slice %154 {offsets = [0, 0], sizes = [8, 128], strides = [1, 1]} : vector<8x512xf32> to vector<8x128xf32>
    %156 = arith.negf %155 : vector<8x128xf32>
    %157 = math.exp %156 : vector<8x128xf32>
    %cst_64 = arith.constant 1.000000e+00 : f32
    %158 = vector.broadcast %cst_64 : f32 to vector<8x128xf32>
    %159 = arith.addf %158, %157 : vector<8x128xf32>
    %160 = arith.divf %158, %159 : vector<8x128xf32>
    %161 = vector.extract_strided_slice %154 {offsets = [0, 128], sizes = [8, 128], strides = [1, 1]} : vector<8x512xf32> to vector<8x128xf32>
    %162 = arith.negf %161 : vector<8x128xf32>
    %163 = math.exp %162 : vector<8x128xf32>
    %cst_65 = arith.constant 1.000000e+00 : f32
    %164 = vector.broadcast %cst_65 : f32 to vector<8x128xf32>
    %165 = arith.addf %164, %163 : vector<8x128xf32>
    %166 = arith.divf %164, %165 : vector<8x128xf32>
    %167 = vector.extract_strided_slice %154 {offsets = [0, 256], sizes = [8, 128], strides = [1, 1]} : vector<8x512xf32> to vector<8x128xf32>
    %168 = math.tanh %167 : vector<8x128xf32>
    %169 = vector.extract_strided_slice %154 {offsets = [0, 384], sizes = [8, 128], strides = [1, 1]} : vector<8x512xf32> to vector<8x128xf32>
    %170 = arith.negf %169 : vector<8x128xf32>
    %171 = math.exp %170 : vector<8x128xf32>
    %cst_66 = arith.constant 1.000000e+00 : f32
    %172 = vector.broadcast %cst_66 : f32 to vector<8x128xf32>
    %173 = arith.addf %172, %171 : vector<8x128xf32>
    %174 = arith.divf %172, %173 : vector<8x128xf32>
    %175 = arith.mulf %166, %142 : vector<8x128xf32>
    %176 = arith.mulf %160, %168 : vector<8x128xf32>
    %177 = arith.addf %175, %176 : vector<8x128xf32>
    %178 = math.tanh %177 : vector<8x128xf32>
    %179 = arith.mulf %174, %178 : vector<8x128xf32>
    %cst_67 = arith.constant 0.000000e+00 : f32
    %180 = vector.broadcast %cst_67 : f32 to vector<8x128xf32>
    %181 = arith.maximumf %179, %180 : vector<8x128xf32>
    %c4_68 = arith.constant 4 : index
    %c0_69 = arith.constant 0 : index
    %c0_70 = arith.constant 0 : index
    %182 = vector.load %arg10[%c4_68, %c0_69, %c0_70] : memref<23x8x128xf32, #tpu.memory_space<vmem>>, vector<1x8x128xf32>
    %183 = vector.shape_cast %182 : vector<1x8x128xf32> to vector<8x128xf32>
    %184 = vector.shape_cast %181 : vector<8x128xf32> to vector<1x8x128xf32>
    tpu.vector_store %arg10[%c4_68, %c0_69, %c0_70], %184 {strides = array<i32>} : memref<23x8x128xf32, #tpu.memory_space<vmem>>, vector<1x8x128xf32>,
    %c5 = arith.constant 5 : index
    %c0_71 = arith.constant 0 : index
    %c0_72 = arith.constant 0 : index
    %185 = vector.load %arg9[%c5, %c0_71, %c0_72] : memref<23x8x512xf32, #tpu.memory_space<vmem>>, vector<1x8x512xf32>
    %186 = vector.shape_cast %185 : vector<1x8x512xf32> to vector<8x512xf32>
    %c0_73 = arith.constant 0 : index
    %c0_74 = arith.constant 0 : index
    %187 = vector.load %arg2[%c0_73, %c0_74] : memref<128x512xf32, #tpu.memory_space<vmem>>, vector<128x512xf32>
    %cst_75 = arith.constant dense<0.000000e+00> : vector<8x512xf32>
    %188 = tpu.matmul %179, %187, %cst_75 {dimension_numbers = #tpu.dot_dimension_numbers<[1], [0], [0], [1], [0, 0, 1, 1], [], []>} : vector<8x128xf32>, vector<128x512xf32>, vector<8x512xf32> -> vector<8x512xf32>
    %189 = arith.addf %186, %188 : vector<8x512xf32>
    %190 = vector.extract_strided_slice %189 {offsets = [0, 0], sizes = [8, 128], strides = [1, 1]} : vector<8x512xf32> to vector<8x128xf32>
    %191 = arith.negf %190 : vector<8x128xf32>
    %192 = math.exp %191 : vector<8x128xf32>
    %cst_76 = arith.constant 1.000000e+00 : f32
    %193 = vector.broadcast %cst_76 : f32 to vector<8x128xf32>
    %194 = arith.addf %193, %192 : vector<8x128xf32>
    %195 = arith.divf %193, %194 : vector<8x128xf32>
    %196 = vector.extract_strided_slice %189 {offsets = [0, 128], sizes = [8, 128], strides = [1, 1]} : vector<8x512xf32> to vector<8x128xf32>
    %197 = arith.negf %196 : vector<8x128xf32>
    %198 = math.exp %197 : vector<8x128xf32>
    %cst_77 = arith.constant 1.000000e+00 : f32
    %199 = vector.broadcast %cst_77 : f32 to vector<8x128xf32>
    %200 = arith.addf %199, %198 : vector<8x128xf32>
    %201 = arith.divf %199, %200 : vector<8x128xf32>
    %202 = vector.extract_strided_slice %189 {offsets = [0, 256], sizes = [8, 128], strides = [1, 1]} : vector<8x512xf32> to vector<8x128xf32>
    %203 = math.tanh %202 : vector<8x128xf32>
    %204 = vector.extract_strided_slice %189 {offsets = [0, 384], sizes = [8, 128], strides = [1, 1]} : vector<8x512xf32> to vector<8x128xf32>
    %205 = arith.negf %204 : vector<8x128xf32>
    %206 = math.exp %205 : vector<8x128xf32>
    %cst_78 = arith.constant 1.000000e+00 : f32
    %207 = vector.broadcast %cst_78 : f32 to vector<8x128xf32>
    %208 = arith.addf %207, %206 : vector<8x128xf32>
    %209 = arith.divf %207, %208 : vector<8x128xf32>
    %210 = arith.mulf %201, %177 : vector<8x128xf32>
    %211 = arith.mulf %195, %203 : vector<8x128xf32>
    %212 = arith.addf %210, %211 : vector<8x128xf32>
    %213 = math.tanh %212 : vector<8x128xf32>
    %214 = arith.mulf %209, %213 : vector<8x128xf32>
    %cst_79 = arith.constant 0.000000e+00 : f32
    %215 = vector.broadcast %cst_79 : f32 to vector<8x128xf32>
    %216 = arith.maximumf %214, %215 : vector<8x128xf32>
    %c5_80 = arith.constant 5 : index
    %c0_81 = arith.constant 0 : index
    %c0_82 = arith.constant 0 : index
    %217 = vector.load %arg10[%c5_80, %c0_81, %c0_82] : memref<23x8x128xf32, #tpu.memory_space<vmem>>, vector<1x8x128xf32>
    %218 = vector.shape_cast %217 : vector<1x8x128xf32> to vector<8x128xf32>
    %219 = vector.shape_cast %216 : vector<8x128xf32> to vector<1x8x128xf32>
    tpu.vector_store %arg10[%c5_80, %c0_81, %c0_82], %219 {strides = array<i32>} : memref<23x8x128xf32, #tpu.memory_space<vmem>>, vector<1x8x128xf32>,
    %c6 = arith.constant 6 : index
    %c0_83 = arith.constant 0 : index
    %c0_84 = arith.constant 0 : index
    %220 = vector.load %arg9[%c6, %c0_83, %c0_84] : memref<23x8x512xf32, #tpu.memory_space<vmem>>, vector<1x8x512xf32>
    %221 = vector.shape_cast %220 : vector<1x8x512xf32> to vector<8x512xf32>
    %c0_85 = arith.constant 0 : index
    %c0_86 = arith.constant 0 : index
    %222 = vector.load %arg2[%c0_85, %c0_86] : memref<128x512xf32, #tpu.memory_space<vmem>>, vector<128x512xf32>
    %cst_87 = arith.constant dense<0.000000e+00> : vector<8x512xf32>
    %223 = tpu.matmul %214, %222, %cst_87 {dimension_numbers = #tpu.dot_dimension_numbers<[1], [0], [0], [1], [0, 0, 1, 1], [], []>} : vector<8x128xf32>, vector<128x512xf32>, vector<8x512xf32> -> vector<8x512xf32>
    %224 = arith.addf %221, %223 : vector<8x512xf32>
    %225 = vector.extract_strided_slice %224 {offsets = [0, 0], sizes = [8, 128], strides = [1, 1]} : vector<8x512xf32> to vector<8x128xf32>
    %226 = arith.negf %225 : vector<8x128xf32>
    %227 = math.exp %226 : vector<8x128xf32>
    %cst_88 = arith.constant 1.000000e+00 : f32
    %228 = vector.broadcast %cst_88 : f32 to vector<8x128xf32>
    %229 = arith.addf %228, %227 : vector<8x128xf32>
    %230 = arith.divf %228, %229 : vector<8x128xf32>
    %231 = vector.extract_strided_slice %224 {offsets = [0, 128], sizes = [8, 128], strides = [1, 1]} : vector<8x512xf32> to vector<8x128xf32>
    %232 = arith.negf %231 : vector<8x128xf32>
    %233 = math.exp %232 : vector<8x128xf32>
    %cst_89 = arith.constant 1.000000e+00 : f32
    %234 = vector.broadcast %cst_89 : f32 to vector<8x128xf32>
    %235 = arith.addf %234, %233 : vector<8x128xf32>
    %236 = arith.divf %234, %235 : vector<8x128xf32>
    %237 = vector.extract_strided_slice %224 {offsets = [0, 256], sizes = [8, 128], strides = [1, 1]} : vector<8x512xf32> to vector<8x128xf32>
    %238 = math.tanh %237 : vector<8x128xf32>
    %239 = vector.extract_strided_slice %224 {offsets = [0, 384], sizes = [8, 128], strides = [1, 1]} : vector<8x512xf32> to vector<8x128xf32>
    %240 = arith.negf %239 : vector<8x128xf32>
    %241 = math.exp %240 : vector<8x128xf32>
    %cst_90 = arith.constant 1.000000e+00 : f32
    %242 = vector.broadcast %cst_90 : f32 to vector<8x128xf32>
    %243 = arith.addf %242, %241 : vector<8x128xf32>
    %244 = arith.divf %242, %243 : vector<8x128xf32>
    %245 = arith.mulf %236, %212 : vector<8x128xf32>
    %246 = arith.mulf %230, %238 : vector<8x128xf32>
    %247 = arith.addf %245, %246 : vector<8x128xf32>
    %248 = math.tanh %247 : vector<8x128xf32>
    %249 = arith.mulf %244, %248 : vector<8x128xf32>
    %cst_91 = arith.constant 0.000000e+00 : f32
    %250 = vector.broadcast %cst_91 : f32 to vector<8x128xf32>
    %251 = arith.maximumf %249, %250 : vector<8x128xf32>
    %c6_92 = arith.constant 6 : index
    %c0_93 = arith.constant 0 : index
    %c0_94 = arith.constant 0 : index
    %252 = vector.load %arg10[%c6_92, %c0_93, %c0_94] : memref<23x8x128xf32, #tpu.memory_space<vmem>>, vector<1x8x128xf32>
    %253 = vector.shape_cast %252 : vector<1x8x128xf32> to vector<8x128xf32>
    %254 = vector.shape_cast %251 : vector<8x128xf32> to vector<1x8x128xf32>
    tpu.vector_store %arg10[%c6_92, %c0_93, %c0_94], %254 {strides = array<i32>} : memref<23x8x128xf32, #tpu.memory_space<vmem>>, vector<1x8x128xf32>,
    %c7 = arith.constant 7 : index
    %c0_95 = arith.constant 0 : index
    %c0_96 = arith.constant 0 : index
    %255 = vector.load %arg9[%c7, %c0_95, %c0_96] : memref<23x8x512xf32, #tpu.memory_space<vmem>>, vector<1x8x512xf32>
    %256 = vector.shape_cast %255 : vector<1x8x512xf32> to vector<8x512xf32>
    %c0_97 = arith.constant 0 : index
    %c0_98 = arith.constant 0 : index
    %257 = vector.load %arg2[%c0_97, %c0_98] : memref<128x512xf32, #tpu.memory_space<vmem>>, vector<128x512xf32>
    %cst_99 = arith.constant dense<0.000000e+00> : vector<8x512xf32>
    %258 = tpu.matmul %249, %257, %cst_99 {dimension_numbers = #tpu.dot_dimension_numbers<[1], [0], [0], [1], [0, 0, 1, 1], [], []>} : vector<8x128xf32>, vector<128x512xf32>, vector<8x512xf32> -> vector<8x512xf32>
    %259 = arith.addf %256, %258 : vector<8x512xf32>
    %260 = vector.extract_strided_slice %259 {offsets = [0, 0], sizes = [8, 128], strides = [1, 1]} : vector<8x512xf32> to vector<8x128xf32>
    %261 = arith.negf %260 : vector<8x128xf32>
    %262 = math.exp %261 : vector<8x128xf32>
    %cst_100 = arith.constant 1.000000e+00 : f32
    %263 = vector.broadcast %cst_100 : f32 to vector<8x128xf32>
    %264 = arith.addf %263, %262 : vector<8x128xf32>
    %265 = arith.divf %263, %264 : vector<8x128xf32>
    %266 = vector.extract_strided_slice %259 {offsets = [0, 128], sizes = [8, 128], strides = [1, 1]} : vector<8x512xf32> to vector<8x128xf32>
    %267 = arith.negf %266 : vector<8x128xf32>
    %268 = math.exp %267 : vector<8x128xf32>
    %cst_101 = arith.constant 1.000000e+00 : f32
    %269 = vector.broadcast %cst_101 : f32 to vector<8x128xf32>
    %270 = arith.addf %269, %268 : vector<8x128xf32>
    %271 = arith.divf %269, %270 : vector<8x128xf32>
    %272 = vector.extract_strided_slice %259 {offsets = [0, 256], sizes = [8, 128], strides = [1, 1]} : vector<8x512xf32> to vector<8x128xf32>
    %273 = math.tanh %272 : vector<8x128xf32>
    %274 = vector.extract_strided_slice %259 {offsets = [0, 384], sizes = [8, 128], strides = [1, 1]} : vector<8x512xf32> to vector<8x128xf32>
    %275 = arith.negf %274 : vector<8x128xf32>
    %276 = math.exp %275 : vector<8x128xf32>
    %cst_102 = arith.constant 1.000000e+00 : f32
    %277 = vector.broadcast %cst_102 : f32 to vector<8x128xf32>
    %278 = arith.addf %277, %276 : vector<8x128xf32>
    %279 = arith.divf %277, %278 : vector<8x128xf32>
    %280 = arith.mulf %271, %247 : vector<8x128xf32>
    %281 = arith.mulf %265, %273 : vector<8x128xf32>
    %282 = arith.addf %280, %281 : vector<8x128xf32>
    %283 = math.tanh %282 : vector<8x128xf32>
    %284 = arith.mulf %279, %283 : vector<8x128xf32>
    %cst_103 = arith.constant 0.000000e+00 : f32
    %285 = vector.broadcast %cst_103 : f32 to vector<8x128xf32>
    %286 = arith.maximumf %284, %285 : vector<8x128xf32>
    %c7_104 = arith.constant 7 : index
    %c0_105 = arith.constant 0 : index
    %c0_106 = arith.constant 0 : index
    %287 = vector.load %arg10[%c7_104, %c0_105, %c0_106] : memref<23x8x128xf32, #tpu.memory_space<vmem>>, vector<1x8x128xf32>
    %288 = vector.shape_cast %287 : vector<1x8x128xf32> to vector<8x128xf32>
    %289 = vector.shape_cast %286 : vector<8x128xf32> to vector<1x8x128xf32>
    tpu.vector_store %arg10[%c7_104, %c0_105, %c0_106], %289 {strides = array<i32>} : memref<23x8x128xf32, #tpu.memory_space<vmem>>, vector<1x8x128xf32>,
    %c8 = arith.constant 8 : index
    %c0_107 = arith.constant 0 : index
    %c0_108 = arith.constant 0 : index
    %290 = vector.load %arg9[%c8, %c0_107, %c0_108] : memref<23x8x512xf32, #tpu.memory_space<vmem>>, vector<1x8x512xf32>
    %291 = vector.shape_cast %290 : vector<1x8x512xf32> to vector<8x512xf32>
    %c0_109 = arith.constant 0 : index
    %c0_110 = arith.constant 0 : index
    %292 = vector.load %arg2[%c0_109, %c0_110] : memref<128x512xf32, #tpu.memory_space<vmem>>, vector<128x512xf32>
    %cst_111 = arith.constant dense<0.000000e+00> : vector<8x512xf32>
    %293 = tpu.matmul %284, %292, %cst_111 {dimension_numbers = #tpu.dot_dimension_numbers<[1], [0], [0], [1], [0, 0, 1, 1], [], []>} : vector<8x128xf32>, vector<128x512xf32>, vector<8x512xf32> -> vector<8x512xf32>
    %294 = arith.addf %291, %293 : vector<8x512xf32>
    %295 = vector.extract_strided_slice %294 {offsets = [0, 0], sizes = [8, 128], strides = [1, 1]} : vector<8x512xf32> to vector<8x128xf32>
    %296 = arith.negf %295 : vector<8x128xf32>
    %297 = math.exp %296 : vector<8x128xf32>
    %cst_112 = arith.constant 1.000000e+00 : f32
    %298 = vector.broadcast %cst_112 : f32 to vector<8x128xf32>
    %299 = arith.addf %298, %297 : vector<8x128xf32>
    %300 = arith.divf %298, %299 : vector<8x128xf32>
    %301 = vector.extract_strided_slice %294 {offsets = [0, 128], sizes = [8, 128], strides = [1, 1]} : vector<8x512xf32> to vector<8x128xf32>
    %302 = arith.negf %301 : vector<8x128xf32>
    %303 = math.exp %302 : vector<8x128xf32>
    %cst_113 = arith.constant 1.000000e+00 : f32
    %304 = vector.broadcast %cst_113 : f32 to vector<8x128xf32>
    %305 = arith.addf %304, %303 : vector<8x128xf32>
    %306 = arith.divf %304, %305 : vector<8x128xf32>
    %307 = vector.extract_strided_slice %294 {offsets = [0, 256], sizes = [8, 128], strides = [1, 1]} : vector<8x512xf32> to vector<8x128xf32>
    %308 = math.tanh %307 : vector<8x128xf32>
    %309 = vector.extract_strided_slice %294 {offsets = [0, 384], sizes = [8, 128], strides = [1, 1]} : vector<8x512xf32> to vector<8x128xf32>
    %310 = arith.negf %309 : vector<8x128xf32>
    %311 = math.exp %310 : vector<8x128xf32>
    %cst_114 = arith.constant 1.000000e+00 : f32
    %312 = vector.broadcast %cst_114 : f32 to vector<8x128xf32>
    %313 = arith.addf %312, %311 : vector<8x128xf32>
    %314 = arith.divf %312, %313 : vector<8x128xf32>
    %315 = arith.mulf %306, %282 : vector<8x128xf32>
    %316 = arith.mulf %300, %308 : vector<8x128xf32>
    %317 = arith.addf %315, %316 : vector<8x128xf32>
    %318 = math.tanh %317 : vector<8x128xf32>
    %319 = arith.mulf %314, %318 : vector<8x128xf32>
    %cst_115 = arith.constant 0.000000e+00 : f32
    %320 = vector.broadcast %cst_115 : f32 to vector<8x128xf32>
    %321 = arith.maximumf %319, %320 : vector<8x128xf32>
    %c8_116 = arith.constant 8 : index
    %c0_117 = arith.constant 0 : index
    %c0_118 = arith.constant 0 : index
    %322 = vector.load %arg10[%c8_116, %c0_117, %c0_118] : memref<23x8x128xf32, #tpu.memory_space<vmem>>, vector<1x8x128xf32>
    %323 = vector.shape_cast %322 : vector<1x8x128xf32> to vector<8x128xf32>
    %324 = vector.shape_cast %321 : vector<8x128xf32> to vector<1x8x128xf32>
    tpu.vector_store %arg10[%c8_116, %c0_117, %c0_118], %324 {strides = array<i32>} : memref<23x8x128xf32, #tpu.memory_space<vmem>>, vector<1x8x128xf32>,
    %c9 = arith.constant 9 : index
    %c0_119 = arith.constant 0 : index
    %c0_120 = arith.constant 0 : index
    %325 = vector.load %arg9[%c9, %c0_119, %c0_120] : memref<23x8x512xf32, #tpu.memory_space<vmem>>, vector<1x8x512xf32>
    %326 = vector.shape_cast %325 : vector<1x8x512xf32> to vector<8x512xf32>
    %c0_121 = arith.constant 0 : index
    %c0_122 = arith.constant 0 : index
    %327 = vector.load %arg2[%c0_121, %c0_122] : memref<128x512xf32, #tpu.memory_space<vmem>>, vector<128x512xf32>
    %cst_123 = arith.constant dense<0.000000e+00> : vector<8x512xf32>
    %328 = tpu.matmul %319, %327, %cst_123 {dimension_numbers = #tpu.dot_dimension_numbers<[1], [0], [0], [1], [0, 0, 1, 1], [], []>} : vector<8x128xf32>, vector<128x512xf32>, vector<8x512xf32> -> vector<8x512xf32>
    %329 = arith.addf %326, %328 : vector<8x512xf32>
    %330 = vector.extract_strided_slice %329 {offsets = [0, 0], sizes = [8, 128], strides = [1, 1]} : vector<8x512xf32> to vector<8x128xf32>
    %331 = arith.negf %330 : vector<8x128xf32>
    %332 = math.exp %331 : vector<8x128xf32>
    %cst_124 = arith.constant 1.000000e+00 : f32
    %333 = vector.broadcast %cst_124 : f32 to vector<8x128xf32>
    %334 = arith.addf %333, %332 : vector<8x128xf32>
    %335 = arith.divf %333, %334 : vector<8x128xf32>
    %336 = vector.extract_strided_slice %329 {offsets = [0, 128], sizes = [8, 128], strides = [1, 1]} : vector<8x512xf32> to vector<8x128xf32>
    %337 = arith.negf %336 : vector<8x128xf32>
    %338 = math.exp %337 : vector<8x128xf32>
    %cst_125 = arith.constant 1.000000e+00 : f32
    %339 = vector.broadcast %cst_125 : f32 to vector<8x128xf32>
    %340 = arith.addf %339, %338 : vector<8x128xf32>
    %341 = arith.divf %339, %340 : vector<8x128xf32>
    %342 = vector.extract_strided_slice %329 {offsets = [0, 256], sizes = [8, 128], strides = [1, 1]} : vector<8x512xf32> to vector<8x128xf32>
    %343 = math.tanh %342 : vector<8x128xf32>
    %344 = vector.extract_strided_slice %329 {offsets = [0, 384], sizes = [8, 128], strides = [1, 1]} : vector<8x512xf32> to vector<8x128xf32>
    %345 = arith.negf %344 : vector<8x128xf32>
    %346 = math.exp %345 : vector<8x128xf32>
    %cst_126 = arith.constant 1.000000e+00 : f32
    %347 = vector.broadcast %cst_126 : f32 to vector<8x128xf32>
    %348 = arith.addf %347, %346 : vector<8x128xf32>
    %349 = arith.divf %347, %348 : vector<8x128xf32>
    %350 = arith.mulf %341, %317 : vector<8x128xf32>
    %351 = arith.mulf %335, %343 : vector<8x128xf32>
    %352 = arith.addf %350, %351 : vector<8x128xf32>
    %353 = math.tanh %352 : vector<8x128xf32>
    %354 = arith.mulf %349, %353 : vector<8x128xf32>
    %cst_127 = arith.constant 0.000000e+00 : f32
    %355 = vector.broadcast %cst_127 : f32 to vector<8x128xf32>
    %356 = arith.maximumf %354, %355 : vector<8x128xf32>
    %c9_128 = arith.constant 9 : index
    %c0_129 = arith.constant 0 : index
    %c0_130 = arith.constant 0 : index
    %357 = vector.load %arg10[%c9_128, %c0_129, %c0_130] : memref<23x8x128xf32, #tpu.memory_space<vmem>>, vector<1x8x128xf32>
    %358 = vector.shape_cast %357 : vector<1x8x128xf32> to vector<8x128xf32>
    %359 = vector.shape_cast %356 : vector<8x128xf32> to vector<1x8x128xf32>
    tpu.vector_store %arg10[%c9_128, %c0_129, %c0_130], %359 {strides = array<i32>} : memref<23x8x128xf32, #tpu.memory_space<vmem>>, vector<1x8x128xf32>,
    %c10 = arith.constant 10 : index
    %c0_131 = arith.constant 0 : index
    %c0_132 = arith.constant 0 : index
    %360 = vector.load %arg9[%c10, %c0_131, %c0_132] : memref<23x8x512xf32, #tpu.memory_space<vmem>>, vector<1x8x512xf32>
    %361 = vector.shape_cast %360 : vector<1x8x512xf32> to vector<8x512xf32>
    %c0_133 = arith.constant 0 : index
    %c0_134 = arith.constant 0 : index
    %362 = vector.load %arg2[%c0_133, %c0_134] : memref<128x512xf32, #tpu.memory_space<vmem>>, vector<128x512xf32>
    %cst_135 = arith.constant dense<0.000000e+00> : vector<8x512xf32>
    %363 = tpu.matmul %354, %362, %cst_135 {dimension_numbers = #tpu.dot_dimension_numbers<[1], [0], [0], [1], [0, 0, 1, 1], [], []>} : vector<8x128xf32>, vector<128x512xf32>, vector<8x512xf32> -> vector<8x512xf32>
    %364 = arith.addf %361, %363 : vector<8x512xf32>
    %365 = vector.extract_strided_slice %364 {offsets = [0, 0], sizes = [8, 128], strides = [1, 1]} : vector<8x512xf32> to vector<8x128xf32>
    %366 = arith.negf %365 : vector<8x128xf32>
    %367 = math.exp %366 : vector<8x128xf32>
    %cst_136 = arith.constant 1.000000e+00 : f32
    %368 = vector.broadcast %cst_136 : f32 to vector<8x128xf32>
    %369 = arith.addf %368, %367 : vector<8x128xf32>
    %370 = arith.divf %368, %369 : vector<8x128xf32>
    %371 = vector.extract_strided_slice %364 {offsets = [0, 128], sizes = [8, 128], strides = [1, 1]} : vector<8x512xf32> to vector<8x128xf32>
    %372 = arith.negf %371 : vector<8x128xf32>
    %373 = math.exp %372 : vector<8x128xf32>
    %cst_137 = arith.constant 1.000000e+00 : f32
    %374 = vector.broadcast %cst_137 : f32 to vector<8x128xf32>
    %375 = arith.addf %374, %373 : vector<8x128xf32>
    %376 = arith.divf %374, %375 : vector<8x128xf32>
    %377 = vector.extract_strided_slice %364 {offsets = [0, 256], sizes = [8, 128], strides = [1, 1]} : vector<8x512xf32> to vector<8x128xf32>
    %378 = math.tanh %377 : vector<8x128xf32>
    %379 = vector.extract_strided_slice %364 {offsets = [0, 384], sizes = [8, 128], strides = [1, 1]} : vector<8x512xf32> to vector<8x128xf32>
    %380 = arith.negf %379 : vector<8x128xf32>
    %381 = math.exp %380 : vector<8x128xf32>
    %cst_138 = arith.constant 1.000000e+00 : f32
    %382 = vector.broadcast %cst_138 : f32 to vector<8x128xf32>
    %383 = arith.addf %382, %381 : vector<8x128xf32>
    %384 = arith.divf %382, %383 : vector<8x128xf32>
    %385 = arith.mulf %376, %352 : vector<8x128xf32>
    %386 = arith.mulf %370, %378 : vector<8x128xf32>
    %387 = arith.addf %385, %386 : vector<8x128xf32>
    %388 = math.tanh %387 : vector<8x128xf32>
    %389 = arith.mulf %384, %388 : vector<8x128xf32>
    %cst_139 = arith.constant 0.000000e+00 : f32
    %390 = vector.broadcast %cst_139 : f32 to vector<8x128xf32>
    %391 = arith.maximumf %389, %390 : vector<8x128xf32>
    %c10_140 = arith.constant 10 : index
    %c0_141 = arith.constant 0 : index
    %c0_142 = arith.constant 0 : index
    %392 = vector.load %arg10[%c10_140, %c0_141, %c0_142] : memref<23x8x128xf32, #tpu.memory_space<vmem>>, vector<1x8x128xf32>
    %393 = vector.shape_cast %392 : vector<1x8x128xf32> to vector<8x128xf32>
    %394 = vector.shape_cast %391 : vector<8x128xf32> to vector<1x8x128xf32>
    tpu.vector_store %arg10[%c10_140, %c0_141, %c0_142], %394 {strides = array<i32>} : memref<23x8x128xf32, #tpu.memory_space<vmem>>, vector<1x8x128xf32>,
    %c11 = arith.constant 11 : index
    %c0_143 = arith.constant 0 : index
    %c0_144 = arith.constant 0 : index
    %395 = vector.load %arg9[%c11, %c0_143, %c0_144] : memref<23x8x512xf32, #tpu.memory_space<vmem>>, vector<1x8x512xf32>
    %396 = vector.shape_cast %395 : vector<1x8x512xf32> to vector<8x512xf32>
    %c0_145 = arith.constant 0 : index
    %c0_146 = arith.constant 0 : index
    %397 = vector.load %arg2[%c0_145, %c0_146] : memref<128x512xf32, #tpu.memory_space<vmem>>, vector<128x512xf32>
    %cst_147 = arith.constant dense<0.000000e+00> : vector<8x512xf32>
    %398 = tpu.matmul %389, %397, %cst_147 {dimension_numbers = #tpu.dot_dimension_numbers<[1], [0], [0], [1], [0, 0, 1, 1], [], []>} : vector<8x128xf32>, vector<128x512xf32>, vector<8x512xf32> -> vector<8x512xf32>
    %399 = arith.addf %396, %398 : vector<8x512xf32>
    %400 = vector.extract_strided_slice %399 {offsets = [0, 0], sizes = [8, 128], strides = [1, 1]} : vector<8x512xf32> to vector<8x128xf32>
    %401 = arith.negf %400 : vector<8x128xf32>
    %402 = math.exp %401 : vector<8x128xf32>
    %cst_148 = arith.constant 1.000000e+00 : f32
    %403 = vector.broadcast %cst_148 : f32 to vector<8x128xf32>
    %404 = arith.addf %403, %402 : vector<8x128xf32>
    %405 = arith.divf %403, %404 : vector<8x128xf32>
    %406 = vector.extract_strided_slice %399 {offsets = [0, 128], sizes = [8, 128], strides = [1, 1]} : vector<8x512xf32> to vector<8x128xf32>
    %407 = arith.negf %406 : vector<8x128xf32>
    %408 = math.exp %407 : vector<8x128xf32>
    %cst_149 = arith.constant 1.000000e+00 : f32
    %409 = vector.broadcast %cst_149 : f32 to vector<8x128xf32>
    %410 = arith.addf %409, %408 : vector<8x128xf32>
    %411 = arith.divf %409, %410 : vector<8x128xf32>
    %412 = vector.extract_strided_slice %399 {offsets = [0, 256], sizes = [8, 128], strides = [1, 1]} : vector<8x512xf32> to vector<8x128xf32>
    %413 = math.tanh %412 : vector<8x128xf32>
    %414 = vector.extract_strided_slice %399 {offsets = [0, 384], sizes = [8, 128], strides = [1, 1]} : vector<8x512xf32> to vector<8x128xf32>
    %415 = arith.negf %414 : vector<8x128xf32>
    %416 = math.exp %415 : vector<8x128xf32>
    %cst_150 = arith.constant 1.000000e+00 : f32
    %417 = vector.broadcast %cst_150 : f32 to vector<8x128xf32>
    %418 = arith.addf %417, %416 : vector<8x128xf32>
    %419 = arith.divf %417, %418 : vector<8x128xf32>
    %420 = arith.mulf %411, %387 : vector<8x128xf32>
    %421 = arith.mulf %405, %413 : vector<8x128xf32>
    %422 = arith.addf %420, %421 : vector<8x128xf32>
    %423 = math.tanh %422 : vector<8x128xf32>
    %424 = arith.mulf %419, %423 : vector<8x128xf32>
    %cst_151 = arith.constant 0.000000e+00 : f32
    %425 = vector.broadcast %cst_151 : f32 to vector<8x128xf32>
    %426 = arith.maximumf %424, %425 : vector<8x128xf32>
    %c11_152 = arith.constant 11 : index
    %c0_153 = arith.constant 0 : index
    %c0_154 = arith.constant 0 : index
    %427 = vector.load %arg10[%c11_152, %c0_153, %c0_154] : memref<23x8x128xf32, #tpu.memory_space<vmem>>, vector<1x8x128xf32>
    %428 = vector.shape_cast %427 : vector<1x8x128xf32> to vector<8x128xf32>
    %429 = vector.shape_cast %426 : vector<8x128xf32> to vector<1x8x128xf32>
    tpu.vector_store %arg10[%c11_152, %c0_153, %c0_154], %429 {strides = array<i32>} : memref<23x8x128xf32, #tpu.memory_space<vmem>>, vector<1x8x128xf32>,
    %c12 = arith.constant 12 : index
    %c0_155 = arith.constant 0 : index
    %c0_156 = arith.constant 0 : index
    %430 = vector.load %arg9[%c12, %c0_155, %c0_156] : memref<23x8x512xf32, #tpu.memory_space<vmem>>, vector<1x8x512xf32>
    %431 = vector.shape_cast %430 : vector<1x8x512xf32> to vector<8x512xf32>
    %c0_157 = arith.constant 0 : index
    %c0_158 = arith.constant 0 : index
    %432 = vector.load %arg2[%c0_157, %c0_158] : memref<128x512xf32, #tpu.memory_space<vmem>>, vector<128x512xf32>
    %cst_159 = arith.constant dense<0.000000e+00> : vector<8x512xf32>
    %433 = tpu.matmul %424, %432, %cst_159 {dimension_numbers = #tpu.dot_dimension_numbers<[1], [0], [0], [1], [0, 0, 1, 1], [], []>} : vector<8x128xf32>, vector<128x512xf32>, vector<8x512xf32> -> vector<8x512xf32>
    %434 = arith.addf %431, %433 : vector<8x512xf32>
    %435 = vector.extract_strided_slice %434 {offsets = [0, 0], sizes = [8, 128], strides = [1, 1]} : vector<8x512xf32> to vector<8x128xf32>
    %436 = arith.negf %435 : vector<8x128xf32>
    %437 = math.exp %436 : vector<8x128xf32>
    %cst_160 = arith.constant 1.000000e+00 : f32
    %438 = vector.broadcast %cst_160 : f32 to vector<8x128xf32>
    %439 = arith.addf %438, %437 : vector<8x128xf32>
    %440 = arith.divf %438, %439 : vector<8x128xf32>
    %441 = vector.extract_strided_slice %434 {offsets = [0, 128], sizes = [8, 128], strides = [1, 1]} : vector<8x512xf32> to vector<8x128xf32>
    %442 = arith.negf %441 : vector<8x128xf32>
    %443 = math.exp %442 : vector<8x128xf32>
    %cst_161 = arith.constant 1.000000e+00 : f32
    %444 = vector.broadcast %cst_161 : f32 to vector<8x128xf32>
    %445 = arith.addf %444, %443 : vector<8x128xf32>
    %446 = arith.divf %444, %445 : vector<8x128xf32>
    %447 = vector.extract_strided_slice %434 {offsets = [0, 256], sizes = [8, 128], strides = [1, 1]} : vector<8x512xf32> to vector<8x128xf32>
    %448 = math.tanh %447 : vector<8x128xf32>
    %449 = vector.extract_strided_slice %434 {offsets = [0, 384], sizes = [8, 128], strides = [1, 1]} : vector<8x512xf32> to vector<8x128xf32>
    %450 = arith.negf %449 : vector<8x128xf32>
    %451 = math.exp %450 : vector<8x128xf32>
    %cst_162 = arith.constant 1.000000e+00 : f32
    %452 = vector.broadcast %cst_162 : f32 to vector<8x128xf32>
    %453 = arith.addf %452, %451 : vector<8x128xf32>
    %454 = arith.divf %452, %453 : vector<8x128xf32>
    %455 = arith.mulf %446, %422 : vector<8x128xf32>
    %456 = arith.mulf %440, %448 : vector<8x128xf32>
    %457 = arith.addf %455, %456 : vector<8x128xf32>
    %458 = math.tanh %457 : vector<8x128xf32>
    %459 = arith.mulf %454, %458 : vector<8x128xf32>
    %cst_163 = arith.constant 0.000000e+00 : f32
    %460 = vector.broadcast %cst_163 : f32 to vector<8x128xf32>
    %461 = arith.maximumf %459, %460 : vector<8x128xf32>
    %c12_164 = arith.constant 12 : index
    %c0_165 = arith.constant 0 : index
    %c0_166 = arith.constant 0 : index
    %462 = vector.load %arg10[%c12_164, %c0_165, %c0_166] : memref<23x8x128xf32, #tpu.memory_space<vmem>>, vector<1x8x128xf32>
    %463 = vector.shape_cast %462 : vector<1x8x128xf32> to vector<8x128xf32>
    %464 = vector.shape_cast %461 : vector<8x128xf32> to vector<1x8x128xf32>
    tpu.vector_store %arg10[%c12_164, %c0_165, %c0_166], %464 {strides = array<i32>} : memref<23x8x128xf32, #tpu.memory_space<vmem>>, vector<1x8x128xf32>,
    %c13 = arith.constant 13 : index
    %c0_167 = arith.constant 0 : index
    %c0_168 = arith.constant 0 : index
    %465 = vector.load %arg9[%c13, %c0_167, %c0_168] : memref<23x8x512xf32, #tpu.memory_space<vmem>>, vector<1x8x512xf32>
    %466 = vector.shape_cast %465 : vector<1x8x512xf32> to vector<8x512xf32>
    %c0_169 = arith.constant 0 : index
    %c0_170 = arith.constant 0 : index
    %467 = vector.load %arg2[%c0_169, %c0_170] : memref<128x512xf32, #tpu.memory_space<vmem>>, vector<128x512xf32>
    %cst_171 = arith.constant dense<0.000000e+00> : vector<8x512xf32>
    %468 = tpu.matmul %459, %467, %cst_171 {dimension_numbers = #tpu.dot_dimension_numbers<[1], [0], [0], [1], [0, 0, 1, 1], [], []>} : vector<8x128xf32>, vector<128x512xf32>, vector<8x512xf32> -> vector<8x512xf32>
    %469 = arith.addf %466, %468 : vector<8x512xf32>
    %470 = vector.extract_strided_slice %469 {offsets = [0, 0], sizes = [8, 128], strides = [1, 1]} : vector<8x512xf32> to vector<8x128xf32>
    %471 = arith.negf %470 : vector<8x128xf32>
    %472 = math.exp %471 : vector<8x128xf32>
    %cst_172 = arith.constant 1.000000e+00 : f32
    %473 = vector.broadcast %cst_172 : f32 to vector<8x128xf32>
    %474 = arith.addf %473, %472 : vector<8x128xf32>
    %475 = arith.divf %473, %474 : vector<8x128xf32>
    %476 = vector.extract_strided_slice %469 {offsets = [0, 128], sizes = [8, 128], strides = [1, 1]} : vector<8x512xf32> to vector<8x128xf32>
    %477 = arith.negf %476 : vector<8x128xf32>
    %478 = math.exp %477 : vector<8x128xf32>
    %cst_173 = arith.constant 1.000000e+00 : f32
    %479 = vector.broadcast %cst_173 : f32 to vector<8x128xf32>
    %480 = arith.addf %479, %478 : vector<8x128xf32>
    %481 = arith.divf %479, %480 : vector<8x128xf32>
    %482 = vector.extract_strided_slice %469 {offsets = [0, 256], sizes = [8, 128], strides = [1, 1]} : vector<8x512xf32> to vector<8x128xf32>
    %483 = math.tanh %482 : vector<8x128xf32>
    %484 = vector.extract_strided_slice %469 {offsets = [0, 384], sizes = [8, 128], strides = [1, 1]} : vector<8x512xf32> to vector<8x128xf32>
    %485 = arith.negf %484 : vector<8x128xf32>
    %486 = math.exp %485 : vector<8x128xf32>
    %cst_174 = arith.constant 1.000000e+00 : f32
    %487 = vector.broadcast %cst_174 : f32 to vector<8x128xf32>
    %488 = arith.addf %487, %486 : vector<8x128xf32>
    %489 = arith.divf %487, %488 : vector<8x128xf32>
    %490 = arith.mulf %481, %457 : vector<8x128xf32>
    %491 = arith.mulf %475, %483 : vector<8x128xf32>
    %492 = arith.addf %490, %491 : vector<8x128xf32>
    %493 = math.tanh %492 : vector<8x128xf32>
    %494 = arith.mulf %489, %493 : vector<8x128xf32>
    %cst_175 = arith.constant 0.000000e+00 : f32
    %495 = vector.broadcast %cst_175 : f32 to vector<8x128xf32>
    %496 = arith.maximumf %494, %495 : vector<8x128xf32>
    %c13_176 = arith.constant 13 : index
    %c0_177 = arith.constant 0 : index
    %c0_178 = arith.constant 0 : index
    %497 = vector.load %arg10[%c13_176, %c0_177, %c0_178] : memref<23x8x128xf32, #tpu.memory_space<vmem>>, vector<1x8x128xf32>
    %498 = vector.shape_cast %497 : vector<1x8x128xf32> to vector<8x128xf32>
    %499 = vector.shape_cast %496 : vector<8x128xf32> to vector<1x8x128xf32>
    tpu.vector_store %arg10[%c13_176, %c0_177, %c0_178], %499 {strides = array<i32>} : memref<23x8x128xf32, #tpu.memory_space<vmem>>, vector<1x8x128xf32>,
    %c14 = arith.constant 14 : index
    %c0_179 = arith.constant 0 : index
    %c0_180 = arith.constant 0 : index
    %500 = vector.load %arg9[%c14, %c0_179, %c0_180] : memref<23x8x512xf32, #tpu.memory_space<vmem>>, vector<1x8x512xf32>
    %501 = vector.shape_cast %500 : vector<1x8x512xf32> to vector<8x512xf32>
    %c0_181 = arith.constant 0 : index
    %c0_182 = arith.constant 0 : index
    %502 = vector.load %arg2[%c0_181, %c0_182] : memref<128x512xf32, #tpu.memory_space<vmem>>, vector<128x512xf32>
    %cst_183 = arith.constant dense<0.000000e+00> : vector<8x512xf32>
    %503 = tpu.matmul %494, %502, %cst_183 {dimension_numbers = #tpu.dot_dimension_numbers<[1], [0], [0], [1], [0, 0, 1, 1], [], []>} : vector<8x128xf32>, vector<128x512xf32>, vector<8x512xf32> -> vector<8x512xf32>
    %504 = arith.addf %501, %503 : vector<8x512xf32>
    %505 = vector.extract_strided_slice %504 {offsets = [0, 0], sizes = [8, 128], strides = [1, 1]} : vector<8x512xf32> to vector<8x128xf32>
    %506 = arith.negf %505 : vector<8x128xf32>
    %507 = math.exp %506 : vector<8x128xf32>
    %cst_184 = arith.constant 1.000000e+00 : f32
    %508 = vector.broadcast %cst_184 : f32 to vector<8x128xf32>
    %509 = arith.addf %508, %507 : vector<8x128xf32>
    %510 = arith.divf %508, %509 : vector<8x128xf32>
    %511 = vector.extract_strided_slice %504 {offsets = [0, 128], sizes = [8, 128], strides = [1, 1]} : vector<8x512xf32> to vector<8x128xf32>
    %512 = arith.negf %511 : vector<8x128xf32>
    %513 = math.exp %512 : vector<8x128xf32>
    %cst_185 = arith.constant 1.000000e+00 : f32
    %514 = vector.broadcast %cst_185 : f32 to vector<8x128xf32>
    %515 = arith.addf %514, %513 : vector<8x128xf32>
    %516 = arith.divf %514, %515 : vector<8x128xf32>
    %517 = vector.extract_strided_slice %504 {offsets = [0, 256], sizes = [8, 128], strides = [1, 1]} : vector<8x512xf32> to vector<8x128xf32>
    %518 = math.tanh %517 : vector<8x128xf32>
    %519 = vector.extract_strided_slice %504 {offsets = [0, 384], sizes = [8, 128], strides = [1, 1]} : vector<8x512xf32> to vector<8x128xf32>
    %520 = arith.negf %519 : vector<8x128xf32>
    %521 = math.exp %520 : vector<8x128xf32>
    %cst_186 = arith.constant 1.000000e+00 : f32
    %522 = vector.broadcast %cst_186 : f32 to vector<8x128xf32>
    %523 = arith.addf %522, %521 : vector<8x128xf32>
    %524 = arith.divf %522, %523 : vector<8x128xf32>
    %525 = arith.mulf %516, %492 : vector<8x128xf32>
    %526 = arith.mulf %510, %518 : vector<8x128xf32>
    %527 = arith.addf %525, %526 : vector<8x128xf32>
    %528 = math.tanh %527 : vector<8x128xf32>
    %529 = arith.mulf %524, %528 : vector<8x128xf32>
    %cst_187 = arith.constant 0.000000e+00 : f32
    %530 = vector.broadcast %cst_187 : f32 to vector<8x128xf32>
    %531 = arith.maximumf %529, %530 : vector<8x128xf32>
    %c14_188 = arith.constant 14 : index
    %c0_189 = arith.constant 0 : index
    %c0_190 = arith.constant 0 : index
    %532 = vector.load %arg10[%c14_188, %c0_189, %c0_190] : memref<23x8x128xf32, #tpu.memory_space<vmem>>, vector<1x8x128xf32>
    %533 = vector.shape_cast %532 : vector<1x8x128xf32> to vector<8x128xf32>
    %534 = vector.shape_cast %531 : vector<8x128xf32> to vector<1x8x128xf32>
    tpu.vector_store %arg10[%c14_188, %c0_189, %c0_190], %534 {strides = array<i32>} : memref<23x8x128xf32, #tpu.memory_space<vmem>>, vector<1x8x128xf32>,
    %c15 = arith.constant 15 : index
    %c0_191 = arith.constant 0 : index
    %c0_192 = arith.constant 0 : index
    %535 = vector.load %arg9[%c15, %c0_191, %c0_192] : memref<23x8x512xf32, #tpu.memory_space<vmem>>, vector<1x8x512xf32>
    %536 = vector.shape_cast %535 : vector<1x8x512xf32> to vector<8x512xf32>
    %c0_193 = arith.constant 0 : index
    %c0_194 = arith.constant 0 : index
    %537 = vector.load %arg2[%c0_193, %c0_194] : memref<128x512xf32, #tpu.memory_space<vmem>>, vector<128x512xf32>
    %cst_195 = arith.constant dense<0.000000e+00> : vector<8x512xf32>
    %538 = tpu.matmul %529, %537, %cst_195 {dimension_numbers = #tpu.dot_dimension_numbers<[1], [0], [0], [1], [0, 0, 1, 1], [], []>} : vector<8x128xf32>, vector<128x512xf32>, vector<8x512xf32> -> vector<8x512xf32>
    %539 = arith.addf %536, %538 : vector<8x512xf32>
    %540 = vector.extract_strided_slice %539 {offsets = [0, 0], sizes = [8, 128], strides = [1, 1]} : vector<8x512xf32> to vector<8x128xf32>
    %541 = arith.negf %540 : vector<8x128xf32>
    %542 = math.exp %541 : vector<8x128xf32>
    %cst_196 = arith.constant 1.000000e+00 : f32
    %543 = vector.broadcast %cst_196 : f32 to vector<8x128xf32>
    %544 = arith.addf %543, %542 : vector<8x128xf32>
    %545 = arith.divf %543, %544 : vector<8x128xf32>
    %546 = vector.extract_strided_slice %539 {offsets = [0, 128], sizes = [8, 128], strides = [1, 1]} : vector<8x512xf32> to vector<8x128xf32>
    %547 = arith.negf %546 : vector<8x128xf32>
    %548 = math.exp %547 : vector<8x128xf32>
    %cst_197 = arith.constant 1.000000e+00 : f32
    %549 = vector.broadcast %cst_197 : f32 to vector<8x128xf32>
    %550 = arith.addf %549, %548 : vector<8x128xf32>
    %551 = arith.divf %549, %550 : vector<8x128xf32>
    %552 = vector.extract_strided_slice %539 {offsets = [0, 256], sizes = [8, 128], strides = [1, 1]} : vector<8x512xf32> to vector<8x128xf32>
    %553 = math.tanh %552 : vector<8x128xf32>
    %554 = vector.extract_strided_slice %539 {offsets = [0, 384], sizes = [8, 128], strides = [1, 1]} : vector<8x512xf32> to vector<8x128xf32>
    %555 = arith.negf %554 : vector<8x128xf32>
    %556 = math.exp %555 : vector<8x128xf32>
    %cst_198 = arith.constant 1.000000e+00 : f32
    %557 = vector.broadcast %cst_198 : f32 to vector<8x128xf32>
    %558 = arith.addf %557, %556 : vector<8x128xf32>
    %559 = arith.divf %557, %558 : vector<8x128xf32>
    %560 = arith.mulf %551, %527 : vector<8x128xf32>
    %561 = arith.mulf %545, %553 : vector<8x128xf32>
    %562 = arith.addf %560, %561 : vector<8x128xf32>
    %563 = math.tanh %562 : vector<8x128xf32>
    %564 = arith.mulf %559, %563 : vector<8x128xf32>
    %cst_199 = arith.constant 0.000000e+00 : f32
    %565 = vector.broadcast %cst_199 : f32 to vector<8x128xf32>
    %566 = arith.maximumf %564, %565 : vector<8x128xf32>
    %c15_200 = arith.constant 15 : index
    %c0_201 = arith.constant 0 : index
    %c0_202 = arith.constant 0 : index
    %567 = vector.load %arg10[%c15_200, %c0_201, %c0_202] : memref<23x8x128xf32, #tpu.memory_space<vmem>>, vector<1x8x128xf32>
    %568 = vector.shape_cast %567 : vector<1x8x128xf32> to vector<8x128xf32>
    %569 = vector.shape_cast %566 : vector<8x128xf32> to vector<1x8x128xf32>
    tpu.vector_store %arg10[%c15_200, %c0_201, %c0_202], %569 {strides = array<i32>} : memref<23x8x128xf32, #tpu.memory_space<vmem>>, vector<1x8x128xf32>,
    %c16 = arith.constant 16 : index
    %c0_203 = arith.constant 0 : index
    %c0_204 = arith.constant 0 : index
    %570 = vector.load %arg9[%c16, %c0_203, %c0_204] : memref<23x8x512xf32, #tpu.memory_space<vmem>>, vector<1x8x512xf32>
    %571 = vector.shape_cast %570 : vector<1x8x512xf32> to vector<8x512xf32>
    %c0_205 = arith.constant 0 : index
    %c0_206 = arith.constant 0 : index
    %572 = vector.load %arg2[%c0_205, %c0_206] : memref<128x512xf32, #tpu.memory_space<vmem>>, vector<128x512xf32>
    %cst_207 = arith.constant dense<0.000000e+00> : vector<8x512xf32>
    %573 = tpu.matmul %564, %572, %cst_207 {dimension_numbers = #tpu.dot_dimension_numbers<[1], [0], [0], [1], [0, 0, 1, 1], [], []>} : vector<8x128xf32>, vector<128x512xf32>, vector<8x512xf32> -> vector<8x512xf32>
    %574 = arith.addf %571, %573 : vector<8x512xf32>
    %575 = vector.extract_strided_slice %574 {offsets = [0, 0], sizes = [8, 128], strides = [1, 1]} : vector<8x512xf32> to vector<8x128xf32>
    %576 = arith.negf %575 : vector<8x128xf32>
    %577 = math.exp %576 : vector<8x128xf32>
    %cst_208 = arith.constant 1.000000e+00 : f32
    %578 = vector.broadcast %cst_208 : f32 to vector<8x128xf32>
    %579 = arith.addf %578, %577 : vector<8x128xf32>
    %580 = arith.divf %578, %579 : vector<8x128xf32>
    %581 = vector.extract_strided_slice %574 {offsets = [0, 128], sizes = [8, 128], strides = [1, 1]} : vector<8x512xf32> to vector<8x128xf32>
    %582 = arith.negf %581 : vector<8x128xf32>
    %583 = math.exp %582 : vector<8x128xf32>
    %cst_209 = arith.constant 1.000000e+00 : f32
    %584 = vector.broadcast %cst_209 : f32 to vector<8x128xf32>
    %585 = arith.addf %584, %583 : vector<8x128xf32>
    %586 = arith.divf %584, %585 : vector<8x128xf32>
    %587 = vector.extract_strided_slice %574 {offsets = [0, 256], sizes = [8, 128], strides = [1, 1]} : vector<8x512xf32> to vector<8x128xf32>
    %588 = math.tanh %587 : vector<8x128xf32>
    %589 = vector.extract_strided_slice %574 {offsets = [0, 384], sizes = [8, 128], strides = [1, 1]} : vector<8x512xf32> to vector<8x128xf32>
    %590 = arith.negf %589 : vector<8x128xf32>
    %591 = math.exp %590 : vector<8x128xf32>
    %cst_210 = arith.constant 1.000000e+00 : f32
    %592 = vector.broadcast %cst_210 : f32 to vector<8x128xf32>
    %593 = arith.addf %592, %591 : vector<8x128xf32>
    %594 = arith.divf %592, %593 : vector<8x128xf32>
    %595 = arith.mulf %586, %562 : vector<8x128xf32>
    %596 = arith.mulf %580, %588 : vector<8x128xf32>
    %597 = arith.addf %595, %596 : vector<8x128xf32>
    %598 = math.tanh %597 : vector<8x128xf32>
    %599 = arith.mulf %594, %598 : vector<8x128xf32>
    %cst_211 = arith.constant 0.000000e+00 : f32
    %600 = vector.broadcast %cst_211 : f32 to vector<8x128xf32>
    %601 = arith.maximumf %599, %600 : vector<8x128xf32>
    %c16_212 = arith.constant 16 : index
    %c0_213 = arith.constant 0 : index
    %c0_214 = arith.constant 0 : index
    %602 = vector.load %arg10[%c16_212, %c0_213, %c0_214] : memref<23x8x128xf32, #tpu.memory_space<vmem>>, vector<1x8x128xf32>
    %603 = vector.shape_cast %602 : vector<1x8x128xf32> to vector<8x128xf32>
    %604 = vector.shape_cast %601 : vector<8x128xf32> to vector<1x8x128xf32>
    tpu.vector_store %arg10[%c16_212, %c0_213, %c0_214], %604 {strides = array<i32>} : memref<23x8x128xf32, #tpu.memory_space<vmem>>, vector<1x8x128xf32>,
    %c17 = arith.constant 17 : index
    %c0_215 = arith.constant 0 : index
    %c0_216 = arith.constant 0 : index
    %605 = vector.load %arg9[%c17, %c0_215, %c0_216] : memref<23x8x512xf32, #tpu.memory_space<vmem>>, vector<1x8x512xf32>
    %606 = vector.shape_cast %605 : vector<1x8x512xf32> to vector<8x512xf32>
    %c0_217 = arith.constant 0 : index
    %c0_218 = arith.constant 0 : index
    %607 = vector.load %arg2[%c0_217, %c0_218] : memref<128x512xf32, #tpu.memory_space<vmem>>, vector<128x512xf32>
    %cst_219 = arith.constant dense<0.000000e+00> : vector<8x512xf32>
    %608 = tpu.matmul %599, %607, %cst_219 {dimension_numbers = #tpu.dot_dimension_numbers<[1], [0], [0], [1], [0, 0, 1, 1], [], []>} : vector<8x128xf32>, vector<128x512xf32>, vector<8x512xf32> -> vector<8x512xf32>
    %609 = arith.addf %606, %608 : vector<8x512xf32>
    %610 = vector.extract_strided_slice %609 {offsets = [0, 0], sizes = [8, 128], strides = [1, 1]} : vector<8x512xf32> to vector<8x128xf32>
    %611 = arith.negf %610 : vector<8x128xf32>
    %612 = math.exp %611 : vector<8x128xf32>
    %cst_220 = arith.constant 1.000000e+00 : f32
    %613 = vector.broadcast %cst_220 : f32 to vector<8x128xf32>
    %614 = arith.addf %613, %612 : vector<8x128xf32>
    %615 = arith.divf %613, %614 : vector<8x128xf32>
    %616 = vector.extract_strided_slice %609 {offsets = [0, 128], sizes = [8, 128], strides = [1, 1]} : vector<8x512xf32> to vector<8x128xf32>
    %617 = arith.negf %616 : vector<8x128xf32>
    %618 = math.exp %617 : vector<8x128xf32>
    %cst_221 = arith.constant 1.000000e+00 : f32
    %619 = vector.broadcast %cst_221 : f32 to vector<8x128xf32>
    %620 = arith.addf %619, %618 : vector<8x128xf32>
    %621 = arith.divf %619, %620 : vector<8x128xf32>
    %622 = vector.extract_strided_slice %609 {offsets = [0, 256], sizes = [8, 128], strides = [1, 1]} : vector<8x512xf32> to vector<8x128xf32>
    %623 = math.tanh %622 : vector<8x128xf32>
    %624 = vector.extract_strided_slice %609 {offsets = [0, 384], sizes = [8, 128], strides = [1, 1]} : vector<8x512xf32> to vector<8x128xf32>
    %625 = arith.negf %624 : vector<8x128xf32>
    %626 = math.exp %625 : vector<8x128xf32>
    %cst_222 = arith.constant 1.000000e+00 : f32
    %627 = vector.broadcast %cst_222 : f32 to vector<8x128xf32>
    %628 = arith.addf %627, %626 : vector<8x128xf32>
    %629 = arith.divf %627, %628 : vector<8x128xf32>
    %630 = arith.mulf %621, %597 : vector<8x128xf32>
    %631 = arith.mulf %615, %623 : vector<8x128xf32>
    %632 = arith.addf %630, %631 : vector<8x128xf32>
    %633 = math.tanh %632 : vector<8x128xf32>
    %634 = arith.mulf %629, %633 : vector<8x128xf32>
    %cst_223 = arith.constant 0.000000e+00 : f32
    %635 = vector.broadcast %cst_223 : f32 to vector<8x128xf32>
    %636 = arith.maximumf %634, %635 : vector<8x128xf32>
    %c17_224 = arith.constant 17 : index
    %c0_225 = arith.constant 0 : index
    %c0_226 = arith.constant 0 : index
    %637 = vector.load %arg10[%c17_224, %c0_225, %c0_226] : memref<23x8x128xf32, #tpu.memory_space<vmem>>, vector<1x8x128xf32>
    %638 = vector.shape_cast %637 : vector<1x8x128xf32> to vector<8x128xf32>
    %639 = vector.shape_cast %636 : vector<8x128xf32> to vector<1x8x128xf32>
    tpu.vector_store %arg10[%c17_224, %c0_225, %c0_226], %639 {strides = array<i32>} : memref<23x8x128xf32, #tpu.memory_space<vmem>>, vector<1x8x128xf32>,
    %c18 = arith.constant 18 : index
    %c0_227 = arith.constant 0 : index
    %c0_228 = arith.constant 0 : index
    %640 = vector.load %arg9[%c18, %c0_227, %c0_228] : memref<23x8x512xf32, #tpu.memory_space<vmem>>, vector<1x8x512xf32>
    %641 = vector.shape_cast %640 : vector<1x8x512xf32> to vector<8x512xf32>
    %c0_229 = arith.constant 0 : index
    %c0_230 = arith.constant 0 : index
    %642 = vector.load %arg2[%c0_229, %c0_230] : memref<128x512xf32, #tpu.memory_space<vmem>>, vector<128x512xf32>
    %cst_231 = arith.constant dense<0.000000e+00> : vector<8x512xf32>
    %643 = tpu.matmul %634, %642, %cst_231 {dimension_numbers = #tpu.dot_dimension_numbers<[1], [0], [0], [1], [0, 0, 1, 1], [], []>} : vector<8x128xf32>, vector<128x512xf32>, vector<8x512xf32> -> vector<8x512xf32>
    %644 = arith.addf %641, %643 : vector<8x512xf32>
    %645 = vector.extract_strided_slice %644 {offsets = [0, 0], sizes = [8, 128], strides = [1, 1]} : vector<8x512xf32> to vector<8x128xf32>
    %646 = arith.negf %645 : vector<8x128xf32>
    %647 = math.exp %646 : vector<8x128xf32>
    %cst_232 = arith.constant 1.000000e+00 : f32
    %648 = vector.broadcast %cst_232 : f32 to vector<8x128xf32>
    %649 = arith.addf %648, %647 : vector<8x128xf32>
    %650 = arith.divf %648, %649 : vector<8x128xf32>
    %651 = vector.extract_strided_slice %644 {offsets = [0, 128], sizes = [8, 128], strides = [1, 1]} : vector<8x512xf32> to vector<8x128xf32>
    %652 = arith.negf %651 : vector<8x128xf32>
    %653 = math.exp %652 : vector<8x128xf32>
    %cst_233 = arith.constant 1.000000e+00 : f32
    %654 = vector.broadcast %cst_233 : f32 to vector<8x128xf32>
    %655 = arith.addf %654, %653 : vector<8x128xf32>
    %656 = arith.divf %654, %655 : vector<8x128xf32>
    %657 = vector.extract_strided_slice %644 {offsets = [0, 256], sizes = [8, 128], strides = [1, 1]} : vector<8x512xf32> to vector<8x128xf32>
    %658 = math.tanh %657 : vector<8x128xf32>
    %659 = vector.extract_strided_slice %644 {offsets = [0, 384], sizes = [8, 128], strides = [1, 1]} : vector<8x512xf32> to vector<8x128xf32>
    %660 = arith.negf %659 : vector<8x128xf32>
    %661 = math.exp %660 : vector<8x128xf32>
    %cst_234 = arith.constant 1.000000e+00 : f32
    %662 = vector.broadcast %cst_234 : f32 to vector<8x128xf32>
    %663 = arith.addf %662, %661 : vector<8x128xf32>
    %664 = arith.divf %662, %663 : vector<8x128xf32>
    %665 = arith.mulf %656, %632 : vector<8x128xf32>
    %666 = arith.mulf %650, %658 : vector<8x128xf32>
    %667 = arith.addf %665, %666 : vector<8x128xf32>
    %668 = math.tanh %667 : vector<8x128xf32>
    %669 = arith.mulf %664, %668 : vector<8x128xf32>
    %cst_235 = arith.constant 0.000000e+00 : f32
    %670 = vector.broadcast %cst_235 : f32 to vector<8x128xf32>
    %671 = arith.maximumf %669, %670 : vector<8x128xf32>
    %c18_236 = arith.constant 18 : index
    %c0_237 = arith.constant 0 : index
    %c0_238 = arith.constant 0 : index
    %672 = vector.load %arg10[%c18_236, %c0_237, %c0_238] : memref<23x8x128xf32, #tpu.memory_space<vmem>>, vector<1x8x128xf32>
    %673 = vector.shape_cast %672 : vector<1x8x128xf32> to vector<8x128xf32>
    %674 = vector.shape_cast %671 : vector<8x128xf32> to vector<1x8x128xf32>
    tpu.vector_store %arg10[%c18_236, %c0_237, %c0_238], %674 {strides = array<i32>} : memref<23x8x128xf32, #tpu.memory_space<vmem>>, vector<1x8x128xf32>,
    %c19 = arith.constant 19 : index
    %c0_239 = arith.constant 0 : index
    %c0_240 = arith.constant 0 : index
    %675 = vector.load %arg9[%c19, %c0_239, %c0_240] : memref<23x8x512xf32, #tpu.memory_space<vmem>>, vector<1x8x512xf32>
    %676 = vector.shape_cast %675 : vector<1x8x512xf32> to vector<8x512xf32>
    %c0_241 = arith.constant 0 : index
    %c0_242 = arith.constant 0 : index
    %677 = vector.load %arg2[%c0_241, %c0_242] : memref<128x512xf32, #tpu.memory_space<vmem>>, vector<128x512xf32>
    %cst_243 = arith.constant dense<0.000000e+00> : vector<8x512xf32>
    %678 = tpu.matmul %669, %677, %cst_243 {dimension_numbers = #tpu.dot_dimension_numbers<[1], [0], [0], [1], [0, 0, 1, 1], [], []>} : vector<8x128xf32>, vector<128x512xf32>, vector<8x512xf32> -> vector<8x512xf32>
    %679 = arith.addf %676, %678 : vector<8x512xf32>
    %680 = vector.extract_strided_slice %679 {offsets = [0, 0], sizes = [8, 128], strides = [1, 1]} : vector<8x512xf32> to vector<8x128xf32>
    %681 = arith.negf %680 : vector<8x128xf32>
    %682 = math.exp %681 : vector<8x128xf32>
    %cst_244 = arith.constant 1.000000e+00 : f32
    %683 = vector.broadcast %cst_244 : f32 to vector<8x128xf32>
    %684 = arith.addf %683, %682 : vector<8x128xf32>
    %685 = arith.divf %683, %684 : vector<8x128xf32>
    %686 = vector.extract_strided_slice %679 {offsets = [0, 128], sizes = [8, 128], strides = [1, 1]} : vector<8x512xf32> to vector<8x128xf32>
    %687 = arith.negf %686 : vector<8x128xf32>
    %688 = math.exp %687 : vector<8x128xf32>
    %cst_245 = arith.constant 1.000000e+00 : f32
    %689 = vector.broadcast %cst_245 : f32 to vector<8x128xf32>
    %690 = arith.addf %689, %688 : vector<8x128xf32>
    %691 = arith.divf %689, %690 : vector<8x128xf32>
    %692 = vector.extract_strided_slice %679 {offsets = [0, 256], sizes = [8, 128], strides = [1, 1]} : vector<8x512xf32> to vector<8x128xf32>
    %693 = math.tanh %692 : vector<8x128xf32>
    %694 = vector.extract_strided_slice %679 {offsets = [0, 384], sizes = [8, 128], strides = [1, 1]} : vector<8x512xf32> to vector<8x128xf32>
    %695 = arith.negf %694 : vector<8x128xf32>
    %696 = math.exp %695 : vector<8x128xf32>
    %cst_246 = arith.constant 1.000000e+00 : f32
    %697 = vector.broadcast %cst_246 : f32 to vector<8x128xf32>
    %698 = arith.addf %697, %696 : vector<8x128xf32>
    %699 = arith.divf %697, %698 : vector<8x128xf32>
    %700 = arith.mulf %691, %667 : vector<8x128xf32>
    %701 = arith.mulf %685, %693 : vector<8x128xf32>
    %702 = arith.addf %700, %701 : vector<8x128xf32>
    %703 = math.tanh %702 : vector<8x128xf32>
    %704 = arith.mulf %699, %703 : vector<8x128xf32>
    %cst_247 = arith.constant 0.000000e+00 : f32
    %705 = vector.broadcast %cst_247 : f32 to vector<8x128xf32>
    %706 = arith.maximumf %704, %705 : vector<8x128xf32>
    %c19_248 = arith.constant 19 : index
    %c0_249 = arith.constant 0 : index
    %c0_250 = arith.constant 0 : index
    %707 = vector.load %arg10[%c19_248, %c0_249, %c0_250] : memref<23x8x128xf32, #tpu.memory_space<vmem>>, vector<1x8x128xf32>
    %708 = vector.shape_cast %707 : vector<1x8x128xf32> to vector<8x128xf32>
    %709 = vector.shape_cast %706 : vector<8x128xf32> to vector<1x8x128xf32>
    tpu.vector_store %arg10[%c19_248, %c0_249, %c0_250], %709 {strides = array<i32>} : memref<23x8x128xf32, #tpu.memory_space<vmem>>, vector<1x8x128xf32>,
    %c20 = arith.constant 20 : index
    %c0_251 = arith.constant 0 : index
    %c0_252 = arith.constant 0 : index
    %710 = vector.load %arg9[%c20, %c0_251, %c0_252] : memref<23x8x512xf32, #tpu.memory_space<vmem>>, vector<1x8x512xf32>
    %711 = vector.shape_cast %710 : vector<1x8x512xf32> to vector<8x512xf32>
    %c0_253 = arith.constant 0 : index
    %c0_254 = arith.constant 0 : index
    %712 = vector.load %arg2[%c0_253, %c0_254] : memref<128x512xf32, #tpu.memory_space<vmem>>, vector<128x512xf32>
    %cst_255 = arith.constant dense<0.000000e+00> : vector<8x512xf32>
    %713 = tpu.matmul %704, %712, %cst_255 {dimension_numbers = #tpu.dot_dimension_numbers<[1], [0], [0], [1], [0, 0, 1, 1], [], []>} : vector<8x128xf32>, vector<128x512xf32>, vector<8x512xf32> -> vector<8x512xf32>
    %714 = arith.addf %711, %713 : vector<8x512xf32>
    %715 = vector.extract_strided_slice %714 {offsets = [0, 0], sizes = [8, 128], strides = [1, 1]} : vector<8x512xf32> to vector<8x128xf32>
    %716 = arith.negf %715 : vector<8x128xf32>
    %717 = math.exp %716 : vector<8x128xf32>
    %cst_256 = arith.constant 1.000000e+00 : f32
    %718 = vector.broadcast %cst_256 : f32 to vector<8x128xf32>
    %719 = arith.addf %718, %717 : vector<8x128xf32>
    %720 = arith.divf %718, %719 : vector<8x128xf32>
    %721 = vector.extract_strided_slice %714 {offsets = [0, 128], sizes = [8, 128], strides = [1, 1]} : vector<8x512xf32> to vector<8x128xf32>
    %722 = arith.negf %721 : vector<8x128xf32>
    %723 = math.exp %722 : vector<8x128xf32>
    %cst_257 = arith.constant 1.000000e+00 : f32
    %724 = vector.broadcast %cst_257 : f32 to vector<8x128xf32>
    %725 = arith.addf %724, %723 : vector<8x128xf32>
    %726 = arith.divf %724, %725 : vector<8x128xf32>
    %727 = vector.extract_strided_slice %714 {offsets = [0, 256], sizes = [8, 128], strides = [1, 1]} : vector<8x512xf32> to vector<8x128xf32>
    %728 = math.tanh %727 : vector<8x128xf32>
    %729 = vector.extract_strided_slice %714 {offsets = [0, 384], sizes = [8, 128], strides = [1, 1]} : vector<8x512xf32> to vector<8x128xf32>
    %730 = arith.negf %729 : vector<8x128xf32>
    %731 = math.exp %730 : vector<8x128xf32>
    %cst_258 = arith.constant 1.000000e+00 : f32
    %732 = vector.broadcast %cst_258 : f32 to vector<8x128xf32>
    %733 = arith.addf %732, %731 : vector<8x128xf32>
    %734 = arith.divf %732, %733 : vector<8x128xf32>
    %735 = arith.mulf %726, %702 : vector<8x128xf32>
    %736 = arith.mulf %720, %728 : vector<8x128xf32>
    %737 = arith.addf %735, %736 : vector<8x128xf32>
    %738 = math.tanh %737 : vector<8x128xf32>
    %739 = arith.mulf %734, %738 : vector<8x128xf32>
    %cst_259 = arith.constant 0.000000e+00 : f32
    %740 = vector.broadcast %cst_259 : f32 to vector<8x128xf32>
    %741 = arith.maximumf %739, %740 : vector<8x128xf32>
    %c20_260 = arith.constant 20 : index
    %c0_261 = arith.constant 0 : index
    %c0_262 = arith.constant 0 : index
    %742 = vector.load %arg10[%c20_260, %c0_261, %c0_262] : memref<23x8x128xf32, #tpu.memory_space<vmem>>, vector<1x8x128xf32>
    %743 = vector.shape_cast %742 : vector<1x8x128xf32> to vector<8x128xf32>
    %744 = vector.shape_cast %741 : vector<8x128xf32> to vector<1x8x128xf32>
    tpu.vector_store %arg10[%c20_260, %c0_261, %c0_262], %744 {strides = array<i32>} : memref<23x8x128xf32, #tpu.memory_space<vmem>>, vector<1x8x128xf32>,
    %c21 = arith.constant 21 : index
    %c0_263 = arith.constant 0 : index
    %c0_264 = arith.constant 0 : index
    %745 = vector.load %arg9[%c21, %c0_263, %c0_264] : memref<23x8x512xf32, #tpu.memory_space<vmem>>, vector<1x8x512xf32>
    %746 = vector.shape_cast %745 : vector<1x8x512xf32> to vector<8x512xf32>
    %c0_265 = arith.constant 0 : index
    %c0_266 = arith.constant 0 : index
    %747 = vector.load %arg2[%c0_265, %c0_266] : memref<128x512xf32, #tpu.memory_space<vmem>>, vector<128x512xf32>
    %cst_267 = arith.constant dense<0.000000e+00> : vector<8x512xf32>
    %748 = tpu.matmul %739, %747, %cst_267 {dimension_numbers = #tpu.dot_dimension_numbers<[1], [0], [0], [1], [0, 0, 1, 1], [], []>} : vector<8x128xf32>, vector<128x512xf32>, vector<8x512xf32> -> vector<8x512xf32>
    %749 = arith.addf %746, %748 : vector<8x512xf32>
    %750 = vector.extract_strided_slice %749 {offsets = [0, 0], sizes = [8, 128], strides = [1, 1]} : vector<8x512xf32> to vector<8x128xf32>
    %751 = arith.negf %750 : vector<8x128xf32>
    %752 = math.exp %751 : vector<8x128xf32>
    %cst_268 = arith.constant 1.000000e+00 : f32
    %753 = vector.broadcast %cst_268 : f32 to vector<8x128xf32>
    %754 = arith.addf %753, %752 : vector<8x128xf32>
    %755 = arith.divf %753, %754 : vector<8x128xf32>
    %756 = vector.extract_strided_slice %749 {offsets = [0, 128], sizes = [8, 128], strides = [1, 1]} : vector<8x512xf32> to vector<8x128xf32>
    %757 = arith.negf %756 : vector<8x128xf32>
    %758 = math.exp %757 : vector<8x128xf32>
    %cst_269 = arith.constant 1.000000e+00 : f32
    %759 = vector.broadcast %cst_269 : f32 to vector<8x128xf32>
    %760 = arith.addf %759, %758 : vector<8x128xf32>
    %761 = arith.divf %759, %760 : vector<8x128xf32>
    %762 = vector.extract_strided_slice %749 {offsets = [0, 256], sizes = [8, 128], strides = [1, 1]} : vector<8x512xf32> to vector<8x128xf32>
    %763 = math.tanh %762 : vector<8x128xf32>
    %764 = vector.extract_strided_slice %749 {offsets = [0, 384], sizes = [8, 128], strides = [1, 1]} : vector<8x512xf32> to vector<8x128xf32>
    %765 = arith.negf %764 : vector<8x128xf32>
    %766 = math.exp %765 : vector<8x128xf32>
    %cst_270 = arith.constant 1.000000e+00 : f32
    %767 = vector.broadcast %cst_270 : f32 to vector<8x128xf32>
    %768 = arith.addf %767, %766 : vector<8x128xf32>
    %769 = arith.divf %767, %768 : vector<8x128xf32>
    %770 = arith.mulf %761, %737 : vector<8x128xf32>
    %771 = arith.mulf %755, %763 : vector<8x128xf32>
    %772 = arith.addf %770, %771 : vector<8x128xf32>
    %773 = math.tanh %772 : vector<8x128xf32>
    %774 = arith.mulf %769, %773 : vector<8x128xf32>
    %cst_271 = arith.constant 0.000000e+00 : f32
    %775 = vector.broadcast %cst_271 : f32 to vector<8x128xf32>
    %776 = arith.maximumf %774, %775 : vector<8x128xf32>
    %c21_272 = arith.constant 21 : index
    %c0_273 = arith.constant 0 : index
    %c0_274 = arith.constant 0 : index
    %777 = vector.load %arg10[%c21_272, %c0_273, %c0_274] : memref<23x8x128xf32, #tpu.memory_space<vmem>>, vector<1x8x128xf32>
    %778 = vector.shape_cast %777 : vector<1x8x128xf32> to vector<8x128xf32>
    %779 = vector.shape_cast %776 : vector<8x128xf32> to vector<1x8x128xf32>
    tpu.vector_store %arg10[%c21_272, %c0_273, %c0_274], %779 {strides = array<i32>} : memref<23x8x128xf32, #tpu.memory_space<vmem>>, vector<1x8x128xf32>,
    %c22 = arith.constant 22 : index
    %c0_275 = arith.constant 0 : index
    %c0_276 = arith.constant 0 : index
    %780 = vector.load %arg9[%c22, %c0_275, %c0_276] : memref<23x8x512xf32, #tpu.memory_space<vmem>>, vector<1x8x512xf32>
    %781 = vector.shape_cast %780 : vector<1x8x512xf32> to vector<8x512xf32>
    %c0_277 = arith.constant 0 : index
    %c0_278 = arith.constant 0 : index
    %782 = vector.load %arg2[%c0_277, %c0_278] : memref<128x512xf32, #tpu.memory_space<vmem>>, vector<128x512xf32>
    %cst_279 = arith.constant dense<0.000000e+00> : vector<8x512xf32>
    %783 = tpu.matmul %774, %782, %cst_279 {dimension_numbers = #tpu.dot_dimension_numbers<[1], [0], [0], [1], [0, 0, 1, 1], [], []>} : vector<8x128xf32>, vector<128x512xf32>, vector<8x512xf32> -> vector<8x512xf32>
    %784 = arith.addf %781, %783 : vector<8x512xf32>
    %785 = vector.extract_strided_slice %784 {offsets = [0, 0], sizes = [8, 128], strides = [1, 1]} : vector<8x512xf32> to vector<8x128xf32>
    %786 = arith.negf %785 : vector<8x128xf32>
    %787 = math.exp %786 : vector<8x128xf32>
    %cst_280 = arith.constant 1.000000e+00 : f32
    %788 = vector.broadcast %cst_280 : f32 to vector<8x128xf32>
    %789 = arith.addf %788, %787 : vector<8x128xf32>
    %790 = arith.divf %788, %789 : vector<8x128xf32>
    %791 = vector.extract_strided_slice %784 {offsets = [0, 128], sizes = [8, 128], strides = [1, 1]} : vector<8x512xf32> to vector<8x128xf32>
    %792 = arith.negf %791 : vector<8x128xf32>
    %793 = math.exp %792 : vector<8x128xf32>
    %cst_281 = arith.constant 1.000000e+00 : f32
    %794 = vector.broadcast %cst_281 : f32 to vector<8x128xf32>
    %795 = arith.addf %794, %793 : vector<8x128xf32>
    %796 = arith.divf %794, %795 : vector<8x128xf32>
    %797 = vector.extract_strided_slice %784 {offsets = [0, 256], sizes = [8, 128], strides = [1, 1]} : vector<8x512xf32> to vector<8x128xf32>
    %798 = math.tanh %797 : vector<8x128xf32>
    %799 = vector.extract_strided_slice %784 {offsets = [0, 384], sizes = [8, 128], strides = [1, 1]} : vector<8x512xf32> to vector<8x128xf32>
    %800 = arith.negf %799 : vector<8x128xf32>
    %801 = math.exp %800 : vector<8x128xf32>
    %cst_282 = arith.constant 1.000000e+00 : f32
    %802 = vector.broadcast %cst_282 : f32 to vector<8x128xf32>
    %803 = arith.addf %802, %801 : vector<8x128xf32>
    %804 = arith.divf %802, %803 : vector<8x128xf32>
    %805 = arith.mulf %796, %772 : vector<8x128xf32>
    %806 = arith.mulf %790, %798 : vector<8x128xf32>
    %807 = arith.addf %805, %806 : vector<8x128xf32>
    %808 = math.tanh %807 : vector<8x128xf32>
    %809 = arith.mulf %804, %808 : vector<8x128xf32>
    %cst_283 = arith.constant 0.000000e+00 : f32
    %810 = vector.broadcast %cst_283 : f32 to vector<8x128xf32>
    %811 = arith.maximumf %809, %810 : vector<8x128xf32>
    %c22_284 = arith.constant 22 : index
    %c0_285 = arith.constant 0 : index
    %c0_286 = arith.constant 0 : index
    %812 = vector.load %arg10[%c22_284, %c0_285, %c0_286] : memref<23x8x128xf32, #tpu.memory_space<vmem>>, vector<1x8x128xf32>
    %813 = vector.shape_cast %812 : vector<1x8x128xf32> to vector<8x128xf32>
    %814 = vector.shape_cast %811 : vector<8x128xf32> to vector<1x8x128xf32>
    tpu.vector_store %arg10[%c22_284, %c0_285, %c0_286], %814 {strides = array<i32>} : memref<23x8x128xf32, #tpu.memory_space<vmem>>, vector<1x8x128xf32>,
    %c0_287 = arith.constant 0 : index
    %c0_288 = arith.constant 0 : index
    %c0_289 = arith.constant 0 : index
    %815 = vector.load %arg10[%c0_287, %c0_288, %c0_289] : memref<23x8x128xf32, #tpu.memory_space<vmem>>, vector<23x8x128xf32>
    %816 = vector.shape_cast %815 : vector<23x8x128xf32> to vector<184x128xf32>
    %c0_290 = arith.constant 0 : index
    %c0_291 = arith.constant 0 : index
    %817 = vector.load %arg4[%c0_290, %c0_291] : memref<128x128xf32, #tpu.memory_space<vmem>>, vector<128x128xf32>
    %cst_292 = arith.constant dense<0.000000e+00> : vector<184x128xf32>
    %818 = tpu.matmul %816, %817, %cst_292 {dimension_numbers = #tpu.dot_dimension_numbers<[1], [0], [0], [1], [0, 0, 1, 1], [], []>} : vector<184x128xf32>, vector<128x128xf32>, vector<184x128xf32> -> vector<184x128xf32>
    %c0_293 = arith.constant 0 : index
    %c0_294 = arith.constant 0 : index
    %819 = vector.load %arg5[%c0_293, %c0_294] : memref<1x128xf32, #tpu.memory_space<vmem>>, vector<1x128xf32>
    %820 = vector.broadcast %819 : vector<1x128xf32> to vector<184x128xf32>
    %821 = arith.addf %818, %820 : vector<184x128xf32>
    %cst_295 = arith.constant 0.000000e+00 : f32
    %822 = vector.broadcast %cst_295 : f32 to vector<184x128xf32>
    %823 = arith.maximumf %821, %822 : vector<184x128xf32>
    %824 = vector.shape_cast %823 : vector<184x128xf32> to vector<23x8x128xf32>
    %c0_296 = arith.constant 0 : index
    %c0_297 = arith.constant 0 : index
    %c0_298 = arith.constant 0 : index
    %825 = vector.load %arg6[%c0_296, %c0_297, %c0_298] : memref<23x128x3xf32, #tpu.memory_space<vmem>>, vector<23x128x3xf32>
    %cst_299 = arith.constant dense<0.000000e+00> : vector<23x8x3xf32>
    %826 = tpu.matmul %824, %825, %cst_299 {dimension_numbers = #tpu.dot_dimension_numbers<[2], [1], [1], [2], [0, 0, 0, 1, 1, 2], [0], [0]>} : vector<23x8x128xf32>, vector<23x128x3xf32>, vector<23x8x3xf32> -> vector<23x8x3xf32>
    %cst_300 = arith.constant dense<0.000000e+00> : vector<8x3xf32>
    %827 = vector.multi_reduction <add>, %826, %cst_300 [0] : vector<23x8x3xf32> to vector<8x3xf32>
    %c0_301 = arith.constant 0 : index
    %c0_302 = arith.constant 0 : index
    %828 = vector.load %arg7[%c0_301, %c0_302] : memref<1x3xf32, #tpu.memory_space<vmem>>, vector<1x3xf32>
    %829 = vector.broadcast %828 : vector<1x3xf32> to vector<8x3xf32>
    %830 = arith.addf %827, %829 : vector<8x3xf32>
    %cst_303 = arith.constant dense<0xFF800000> : vector<8xf32>
    %831 = vector.multi_reduction <maximumf>, %830, %cst_303 [1] : vector<8x3xf32> to vector<8xf32>
    %832 = vector.shape_cast %831 : vector<8xf32> to vector<8x1xf32>
    %833 = vector.broadcast %832 : vector<8x1xf32> to vector<8x3xf32>
    %834 = arith.subf %830, %833 : vector<8x3xf32>
    %835 = math.exp %834 : vector<8x3xf32>
    %cst_304 = arith.constant dense<0.000000e+00> : vector<8xf32>
    %836 = vector.multi_reduction <add>, %835, %cst_304 [1] : vector<8x3xf32> to vector<8xf32>
    %837 = vector.shape_cast %836 : vector<8xf32> to vector<8x1xf32>
    %838 = tpu.reciprocal %837 : vector<8x1xf32> -> vector<8x1xf32>
    %839 = vector.broadcast %838 : vector<8x1xf32> to vector<8x3xf32>
    %840 = arith.mulf %835, %839 : vector<8x3xf32>
    %c0_305 = arith.constant 0 : index
    %c0_306 = arith.constant 0 : index
    %841 = vector.load %arg8[%c0_305, %c0_306] : memref<8x3xf32, #tpu.memory_space<vmem>>, vector<8x3xf32>
    tpu.vector_store %arg8[%c0_305, %c0_306], %840 {strides = array<i32>} : memref<8x3xf32, #tpu.memory_space<vmem>>, vector<8x3xf32>,
    return
  }
}

</mosaic_0001>

<bundles_post_ra>
// kernel: tpu_custom_call.1
= control target key start
LH: loop header
LB: loop body
LE: loop exit
PB: predicated region body
PF: predicated region fallthrough
CT: control target
= control target key end

     0   :  { %vm150_vm0 = vcmask 1043456   ;;  %v17019_v2 = vmov 0.0   ;;  %vm80_vm1 = vcmask 31744   ;;  %vm12587_vm2 = vmmov 0   ;;  %s17010_s1 = inlined_call_operand.vmem [shape: f32[4,512], index: 1, kind: input, shape index: {}]   ;;  %s17011_s0 = inlined_call_operand.vmem [shape: f32[184,4], index: 0, kind: input, shape index: {}]   ;;  %s17012_s2 = inlined_call_operand.vmem [shape: f32[128,512], index: 2, kind: input, shape index: {}]   ;;  %s17013_s3 = inlined_call_operand.vmem [shape: f32[1,512], index: 3, kind: input, shape index: {}]   ;;  %s17014_s4 = inlined_call_operand.vmem [shape: f32[128,128], index: 4, kind: input, shape index: {}]   ;;  %s17015_s6 = inlined_call_operand.vmem [shape: f32[23,128,3], index: 6, kind: input, shape index: {}]   ;;  %s17016_s5 = inlined_call_operand.vmem [shape: f32[1,128], index: 5, kind: input, shape index: {}]   ;;  %s17017_s7 = inlined_call_operand.vmem [shape: f32[1,3], index: 7, kind: input, shape index: {}]   ;;  %s17018_s8 = inlined_call_operand.vmem [shape: f32[8,3], index: 8, kind: output, shape index: {}]  }
   0x1   :  { %v52_v0 = vld [vmem:[%s17010_s1] sm:$0xff]  ;;  %v53_v1 = vld [vmem:[%s17010_s1 + $0x8] sm:$0xff]  ;;  %223 = vmatprep.mubr.f32.mxu0 %v17019_v2  ;;  %426 = vmatprep.mubr.f32.mxu1 %v17019_v2  ;;  %v664_v17 = vld [vmem:[%s17012_s2 + $0x18] sm:$0xff]  ;;  %vm8448_vm3 = vcmask 23552  }
   0x2   :  { %v78_v3 = vcombine.high %v52_v0, %v52_v0  ;;  %v79_v4 = vcombine.high %v53_v1, %v53_v1  ;;  %v662_v5 = vld [vmem:[%s17012_s2 + $0x8] sm:$0xff]  ;;  %v661_v7 = vld [vmem:[%s17012_s2] sm:$0xff]  ;;  %v668_v18 = vld [vmem:[%s17012_s2 + $0x38] sm:$0xff] }
   0x3   :  { %v666_v6 = vld [vmem:[%s17012_s2 + $0x28] sm:$0xff]  ;;  %v29_v8 = vld [vmem:[%s17011_s0] sm:$0xff]  ;;  %v663_v19 = vld [vmem:[%s17012_s2 + $0x10] sm:$0xff]  ;;  %v12694_v21 = vpack.c.bf16 %v668_v18, %v664_v17 }
   0x4   :  { %v12653_v9 = vpack.c.bf16 %v666_v6, %v662_v5  ;;  %v665_v10 = vld [vmem:[%s17012_s2 + $0x20] sm:$0xff]  ;;  %8518 = vmatprep.subr.msk.mxu0 %vm150_vm0, %v78_v3  ;;  %8543 = vmatprep.subr.msk.mxu1 %vm150_vm0, %v79_v4  ;;  %v670_v12 = vld [vmem:[%s17012_s2 + $0x48] sm:$0xff]  ;;  %v667_v22 = vld [vmem:[%s17012_s2 + $0x30] sm:$0xff] }
   0x5   :  { %v12660_v11 = vpack.c.bf16 %v665_v10, %v661_v7  ;;  %v674_v13 = vld [vmem:[%s17012_s2 + $0x68] sm:$0xff]  ;;  %8519 = vmatpush1.msk.msra.mxu0 %vm150_vm0, %v52_v0  ;;  %8544 = vmatpush1.msk.msra.mxu1 %vm150_vm0, %v53_v1  ;;  %v669_v15 = vld [vmem:[%s17012_s2 + $0x40] sm:$0xff]  ;;  %v12706_v25 = vpack.c.bf16 %v667_v22, %v663_v19  ;;  %v672_v30 = vld [vmem:[%s17012_s2 + $0x58] sm:$0xff] }
   0x6   :  { %v12670_v14 = vpack.c.bf16 %v674_v13, %v670_v12  ;;  %v673_v16 = vld [vmem:[%s17012_s2 + $0x60] sm:$0xff]  ;;  %8520 = vmatmul.mubr.msk.f32.vlgmr.msra.gmra.mrb[0].mxu0 %vm80_vm1, %v29_v8  ;;  %8545 = vmatmul.mubr.msk.f32.vlgmr.msra.gmra.mrb[0].mxu1 %vm80_vm1, %v29_v8  ;;  %v30_v20 = vld [vmem:[%s17011_s0 + $0x8] sm:$0xff]  ;;  %v676_v31 = vld [vmem:[%s17012_s2 + $0x78] sm:$0xff] }
   0x7   :  { %9976 = vmatprep.subr.bf16.mxu0 %v12653_v9  ;;  %229 = vmatprep.mubr.f32.mxu0 %v17019_v2  ;;  %v678_v23 = vld [vmem:[%s17012_s2 + $0x88] sm:$0xff]  ;;  %v12704_v24 = vpack.c.bf16 %v673_v16, %v669_v15  ;;  %v677_v27 = vld [vmem:[%s17012_s2 + $0x80] sm:$0xff]  ;;  %v12729_v32 = vpack.c.bf16 %v676_v31, %v672_v30  ;;  %v671_v33 = vld [vmem:[%s17012_s2 + $0x50] sm:$0xff] }
   0x8   :  { %9978 = vmatpush1.bf16.msra.mxu0 %v12660_v11  ;;  %432 = vmatprep.mubr.f32.mxu1 %v17019_v2  ;;  %v682_v26 = vld [vmem:[%s17012_s2 + $0xa8] sm:$0xff]  ;;  %v681_v29 = vld [vmem:[%s17012_s2 + $0xa0] sm:$0xff]  ;;  %v675_v34 = vld [vmem:[%s17012_s2 + $0x70] sm:$0xff] }
   0x9   :  { %9980 = vmatprep.subr.bf16.mxu0 %v12670_v14  ;;  %10008 = vmatprep.subr.bf16.mxu1 %v12694_v21  ;;  %v12716_v28 = vpack.c.bf16 %v682_v26, %v678_v23  ;;  %v31_v35 = vld [vmem:[%s17011_s0 + $0x10] sm:$0xff]  ;;  %v686_v36 = vld [vmem:[%s17012_s2 + $0xc8] sm:$0xff]  ;;  %v12750_v38 = vpack.c.bf16 %v681_v29, %v677_v27  ;;  %v12752_v39 = vpack.c.bf16 %v675_v34, %v671_v33  ;;  %v685_v40 = vld [vmem:[%s17012_s2 + $0xc0] sm:$0xff] }
   0xa   :  { %8521 = vmatmul.mubr.msk.f32.gmra.mrb[2].mxu0 %vm80_vm1, %v30_v20  ;;  %8546 = vmatmul.mubr.msk.f32.gmra.mrb[2].mxu1 %vm80_vm1, %v30_v20  ;;  %v690_v37 = vld [vmem:[%s17012_s2 + $0xe8] sm:$0xff]  ;;  %v689_v41 = vld [vmem:[%s17012_s2 + $0xe0] sm:$0xff]  ;;  %v680_v43 = vld [vmem:[%s17012_s2 + $0x98] sm:$0xff] }
   0xb   :  { %235 = vmatprep.mubr.f32.mxu0 %v17019_v2  ;;  %438 = vmatprep.mubr.f32.mxu1 %v17019_v2  ;;  %v12762_v42 = vpack.c.bf16 %v690_v37, %v686_v36  ;;  %v684_v44 = vld [vmem:[%s17012_s2 + $0xb8] sm:$0xff]  ;;  %v679_v45 = vld [vmem:[%s17012_s2 + $0x90] sm:$0xff]  ;;  %v694_v49 = vld [vmem:[%s17012_s2 + $0x108] sm:$0xff]  ;;  %v12793_v51 = vpack.c.bf16 %v689_v41, %v685_v40 }
   0xc   :  { %9982 = vmatpush1.bf16.msra.mxu0 %v12704_v24  ;;  %10010 = vmatpush1.bf16.msra.mxu1 %v12706_v25  ;;  %v12775_v46 = vpack.c.bf16 %v684_v44, %v680_v43  ;;  %v683_v47 = vld [vmem:[%s17012_s2 + $0xb0] sm:$0xff]  ;;  %v32_v48 = vld [vmem:[%s17011_s0 + $0x18] sm:$0xff]  ;;  %v698_v50 = vld [vmem:[%s17012_s2 + $0x128] sm:$0xff] }
   0xd   :  { %9984 = vmatprep.subr.bf16.mxu0 %v12716_v28  ;;  %10012 = vmatprep.subr.bf16.mxu1 %v12729_v32  ;;  %v12795_v52 = vpack.c.bf16 %v683_v47, %v679_v45  ;;  %v693_v53 = vld [vmem:[%s17012_s2 + $0x100] sm:$0xff]  ;;  %v688_v55 = vld [vmem:[%s17012_s2 + $0xd8] sm:$0xff]  ;;  %v12808_v56 = vpack.c.bf16 %v698_v50, %v694_v49  ;;  %v687_v58 = vld [vmem:[%s17012_s2 + $0xd0] sm:$0xff] }
   0xe   :  { %8522 = vmatmul.mubr.msk.f32.gmra.mrb[4].mxu0 %vm80_vm1, %v31_v35  ;;  %8547 = vmatmul.mubr.msk.f32.gmra.mrb[4].mxu1 %vm80_vm1, %v31_v35  ;;  %v697_v54 = vld [vmem:[%s17012_s2 + $0x120] sm:$0xff]  ;;  %v692_v57 = vld [vmem:[%s17012_s2 + $0xf8] sm:$0xff]  ;;  %v691_v59 = vld [vmem:[%s17012_s2 + $0xf0] sm:$0xff] }
   0xf   :  { %241 = vmatprep.mubr.f32.mxu0 %v17019_v2  ;;  %444 = vmatprep.mubr.f32.mxu1 %v17019_v2  ;;  %v12821_v60 = vpack.c.bf16 %v692_v57, %v688_v55  ;;  %v702_v61 = vld [vmem:[%s17012_s2 + $0x148] sm:$0xff]  ;;  %v33_v62 = vld [vmem:[%s17011_s0 + $0x20] sm:$0xff]  ;;  %v12836_v0 = vpack.c.bf16 %v697_v54, %v693_v53  ;;  %v12838_v1 = vpack.c.bf16 %v691_v59, %v687_v58  ;;  %v696_v4 = vld [vmem:[%s17012_s2 + $0x118] sm:$0xff] }
  0x10   :  { %9986 = vmatpush1.bf16.msra.mxu0 %v12750_v38  ;;  %10014 = vmatpush1.bf16.msra.mxu1 %v12752_v39  ;;  %v706_v63 = vld [vmem:[%s17012_s2 + $0x168] sm:$0xff]  ;;  %v701_v3 = vld [vmem:[%s17012_s2 + $0x140] sm:$0xff]  ;;  %v700_v5 = vld [vmem:[%s17012_s2 + $0x138] sm:$0xff] }
  0x11   :  { %9988 = vmatprep.subr.bf16.mxu0 %v12762_v42  ;;  %10016 = vmatprep.subr.bf16.mxu1 %v12775_v46  ;;  %v12851_v6 = vpack.c.bf16 %v706_v63, %v702_v61  ;;  %v705_v7 = vld [vmem:[%s17012_s2 + $0x160] sm:$0xff]  ;;  %v12856_v8 = vpack.c.bf16 %v700_v5, %v696_v4  ;;  %v695_v10 = vld [vmem:[%s17012_s2 + $0x110] sm:$0xff]  ;;  %v710_v13 = vld [vmem:[%s17012_s2 + $0x188] sm:$0xff] }
  0x12   :  { %8523 = vmatmul.mubr.msk.f32.gmra.mrb[6].mxu0 %vm80_vm1, %v32_v48  ;;  %8548 = vmatmul.mubr.msk.f32.gmra.mrb[6].mxu1 %vm80_vm1, %v32_v48  ;;  %v699_v12 = vld [vmem:[%s17012_s2 + $0x130] sm:$0xff]  ;;  %v714_v15 = vld [vmem:[%s17012_s2 + $0x1a8] sm:$0xff]  ;;  %v12879_v17 = vpack.c.bf16 %v705_v7, %v701_v3  ;;  %v709_v19 = vld [vmem:[%s17012_s2 + $0x180] sm:$0xff] }
  0x13   :  { %247 = vmatprep.mubr.f32.mxu0 %v17019_v2  ;;  %450 = vmatprep.mubr.f32.mxu1 %v17019_v2  ;;  %v34_v16 = vld [vmem:[%s17011_s0 + $0x28] sm:$0xff]  ;;  %v12881_v18 = vpack.c.bf16 %v699_v12, %v695_v10  ;;  %v704_v20 = vld [vmem:[%s17012_s2 + $0x158] sm:$0xff]  ;;  %v12894_v23 = vpack.c.bf16 %v714_v15, %v710_v13  ;;  %v713_v26 = vld [vmem:[%s17012_s2 + $0x1a0] sm:$0xff] }
  0x14   :  { %9990 = vmatpush1.bf16.msra.mxu0 %v12793_v51  ;;  %10018 = vmatpush1.bf16.msra.mxu1 %v12795_v52  ;;  %v708_v22 = vld [vmem:[%s17012_s2 + $0x178] sm:$0xff]  ;;  %v703_v29 = vld [vmem:[%s17012_s2 + $0x150] sm:$0xff]  ;;  %v718_v31 = vld [vmem:[%s17012_s2 + $0x1c8] sm:$0xff]  ;;  %v12925_v36 = vpack.c.bf16 %v713_v26, %v709_v19 }
  0x15   :  { %9992 = vmatprep.subr.bf16.mxu0 %v12808_v56  ;;  %10020 = vmatprep.subr.bf16.mxu1 %v12821_v60  ;;  %v12899_v27 = vpack.c.bf16 %v708_v22, %v704_v20  ;;  %v707_v30 = vld [vmem:[%s17012_s2 + $0x170] sm:$0xff]  ;;  %v722_v33 = vld [vmem:[%s17012_s2 + $0x1e8] sm:$0xff]  ;;  %v712_v35 = vld [vmem:[%s17012_s2 + $0x198] sm:$0xff] }
  0x16   :  { %8524 = vmatmul.mubr.msk.f32.gmra.mrb[8].mxu0 %vm80_vm1, %v33_v62  ;;  %8549 = vmatmul.mubr.msk.f32.gmra.mrb[8].mxu1 %vm80_vm1, %v33_v62  ;;  %v35_v34 = vld [vmem:[%s17011_s0 + $0x30] sm:$0xff]  ;;  %v12927_v37 = vpack.c.bf16 %v707_v30, %v703_v29  ;;  %v717_v40 = vld [vmem:[%s17012_s2 + $0x1c0] sm:$0xff]  ;;  %v716_v41 = vld [vmem:[%s17012_s2 + $0x1b8] sm:$0xff]  ;;  %v12937_v43 = vpack.c.bf16 %v722_v33, %v718_v31  ;;  %v56_v29 = vlaneseq }
  0x17   :  { %253 = vmatprep.mubr.f32.mxu0 %v17019_v2  ;;  %456 = vmatprep.mubr.f32.mxu1 %v17019_v2  ;;  %v721_v44 = vld [vmem:[%s17012_s2 + $0x1e0] sm:$0xff]  ;;  %v12942_v45 = vpack.c.bf16 %v716_v41, %v712_v35  ;;  %v711_v47 = vld [vmem:[%s17012_s2 + $0x190] sm:$0xff]  ;;  %v720_v49 = vld [vmem:[%s17012_s2 + $0x1d8] sm:$0xff] }
  0x18   :  { %9994 = vmatpush1.bf16.msra.mxu0 %v12836_v0  ;;  %10022 = vmatpush1.bf16.msra.mxu1 %v12838_v1  ;;  %v715_v48 = vld [vmem:[%s17012_s2 + $0x1b0] sm:$0xff]  ;;  %v724_v50 = vld [vmem:[%s17012_s2 + $0x1f8] sm:$0xff]  ;;  %v12965_v54 = vpack.c.bf16 %v721_v44, %v717_v40  ;;  %v37_v61 = vld [vmem:[%s17011_s0 + $0x40] sm:$0xff]  ;;  %v57_v30 = vshrl.u32 %v56_v29, 7 }
  0x19   :  { %9996 = vmatprep.subr.bf16.mxu0 %v12851_v6  ;;  %10024 = vmatprep.subr.bf16.mxu1 %v12856_v8  ;;  %v36_v53 = vld [vmem:[%s17011_s0 + $0x38] sm:$0xff]  ;;  %v12967_v55 = vpack.c.bf16 %v715_v48, %v711_v47  ;;  %v12971_v57 = vpack.c.bf16 %v724_v50, %v720_v49  ;;  %v719_v58 = vld [vmem:[%s17012_s2 + $0x1d0] sm:$0xff]  ;;  %v38_v63 = vld [vmem:[%s17011_s0 + $0x48] sm:$0xff] }
  0x1a   :  { %8525 = vmatmul.mubr.msk.f32.gmra.mrb[10].mxu0 %vm80_vm1, %v34_v16  ;;  %8550 = vmatmul.mubr.msk.f32.gmra.mrb[10].mxu1 %vm80_vm1, %v34_v16  ;;  %v723_v59 = vld [vmem:[%s17012_s2 + $0x1f0] sm:$0xff]  ;;  %v40_v4 = vld [vmem:[%s17011_s0 + $0x58] sm:$0xff]  ;;  %v41_v5 = vld [vmem:[%s17011_s0 + $0x60] sm:$0xff]  ;;  %v58_v31 = vsub.s32 0, %v57_v30  ;;  %v70_v47 = vsub.s32 3, %v57_v30 }
  0x1b   :  { %259 = vmatprep.mubr.f32.mxu0 %v17019_v2  ;;  %462 = vmatprep.mubr.f32.mxu1 %v17019_v2  ;;  %v12988_v62 = vpack.c.bf16 %v723_v59, %v719_v58  ;;  %v39_v3 = vld [vmem:[%s17011_s0 + $0x50] sm:$0xff]  ;;  %v42_v7 = vld [vmem:[%s17011_s0 + $0x68] sm:$0xff]  ;;  %v44_v12 = vld [vmem:[%s17011_s0 + $0x78] sm:$0xff]  ;;  %v66_v59 = vsub.s32 2, %v57_v30 }
  0x1c   :  { %9998 = vmatpush1.bf16.msra.mxu0 %v12879_v17  ;;  %10026 = vmatpush1.bf16.msra.mxu1 %v12881_v18  ;;  %v43_v10 = vld [vmem:[%s17011_s0 + $0x70] sm:$0xff]  ;;  %v45_v13 = vld [vmem:[%s17011_s0 + $0x80] sm:$0xff]  ;;  %v46_v15 = vld [vmem:[%s17011_s0 + $0x88] sm:$0xff] }
  0x1d   :  { %10000 = vmatprep.subr.bf16.mxu0 %v12894_v23  ;;  %10028 = vmatprep.subr.bf16.mxu1 %v12899_v27  ;;  %v47_v16 = vld [vmem:[%s17011_s0 + $0x90] sm:$0xff]  ;;  %v48_v19 = vld [vmem:[%s17011_s0 + $0x98] sm:$0xff]  ;;  %v49_v20 = vld [vmem:[%s17011_s0 + $0xa0] sm:$0xff] }
  0x1e   :  { %8526 = vmatmul.mubr.msk.f32.gmra.mrb[12].mxu0 %vm80_vm1, %v35_v34  ;;  %8551 = vmatmul.mubr.msk.f32.gmra.mrb[12].mxu1 %vm80_vm1, %v35_v34  ;;  %v50_v22 = vld [vmem:[%s17011_s0 + $0xa8] sm:$0xff]  ;;  %v51_v26 = vld [vmem:[%s17011_s0 + $0xb0] sm:$0xff]  ;;  %v54_v33 = vld [vmem:[%s17013_s3] sm:$0xf]  ;;  %v62_v34 = vsub.s32 1, %v57_v30 }
  0x1f   :  { %265 = vmatprep.mubr.f32.mxu0 %v17019_v2  ;;  %468 = vmatprep.mubr.f32.mxu1 %v17019_v2  ;;  %v13135_v35 = vrot.slane %v54_v33, %v58_v31  ;;  %v13141_v58 = vrot.slane %v54_v33, %v70_v47 }
  0x20   :  { %10002 = vmatpush1.bf16.msra.mxu0 %v12925_v36  ;;  %10030 = vmatpush1.bf16.msra.mxu1 %v12927_v37  ;;  %v13137_v40 = vrot.slane %v54_v33, %v62_v34 }
  0x21   :  { %10004 = vmatprep.subr.bf16.mxu0 %v12937_v43  ;;  %10032 = vmatprep.subr.bf16.mxu1 %v12942_v45 }
  0x22   :  { %8527 = vmatmul.mubr.msk.f32.gmra.mrb[14].mxu0 %vm80_vm1, %v36_v53  ;;  %8552 = vmatmul.mubr.msk.f32.gmra.mrb[14].mxu1 %vm80_vm1, %v36_v53 }
  0x23   :  { %271 = vmatprep.mubr.f32.mxu0 %v17019_v2  ;;  %474 = vmatprep.mubr.f32.mxu1 %v17019_v2 }
  0x24   :  { %10006 = vmatpush1.bf16.msra.mxu0 %v12965_v54  ;;  %10034 = vmatpush1.bf16.msra.mxu1 %v12967_v55 }
  0x25   :  { %10036 = vmatprep.subr.bf16.mxu1 %v12971_v57  ;;  %10040 = vmatprep.subr.bf16.mxu0 %v12653_v9 }
  0x26   :  { %8528 = vmatmul.mubr.msk.f32.gmra.mrb[16].mxu0 %vm80_vm1, %v37_v61  ;;  %8553 = vmatmul.mubr.msk.f32.gmra.mrb[16].mxu1 %vm80_vm1, %v37_v61 }
  0x27   :  { %277 = vmatprep.mubr.f32.mxu0 %v17019_v2  ;;  %480 = vmatprep.mubr.f32.mxu1 %v17019_v2 }
  0x28   :  { %10038 = vmatpush1.bf16.msra.mxu1 %v12988_v62 }
  0x29   :  { %10072 = vmatprep.subr.bf16.mxu1 %v12694_v21 }
  0x2a   :  { %8529 = vmatmul.mubr.msk.f32.gmra.mrb[18].mxu0 %vm80_vm1, %v38_v63  ;;  %8554 = vmatmul.mubr.msk.f32.gmra.mrb[18].mxu1 %vm80_vm1, %v38_v63  ;;  %v13144_v63 = vrot.slane %v54_v33, %v66_v59  ;;  %v1393_v59 = vld [vmem:[%s17012_s2 + $0x38] sm:$0xff] }
  0x2b   :  { %283 = vmatprep.mubr.f32.mxu0 %v17019_v2  ;;  %486 = vmatprep.mubr.f32.mxu1 %v17019_v2 }
  0x2e   :  { %8530 = vmatmul.mubr.msk.f32.gmra.mrb[20].mxu0 %vm80_vm1, %v39_v3  ;;  %8555 = vmatmul.mubr.msk.f32.gmra.mrb[20].mxu1 %vm80_vm1, %v39_v3 }
  0x2f   :  { %289 = vmatprep.mubr.f32.mxu0 %v17019_v2  ;;  %492 = vmatprep.mubr.f32.mxu1 %v17019_v2 }
  0x32   :  { %8531 = vmatmul.mubr.msk.f32.gmra.mrb[22].mxu0 %vm80_vm1, %v40_v4  ;;  %8556 = vmatmul.mubr.msk.f32.gmra.mrb[22].mxu1 %vm80_vm1, %v40_v4 }
  0x33   :  { %295 = vmatprep.mubr.f32.mxu0 %v17019_v2  ;;  %498 = vmatprep.mubr.f32.mxu1 %v17019_v2 }
  0x36   :  { %8532 = vmatmul.mubr.msk.f32.gmra.mrb[24].mxu0 %vm80_vm1, %v41_v5  ;;  %8557 = vmatmul.mubr.msk.f32.gmra.mrb[24].mxu1 %vm80_vm1, %v41_v5 }
  0x37   :  { %301 = vmatprep.mubr.f32.mxu0 %v17019_v2  ;;  %504 = vmatprep.mubr.f32.mxu1 %v17019_v2 }
  0x3a   :  { %8533 = vmatmul.mubr.msk.f32.gmra.mrb[26].mxu0 %vm80_vm1, %v42_v7  ;;  %8558 = vmatmul.mubr.msk.f32.gmra.mrb[26].mxu1 %vm80_vm1, %v42_v7 }
  0x3b   :  { %307 = vmatprep.mubr.f32.mxu0 %v17019_v2  ;;  %510 = vmatprep.mubr.f32.mxu1 %v17019_v2 }
  0x3e   :  { %8534 = vmatmul.mubr.msk.f32.gmra.mrb[28].mxu0 %vm80_vm1, %v43_v10  ;;  %8559 = vmatmul.mubr.msk.f32.gmra.mrb[28].mxu1 %vm80_vm1, %v43_v10 }
  0x3f   :  { %313 = vmatprep.mubr.f32.mxu0 %v17019_v2  ;;  %516 = vmatprep.mubr.f32.mxu1 %v17019_v2 }
  0x42   :  { %8535 = vmatmul.mubr.msk.f32.gmra.mrb[30].mxu0 %vm80_vm1, %v44_v12  ;;  %8560 = vmatmul.mubr.msk.f32.gmra.mrb[30].mxu1 %vm80_vm1, %v44_v12 }
  0x43   :  { %319 = vmatprep.mubr.f32.mxu0 %v17019_v2  ;;  %522 = vmatprep.mubr.f32.mxu1 %v17019_v2 }
  0x46   :  { %8536 = vmatmul.mubr.msk.f32.gmra.mrb[32].mxu0 %vm80_vm1, %v45_v13  ;;  %8561 = vmatmul.mubr.msk.f32.gmra.mrb[32].mxu1 %vm80_vm1, %v45_v13 }
  0x47   :  { %325 = vmatprep.mubr.f32.mxu0 %v17019_v2  ;;  %528 = vmatprep.mubr.f32.mxu1 %v17019_v2 }
  0x4a   :  { %8537 = vmatmul.mubr.msk.f32.gmra.mrb[34].mxu0 %vm80_vm1, %v46_v15  ;;  %8562 = vmatmul.mubr.msk.f32.gmra.mrb[34].mxu1 %vm80_vm1, %v46_v15 }
  0x4b   :  { %331 = vmatprep.mubr.f32.mxu0 %v17019_v2  ;;  %534 = vmatprep.mubr.f32.mxu1 %v17019_v2 }
  0x4e   :  { %8538 = vmatmul.mubr.msk.f32.gmra.mrb[36].mxu0 %vm80_vm1, %v47_v16  ;;  %8563 = vmatmul.mubr.msk.f32.gmra.mrb[36].mxu1 %vm80_vm1, %v47_v16 }
  0x4f   :  { %337 = vmatprep.mubr.f32.mxu0 %v17019_v2  ;;  %540 = vmatprep.mubr.f32.mxu1 %v17019_v2 }
  0x52   :  { %8539 = vmatmul.mubr.msk.f32.gmra.mrb[38].mxu0 %vm80_vm1, %v48_v19  ;;  %8564 = vmatmul.mubr.msk.f32.gmra.mrb[38].mxu1 %vm80_vm1, %v48_v19 }
  0x53   :  { %343 = vmatprep.mubr.f32.mxu0 %v17019_v2  ;;  %546 = vmatprep.mubr.f32.mxu1 %v17019_v2 }
  0x56   :  { %8540 = vmatmul.mubr.msk.f32.gmra.mrb[40].mxu0 %vm80_vm1, %v49_v20  ;;  %8565 = vmatmul.mubr.msk.f32.gmra.mrb[40].mxu1 %vm80_vm1, %v49_v20 }
  0x57   :  { %349 = vmatprep.mubr.f32.mxu0 %v17019_v2  ;;  %552 = vmatprep.mubr.f32.mxu1 %v17019_v2 }
  0x5a   :  { %8541 = vmatmul.mubr.msk.f32.gmra.mrb[42].mxu0 %vm80_vm1, %v50_v22  ;;  %8566 = vmatmul.mubr.msk.f32.gmra.mrb[42].mxu1 %vm80_vm1, %v50_v22 }
  0x5b   :  { %355 = vmatprep.mubr.f32.mxu0 %v17019_v2  ;;  %558 = vmatprep.mubr.f32.mxu1 %v17019_v2 }
  0x5e   :  { %8542 = vmatmul.mubr.msk.f32.gmra.mrb[44].mxu0 %vm80_vm1, %v51_v26  ;;  %8567 = vmatmul.mubr.msk.f32.gmra.mrb[44].mxu1 %vm80_vm1, %v51_v26 }
  0x5f   :  { %789 = vmatprep.mubr.f32.mxu0 %v17019_v2  ;;  %860 = vmatprep.mubr.f32.mxu1 %v17019_v2 }
  0x62   :  { %790 = vmatmul.mubr.f32.vlgmr.msra.gmra.mrb[0].mxu0 %v17019_v2  ;;  %861 = vmatmul.mubr.f32.vlgmr.msra.gmra.mrb[0].mxu1 %v17019_v2 }
  0x63   :  { %10042 = vmatpush1.bf16.msra.mxu0 %v12660_v11  ;;  %10074 = vmatpush1.bf16.msra.mxu1 %v12706_v25 }
  0x64   :  { %10044 = vmatprep.subr.bf16.mxu0 %v12670_v14  ;;  %10076 = vmatprep.subr.bf16.mxu1 %v12729_v32 }
  0x65   :  { %1030 = vmatprep.mubr.f32.mxu0 %v17019_v2  ;;  %1101 = vmatprep.mubr.f32.mxu1 %v17019_v2 }
  0x67   :  { %10046 = vmatpush1.bf16.msra.mxu0 %v12704_v24  ;;  %10078 = vmatpush1.bf16.msra.mxu1 %v12752_v39 }
  0x68   :  { %10048 = vmatprep.subr.bf16.mxu0 %v12716_v28  ;;  %10080 = vmatprep.subr.bf16.mxu1 %v12775_v46 }
  0x6b   :  { %10050 = vmatpush1.bf16.msra.mxu0 %v12750_v38  ;;  %10082 = vmatpush1.bf16.msra.mxu1 %v12795_v52 }
  0x6c   :  { %10052 = vmatprep.subr.bf16.mxu0 %v12762_v42  ;;  %10084 = vmatprep.subr.bf16.mxu1 %v12821_v60 }
  0x6f   :  { %10054 = vmatpush1.bf16.msra.mxu0 %v12793_v51  ;;  %10086 = vmatpush1.bf16.msra.mxu1 %v12838_v1 }
  0x70   :  { %10056 = vmatprep.subr.bf16.mxu0 %v12808_v56  ;;  %10088 = vmatprep.subr.bf16.mxu1 %v12856_v8 }
  0x73   :  { %10058 = vmatpush1.bf16.msra.mxu0 %v12836_v0  ;;  %10090 = vmatpush1.bf16.msra.mxu1 %v12881_v18 }
  0x74   :  { %10060 = vmatprep.subr.bf16.mxu0 %v12851_v6  ;;  %10092 = vmatprep.subr.bf16.mxu1 %v12899_v27 }
  0x77   :  { %10062 = vmatpush1.bf16.msra.mxu0 %v12879_v17  ;;  %10094 = vmatpush1.bf16.msra.mxu1 %v12927_v37 }
  0x78   :  { %10064 = vmatprep.subr.bf16.mxu0 %v12894_v23  ;;  %10096 = vmatprep.subr.bf16.mxu1 %v12942_v45 }
  0x7b   :  { %10066 = vmatpush1.bf16.msra.mxu0 %v12925_v36  ;;  %10098 = vmatpush1.bf16.msra.mxu1 %v12967_v55 }
  0x7c   :  { %10068 = vmatprep.subr.bf16.mxu0 %v12937_v43  ;;  %10100 = vmatprep.subr.bf16.mxu1 %v12971_v57 }
  0x7f   :  { %10070 = vmatpush1.bf16.msra.mxu0 %v12965_v54  ;;  %10102 = vmatpush1.bf16.msra.mxu1 %v12988_v62 }
  0x80   :  { %10104 = vmatprep.subr.bf16.mxu0 %v12653_v9  ;;  %10136 = vmatprep.subr.bf16.mxu1 %v12694_v21 }
 0x135   :  { %v791_v41 = vpop.f32.mrb[0].mxu0  ;;  %v862_v44 = vpop.f32.mrb[0].mxu1 }
 0x136   :  { %v12023_v48 = vadd.f32 %v791_v41, %v13135_v35  ;;  %v793_v9 = vpop.f32.mrb[1].mxu0  ;;  %v864_v49 = vpop.f32.mrb[1].mxu1  ;;  %v12069_v4 = vadd.f32 %v862_v44, %v13144_v63 }
 0x137   :  { %v12024_v21 = vadd.f32 %v793_v9, %v13137_v40  ;;  %v12070_v61 = vadd.f32 %v864_v49, %v13141_v58  ;;  %v1387_v49 = vld [vmem:[%s17012_s2 + $0x8] sm:$0xff] }
 0x138   :  { %v8568_v50 = vmul.f32 -1.442695, %v12023_v48 }
 0x139   :  { %v8569_v53 = vmul.f32 -1.442695, %v12024_v21  ;;  %v8570_v3 = vmul.f32 -1.442695, %v12070_v61  ;;  %v1391_v21 = vld [vmem:[%s17012_s2 + $0x28] sm:$0xff]  ;;  %v1386_v61 = vld [vmem:[%s17012_s2] sm:$0xff] }
 0x13a   :  { %12212 = vpow2.f32 %v8568_v50  ;;  %v1389_v50 = vld [vmem:[%s17012_s2 + $0x18] sm:$0xff] }
 0x13b   :  { %12214 = vpow2.f32 %v8569_v53  ;;  %v13209_v53 = vpack.c.bf16 %v1391_v21, %v1387_v49  ;;  %v1416_v49 = vld [vmem:[%s17012_s2 + $0xf0] sm:$0xff] }
 0x13c   :  { %12216 = vpow2.f32 %v8570_v3  ;;  %v1390_v3 = vld [vmem:[%s17012_s2 + $0x20] sm:$0xff] }
 0x13d   :  { %12218 = vtanh.f32 %v12069_v4  ;;  %v13220_v4 = vpack.c.bf16 %v1393_v59, %v1389_v50  ;;  %v1419_v50 = vld [vmem:[%s17012_s2 + $0x108] sm:$0xff] }
 0x13e   :  { %v1423_v59 = vld [vmem:[%s17012_s2 + $0x128] sm:$0xff] }
 0x144   :  { %v12213_v5 = vpop.eup %12212 }
 0x145   :  { %v12215_v7 = vpop.eup %12214  ;;  %v874_v10 = vadd.f32 1.0, %v12213_v5  ;;  %v13222_v5 = vpack.c.bf16 %v1390_v3, %v1386_v61  ;;  %v13350_v61 = vpack.c.bf16 %v1423_v59, %v1419_v50  ;;  %v1418_v3 = vld [vmem:[%s17012_s2 + $0x100] sm:$0xff] }
 0x146   :  { %v880_v12 = vadd.f32 1.0, %v12215_v7  ;;  %v12217_v13 = vpop.eup %12216  ;;  %v1388_v7 = vld [vmem:[%s17012_s2 + $0x10] sm:$0xff] }
 0x147   :  { %12220 = vrcp.f32 %v874_v10  ;;  %v12219_v15 = vpop.eup %12218  ;;  %v887_v22 = vadd.f32 1.0, %v12217_v13  ;;  %v1392_v10 = vld [vmem:[%s17012_s2 + $0x30] sm:$0xff]  ;;  %v1395_v13 = vld [vmem:[%s17012_s2 + $0x48] sm:$0xff] }
 0x148   :  { %12222 = vrcp.f32 %v880_v12  ;;  %v13231_v12 = vpack.c.bf16 %v1392_v10, %v1388_v7  ;;  %v1422_v7 = vld [vmem:[%s17012_s2 + $0x120] sm:$0xff] }
 0x149   :  { %12224 = vrcp.f32 %v887_v22  ;;  %v1394_v22 = vld [vmem:[%s17012_s2 + $0x40] sm:$0xff]  ;;  %v13359_v10 = vpack.c.bf16 %v1422_v7, %v1418_v3 }
 0x151   :  { %v12221_v16 = vpop.eup %12220 }
 0x152   :  { %v12223_v19 = vpop.eup %12222  ;;  %v891_v20 = vmul.f32 %v12221_v16, %v12219_v15  ;;  %v1399_v15 = vld [vmem:[%s17012_s2 + $0x68] sm:$0xff]  ;;  %v1397_v16 = vld [vmem:[%s17012_s2 + $0x58] sm:$0xff] }
 0x153   :  { %v890_v26 = vmul.f32 0.0, %v12223_v19  ;;  %v12225_v30 = vpop.eup %12224  ;;  %v13245_v19 = vpack.c.bf16 %v1399_v15, %v1395_v13  ;;  %v1427_v13 = vld [vmem:[%s17012_s2 + $0x148] sm:$0xff] }
 0x154   :  { %v1431_v15 = vld [vmem:[%s17012_s2 + $0x168] sm:$0xff] }
 0x155   :  { %v13147_v29 = vadd.f32 %v891_v20, %v890_v26  ;;  %v1401_v20 = vld [vmem:[%s17012_s2 + $0x78] sm:$0xff]  ;;  %v1398_v26 = vld [vmem:[%s17012_s2 + $0x60] sm:$0xff] }
 0x157   :  { %12226 = vtanh.f32 %v13147_v29 }
 0x161   :  { %v12227_v31 = vpop.eup %12226 }
 0x162   :  { %v13150_v33 = vmul.f32 %v12227_v31, %v12225_v30  ;;  %v13258_v30 = vpack.c.bf16 %v1398_v26, %v1394_v22  ;;  %v1396_v31 = vld [vmem:[%s17012_s2 + $0x50] sm:$0xff]  ;;  %v1435_v22 = vld [vmem:[%s17012_s2 + $0x188] sm:$0xff] }
 0x163   :  { %v1439_v26 = vld [vmem:[%s17012_s2 + $0x1a8] sm:$0xff] }
 0x164   :  { %1031 = vmatmul.mubr.f32.vlgmr.msra.gmra.mrb[2].mxu0 %v13150_v33  ;;  %1102 = vmatmul.mubr.f32.vlgmr.msra.gmra.mrb[2].mxu1 %v13150_v33 }
 0x165   :  { %10106 = vmatpush1.bf16.msra.mxu0 %v12660_v11  ;;  %10138 = vmatpush1.bf16.msra.mxu1 %v12706_v25 }
 0x166   :  { %10108 = vmatprep.subr.bf16.mxu0 %v12670_v14  ;;  %10140 = vmatprep.subr.bf16.mxu1 %v12729_v32 }
 0x167   :  { %1272 = vmatprep.mubr.f32.mxu0 %v17019_v2  ;;  %1343 = vmatprep.mubr.f32.mxu1 %v17019_v2 }
 0x169   :  { %10110 = vmatpush1.bf16.msra.mxu0 %v12704_v24  ;;  %10142 = vmatpush1.bf16.msra.mxu1 %v12752_v39 }
 0x16a   :  { %10112 = vmatprep.subr.bf16.mxu0 %v12716_v28  ;;  %10144 = vmatprep.subr.bf16.mxu1 %v12775_v46 }
 0x16d   :  { %10114 = vmatpush1.bf16.msra.mxu0 %v12750_v38  ;;  %10146 = vmatpush1.bf16.msra.mxu1 %v12795_v52 }
 0x16e   :  { %10116 = vmatprep.subr.bf16.mxu0 %v12762_v42  ;;  %10148 = vmatprep.subr.bf16.mxu1 %v12821_v60 }
 0x171   :  { %10118 = vmatpush1.bf16.msra.mxu0 %v12793_v51  ;;  %10150 = vmatpush1.bf16.msra.mxu1 %v12838_v1 }
 0x172   :  { %10120 = vmatprep.subr.bf16.mxu0 %v12808_v56  ;;  %10152 = vmatprep.subr.bf16.mxu1 %v12856_v8 }
 0x175   :  { %10122 = vmatpush1.bf16.msra.mxu0 %v12836_v0  ;;  %10154 = vmatpush1.bf16.msra.mxu1 %v12881_v18 }
 0x176   :  { %10124 = vmatprep.subr.bf16.mxu0 %v12851_v6  ;;  %10156 = vmatprep.subr.bf16.mxu1 %v12899_v27 }
 0x179   :  { %10126 = vmatpush1.bf16.msra.mxu0 %v12879_v17  ;;  %10158 = vmatpush1.bf16.msra.mxu1 %v12927_v37 }
 0x17a   :  { %10128 = vmatprep.subr.bf16.mxu0 %v12894_v23  ;;  %10160 = vmatprep.subr.bf16.mxu1 %v12942_v45 }
 0x17d   :  { %10130 = vmatpush1.bf16.msra.mxu0 %v12925_v36  ;;  %10162 = vmatpush1.bf16.msra.mxu1 %v12967_v55 }
 0x17e   :  { %10132 = vmatprep.subr.bf16.mxu0 %v12937_v43  ;;  %10164 = vmatprep.subr.bf16.mxu1 %v12971_v57 }
 0x181   :  { %10134 = vmatpush1.bf16.msra.mxu0 %v12965_v54  ;;  %10166 = vmatpush1.bf16.msra.mxu1 %v12988_v62 }
 0x182   :  { %10168 = vmatprep.subr.bf16.mxu0 %v13209_v53  ;;  %10200 = vmatprep.subr.bf16.mxu1 %v13220_v4 }
 0x237   :  { %v1032_v11 = vpop.f32.mrb[2].mxu0  ;;  %v1103_v14 = vpop.f32.mrb[2].mxu1 }
 0x238   :  { %v12025_v24 = vadd.f32 %v1032_v11, %v13135_v35  ;;  %v1034_v25 = vpop.f32.mrb[3].mxu0  ;;  %v1105_v28 = vpop.f32.mrb[3].mxu1  ;;  %v12071_v51 = vadd.f32 %v1103_v14, %v13144_v63  ;;  %v1400_v11 = vld [vmem:[%s17012_s2 + $0x70] sm:$0xff] }
 0x239   :  { %v12026_v32 = vadd.f32 %v1034_v25, %v13137_v40  ;;  %v12072_v42 = vadd.f32 %v1105_v28, %v13141_v58  ;;  %v13267_v14 = vpack.c.bf16 %v1400_v11, %v1396_v31  ;;  %v1407_v25 = vld [vmem:[%s17012_s2 + $0xa8] sm:$0xff]  ;;  %v1405_v28 = vld [vmem:[%s17012_s2 + $0x98] sm:$0xff]  ;;  %v13386_v11 = vpack.c.bf16 %v1439_v26, %v1435_v22 }
 0x23a   :  { %v8571_v38 = vmul.f32 -1.442695, %v12025_v24  ;;  %v1403_v24 = vld [vmem:[%s17012_s2 + $0x88] sm:$0xff]  ;;  %v1671_v26 = vld [vmem:[%s17012_s2 + $0x158] sm:$0xff] }
 0x23b   :  { %v8572_v39 = vmul.f32 -1.442695, %v12026_v32  ;;  %v8573_v46 = vmul.f32 -1.442695, %v12072_v42  ;;  %v13281_v32 = vpack.c.bf16 %v1407_v25, %v1403_v24  ;;  %v1406_v42 = vld [vmem:[%s17012_s2 + $0xa0] sm:$0xff] }
 0x23c   :  { %12228 = vpow2.f32 %v8571_v38  ;;  %v1409_v38 = vld [vmem:[%s17012_s2 + $0xb8] sm:$0xff]  ;;  %v1434_v24 = vld [vmem:[%s17012_s2 + $0x180] sm:$0xff] }
 0x23d   :  { %12230 = vpow2.f32 %v8572_v39  ;;  %v1402_v39 = vld [vmem:[%s17012_s2 + $0x80] sm:$0xff] }
 0x23e   :  { %12232 = vpow2.f32 %v8573_v46  ;;  %v13292_v46 = vpack.c.bf16 %v1409_v38, %v1405_v28  ;;  %v1438_v25 = vld [vmem:[%s17012_s2 + $0x1a0] sm:$0xff] }
 0x23f   :  { %12234 = vtanh.f32 %v12071_v51  ;;  %v13294_v51 = vpack.c.bf16 %v1406_v42, %v1402_v39  ;;  %v13397_v28 = vpack.c.bf16 %v1438_v25, %v1434_v24  ;;  %v1675_v24 = vld [vmem:[%s17012_s2 + $0x178] sm:$0xff]  ;;  %v1670_v25 = vld [vmem:[%s17012_s2 + $0x150] sm:$0xff] }
 0x246   :  { %v12229_v52 = vpop.eup %12228 }
 0x247   :  { %v12231_v56 = vpop.eup %12230  ;;  %v1115_v60 = vadd.f32 1.0, %v12229_v52  ;;  %v1404_v52 = vld [vmem:[%s17012_s2 + $0x90] sm:$0xff] }
 0x248   :  { %v1121_v0 = vadd.f32 1.0, %v12231_v56  ;;  %v12233_v1 = vpop.eup %12232  ;;  %v1408_v56 = vld [vmem:[%s17012_s2 + $0xb0] sm:$0xff] }
 0x249   :  { %12236 = vrcp.f32 %v1115_v60  ;;  %v12235_v6 = vpop.eup %12234  ;;  %v1128_v34 = vadd.f32 1.0, %v12233_v1  ;;  %v13303_v60 = vpack.c.bf16 %v1408_v56, %v1404_v52  ;;  %v1415_v1 = vld [vmem:[%s17012_s2 + $0xe8] sm:$0xff] }
 0x24a   :  { %12238 = vrcp.f32 %v1121_v0  ;;  %v1411_v0 = vld [vmem:[%s17012_s2 + $0xc8] sm:$0xff] }
 0x24b   :  { %12240 = vrcp.f32 %v1128_v34  ;;  %v1414_v34 = vld [vmem:[%s17012_s2 + $0xe0] sm:$0xff] }
 0x253   :  { %v12237_v17 = vpop.eup %12236 }
 0x254   :  { %v12239_v23 = vpop.eup %12238  ;;  %v1132_v36 = vmul.f32 %v12237_v17, %v12235_v6  ;;  %v1413_v6 = vld [vmem:[%s17012_s2 + $0xd8] sm:$0xff]  ;;  %v13317_v17 = vpack.c.bf16 %v1415_v1, %v1411_v0 }
 0x255   :  { %v1131_v41 = vmul.f32 %v12239_v23, %v13147_v29  ;;  %v12241_v47 = vpop.eup %12240  ;;  %v13256_v29 = vpack.c.bf16 %v1401_v20, %v1397_v16  ;;  %v1417_v23 = vld [vmem:[%s17012_s2 + $0xf8] sm:$0xff]  ;;  %v1426_v16 = vld [vmem:[%s17012_s2 + $0x140] sm:$0xff]  ;;  %v13372_v20 = vpack.c.bf16 %v1431_v15, %v1427_v13 }
 0x256   :  { %v1667_v13 = vld [vmem:[%s17012_s2 + $0x138] sm:$0xff] }
 0x257   :  { %v13191_v44 = vadd.f32 %v1132_v36, %v1131_v41  ;;  %v1410_v36 = vld [vmem:[%s17012_s2 + $0xc0] sm:$0xff]  ;;  %v13328_v41 = vpack.c.bf16 %v1417_v23, %v1413_v6 }
 0x259   :  { %12242 = vtanh.f32 %v13191_v44 }
 0x263   :  { %v12243_v48 = vpop.eup %12242 }
 0x264   :  { %v13194_v9 = vmul.f32 %v12243_v48, %v12241_v47  ;;  %v13330_v47 = vpack.c.bf16 %v1414_v34, %v1410_v36  ;;  %v1412_v48 = vld [vmem:[%s17012_s2 + $0xd0] sm:$0xff] }
 0x265   :  { %v13339_v21 = vpack.c.bf16 %v1416_v49, %v1412_v48 }
 0x266   :  { %1273 = vmatmul.mubr.f32.vlgmr.msra.gmra.mrb[4].mxu0 %v13194_v9  ;;  %1344 = vmatmul.mubr.f32.vlgmr.msra.gmra.mrb[4].mxu1 %v13194_v9 }
 0x267   :  { %1514 = vmatprep.mubr.f32.mxu0 %v17019_v2  ;;  %1585 = vmatprep.mubr.f32.mxu1 %v17019_v2 }
 0x268   :  { %10170 = vmatpush1.bf16.msra.mxu0 %v13222_v5  ;;  %10202 = vmatpush1.bf16.msra.mxu1 %v13231_v12 }
 0x269   :  { %10172 = vmatprep.subr.bf16.mxu0 %v13245_v19  ;;  %10204 = vmatprep.subr.bf16.mxu1 %v13256_v29 }
 0x26c   :  { %10174 = vmatpush1.bf16.msra.mxu0 %v13258_v30  ;;  %10206 = vmatpush1.bf16.msra.mxu1 %v13267_v14 }
 0x26d   :  { %10176 = vmatprep.subr.bf16.mxu0 %v13281_v32  ;;  %10208 = vmatprep.subr.bf16.mxu1 %v13292_v46 }
 0x270   :  { %10178 = vmatpush1.bf16.msra.mxu0 %v13294_v51  ;;  %10210 = vmatpush1.bf16.msra.mxu1 %v13303_v60 }
 0x271   :  { %10180 = vmatprep.subr.bf16.mxu0 %v13317_v17  ;;  %10212 = vmatprep.subr.bf16.mxu1 %v13328_v41 }
 0x274   :  { %10182 = vmatpush1.bf16.msra.mxu0 %v13330_v47  ;;  %10214 = vmatpush1.bf16.msra.mxu1 %v13339_v21 }
 0x275   :  { %10216 = vmatprep.subr.bf16.mxu1 %v12856_v8  ;;  %10184 = vmatprep.subr.bf16.mxu0 %v13350_v61  ;;  %v1430_v8 = vld [vmem:[%s17012_s2 + $0x160] sm:$0xff] }
 0x276   :  { %v13384_v31 = vpack.c.bf16 %v1430_v8, %v1426_v16  ;;  %v1662_v16 = vld [vmem:[%s17012_s2 + $0x110] sm:$0xff] }
 0x277   :  { %v1666_v8 = vld [vmem:[%s17012_s2 + $0x130] sm:$0xff] }
 0x278   :  { %10186 = vmatpush1.bf16.msra.mxu0 %v13359_v10  ;;  %10218 = vmatpush1.bf16.msra.mxu1 %v12881_v18  ;;  %v13458_v22 = vpack.c.bf16 %v1666_v8, %v1662_v16 }
 0x279   :  { %10188 = vmatprep.subr.bf16.mxu0 %v13372_v20  ;;  %10220 = vmatprep.subr.bf16.mxu1 %v12899_v27 }
 0x27c   :  { %10190 = vmatpush1.bf16.msra.mxu0 %v13384_v31  ;;  %10222 = vmatpush1.bf16.msra.mxu1 %v12927_v37 }
 0x27d   :  { %10192 = vmatprep.subr.bf16.mxu0 %v13386_v11  ;;  %10224 = vmatprep.subr.bf16.mxu1 %v12942_v45 }
 0x280   :  { %10194 = vmatpush1.bf16.msra.mxu0 %v13397_v28  ;;  %10226 = vmatpush1.bf16.msra.mxu1 %v12967_v55 }
 0x281   :  { %10196 = vmatprep.subr.bf16.mxu0 %v12937_v43  ;;  %10228 = vmatprep.subr.bf16.mxu1 %v12971_v57 }
 0x284   :  { %10198 = vmatpush1.bf16.msra.mxu0 %v12965_v54  ;;  %10230 = vmatpush1.bf16.msra.mxu1 %v12988_v62 }
 0x285   :  { %10232 = vmatprep.subr.bf16.mxu0 %v13209_v53  ;;  %10264 = vmatprep.subr.bf16.mxu1 %v13220_v4 }
 0x339   :  { %v1274_v18 = vpop.f32.mrb[4].mxu0  ;;  %v1345_v27 = vpop.f32.mrb[4].mxu1 }
 0x33a   :  { %v12027_v37 = vadd.f32 %v1274_v18, %v13135_v35  ;;  %v1276_v45 = vpop.f32.mrb[5].mxu0  ;;  %v1347_v38 = vpop.f32.mrb[5].mxu1  ;;  %v12073_v62 = vadd.f32 %v1345_v27, %v13144_v63  ;;  %v13471_v18 = vpack.c.bf16 %v1675_v24, %v1671_v26  ;;  %v1674_v27 = vld [vmem:[%s17012_s2 + $0x170] sm:$0xff] }
 0x33b   :  { %v12028_v55 = vadd.f32 %v1276_v45, %v13137_v40  ;;  %v12074_v54 = vadd.f32 %v1347_v38, %v13141_v58  ;;  %v1683_v45 = vld [vmem:[%s17012_s2 + $0x1b8] sm:$0xff]  ;;  %v13482_v38 = vpack.c.bf16 %v1674_v27, %v1670_v25 }
 0x33c   :  { %v8574_v39 = vmul.f32 -1.442695, %v12027_v37  ;;  %v1679_v37 = vld [vmem:[%s17012_s2 + $0x198] sm:$0xff] }
 0x33d   :  { %v8575_v43 = vmul.f32 -1.442695, %v12028_v55  ;;  %v8576_v57 = vmul.f32 -1.442695, %v12074_v54  ;;  %v13484_v55 = vpack.c.bf16 %v1683_v45, %v1679_v37  ;;  %v1685_v54 = vld [vmem:[%s17012_s2 + $0x1c8] sm:$0xff] }
 0x33e   :  { %12244 = vpow2.f32 %v8574_v39  ;;  %v1678_v39 = vld [vmem:[%s17012_s2 + $0x190] sm:$0xff] }
 0x33f   :  { %12246 = vpow2.f32 %v8575_v43  ;;  %v1682_v43 = vld [vmem:[%s17012_s2 + $0x1b0] sm:$0xff] }
 0x340   :  { %12248 = vpow2.f32 %v8576_v57  ;;  %v1689_v57 = vld [vmem:[%s17012_s2 + $0x1e8] sm:$0xff] }
 0x341   :  { %12250 = vtanh.f32 %v12073_v62  ;;  %v1687_v62 = vld [vmem:[%s17012_s2 + $0x1d8] sm:$0xff] }
 0x348   :  { %v12245_v42 = vpop.eup %12244 }
 0x349   :  { %v12247_v52 = vpop.eup %12246  ;;  %v1357_v56 = vadd.f32 1.0, %v12245_v42  ;;  %v1691_v42 = vld [vmem:[%s17012_s2 + $0x1f8] sm:$0xff] }
 0x34a   :  { %v1363_v0 = vadd.f32 1.0, %v12247_v52  ;;  %v12249_v1 = vpop.eup %12248  ;;  %v13505_v52 = vpack.c.bf16 %v1689_v57, %v1685_v54 }
 0x34b   :  { %12252 = vrcp.f32 %v1357_v56  ;;  %v12251_v6 = vpop.eup %12250  ;;  %v1370_v48 = vadd.f32 1.0, %v12249_v1  ;;  %v1684_v56 = vld [vmem:[%s17012_s2 + $0x1c0] sm:$0xff]  ;;  %v13514_v1 = vpack.c.bf16 %v1682_v43, %v1678_v39 }
 0x34c   :  { %12254 = vrcp.f32 %v1363_v0  ;;  %v1688_v0 = vld [vmem:[%s17012_s2 + $0x1e0] sm:$0xff] }
 0x34d   :  { %12256 = vrcp.f32 %v1370_v48 }
 0x355   :  { %v12253_v23 = vpop.eup %12252 }
 0x356   :  { %v12255_v36 = vpop.eup %12254  ;;  %v1374_v34 = vmul.f32 %v12253_v23, %v12251_v6  ;;  %v13516_v6 = vpack.c.bf16 %v1688_v0, %v1684_v56  ;;  %v13520_v23 = vpack.c.bf16 %v1691_v42, %v1687_v62 }
 0x357   :  { %v1373_v49 = vmul.f32 %v12255_v36, %v13191_v44  ;;  %v12257_v59 = vpop.eup %12256  ;;  %v1663_v44 = vld [vmem:[%s17012_s2 + $0x118] sm:$0xff]  ;;  %v1686_v36 = vld [vmem:[%s17012_s2 + $0x1d0] sm:$0xff] }
 0x358   :  { %v13450_v15 = vpack.c.bf16 %v1667_v13, %v1663_v44 }
 0x359   :  { %v13415_v50 = vadd.f32 %v1374_v34, %v1373_v49  ;;  %v1690_v34 = vld [vmem:[%s17012_s2 + $0x1f0] sm:$0xff] }
 0x35a   :  { %v13531_v48 = vpack.c.bf16 %v1690_v34, %v1686_v36 }
 0x35b   :  { %12258 = vtanh.f32 %v13415_v50 }
 0x365   :  { %v12259_v3 = vpop.eup %12258 }
 0x366   :  { %v13418_v7 = vmul.f32 %v12259_v3, %v12257_v59 }
 0x368   :  { %1515 = vmatmul.mubr.f32.vlgmr.msra.gmra.mrb[6].mxu0 %v13418_v7  ;;  %1586 = vmatmul.mubr.f32.vlgmr.msra.gmra.mrb[6].mxu1 %v13418_v7 }
 0x369   :  { %10234 = vmatpush1.bf16.msra.mxu0 %v13222_v5  ;;  %10266 = vmatpush1.bf16.msra.mxu1 %v13231_v12 }
 0x36a   :  { %10236 = vmatprep.subr.bf16.mxu0 %v13245_v19  ;;  %10268 = vmatprep.subr.bf16.mxu1 %v13256_v29 }
 0x36b   :  { %1756 = vmatprep.mubr.f32.mxu0 %v17019_v2  ;;  %1827 = vmatprep.mubr.f32.mxu1 %v17019_v2 }
 0x36d   :  { %10238 = vmatpush1.bf16.msra.mxu0 %v13258_v30  ;;  %10270 = vmatpush1.bf16.msra.mxu1 %v13267_v14 }
 0x36e   :  { %10240 = vmatprep.subr.bf16.mxu0 %v13281_v32  ;;  %10272 = vmatprep.subr.bf16.mxu1 %v13292_v46 }
 0x371   :  { %10242 = vmatpush1.bf16.msra.mxu0 %v13294_v51  ;;  %10274 = vmatpush1.bf16.msra.mxu1 %v13303_v60 }
 0x372   :  { %10244 = vmatprep.subr.bf16.mxu0 %v13317_v17  ;;  %10276 = vmatprep.subr.bf16.mxu1 %v13328_v41 }
 0x375   :  { %10246 = vmatpush1.bf16.msra.mxu0 %v13330_v47  ;;  %10278 = vmatpush1.bf16.msra.mxu1 %v13339_v21 }
 0x376   :  { %10248 = vmatprep.subr.bf16.mxu0 %v13350_v61  ;;  %10280 = vmatprep.subr.bf16.mxu1 %v13450_v15 }
 0x379   :  { %10250 = vmatpush1.bf16.msra.mxu0 %v13359_v10  ;;  %10282 = vmatpush1.bf16.msra.mxu1 %v13458_v22 }
 0x37a   :  { %10252 = vmatprep.subr.bf16.mxu0 %v13372_v20  ;;  %10284 = vmatprep.subr.bf16.mxu1 %v13471_v18 }
 0x37d   :  { %10254 = vmatpush1.bf16.msra.mxu0 %v13384_v31  ;;  %10286 = vmatpush1.bf16.msra.mxu1 %v13482_v38 }
 0x37e   :  { %10256 = vmatprep.subr.bf16.mxu0 %v13386_v11  ;;  %10288 = vmatprep.subr.bf16.mxu1 %v13484_v55 }
 0x381   :  { %10258 = vmatpush1.bf16.msra.mxu0 %v13397_v28  ;;  %10290 = vmatpush1.bf16.msra.mxu1 %v13514_v1 }
 0x382   :  { %10260 = vmatprep.subr.bf16.mxu0 %v13505_v52  ;;  %10292 = vmatprep.subr.bf16.mxu1 %v13520_v23 }
 0x385   :  { %10262 = vmatpush1.bf16.msra.mxu0 %v13516_v6  ;;  %10294 = vmatpush1.bf16.msra.mxu1 %v13531_v48 }
 0x386   :  { %10296 = vmatprep.subr.bf16.mxu0 %v13209_v53  ;;  %10328 = vmatprep.subr.bf16.mxu1 %v13220_v4 }
 0x43b   :  { %v1516_v49 = vpop.f32.mrb[6].mxu0  ;;  %v1587_v59 = vpop.f32.mrb[6].mxu1 }
 0x43c   :  { %v12029_v3 = vadd.f32 %v1516_v49, %v13135_v35  ;;  %v1518_v44 = vpop.f32.mrb[7].mxu0  ;;  %v1589_v13 = vpop.f32.mrb[7].mxu1  ;;  %v12075_v27 = vadd.f32 %v1587_v59, %v13144_v63 }
 0x43d   :  { %v12030_v16 = vadd.f32 %v1518_v44, %v13137_v40  ;;  %v12076_v24 = vadd.f32 %v1589_v13, %v13141_v58 }
 0x43e   :  { %v8577_v8 = vmul.f32 -1.442695, %v12029_v3 }
 0x43f   :  { %v8578_v26 = vmul.f32 -1.442695, %v12030_v16  ;;  %v8579_v25 = vmul.f32 -1.442695, %v12076_v24 }
 0x440   :  { %12260 = vpow2.f32 %v8577_v8 }
 0x441   :  { %12262 = vpow2.f32 %v8578_v26 }
 0x442   :  { %12264 = vpow2.f32 %v8579_v25 }
 0x443   :  { %12266 = vtanh.f32 %v12075_v27 }
 0x44a   :  { %v12261_v37 = vpop.eup %12260 }
 0x44b   :  { %v12263_v45 = vpop.eup %12262  ;;  %v1599_v39 = vadd.f32 1.0, %v12261_v37 }
 0x44c   :  { %v1605_v43 = vadd.f32 1.0, %v12263_v45  ;;  %v12265_v54 = vpop.eup %12264 }
 0x44d   :  { %12268 = vrcp.f32 %v1599_v39  ;;  %v12267_v57 = vpop.eup %12266  ;;  %v1612_v0 = vadd.f32 1.0, %v12265_v54 }
 0x44e   :  { %12270 = vrcp.f32 %v1605_v43 }
 0x44f   :  { %12272 = vrcp.f32 %v1612_v0 }
 0x457   :  { %v12269_v62 = vpop.eup %12268 }
 0x458   :  { %v12271_v42 = vpop.eup %12270  ;;  %v1616_v56 = vmul.f32 %v12269_v62, %v12267_v57 }
 0x459   :  { %v1615_v36 = vmul.f32 %v12271_v42, %v13415_v50  ;;  %v12273_v49 = vpop.eup %12272 }
 0x45b   :  { %v13541_v34 = vadd.f32 %v1616_v56, %v1615_v36 }
 0x45d   :  { %12274 = vtanh.f32 %v13541_v34 }
 0x467   :  { %v12275_v59 = vpop.eup %12274 }
 0x468   :  { %v13544_v3 = vmul.f32 %v12275_v59, %v12273_v49 }
 0x46a   :  { %1757 = vmatmul.mubr.f32.vlgmr.msra.gmra.mrb[8].mxu0 %v13544_v3  ;;  %1828 = vmatmul.mubr.f32.vlgmr.msra.gmra.mrb[8].mxu1 %v13544_v3 }
 0x46b   :  { %10298 = vmatpush1.bf16.msra.mxu0 %v13222_v5  ;;  %10330 = vmatpush1.bf16.msra.mxu1 %v13231_v12 }
 0x46c   :  { %10300 = vmatprep.subr.bf16.mxu0 %v13245_v19  ;;  %10332 = vmatprep.subr.bf16.mxu1 %v13256_v29 }
 0x46d   :  { %1998 = vmatprep.mubr.f32.mxu0 %v17019_v2  ;;  %2069 = vmatprep.mubr.f32.mxu1 %v17019_v2 }
 0x46f   :  { %10302 = vmatpush1.bf16.msra.mxu0 %v13258_v30  ;;  %10334 = vmatpush1.bf16.msra.mxu1 %v13267_v14 }
 0x470   :  { %10304 = vmatprep.subr.bf16.mxu0 %v13281_v32  ;;  %10336 = vmatprep.subr.bf16.mxu1 %v13292_v46 }
 0x473   :  { %10306 = vmatpush1.bf16.msra.mxu0 %v13294_v51  ;;  %10338 = vmatpush1.bf16.msra.mxu1 %v13303_v60 }
 0x474   :  { %10308 = vmatprep.subr.bf16.mxu0 %v13317_v17  ;;  %10340 = vmatprep.subr.bf16.mxu1 %v13328_v41 }
 0x477   :  { %10310 = vmatpush1.bf16.msra.mxu0 %v13330_v47  ;;  %10342 = vmatpush1.bf16.msra.mxu1 %v13339_v21 }
 0x478   :  { %10312 = vmatprep.subr.bf16.mxu0 %v13350_v61  ;;  %10344 = vmatprep.subr.bf16.mxu1 %v13450_v15 }
 0x47b   :  { %10314 = vmatpush1.bf16.msra.mxu0 %v13359_v10  ;;  %10346 = vmatpush1.bf16.msra.mxu1 %v13458_v22 }
 0x47c   :  { %10316 = vmatprep.subr.bf16.mxu0 %v13372_v20  ;;  %10348 = vmatprep.subr.bf16.mxu1 %v13471_v18 }
 0x47f   :  { %10318 = vmatpush1.bf16.msra.mxu0 %v13384_v31  ;;  %10350 = vmatpush1.bf16.msra.mxu1 %v13482_v38 }
 0x480   :  { %10320 = vmatprep.subr.bf16.mxu0 %v13386_v11  ;;  %10352 = vmatprep.subr.bf16.mxu1 %v13484_v55 }
 0x483   :  { %10322 = vmatpush1.bf16.msra.mxu0 %v13397_v28  ;;  %10354 = vmatpush1.bf16.msra.mxu1 %v13514_v1 }
 0x484   :  { %10324 = vmatprep.subr.bf16.mxu0 %v13505_v52  ;;  %10356 = vmatprep.subr.bf16.mxu1 %v13520_v23 }
 0x487   :  { %10326 = vmatpush1.bf16.msra.mxu0 %v13516_v6  ;;  %10358 = vmatpush1.bf16.msra.mxu1 %v13531_v48 }
 0x488   :  { %10360 = vmatprep.subr.bf16.mxu0 %v13209_v53  ;;  %10392 = vmatprep.subr.bf16.mxu1 %v13220_v4 }
 0x53d   :  { %v1758_v50 = vpop.f32.mrb[8].mxu0  ;;  %v1829_v44 = vpop.f32.mrb[8].mxu1 }
 0x53e   :  { %v12031_v13 = vadd.f32 %v1758_v50, %v13135_v35  ;;  %v1760_v16 = vpop.f32.mrb[9].mxu0  ;;  %v1831_v8 = vpop.f32.mrb[9].mxu1  ;;  %v12077_v45 = vadd.f32 %v1829_v44, %v13144_v63 }
 0x53f   :  { %v12032_v26 = vadd.f32 %v1760_v16, %v13137_v40  ;;  %v12078_v27 = vadd.f32 %v1831_v8, %v13141_v58 }
 0x540   :  { %v8580_v24 = vmul.f32 -1.442695, %v12031_v13 }
 0x541   :  { %v8581_v25 = vmul.f32 -1.442695, %v12032_v26  ;;  %v8582_v37 = vmul.f32 -1.442695, %v12078_v27  ;;  %v2359_v27 = vld [vmem:[%s17012_s2 + $0x28] sm:$0xff] }
 0x542   :  { %12276 = vpow2.f32 %v8580_v24 }
 0x543   :  { %12278 = vpow2.f32 %v8581_v25  ;;  %v2355_v25 = vld [vmem:[%s17012_s2 + $0x8] sm:$0xff] }
 0x544   :  { %12280 = vpow2.f32 %v8582_v37  ;;  %v2357_v37 = vld [vmem:[%s17012_s2 + $0x18] sm:$0xff] }
 0x545   :  { %12282 = vtanh.f32 %v12077_v45  ;;  %v13649_v45 = vpack.c.bf16 %v2359_v27, %v2355_v25  ;;  %v2382_v25 = vld [vmem:[%s17012_s2 + $0xe0] sm:$0xff] }
 0x54c   :  { %v12277_v53 = vpop.eup %12276 }
 0x54d   :  { %v12279_v39 = vpop.eup %12278  ;;  %v1841_v4 = vadd.f32 1.0, %v12277_v53  ;;  %v2361_v53 = vld [vmem:[%s17012_s2 + $0x38] sm:$0xff] }
 0x54e   :  { %v1847_v43 = vadd.f32 1.0, %v12279_v39  ;;  %v12281_v54 = vpop.eup %12280  ;;  %v2354_v39 = vld [vmem:[%s17012_s2] sm:$0xff] }
 0x54f   :  { %12284 = vrcp.f32 %v1841_v4  ;;  %v12283_v57 = vpop.eup %12282  ;;  %v1854_v0 = vadd.f32 1.0, %v12281_v54  ;;  %v2358_v4 = vld [vmem:[%s17012_s2 + $0x20] sm:$0xff] }
 0x550   :  { %12286 = vrcp.f32 %v1847_v43  ;;  %v13660_v43 = vpack.c.bf16 %v2361_v53, %v2357_v37  ;;  %v13662_v54 = vpack.c.bf16 %v2358_v4, %v2354_v39  ;;  %v2380_v53 = vld [vmem:[%s17012_s2 + $0xd0] sm:$0xff] }
 0x551   :  { %12288 = vrcp.f32 %v1854_v0  ;;  %v2367_v0 = vld [vmem:[%s17012_s2 + $0x68] sm:$0xff]  ;;  %v2384_v39 = vld [vmem:[%s17012_s2 + $0xf0] sm:$0xff] }
 0x552   :  { %v13779_v4 = vpack.c.bf16 %v2384_v39, %v2380_v53 }
 0x559   :  { %v12285_v62 = vpop.eup %12284 }
 0x55a   :  { %v12287_v42 = vpop.eup %12286  ;;  %v1858_v56 = vmul.f32 %v12285_v62, %v12283_v57  ;;  %v2356_v57 = vld [vmem:[%s17012_s2 + $0x10] sm:$0xff] }
 0x55b   :  { %v1857_v36 = vmul.f32 %v12287_v42, %v13541_v34  ;;  %v12289_v59 = vpop.eup %12288  ;;  %v2360_v62 = vld [vmem:[%s17012_s2 + $0x30] sm:$0xff] }
 0x55c   :  { %v13671_v42 = vpack.c.bf16 %v2360_v62, %v2356_v57  ;;  %v2387_v57 = vld [vmem:[%s17012_s2 + $0x108] sm:$0xff] }
 0x55d   :  { %v13587_v49 = vadd.f32 %v1858_v56, %v1857_v36  ;;  %v2363_v56 = vld [vmem:[%s17012_s2 + $0x48] sm:$0xff]  ;;  %v2365_v36 = vld [vmem:[%s17012_s2 + $0x58] sm:$0xff] }
 0x55e   :  { %v2391_v62 = vld [vmem:[%s17012_s2 + $0x128] sm:$0xff] }
 0x55f   :  { %12290 = vtanh.f32 %v13587_v49 }
 0x569   :  { %v12291_v50 = vpop.eup %12290 }
 0x56a   :  { %v13590_v44 = vmul.f32 %v12291_v50, %v12289_v59  ;;  %v2369_v59 = vld [vmem:[%s17012_s2 + $0x78] sm:$0xff]  ;;  %v2362_v50 = vld [vmem:[%s17012_s2 + $0x40] sm:$0xff] }
 0x56c   :  { %1999 = vmatmul.mubr.f32.vlgmr.msra.gmra.mrb[10].mxu0 %v13590_v44  ;;  %2070 = vmatmul.mubr.f32.vlgmr.msra.gmra.mrb[10].mxu1 %v13590_v44 }
 0x56d   :  { %10362 = vmatpush1.bf16.msra.mxu0 %v13222_v5  ;;  %10394 = vmatpush1.bf16.msra.mxu1 %v13231_v12 }
 0x56e   :  { %10364 = vmatprep.subr.bf16.mxu0 %v13245_v19  ;;  %10396 = vmatprep.subr.bf16.mxu1 %v13256_v29 }
 0x56f   :  { %2240 = vmatprep.mubr.f32.mxu0 %v17019_v2  ;;  %2311 = vmatprep.mubr.f32.mxu1 %v17019_v2 }
 0x571   :  { %10366 = vmatpush1.bf16.msra.mxu0 %v13258_v30  ;;  %10398 = vmatpush1.bf16.msra.mxu1 %v13267_v14 }
 0x572   :  { %10368 = vmatprep.subr.bf16.mxu0 %v13281_v32  ;;  %10400 = vmatprep.subr.bf16.mxu1 %v13292_v46 }
 0x575   :  { %10370 = vmatpush1.bf16.msra.mxu0 %v13294_v51  ;;  %10402 = vmatpush1.bf16.msra.mxu1 %v13303_v60 }
 0x576   :  { %10372 = vmatprep.subr.bf16.mxu0 %v13317_v17  ;;  %10404 = vmatprep.subr.bf16.mxu1 %v13328_v41 }
 0x579   :  { %10374 = vmatpush1.bf16.msra.mxu0 %v13330_v47  ;;  %10406 = vmatpush1.bf16.msra.mxu1 %v13339_v21 }
 0x57a   :  { %10376 = vmatprep.subr.bf16.mxu0 %v13350_v61  ;;  %10408 = vmatprep.subr.bf16.mxu1 %v13450_v15 }
 0x57d   :  { %10378 = vmatpush1.bf16.msra.mxu0 %v13359_v10  ;;  %10410 = vmatpush1.bf16.msra.mxu1 %v13458_v22 }
 0x57e   :  { %10380 = vmatprep.subr.bf16.mxu0 %v13372_v20  ;;  %10412 = vmatprep.subr.bf16.mxu1 %v13471_v18 }
 0x581   :  { %10382 = vmatpush1.bf16.msra.mxu0 %v13384_v31  ;;  %10414 = vmatpush1.bf16.msra.mxu1 %v13482_v38 }
 0x582   :  { %10384 = vmatprep.subr.bf16.mxu0 %v13386_v11  ;;  %10416 = vmatprep.subr.bf16.mxu1 %v13484_v55 }
 0x585   :  { %10386 = vmatpush1.bf16.msra.mxu0 %v13397_v28  ;;  %10418 = vmatpush1.bf16.msra.mxu1 %v13514_v1 }
 0x586   :  { %10388 = vmatprep.subr.bf16.mxu0 %v13505_v52  ;;  %10420 = vmatprep.subr.bf16.mxu1 %v13520_v23 }
 0x589   :  { %10390 = vmatpush1.bf16.msra.mxu0 %v13516_v6  ;;  %10422 = vmatpush1.bf16.msra.mxu1 %v13531_v48 }
 0x58a   :  { %10424 = vmatprep.subr.bf16.mxu0 %v13649_v45  ;;  %10456 = vmatprep.subr.bf16.mxu1 %v13660_v43 }
 0x63f   :  { %v2000_v5 = vpop.f32.mrb[10].mxu0  ;;  %v2071_v12 = vpop.f32.mrb[10].mxu1 }
 0x640   :  { %v12033_v19 = vadd.f32 %v2000_v5, %v13135_v35  ;;  %v2002_v29 = vpop.f32.mrb[11].mxu0  ;;  %v2073_v30 = vpop.f32.mrb[11].mxu1  ;;  %v12079_v17 = vadd.f32 %v2071_v12, %v13144_v63  ;;  %v2366_v5 = vld [vmem:[%s17012_s2 + $0x60] sm:$0xff]  ;;  %v13696_v12 = vpack.c.bf16 %v2369_v59, %v2365_v36 }
 0x641   :  { %v12034_v14 = vadd.f32 %v2002_v29, %v13137_v40  ;;  %v12080_v51 = vadd.f32 %v2073_v30, %v13141_v58  ;;  %v2364_v29 = vld [vmem:[%s17012_s2 + $0x50] sm:$0xff]  ;;  %v2390_v36 = vld [vmem:[%s17012_s2 + $0x120] sm:$0xff] }
 0x642   :  { %v8583_v32 = vmul.f32 -1.442695, %v12033_v19  ;;  %v13698_v19 = vpack.c.bf16 %v2366_v5, %v2362_v50  ;;  %v2368_v30 = vld [vmem:[%s17012_s2 + $0x70] sm:$0xff]  ;;  %v2395_v50 = vld [vmem:[%s17012_s2 + $0x148] sm:$0xff] }
 0x643   :  { %v8584_v46 = vmul.f32 -1.442695, %v12034_v14  ;;  %v8585_v60 = vmul.f32 -1.442695, %v12080_v51  ;;  %v13707_v14 = vpack.c.bf16 %v2368_v30, %v2364_v29  ;;  %v2373_v51 = vld [vmem:[%s17012_s2 + $0x98] sm:$0xff]  ;;  %v2399_v5 = vld [vmem:[%s17012_s2 + $0x168] sm:$0xff] }
 0x644   :  { %12292 = vpow2.f32 %v8583_v32  ;;  %v2371_v32 = vld [vmem:[%s17012_s2 + $0x88] sm:$0xff]  ;;  %v2394_v29 = vld [vmem:[%s17012_s2 + $0x140] sm:$0xff]  ;;  %v13812_v30 = vpack.c.bf16 %v2399_v5, %v2395_v50 }
 0x645   :  { %12294 = vpow2.f32 %v8584_v46  ;;  %v2375_v46 = vld [vmem:[%s17012_s2 + $0xa8] sm:$0xff] }
 0x646   :  { %12296 = vpow2.f32 %v8585_v60  ;;  %v13721_v60 = vpack.c.bf16 %v2375_v46, %v2371_v32  ;;  %v2403_v32 = vld [vmem:[%s17012_s2 + $0x188] sm:$0xff] }
 0x647   :  { %12298 = vtanh.f32 %v12079_v17  ;;  %v2377_v17 = vld [vmem:[%s17012_s2 + $0xb8] sm:$0xff]  ;;  %v2407_v46 = vld [vmem:[%s17012_s2 + $0x1a8] sm:$0xff] }
 0x64e   :  { %v12293_v41 = vpop.eup %12292 }
 0x64f   :  { %v12295_v47 = vpop.eup %12294  ;;  %v2083_v21 = vadd.f32 1.0, %v12293_v41  ;;  %v2370_v41 = vld [vmem:[%s17012_s2 + $0x80] sm:$0xff] }
 0x650   :  { %v2089_v61 = vadd.f32 1.0, %v12295_v47  ;;  %v12297_v10 = vpop.eup %12296  ;;  %v2374_v47 = vld [vmem:[%s17012_s2 + $0xa0] sm:$0xff] }
 0x651   :  { %12300 = vrcp.f32 %v2083_v21  ;;  %v12299_v20 = vpop.eup %12298  ;;  %v2096_v34 = vadd.f32 1.0, %v12297_v10  ;;  %v13732_v21 = vpack.c.bf16 %v2377_v17, %v2373_v51  ;;  %v2372_v10 = vld [vmem:[%s17012_s2 + $0x90] sm:$0xff]  ;;  %v13826_v17 = vpack.c.bf16 %v2407_v46, %v2403_v32  ;;  %v2635_v32 = vld [vmem:[%s17012_s2 + $0x138] sm:$0xff] }
 0x652   :  { %12302 = vrcp.f32 %v2089_v61  ;;  %v13734_v61 = vpack.c.bf16 %v2374_v47, %v2370_v41  ;;  %v2402_v41 = vld [vmem:[%s17012_s2 + $0x180] sm:$0xff] }
 0x653   :  { %12304 = vrcp.f32 %v2096_v34  ;;  %v2381_v34 = vld [vmem:[%s17012_s2 + $0xd8] sm:$0xff]  ;;  %v2406_v47 = vld [vmem:[%s17012_s2 + $0x1a0] sm:$0xff] }
 0x65b   :  { %v12301_v31 = vpop.eup %12300 }
 0x65c   :  { %v12303_v11 = vpop.eup %12302  ;;  %v2100_v28 = vmul.f32 %v12301_v31, %v12299_v20  ;;  %v2376_v20 = vld [vmem:[%s17012_s2 + $0xb0] sm:$0xff] }
 0x65d   :  { %v2099_v13 = vmul.f32 %v12303_v11, %v13587_v49  ;;  %v12305_v8 = vpop.eup %12304  ;;  %v13685_v49 = vpack.c.bf16 %v2367_v0, %v2363_v56  ;;  %v13743_v31 = vpack.c.bf16 %v2376_v20, %v2372_v10  ;;  %v2379_v11 = vld [vmem:[%s17012_s2 + $0xc8] sm:$0xff]  ;;  %v13790_v56 = vpack.c.bf16 %v2391_v62, %v2387_v57  ;;  %v2386_v0 = vld [vmem:[%s17012_s2 + $0x100] sm:$0xff] }
 0x65e   :  { %v13799_v59 = vpack.c.bf16 %v2390_v36, %v2386_v0  ;;  %v13837_v10 = vpack.c.bf16 %v2406_v47, %v2402_v41  ;;  %v2630_v41 = vld [vmem:[%s17012_s2 + $0x110] sm:$0xff] }
 0x65f   :  { %v13631_v16 = vadd.f32 %v2100_v28, %v2099_v13  ;;  %v2383_v28 = vld [vmem:[%s17012_s2 + $0xe8] sm:$0xff]  ;;  %v2634_v47 = vld [vmem:[%s17012_s2 + $0x130] sm:$0xff] }
 0x660   :  { %v13757_v13 = vpack.c.bf16 %v2383_v28, %v2379_v11 }
 0x661   :  { %12306 = vtanh.f32 %v13631_v16 }
 0x66b   :  { %v12307_v26 = vpop.eup %12306 }
 0x66c   :  { %v13634_v24 = vmul.f32 %v12307_v26, %v12305_v8  ;;  %v2385_v8 = vld [vmem:[%s17012_s2 + $0xf8] sm:$0xff]  ;;  %v2378_v26 = vld [vmem:[%s17012_s2 + $0xc0] sm:$0xff] }
 0x66d   :  { %v13768_v27 = vpack.c.bf16 %v2385_v8, %v2381_v34  ;;  %v13770_v37 = vpack.c.bf16 %v2382_v25, %v2378_v26 }
 0x66e   :  { %2241 = vmatmul.mubr.f32.vlgmr.msra.gmra.mrb[12].mxu0 %v13634_v24  ;;  %2312 = vmatmul.mubr.f32.vlgmr.msra.gmra.mrb[12].mxu1 %v13634_v24 }
 0x66f   :  { %2482 = vmatprep.mubr.f32.mxu0 %v17019_v2  ;;  %2553 = vmatprep.mubr.f32.mxu1 %v17019_v2 }
 0x670   :  { %10426 = vmatpush1.bf16.msra.mxu0 %v13662_v54  ;;  %10458 = vmatpush1.bf16.msra.mxu1 %v13671_v42 }
 0x671   :  { %10428 = vmatprep.subr.bf16.mxu0 %v13685_v49  ;;  %10460 = vmatprep.subr.bf16.mxu1 %v13696_v12 }
 0x674   :  { %10430 = vmatpush1.bf16.msra.mxu0 %v13698_v19  ;;  %10462 = vmatpush1.bf16.msra.mxu1 %v13707_v14 }
 0x675   :  { %10432 = vmatprep.subr.bf16.mxu0 %v13721_v60  ;;  %10464 = vmatprep.subr.bf16.mxu1 %v13732_v21 }
 0x678   :  { %10434 = vmatpush1.bf16.msra.mxu0 %v13734_v61  ;;  %10466 = vmatpush1.bf16.msra.mxu1 %v13743_v31 }
 0x679   :  { %10436 = vmatprep.subr.bf16.mxu0 %v13757_v13  ;;  %10468 = vmatprep.subr.bf16.mxu1 %v13768_v27 }
 0x67c   :  { %10438 = vmatpush1.bf16.msra.mxu0 %v13770_v37  ;;  %10470 = vmatpush1.bf16.msra.mxu1 %v13779_v4 }
 0x67d   :  { %10472 = vmatprep.subr.bf16.mxu1 %v13450_v15  ;;  %10440 = vmatprep.subr.bf16.mxu0 %v13790_v56  ;;  %v2398_v15 = vld [vmem:[%s17012_s2 + $0x160] sm:$0xff] }
 0x67e   :  { %v13824_v51 = vpack.c.bf16 %v2398_v15, %v2394_v29 }
 0x680   :  { %10442 = vmatpush1.bf16.msra.mxu0 %v13799_v59  ;;  %10474 = vmatpush1.bf16.msra.mxu1 %v13458_v22 }
 0x681   :  { %10444 = vmatprep.subr.bf16.mxu0 %v13812_v30  ;;  %10476 = vmatprep.subr.bf16.mxu1 %v13471_v18 }
 0x684   :  { %10446 = vmatpush1.bf16.msra.mxu0 %v13824_v51  ;;  %10478 = vmatpush1.bf16.msra.mxu1 %v13482_v38 }
 0x685   :  { %10448 = vmatprep.subr.bf16.mxu0 %v13826_v17  ;;  %10480 = vmatprep.subr.bf16.mxu1 %v13484_v55 }
 0x688   :  { %10450 = vmatpush1.bf16.msra.mxu0 %v13837_v10  ;;  %10482 = vmatpush1.bf16.msra.mxu1 %v13514_v1 }
 0x689   :  { %10452 = vmatprep.subr.bf16.mxu0 %v13505_v52  ;;  %10484 = vmatprep.subr.bf16.mxu1 %v13520_v23 }
 0x68c   :  { %10454 = vmatpush1.bf16.msra.mxu0 %v13516_v6  ;;  %10486 = vmatpush1.bf16.msra.mxu1 %v13531_v48 }
 0x68d   :  { %10488 = vmatprep.subr.bf16.mxu0 %v13649_v45  ;;  %10520 = vmatprep.subr.bf16.mxu1 %v13660_v43 }
 0x741   :  { %v2242_v22 = vpop.f32.mrb[12].mxu0  ;;  %v2313_v18 = vpop.f32.mrb[12].mxu1 }
 0x742   :  { %v12035_v38 = vadd.f32 %v2242_v22, %v13135_v35  ;;  %v2244_v55 = vpop.f32.mrb[13].mxu0  ;;  %v2315_v20 = vpop.f32.mrb[13].mxu1  ;;  %v12081_v48 = vadd.f32 %v2313_v18, %v13144_v63  ;;  %v13898_v22 = vpack.c.bf16 %v2634_v47, %v2630_v41  ;;  %v2639_v18 = vld [vmem:[%s17012_s2 + $0x158] sm:$0xff] }
 0x743   :  { %v12036_v1 = vadd.f32 %v2244_v55, %v13137_v40  ;;  %v12082_v6 = vadd.f32 %v2315_v20, %v13141_v58  ;;  %v2638_v55 = vld [vmem:[%s17012_s2 + $0x150] sm:$0xff] }
 0x744   :  { %v8586_v11 = vmul.f32 -1.442695, %v12035_v38  ;;  %v2643_v38 = vld [vmem:[%s17012_s2 + $0x178] sm:$0xff] }
 0x745   :  { %v8587_v52 = vmul.f32 -1.442695, %v12036_v1  ;;  %v8588_v23 = vmul.f32 -1.442695, %v12082_v6  ;;  %v13911_v20 = vpack.c.bf16 %v2643_v38, %v2639_v18  ;;  %v2642_v1 = vld [vmem:[%s17012_s2 + $0x170] sm:$0xff] }
 0x746   :  { %12308 = vpow2.f32 %v8586_v11  ;;  %v2647_v11 = vld [vmem:[%s17012_s2 + $0x198] sm:$0xff]  ;;  %v13922_v6 = vpack.c.bf16 %v2642_v1, %v2638_v55 }
 0x747   :  { %12310 = vpow2.f32 %v8587_v52  ;;  %v2651_v52 = vld [vmem:[%s17012_s2 + $0x1b8] sm:$0xff] }
 0x748   :  { %12312 = vpow2.f32 %v8588_v23  ;;  %v13924_v23 = vpack.c.bf16 %v2651_v52, %v2647_v11 }
 0x749   :  { %12314 = vtanh.f32 %v12081_v48  ;;  %v2646_v48 = vld [vmem:[%s17012_s2 + $0x190] sm:$0xff] }
 0x750   :  { %v12309_v28 = vpop.eup %12308 }
 0x751   :  { %v12311_v34 = vpop.eup %12310  ;;  %v2325_v8 = vadd.f32 1.0, %v12309_v28  ;;  %v2650_v28 = vld [vmem:[%s17012_s2 + $0x1b0] sm:$0xff] }
 0x752   :  { %v2331_v26 = vadd.f32 1.0, %v12311_v34  ;;  %v12313_v25 = vpop.eup %12312  ;;  %v2653_v34 = vld [vmem:[%s17012_s2 + $0x1c8] sm:$0xff] }
 0x753   :  { %12316 = vrcp.f32 %v2325_v8  ;;  %v12315_v53 = vpop.eup %12314  ;;  %v2338_v0 = vadd.f32 1.0, %v12313_v25  ;;  %v2657_v8 = vld [vmem:[%s17012_s2 + $0x1e8] sm:$0xff]  ;;  %v2659_v25 = vld [vmem:[%s17012_s2 + $0x1f8] sm:$0xff] }
 0x754   :  { %12318 = vrcp.f32 %v2331_v26  ;;  %v2655_v26 = vld [vmem:[%s17012_s2 + $0x1d8] sm:$0xff] }
 0x755   :  { %12320 = vrcp.f32 %v2338_v0 }
 0x75d   :  { %v12317_v39 = vpop.eup %12316 }
 0x75e   :  { %v12319_v57 = vpop.eup %12318  ;;  %v2342_v62 = vmul.f32 %v12317_v39, %v12315_v53  ;;  %v13945_v53 = vpack.c.bf16 %v2657_v8, %v2653_v34  ;;  %v2652_v39 = vld [vmem:[%s17012_s2 + $0x1c0] sm:$0xff] }
 0x75f   :  { %v2341_v36 = vmul.f32 %v12319_v57, %v13631_v16  ;;  %v12321_v5 = vpop.eup %12320  ;;  %v2631_v16 = vld [vmem:[%s17012_s2 + $0x118] sm:$0xff]  ;;  %v2656_v57 = vld [vmem:[%s17012_s2 + $0x1e0] sm:$0xff] }
 0x760   :  { %v13890_v46 = vpack.c.bf16 %v2635_v32, %v2631_v16  ;;  %v13956_v0 = vpack.c.bf16 %v2656_v57, %v2652_v39 }
 0x761   :  { %v13855_v50 = vadd.f32 %v2342_v62, %v2341_v36  ;;  %v13954_v62 = vpack.c.bf16 %v2650_v28, %v2646_v48  ;;  %v13960_v36 = vpack.c.bf16 %v2659_v25, %v2655_v26 }
 0x763   :  { %12322 = vtanh.f32 %v13855_v50 }
 0x76d   :  { %v12323_v29 = vpop.eup %12322 }
 0x76e   :  { %v13858_v15 = vmul.f32 %v12323_v29, %v12321_v5  ;;  %v2654_v5 = vld [vmem:[%s17012_s2 + $0x1d0] sm:$0xff] }
 0x76f   :  { %v2658_v29 = vld [vmem:[%s17012_s2 + $0x1f0] sm:$0xff] }
 0x770   :  { %2483 = vmatmul.mubr.f32.vlgmr.msra.gmra.mrb[14].mxu0 %v13858_v15  ;;  %2554 = vmatmul.mubr.f32.vlgmr.msra.gmra.mrb[14].mxu1 %v13858_v15  ;;  %v13971_v16 = vpack.c.bf16 %v2658_v29, %v2654_v5 }
 0x771   :  { %10490 = vmatpush1.bf16.msra.mxu0 %v13662_v54  ;;  %10522 = vmatpush1.bf16.msra.mxu1 %v13671_v42 }
 0x772   :  { %10492 = vmatprep.subr.bf16.mxu0 %v13685_v49  ;;  %10524 = vmatprep.subr.bf16.mxu1 %v13696_v12 }
 0x773   :  { %2724 = vmatprep.mubr.f32.mxu0 %v17019_v2  ;;  %2795 = vmatprep.mubr.f32.mxu1 %v17019_v2 }
 0x775   :  { %10494 = vmatpush1.bf16.msra.mxu0 %v13698_v19  ;;  %10526 = vmatpush1.bf16.msra.mxu1 %v13707_v14 }
 0x776   :  { %10496 = vmatprep.subr.bf16.mxu0 %v13721_v60  ;;  %10528 = vmatprep.subr.bf16.mxu1 %v13732_v21 }
 0x779   :  { %10498 = vmatpush1.bf16.msra.mxu0 %v13734_v61  ;;  %10530 = vmatpush1.bf16.msra.mxu1 %v13743_v31 }
 0x77a   :  { %10500 = vmatprep.subr.bf16.mxu0 %v13757_v13  ;;  %10532 = vmatprep.subr.bf16.mxu1 %v13768_v27 }
 0x77d   :  { %10502 = vmatpush1.bf16.msra.mxu0 %v13770_v37  ;;  %10534 = vmatpush1.bf16.msra.mxu1 %v13779_v4 }
 0x77e   :  { %10504 = vmatprep.subr.bf16.mxu0 %v13790_v56  ;;  %10536 = vmatprep.subr.bf16.mxu1 %v13890_v46 }
 0x781   :  { %10506 = vmatpush1.bf16.msra.mxu0 %v13799_v59  ;;  %10538 = vmatpush1.bf16.msra.mxu1 %v13898_v22 }
 0x782   :  { %10508 = vmatprep.subr.bf16.mxu0 %v13812_v30  ;;  %10540 = vmatprep.subr.bf16.mxu1 %v13911_v20 }
 0x785   :  { %10510 = vmatpush1.bf16.msra.mxu0 %v13824_v51  ;;  %10542 = vmatpush1.bf16.msra.mxu1 %v13922_v6 }
 0x786   :  { %10512 = vmatprep.subr.bf16.mxu0 %v13826_v17  ;;  %10544 = vmatprep.subr.bf16.mxu1 %v13924_v23 }
 0x789   :  { %10514 = vmatpush1.bf16.msra.mxu0 %v13837_v10  ;;  %10546 = vmatpush1.bf16.msra.mxu1 %v13954_v62 }
 0x78a   :  { %10516 = vmatprep.subr.bf16.mxu0 %v13945_v53  ;;  %10548 = vmatprep.subr.bf16.mxu1 %v13960_v36 }
 0x78d   :  { %10518 = vmatpush1.bf16.msra.mxu0 %v13956_v0  ;;  %10550 = vmatpush1.bf16.msra.mxu1 %v13971_v16 }
 0x78e   :  { %10552 = vmatprep.subr.bf16.mxu0 %v13649_v45  ;;  %10584 = vmatprep.subr.bf16.mxu1 %v13660_v43 }
 0x843   :  { %v2484_v32 = vpop.f32.mrb[14].mxu0  ;;  %v2555_v41 = vpop.f32.mrb[14].mxu1 }
 0x844   :  { %v12037_v47 = vadd.f32 %v2484_v32, %v13135_v35  ;;  %v2486_v18 = vpop.f32.mrb[15].mxu0  ;;  %v2557_v38 = vpop.f32.mrb[15].mxu1  ;;  %v12083_v28 = vadd.f32 %v2555_v41, %v13144_v63 }
 0x845   :  { %v12038_v55 = vadd.f32 %v2486_v18, %v13137_v40  ;;  %v12084_v52 = vadd.f32 %v2557_v38, %v13141_v58 }
 0x846   :  { %v8589_v1 = vmul.f32 -1.442695, %v12037_v47 }
 0x847   :  { %v8590_v11 = vmul.f32 -1.442695, %v12038_v55  ;;  %v8591_v48 = vmul.f32 -1.442695, %v12084_v52 }
 0x848   :  { %12324 = vpow2.f32 %v8589_v1 }
 0x849   :  { %12326 = vpow2.f32 %v8590_v11 }
 0x84a   :  { %12328 = vpow2.f32 %v8591_v48 }
 0x84b   :  { %12330 = vtanh.f32 %v12083_v28 }
 0x852   :  { %v12325_v34 = vpop.eup %12324 }
 0x853   :  { %v12327_v8 = vpop.eup %12326  ;;  %v2567_v26 = vadd.f32 1.0, %v12325_v34 }
 0x854   :  { %v2573_v25 = vadd.f32 1.0, %v12327_v8  ;;  %v12329_v39 = vpop.eup %12328 }
 0x855   :  { %12332 = vrcp.f32 %v2567_v26  ;;  %v12331_v57 = vpop.eup %12330  ;;  %v2580_v47 = vadd.f32 1.0, %v12329_v39 }
 0x856   :  { %12334 = vrcp.f32 %v2573_v25 }
 0x857   :  { %12336 = vrcp.f32 %v2580_v47 }
 0x85f   :  { %v12333_v5 = vpop.eup %12332 }
 0x860   :  { %v12335_v29 = vpop.eup %12334  ;;  %v2584_v32 = vmul.f32 %v12333_v5, %v12331_v57 }
 0x861   :  { %v2583_v18 = vmul.f32 %v12335_v29, %v13855_v50  ;;  %v12337_v41 = vpop.eup %12336 }
 0x863   :  { %v13981_v38 = vadd.f32 %v2584_v32, %v2583_v18 }
 0x865   :  { %12338 = vtanh.f32 %v13981_v38 }
 0x86f   :  { %v12339_v55 = vpop.eup %12338 }
 0x870   :  { %v13984_v1 = vmul.f32 %v12339_v55, %v12337_v41 }
 0x872   :  { %2725 = vmatmul.mubr.f32.vlgmr.msra.gmra.mrb[16].mxu0 %v13984_v1  ;;  %2796 = vmatmul.mubr.f32.vlgmr.msra.gmra.mrb[16].mxu1 %v13984_v1 }
 0x873   :  { %10554 = vmatpush1.bf16.msra.mxu0 %v13662_v54  ;;  %10586 = vmatpush1.bf16.msra.mxu1 %v13671_v42 }
 0x874   :  { %10556 = vmatprep.subr.bf16.mxu0 %v13685_v49  ;;  %10588 = vmatprep.subr.bf16.mxu1 %v13696_v12 }
 0x875   :  { %2966 = vmatprep.mubr.f32.mxu0 %v17019_v2  ;;  %3037 = vmatprep.mubr.f32.mxu1 %v17019_v2 }
 0x877   :  { %10558 = vmatpush1.bf16.msra.mxu0 %v13698_v19  ;;  %10590 = vmatpush1.bf16.msra.mxu1 %v13707_v14 }
 0x878   :  { %10560 = vmatprep.subr.bf16.mxu0 %v13721_v60  ;;  %10592 = vmatprep.subr.bf16.mxu1 %v13732_v21 }
 0x87b   :  { %10562 = vmatpush1.bf16.msra.mxu0 %v13734_v61  ;;  %10594 = vmatpush1.bf16.msra.mxu1 %v13743_v31 }
 0x87c   :  { %10564 = vmatprep.subr.bf16.mxu0 %v13757_v13  ;;  %10596 = vmatprep.subr.bf16.mxu1 %v13768_v27 }
 0x87f   :  { %10566 = vmatpush1.bf16.msra.mxu0 %v13770_v37  ;;  %10598 = vmatpush1.bf16.msra.mxu1 %v13779_v4 }
 0x880   :  { %10568 = vmatprep.subr.bf16.mxu0 %v13790_v56  ;;  %10600 = vmatprep.subr.bf16.mxu1 %v13890_v46 }
 0x883   :  { %10570 = vmatpush1.bf16.msra.mxu0 %v13799_v59  ;;  %10602 = vmatpush1.bf16.msra.mxu1 %v13898_v22 }
 0x884   :  { %10572 = vmatprep.subr.bf16.mxu0 %v13812_v30  ;;  %10604 = vmatprep.subr.bf16.mxu1 %v13911_v20 }
 0x887   :  { %10574 = vmatpush1.bf16.msra.mxu0 %v13824_v51  ;;  %10606 = vmatpush1.bf16.msra.mxu1 %v13922_v6 }
 0x888   :  { %10576 = vmatprep.subr.bf16.mxu0 %v13826_v17  ;;  %10608 = vmatprep.subr.bf16.mxu1 %v13924_v23 }
 0x88b   :  { %10578 = vmatpush1.bf16.msra.mxu0 %v13837_v10  ;;  %10610 = vmatpush1.bf16.msra.mxu1 %v13954_v62 }
 0x88c   :  { %10580 = vmatprep.subr.bf16.mxu0 %v13945_v53  ;;  %10612 = vmatprep.subr.bf16.mxu1 %v13960_v36 }
 0x88f   :  { %10582 = vmatpush1.bf16.msra.mxu0 %v13956_v0  ;;  %10614 = vmatpush1.bf16.msra.mxu1 %v13971_v16 }
 0x890   :  { %10616 = vmatprep.subr.bf16.mxu0 %v13649_v45  ;;  %10648 = vmatprep.subr.bf16.mxu1 %v13660_v43 }
 0x945   :  { %v2726_v50 = vpop.f32.mrb[16].mxu0  ;;  %v2797_v11 = vpop.f32.mrb[16].mxu1 }
 0x946   :  { %v12039_v52 = vadd.f32 %v2726_v50, %v13135_v35  ;;  %v2728_v48 = vpop.f32.mrb[17].mxu0  ;;  %v2799_v28 = vpop.f32.mrb[17].mxu1  ;;  %v12085_v57 = vadd.f32 %v2797_v11, %v13144_v63 }
 0x947   :  { %v12040_v34 = vadd.f32 %v2728_v48, %v13137_v40  ;;  %v12086_v25 = vadd.f32 %v2799_v28, %v13141_v58 }
 0x948   :  { %v8592_v8 = vmul.f32 -1.442695, %v12039_v52 }
 0x949   :  { %v8593_v26 = vmul.f32 -1.442695, %v12040_v34  ;;  %v8594_v39 = vmul.f32 -1.442695, %v12086_v25 }
 0x94a   :  { %12340 = vpow2.f32 %v8592_v8 }
 0x94b   :  { %12342 = vpow2.f32 %v8593_v26 }
 0x94c   :  { %12344 = vpow2.f32 %v8594_v39 }
 0x94d   :  { %12346 = vtanh.f32 %v12085_v57 }
 0x954   :  { %v12341_v45 = vpop.eup %12340 }
 0x955   :  { %v12343_v5 = vpop.eup %12342  ;;  %v2809_v43 = vadd.f32 1.0, %v12341_v45  ;;  %v3323_v45 = vld [vmem:[%s17012_s2 + $0x8] sm:$0xff] }
 0x956   :  { %v2815_v29 = vadd.f32 1.0, %v12343_v5  ;;  %v12345_v32 = vpop.eup %12344  ;;  %v3327_v5 = vld [vmem:[%s17012_s2 + $0x28] sm:$0xff] }
 0x957   :  { %12348 = vrcp.f32 %v2809_v43  ;;  %v12347_v47 = vpop.eup %12346  ;;  %v2822_v50 = vadd.f32 1.0, %v12345_v32  ;;  %v3325_v43 = vld [vmem:[%s17012_s2 + $0x18] sm:$0xff] }
 0x958   :  { %12350 = vrcp.f32 %v2815_v29  ;;  %v14089_v29 = vpack.c.bf16 %v3327_v5, %v3323_v45  ;;  %v3329_v32 = vld [vmem:[%s17012_s2 + $0x38] sm:$0xff] }
 0x959   :  { %12352 = vrcp.f32 %v2822_v50  ;;  %v3324_v50 = vld [vmem:[%s17012_s2 + $0x10] sm:$0xff]  ;;  %v3349_v45 = vld [vmem:[%s17012_s2 + $0xd8] sm:$0xff] }
 0x961   :  { %v12349_v18 = vpop.eup %12348 }
 0x962   :  { %v12351_v41 = vpop.eup %12350  ;;  %v2826_v55 = vmul.f32 %v12349_v18, %v12347_v47  ;;  %v3322_v47 = vld [vmem:[%s17012_s2] sm:$0xff] }
 0x963   :  { %v2825_v52 = vmul.f32 %v12351_v41, %v13981_v38  ;;  %v12353_v11 = vpop.eup %12352  ;;  %v3326_v18 = vld [vmem:[%s17012_s2 + $0x20] sm:$0xff]  ;;  %v14100_v41 = vpack.c.bf16 %v3329_v32, %v3325_v43  ;;  %v3353_v43 = vld [vmem:[%s17012_s2 + $0xf8] sm:$0xff] }
 0x964   :  { %v3346_v32 = vld [vmem:[%s17012_s2 + $0xc0] sm:$0xff] }
 0x965   :  { %v14027_v48 = vadd.f32 %v2826_v55, %v2825_v52  ;;  %v14102_v55 = vpack.c.bf16 %v3326_v18, %v3322_v47  ;;  %v3328_v52 = vld [vmem:[%s17012_s2 + $0x30] sm:$0xff]  ;;  %v3350_v47 = vld [vmem:[%s17012_s2 + $0xe0] sm:$0xff]  ;;  %v14208_v18 = vpack.c.bf16 %v3353_v43, %v3349_v45 }
 0x967   :  { %12354 = vtanh.f32 %v14027_v48 }
 0x971   :  { %v12355_v28 = vpop.eup %12354 }
 0x972   :  { %v14030_v34 = vmul.f32 %v12355_v28, %v12353_v11  ;;  %v3331_v11 = vld [vmem:[%s17012_s2 + $0x48] sm:$0xff] }
 0x973   :  { %v3335_v28 = vld [vmem:[%s17012_s2 + $0x68] sm:$0xff] }
 0x974   :  { %2967 = vmatmul.mubr.f32.vlgmr.msra.gmra.mrb[18].mxu0 %v14030_v34  ;;  %3038 = vmatmul.mubr.f32.vlgmr.msra.gmra.mrb[18].mxu1 %v14030_v34 }
 0x975   :  { %10618 = vmatpush1.bf16.msra.mxu0 %v13662_v54  ;;  %10650 = vmatpush1.bf16.msra.mxu1 %v13671_v42 }
 0x976   :  { %10620 = vmatprep.subr.bf16.mxu0 %v13685_v49  ;;  %10652 = vmatprep.subr.bf16.mxu1 %v13696_v12 }
 0x977   :  { %3208 = vmatprep.mubr.f32.mxu0 %v17019_v2  ;;  %3279 = vmatprep.mubr.f32.mxu1 %v17019_v2 }
 0x979   :  { %10622 = vmatpush1.bf16.msra.mxu0 %v13698_v19  ;;  %10654 = vmatpush1.bf16.msra.mxu1 %v13707_v14 }
 0x97a   :  { %10624 = vmatprep.subr.bf16.mxu0 %v13721_v60  ;;  %10656 = vmatprep.subr.bf16.mxu1 %v13732_v21 }
 0x97d   :  { %10626 = vmatpush1.bf16.msra.mxu0 %v13734_v61  ;;  %10658 = vmatpush1.bf16.msra.mxu1 %v13743_v31 }
 0x97e   :  { %10628 = vmatprep.subr.bf16.mxu0 %v13757_v13  ;;  %10660 = vmatprep.subr.bf16.mxu1 %v13768_v27 }
 0x981   :  { %10630 = vmatpush1.bf16.msra.mxu0 %v13770_v37  ;;  %10662 = vmatpush1.bf16.msra.mxu1 %v13779_v4 }
 0x982   :  { %10632 = vmatprep.subr.bf16.mxu0 %v13790_v56  ;;  %10664 = vmatprep.subr.bf16.mxu1 %v13890_v46 }
 0x985   :  { %10634 = vmatpush1.bf16.msra.mxu0 %v13799_v59  ;;  %10666 = vmatpush1.bf16.msra.mxu1 %v13898_v22 }
 0x986   :  { %10636 = vmatprep.subr.bf16.mxu0 %v13812_v30  ;;  %10668 = vmatprep.subr.bf16.mxu1 %v13911_v20 }
 0x989   :  { %10638 = vmatpush1.bf16.msra.mxu0 %v13824_v51  ;;  %10670 = vmatpush1.bf16.msra.mxu1 %v13922_v6 }
 0x98a   :  { %10640 = vmatprep.subr.bf16.mxu0 %v13826_v17  ;;  %10672 = vmatprep.subr.bf16.mxu1 %v13924_v23 }
 0x98d   :  { %10642 = vmatpush1.bf16.msra.mxu0 %v13837_v10  ;;  %10674 = vmatpush1.bf16.msra.mxu1 %v13954_v62 }
 0x98e   :  { %10644 = vmatprep.subr.bf16.mxu0 %v13945_v53  ;;  %10676 = vmatprep.subr.bf16.mxu1 %v13960_v36 }
 0x991   :  { %10646 = vmatpush1.bf16.msra.mxu0 %v13956_v0  ;;  %10678 = vmatpush1.bf16.msra.mxu1 %v13971_v16 }
 0x992   :  { %10680 = vmatprep.subr.bf16.mxu0 %v14089_v29  ;;  %10712 = vmatprep.subr.bf16.mxu1 %v14100_v41 }
 0xa47   :  { %v2968_v54 = vpop.f32.mrb[18].mxu0  ;;  %v3039_v42 = vpop.f32.mrb[18].mxu1 }
 0xa48   :  { %v12041_v49 = vadd.f32 %v2968_v54, %v13135_v35  ;;  %v2970_v12 = vpop.f32.mrb[19].mxu0  ;;  %v3041_v19 = vpop.f32.mrb[19].mxu1  ;;  %v12087_v13 = vadd.f32 %v3039_v42, %v13144_v63  ;;  %v3333_v54 = vld [vmem:[%s17012_s2 + $0x58] sm:$0xff]  ;;  %v14125_v42 = vpack.c.bf16 %v3335_v28, %v3331_v11  ;;  %v3352_v11 = vld [vmem:[%s17012_s2 + $0xf0] sm:$0xff] }
 0xa49   :  { %v12042_v14 = vadd.f32 %v2970_v12, %v13137_v40  ;;  %v12088_v61 = vadd.f32 %v3041_v19, %v13141_v58  ;;  %v3330_v12 = vld [vmem:[%s17012_s2 + $0x40] sm:$0xff] }
 0xa4a   :  { %v8595_v60 = vmul.f32 -1.442695, %v12041_v49  ;;  %v3337_v49 = vld [vmem:[%s17012_s2 + $0x78] sm:$0xff]  ;;  %v3334_v19 = vld [vmem:[%s17012_s2 + $0x60] sm:$0xff] }
 0xa4b   :  { %v8596_v21 = vmul.f32 -1.442695, %v12042_v14  ;;  %v8597_v31 = vmul.f32 -1.442695, %v12088_v61  ;;  %v14136_v14 = vpack.c.bf16 %v3337_v49, %v3333_v54  ;;  %v3336_v61 = vld [vmem:[%s17012_s2 + $0x70] sm:$0xff]  ;;  %v3355_v54 = vld [vmem:[%s17012_s2 + $0x108] sm:$0xff] }
 0xa4c   :  { %12356 = vpow2.f32 %v8595_v60  ;;  %v14138_v60 = vpack.c.bf16 %v3334_v19, %v3330_v12  ;;  %v3359_v49 = vld [vmem:[%s17012_s2 + $0x128] sm:$0xff]  ;;  %v3354_v19 = vld [vmem:[%s17012_s2 + $0x100] sm:$0xff] }
 0xa4d   :  { %12358 = vpow2.f32 %v8596_v21  ;;  %v3332_v21 = vld [vmem:[%s17012_s2 + $0x50] sm:$0xff]  ;;  %v14230_v12 = vpack.c.bf16 %v3359_v49, %v3355_v54 }
 0xa4e   :  { %12360 = vpow2.f32 %v8597_v31  ;;  %v14147_v31 = vpack.c.bf16 %v3336_v61, %v3332_v21  ;;  %v3358_v21 = vld [vmem:[%s17012_s2 + $0x120] sm:$0xff] }
 0xa4f   :  { %12362 = vtanh.f32 %v12087_v13  ;;  %v3339_v13 = vld [vmem:[%s17012_s2 + $0x88] sm:$0xff]  ;;  %v14239_v61 = vpack.c.bf16 %v3358_v21, %v3354_v19 }
 0xa56   :  { %v12357_v27 = vpop.eup %12356 }
 0xa57   :  { %v12359_v37 = vpop.eup %12358  ;;  %v3051_v4 = vadd.f32 1.0, %v12357_v27  ;;  %v3343_v27 = vld [vmem:[%s17012_s2 + $0xa8] sm:$0xff] }
 0xa58   :  { %v3057_v56 = vadd.f32 1.0, %v12359_v37  ;;  %v12361_v59 = vpop.eup %12360  ;;  %v3341_v37 = vld [vmem:[%s17012_s2 + $0x98] sm:$0xff] }
 0xa59   :  { %12364 = vrcp.f32 %v3051_v4  ;;  %v12363_v30 = vpop.eup %12362  ;;  %v3064_v38 = vadd.f32 1.0, %v12361_v59  ;;  %v14161_v4 = vpack.c.bf16 %v3343_v27, %v3339_v13  ;;  %v3338_v59 = vld [vmem:[%s17012_s2 + $0x80] sm:$0xff]  ;;  %v3363_v13 = vld [vmem:[%s17012_s2 + $0x148] sm:$0xff] }
 0xa5a   :  { %12366 = vrcp.f32 %v3057_v56  ;;  %v3345_v56 = vld [vmem:[%s17012_s2 + $0xb8] sm:$0xff]  ;;  %v3367_v27 = vld [vmem:[%s17012_s2 + $0x168] sm:$0xff] }
 0xa5b   :  { %12368 = vrcp.f32 %v3064_v38  ;;  %v3344_v38 = vld [vmem:[%s17012_s2 + $0xb0] sm:$0xff] }
 0xa63   :  { %v12365_v51 = vpop.eup %12364 }
 0xa64   :  { %v12367_v17 = vpop.eup %12366  ;;  %v3068_v10 = vmul.f32 %v12365_v51, %v12363_v30  ;;  %v3342_v30 = vld [vmem:[%s17012_s2 + $0xa0] sm:$0xff]  ;;  %v14172_v51 = vpack.c.bf16 %v3345_v56, %v3341_v37  ;;  %v14252_v56 = vpack.c.bf16 %v3367_v27, %v3363_v13 }
 0xa65   :  { %v3067_v8 = vmul.f32 %v12367_v17, %v14027_v48  ;;  %v12369_v25 = vpop.eup %12368  ;;  %v14111_v48 = vpack.c.bf16 %v3328_v52, %v3324_v50  ;;  %v14174_v17 = vpack.c.bf16 %v3342_v30, %v3338_v59  ;;  %v14210_v50 = vpack.c.bf16 %v3350_v47, %v3346_v32  ;;  %v3348_v52 = vld [vmem:[%s17012_s2 + $0xd0] sm:$0xff]  ;;  %v3362_v37 = vld [vmem:[%s17012_s2 + $0x140] sm:$0xff]  ;;  %v3371_v59 = vld [vmem:[%s17012_s2 + $0x188] sm:$0xff] }
 0xa66   :  { %v14219_v28 = vpack.c.bf16 %v3352_v11, %v3348_v52  ;;  %v3375_v30 = vld [vmem:[%s17012_s2 + $0x1a8] sm:$0xff] }
 0xa67   :  { %v14071_v26 = vadd.f32 %v3068_v10, %v3067_v8  ;;  %v3340_v10 = vld [vmem:[%s17012_s2 + $0x90] sm:$0xff] }
 0xa68   :  { %v14183_v8 = vpack.c.bf16 %v3344_v38, %v3340_v10  ;;  %v14266_v38 = vpack.c.bf16 %v3375_v30, %v3371_v59 }
 0xa69   :  { %12370 = vtanh.f32 %v14071_v26 }
 0xa73   :  { %v12371_v39 = vpop.eup %12370 }
 0xa74   :  { %v14074_v57 = vmul.f32 %v12371_v39, %v12369_v25  ;;  %v3347_v25 = vld [vmem:[%s17012_s2 + $0xc8] sm:$0xff] }
 0xa75   :  { %v3351_v39 = vld [vmem:[%s17012_s2 + $0xe8] sm:$0xff] }
 0xa76   :  { %3209 = vmatmul.mubr.f32.vlgmr.msra.gmra.mrb[20].mxu0 %v14074_v57  ;;  %3280 = vmatmul.mubr.f32.vlgmr.msra.gmra.mrb[20].mxu1 %v14074_v57  ;;  %v14197_v5 = vpack.c.bf16 %v3351_v39, %v3347_v25  ;;  %v3370_v25 = vld [vmem:[%s17012_s2 + $0x180] sm:$0xff] }
 0xa77   :  { %3450 = vmatprep.mubr.f32.mxu0 %v17019_v2  ;;  %3521 = vmatprep.mubr.f32.mxu1 %v17019_v2  ;;  %v3374_v39 = vld [vmem:[%s17012_s2 + $0x1a0] sm:$0xff] }
 0xa78   :  { %10682 = vmatpush1.bf16.msra.mxu0 %v14102_v55  ;;  %10714 = vmatpush1.bf16.msra.mxu1 %v14111_v48  ;;  %v14277_v45 = vpack.c.bf16 %v3374_v39, %v3370_v25 }
 0xa79   :  { %10684 = vmatprep.subr.bf16.mxu0 %v14125_v42  ;;  %10716 = vmatprep.subr.bf16.mxu1 %v14136_v14 }
 0xa7c   :  { %10686 = vmatpush1.bf16.msra.mxu0 %v14138_v60  ;;  %10718 = vmatpush1.bf16.msra.mxu1 %v14147_v31 }
 0xa7d   :  { %10688 = vmatprep.subr.bf16.mxu0 %v14161_v4  ;;  %10720 = vmatprep.subr.bf16.mxu1 %v14172_v51 }
 0xa80   :  { %10690 = vmatpush1.bf16.msra.mxu0 %v14174_v17  ;;  %10722 = vmatpush1.bf16.msra.mxu1 %v14183_v8 }
 0xa81   :  { %10692 = vmatprep.subr.bf16.mxu0 %v14197_v5  ;;  %10724 = vmatprep.subr.bf16.mxu1 %v14208_v18 }
 0xa84   :  { %10694 = vmatpush1.bf16.msra.mxu0 %v14210_v50  ;;  %10726 = vmatpush1.bf16.msra.mxu1 %v14219_v28 }
 0xa85   :  { %10728 = vmatprep.subr.bf16.mxu1 %v13890_v46  ;;  %10696 = vmatprep.subr.bf16.mxu0 %v14230_v12  ;;  %v3366_v46 = vld [vmem:[%s17012_s2 + $0x160] sm:$0xff] }
 0xa86   :  { %v14264_v10 = vpack.c.bf16 %v3366_v46, %v3362_v37 }
 0xa88   :  { %10698 = vmatpush1.bf16.msra.mxu0 %v14239_v61  ;;  %10730 = vmatpush1.bf16.msra.mxu1 %v13898_v22 }
 0xa89   :  { %10700 = vmatprep.subr.bf16.mxu0 %v14252_v56  ;;  %10732 = vmatprep.subr.bf16.mxu1 %v13911_v20 }
 0xa8c   :  { %10702 = vmatpush1.bf16.msra.mxu0 %v14264_v10  ;;  %10734 = vmatpush1.bf16.msra.mxu1 %v13922_v6 }
 0xa8d   :  { %10704 = vmatprep.subr.bf16.mxu0 %v14266_v38  ;;  %10736 = vmatprep.subr.bf16.mxu1 %v13924_v23 }
 0xa90   :  { %10706 = vmatpush1.bf16.msra.mxu0 %v14277_v45  ;;  %10738 = vmatpush1.bf16.msra.mxu1 %v13954_v62 }
 0xa91   :  { %10708 = vmatprep.subr.bf16.mxu0 %v13945_v53  ;;  %10740 = vmatprep.subr.bf16.mxu1 %v13960_v36 }
 0xa94   :  { %10710 = vmatpush1.bf16.msra.mxu0 %v13956_v0  ;;  %10742 = vmatpush1.bf16.msra.mxu1 %v13971_v16 }
 0xa95   :  { %10744 = vmatprep.subr.bf16.mxu0 %v14089_v29  ;;  %10776 = vmatprep.subr.bf16.mxu1 %v14100_v41 }
 0xb49   :  { %v3210_v22 = vpop.f32.mrb[20].mxu0  ;;  %v3281_v20 = vpop.f32.mrb[20].mxu1 }
 0xb4a   :  { %v12043_v6 = vadd.f32 %v3210_v22, %v13135_v35  ;;  %v3212_v23 = vpop.f32.mrb[21].mxu0  ;;  %v3283_v43 = vpop.f32.mrb[21].mxu1  ;;  %v12089_v16 = vadd.f32 %v3281_v20, %v13144_v63  ;;  %v3603_v22 = vld [vmem:[%s17012_s2 + $0x138] sm:$0xff] }
 0xb4b   :  { %v12044_v62 = vadd.f32 %v3212_v23, %v13137_v40  ;;  %v12090_v0 = vadd.f32 %v3283_v43, %v13141_v58  ;;  %v3602_v23 = vld [vmem:[%s17012_s2 + $0x130] sm:$0xff] }
 0xb4c   :  { %v8598_v32 = vmul.f32 -1.442695, %v12043_v6  ;;  %v3598_v6 = vld [vmem:[%s17012_s2 + $0x110] sm:$0xff] }
 0xb4d   :  { %v8599_v53 = vmul.f32 -1.442695, %v12044_v62  ;;  %v8600_v36 = vmul.f32 -1.442695, %v12090_v0  ;;  %v14338_v43 = vpack.c.bf16 %v3602_v23, %v3598_v6  ;;  %v3607_v62 = vld [vmem:[%s17012_s2 + $0x158] sm:$0xff]  ;;  %v3622_v6 = vld [vmem:[%s17012_s2 + $0x1d0] sm:$0xff] }
 0xb4e   :  { %12372 = vpow2.f32 %v8598_v32  ;;  %v3611_v32 = vld [vmem:[%s17012_s2 + $0x178] sm:$0xff]  ;;  %v3626_v23 = vld [vmem:[%s17012_s2 + $0x1f0] sm:$0xff] }
 0xb4f   :  { %12374 = vpow2.f32 %v8599_v53  ;;  %v3606_v53 = vld [vmem:[%s17012_s2 + $0x150] sm:$0xff]  ;;  %v14351_v0 = vpack.c.bf16 %v3611_v32, %v3607_v62  ;;  %v14411_v62 = vpack.c.bf16 %v3626_v23, %v3622_v6 }
 0xb50   :  { %12376 = vpow2.f32 %v8600_v36  ;;  %v3610_v36 = vld [vmem:[%s17012_s2 + $0x170] sm:$0xff] }
 0xb51   :  { %12378 = vtanh.f32 %v12089_v16  ;;  %v3615_v16 = vld [vmem:[%s17012_s2 + $0x198] sm:$0xff] }
 0xb58   :  { %v12373_v47 = vpop.eup %12372 }
 0xb59   :  { %v12375_v52 = vpop.eup %12374  ;;  %v3293_v11 = vadd.f32 1.0, %v12373_v47  ;;  %v3619_v47 = vld [vmem:[%s17012_s2 + $0x1b8] sm:$0xff] }
 0xb5a   :  { %v3299_v54 = vadd.f32 1.0, %v12375_v52  ;;  %v12377_v49 = vpop.eup %12376  ;;  %v14362_v52 = vpack.c.bf16 %v3610_v36, %v3606_v53 }
 0xb5b   :  { %12380 = vrcp.f32 %v3293_v11  ;;  %v12379_v19 = vpop.eup %12378  ;;  %v3306_v37 = vadd.f32 1.0, %v12377_v49  ;;  %v14364_v11 = vpack.c.bf16 %v3619_v47, %v3615_v16  ;;  %v3618_v49 = vld [vmem:[%s17012_s2 + $0x1b0] sm:$0xff] }
 0xb5c   :  { %12382 = vrcp.f32 %v3299_v54  ;;  %v3614_v54 = vld [vmem:[%s17012_s2 + $0x190] sm:$0xff] }
 0xb5d   :  { %12384 = vrcp.f32 %v3306_v37 }
 0xb65   :  { %v12381_v21 = vpop.eup %12380 }
 0xb66   :  { %v12383_v13 = vpop.eup %12382  ;;  %v3310_v27 = vmul.f32 %v12381_v21, %v12379_v19  ;;  %v3621_v19 = vld [vmem:[%s17012_s2 + $0x1c8] sm:$0xff] }
 0xb67   :  { %v3309_v46 = vmul.f32 %v12383_v13, %v14071_v26  ;;  %v12385_v30 = vpop.eup %12384  ;;  %v3599_v26 = vld [vmem:[%s17012_s2 + $0x118] sm:$0xff]  ;;  %v3625_v21 = vld [vmem:[%s17012_s2 + $0x1e8] sm:$0xff] }
 0xb68   :  { %v14330_v20 = vpack.c.bf16 %v3603_v22, %v3599_v26  ;;  %v3623_v13 = vld [vmem:[%s17012_s2 + $0x1d8] sm:$0xff]  ;;  %v14385_v37 = vpack.c.bf16 %v3625_v21, %v3621_v19 }
 0xb69   :  { %v14295_v59 = vadd.f32 %v3310_v27, %v3309_v46  ;;  %v3627_v27 = vld [vmem:[%s17012_s2 + $0x1f8] sm:$0xff]  ;;  %v3620_v46 = vld [vmem:[%s17012_s2 + $0x1c0] sm:$0xff] }
 0xb6a   :  { %v14400_v22 = vpack.c.bf16 %v3627_v27, %v3623_v13 }
 0xb6b   :  { %12386 = vtanh.f32 %v14295_v59 }
 0xb75   :  { %v12387_v25 = vpop.eup %12386 }
 0xb76   :  { %v14298_v39 = vmul.f32 %v12387_v25, %v12385_v30  ;;  %v3624_v30 = vld [vmem:[%s17012_s2 + $0x1e0] sm:$0xff]  ;;  %v14394_v25 = vpack.c.bf16 %v3618_v49, %v3614_v54 }
 0xb77   :  { %v14396_v26 = vpack.c.bf16 %v3624_v30, %v3620_v46 }
 0xb78   :  { %17030 = vst [vmem:[#allocation4_spill] sm:$0xff] %v14298_v39  ;;  %3451 = vmatmul.mubr.f32.vlgmr.msra.gmra.mrb[22].mxu0 %v14298_v39  ;;  %3522 = vmatmul.mubr.f32.vlgmr.msra.gmra.mrb[22].mxu1 %v14298_v39 }
 0xb79   :  { %10746 = vmatpush1.bf16.msra.mxu0 %v14102_v55  ;;  %10778 = vmatpush1.bf16.msra.mxu1 %v14111_v48 }
 0xb7a   :  { %10748 = vmatprep.subr.bf16.mxu0 %v14125_v42  ;;  %10780 = vmatprep.subr.bf16.mxu1 %v14136_v14 }
 0xb7b   :  { %3692 = vmatprep.mubr.f32.mxu0 %v17019_v2  ;;  %3763 = vmatprep.mubr.f32.mxu1 %v17019_v2 }
 0xb7d   :  { %10750 = vmatpush1.bf16.msra.mxu0 %v14138_v60  ;;  %10782 = vmatpush1.bf16.msra.mxu1 %v14147_v31 }
 0xb7e   :  { %10752 = vmatprep.subr.bf16.mxu0 %v14161_v4  ;;  %10784 = vmatprep.subr.bf16.mxu1 %v14172_v51 }
 0xb81   :  { %10754 = vmatpush1.bf16.msra.mxu0 %v14174_v17  ;;  %10786 = vmatpush1.bf16.msra.mxu1 %v14183_v8 }
 0xb82   :  { %10756 = vmatprep.subr.bf16.mxu0 %v14197_v5  ;;  %10788 = vmatprep.subr.bf16.mxu1 %v14208_v18 }
 0xb85   :  { %10758 = vmatpush1.bf16.msra.mxu0 %v14210_v50  ;;  %10790 = vmatpush1.bf16.msra.mxu1 %v14219_v28 }
 0xb86   :  { %10760 = vmatprep.subr.bf16.mxu0 %v14230_v12  ;;  %10792 = vmatprep.subr.bf16.mxu1 %v14330_v20 }
 0xb89   :  { %10762 = vmatpush1.bf16.msra.mxu0 %v14239_v61  ;;  %10794 = vmatpush1.bf16.msra.mxu1 %v14338_v43 }
 0xb8a   :  { %10764 = vmatprep.subr.bf16.mxu0 %v14252_v56  ;;  %10796 = vmatprep.subr.bf16.mxu1 %v14351_v0 }
 0xb8d   :  { %10766 = vmatpush1.bf16.msra.mxu0 %v14264_v10  ;;  %10798 = vmatpush1.bf16.msra.mxu1 %v14362_v52 }
 0xb8e   :  { %10768 = vmatprep.subr.bf16.mxu0 %v14266_v38  ;;  %10800 = vmatprep.subr.bf16.mxu1 %v14364_v11 }
 0xb91   :  { %10770 = vmatpush1.bf16.msra.mxu0 %v14277_v45  ;;  %10802 = vmatpush1.bf16.msra.mxu1 %v14394_v25 }
 0xb92   :  { %10772 = vmatprep.subr.bf16.mxu0 %v14385_v37  ;;  %10804 = vmatprep.subr.bf16.mxu1 %v14400_v22 }
 0xb95   :  { %10774 = vmatpush1.bf16.msra.mxu0 %v14396_v26  ;;  %10806 = vmatpush1.bf16.msra.mxu1 %v14411_v62 }
 0xb96   :  { %10808 = vmatprep.subr.bf16.mxu0 %v14089_v29  ;;  %10840 = vmatprep.subr.bf16.mxu1 %v14100_v41 }
 0xc4b   :  { %v3452_v32 = vpop.f32.mrb[22].mxu0  ;;  %v3523_v53 = vpop.f32.mrb[22].mxu1 }
 0xc4c   :  { %v12045_v36 = vadd.f32 %v3452_v32, %v13135_v35  ;;  %v3454_v16 = vpop.f32.mrb[23].mxu0  ;;  %v3525_v47 = vpop.f32.mrb[23].mxu1  ;;  %v12091_v27 = vadd.f32 %v3523_v53, %v13144_v63 }
 0xc4d   :  { %v12046_v54 = vadd.f32 %v3454_v16, %v13137_v40  ;;  %v12092_v21 = vadd.f32 %v3525_v47, %v13141_v58 }
 0xc4e   :  { %v8601_v49 = vmul.f32 -1.442695, %v12045_v36 }
 0xc4f   :  { %v8602_v19 = vmul.f32 -1.442695, %v12046_v54  ;;  %v8603_v13 = vmul.f32 -1.442695, %v12092_v21 }
 0xc50   :  { %12388 = vpow2.f32 %v8601_v49 }
 0xc51   :  { %12390 = vpow2.f32 %v8602_v19 }
 0xc52   :  { %12392 = vpow2.f32 %v8603_v13 }
 0xc53   :  { %12394 = vtanh.f32 %v12091_v27 }
 0xc5a   :  { %v12389_v46 = vpop.eup %12388 }
 0xc5b   :  { %v12391_v30 = vpop.eup %12390  ;;  %v3535_v6 = vadd.f32 1.0, %v12389_v46 }
 0xc5c   :  { %v3541_v23 = vadd.f32 1.0, %v12391_v30  ;;  %v12393_v32 = vpop.eup %12392 }
 0xc5d   :  { %12396 = vrcp.f32 %v3535_v6  ;;  %v12395_v2 = vpop.eup %12394  ;;  %v3548_v49 = vadd.f32 1.0, %v12393_v32 }
 0xc5e   :  { %12398 = vrcp.f32 %v3541_v23 }
 0xc5f   :  { %12400 = vrcp.f32 %v3548_v49 }
 0xc67   :  { %v12397_v16 = vpop.eup %12396 }
 0xc68   :  { %v12399_v36 = vpop.eup %12398  ;;  %v3552_v54 = vmul.f32 %v12397_v16, %v12395_v2  ;;  %v17032_v2 = vmov 0.0  }
 0xc69   :  { %v3551_v19 = vmul.f32 %v12399_v36, %v14295_v59  ;;  %v12401_v53 = vpop.eup %12400 }
 0xc6b   :  { %v14421_v47 = vadd.f32 %v3552_v54, %v3551_v19 }
 0xc6d   :  { %12402 = vtanh.f32 %v14421_v47 }
 0xc77   :  { %v12403_v21 = vpop.eup %12402 }
 0xc78   :  { %v14424_v13 = vmul.f32 %v12403_v21, %v12401_v53 }
 0xc7a   :  { %17031 = vst [vmem:[#allocation5_spill] sm:$0xff] %v14424_v13  ;;  %3693 = vmatmul.mubr.f32.vlgmr.msra.gmra.mrb[24].mxu0 %v14424_v13  ;;  %3764 = vmatmul.mubr.f32.vlgmr.msra.gmra.mrb[24].mxu1 %v14424_v13 }
 0xc7b   :  { %10810 = vmatpush1.bf16.msra.mxu0 %v14102_v55  ;;  %10842 = vmatpush1.bf16.msra.mxu1 %v14111_v48 }
 0xc7c   :  { %10812 = vmatprep.subr.bf16.mxu0 %v14125_v42  ;;  %10844 = vmatprep.subr.bf16.mxu1 %v14136_v14 }
 0xc7d   :  { %3934 = vmatprep.mubr.f32.mxu0 %v17032_v2  ;;  %4005 = vmatprep.mubr.f32.mxu1 %v17032_v2 }
 0xc7f   :  { %10814 = vmatpush1.bf16.msra.mxu0 %v14138_v60  ;;  %10846 = vmatpush1.bf16.msra.mxu1 %v14147_v31 }
 0xc80   :  { %10816 = vmatprep.subr.bf16.mxu0 %v14161_v4  ;;  %10848 = vmatprep.subr.bf16.mxu1 %v14172_v51 }
 0xc83   :  { %10818 = vmatpush1.bf16.msra.mxu0 %v14174_v17  ;;  %10850 = vmatpush1.bf16.msra.mxu1 %v14183_v8 }
 0xc84   :  { %10820 = vmatprep.subr.bf16.mxu0 %v14197_v5  ;;  %10852 = vmatprep.subr.bf16.mxu1 %v14208_v18 }
 0xc87   :  { %10822 = vmatpush1.bf16.msra.mxu0 %v14210_v50  ;;  %10854 = vmatpush1.bf16.msra.mxu1 %v14219_v28 }
 0xc88   :  { %10824 = vmatprep.subr.bf16.mxu0 %v14230_v12  ;;  %10856 = vmatprep.subr.bf16.mxu1 %v14330_v20 }
 0xc8b   :  { %10826 = vmatpush1.bf16.msra.mxu0 %v14239_v61  ;;  %10858 = vmatpush1.bf16.msra.mxu1 %v14338_v43 }
 0xc8c   :  { %10828 = vmatprep.subr.bf16.mxu0 %v14252_v56  ;;  %10860 = vmatprep.subr.bf16.mxu1 %v14351_v0 }
 0xc8f   :  { %10830 = vmatpush1.bf16.msra.mxu0 %v14264_v10  ;;  %10862 = vmatpush1.bf16.msra.mxu1 %v14362_v52 }
 0xc90   :  { %10832 = vmatprep.subr.bf16.mxu0 %v14266_v38  ;;  %10864 = vmatprep.subr.bf16.mxu1 %v14364_v11 }
 0xc93   :  { %10834 = vmatpush1.bf16.msra.mxu0 %v14277_v45  ;;  %10866 = vmatpush1.bf16.msra.mxu1 %v14394_v25 }
 0xc94   :  { %10836 = vmatprep.subr.bf16.mxu0 %v14385_v37  ;;  %10868 = vmatprep.subr.bf16.mxu1 %v14400_v22 }
 0xc97   :  { %10838 = vmatpush1.bf16.msra.mxu0 %v14396_v26  ;;  %10870 = vmatpush1.bf16.msra.mxu1 %v14411_v62 }
 0xc98   :  { %10872 = vmatprep.subr.bf16.mxu0 %v14089_v29  ;;  %10904 = vmatprep.subr.bf16.mxu1 %v14100_v41 }
 0xd4d   :  { %v3694_v59 = vpop.f32.mrb[24].mxu0  ;;  %v3765_v27 = vpop.f32.mrb[24].mxu1 }
 0xd4e   :  { %v12047_v46 = vadd.f32 %v3694_v59, %v13135_v35  ;;  %v3696_v30 = vpop.f32.mrb[25].mxu0  ;;  %v3767_v6 = vpop.f32.mrb[25].mxu1  ;;  %v12093_v49 = vadd.f32 %v3765_v27, %v13144_v63 }
 0xd4f   :  { %v12048_v23 = vadd.f32 %v3696_v30, %v13137_v40  ;;  %v12094_v36 = vadd.f32 %v3767_v6, %v13141_v58 }
 0xd50   :  { %v8604_v32 = vmul.f32 -1.442695, %v12047_v46 }
 0xd51   :  { %v8605_v16 = vmul.f32 -1.442695, %v12048_v23  ;;  %v8606_v54 = vmul.f32 -1.442695, %v12094_v36 }
 0xd52   :  { %12404 = vpow2.f32 %v8604_v32 }
 0xd53   :  { %12406 = vpow2.f32 %v8605_v16 }
 0xd54   :  { %12408 = vpow2.f32 %v8606_v54 }
 0xd55   :  { %12410 = vtanh.f32 %v12093_v49 }
 0xd5c   :  { %v12405_v29 = vpop.eup %12404 }
 0xd5d   :  { %v12407_v19 = vpop.eup %12406  ;;  %v3777_v41 = vadd.f32 1.0, %v12405_v29 }
 0xd5e   :  { %v3783_v53 = vadd.f32 1.0, %v12407_v19  ;;  %v12409_v21 = vpop.eup %12408 }
 0xd5f   :  { %12412 = vrcp.f32 %v3777_v41  ;;  %v12411_v59 = vpop.eup %12410  ;;  %v3790_v32 = vadd.f32 1.0, %v12409_v21  ;;  %v4291_v21 = vld [vmem:[%s17012_s2 + $0x8] sm:$0xff] }
 0xd60   :  { %12414 = vrcp.f32 %v3783_v53 }
 0xd61   :  { %12416 = vrcp.f32 %v3790_v32  ;;  %v4290_v32 = vld [vmem:[%s17012_s2] sm:$0xff] }
 0xd69   :  { %v12413_v30 = vpop.eup %12412 }
 0xd6a   :  { %v12415_v46 = vpop.eup %12414  ;;  %v3794_v23 = vmul.f32 %v12413_v30, %v12411_v59  ;;  %v4295_v59 = vld [vmem:[%s17012_s2 + $0x28] sm:$0xff]  ;;  %v4293_v30 = vld [vmem:[%s17012_s2 + $0x18] sm:$0xff] }
 0xd6b   :  { %v3793_v16 = vmul.f32 %v12415_v46, %v14421_v47  ;;  %v12417_v27 = vpop.eup %12416  ;;  %v14529_v46 = vpack.c.bf16 %v4295_v59, %v4291_v21  ;;  %v4312_v21 = vld [vmem:[%s17012_s2 + $0xb0] sm:$0xff] }
 0xd6d   :  { %v14467_v6 = vadd.f32 %v3794_v23, %v3793_v16  ;;  %v4297_v23 = vld [vmem:[%s17012_s2 + $0x38] sm:$0xff]  ;;  %v4294_v16 = vld [vmem:[%s17012_s2 + $0x20] sm:$0xff] }
 0xd6f   :  { %12418 = vtanh.f32 %v14467_v6 }
 0xd79   :  { %v12419_v36 = vpop.eup %12418 }
 0xd7a   :  { %v14470_v54 = vmul.f32 %v12419_v36, %v12417_v27  ;;  %v14542_v27 = vpack.c.bf16 %v4294_v16, %v4290_v32  ;;  %v4292_v36 = vld [vmem:[%s17012_s2 + $0x10] sm:$0xff]  ;;  %v4317_v32 = vld [vmem:[%s17012_s2 + $0xd8] sm:$0xff] }
 0xd7c   :  { %17033 = vst [vmem:[#allocation6_spill] sm:$0xff] %v14470_v54  ;;  %3935 = vmatmul.mubr.f32.vlgmr.msra.gmra.mrb[26].mxu0 %v14470_v54  ;;  %4006 = vmatmul.mubr.f32.vlgmr.msra.gmra.mrb[26].mxu1 %v14470_v54 }
 0xd7d   :  { %10874 = vmatpush1.bf16.msra.mxu0 %v14102_v55  ;;  %10906 = vmatpush1.bf16.msra.mxu1 %v14111_v48 }
 0xd7e   :  { %10876 = vmatprep.subr.bf16.mxu0 %v14125_v42  ;;  %10908 = vmatprep.subr.bf16.mxu1 %v14136_v14 }
 0xd7f   :  { %4176 = vmatprep.mubr.f32.mxu0 %v17032_v2  ;;  %4247 = vmatprep.mubr.f32.mxu1 %v17032_v2 }
 0xd81   :  { %10878 = vmatpush1.bf16.msra.mxu0 %v14138_v60  ;;  %10910 = vmatpush1.bf16.msra.mxu1 %v14147_v31 }
 0xd82   :  { %10880 = vmatprep.subr.bf16.mxu0 %v14161_v4  ;;  %10912 = vmatprep.subr.bf16.mxu1 %v14172_v51 }
 0xd85   :  { %10882 = vmatpush1.bf16.msra.mxu0 %v14174_v17  ;;  %10914 = vmatpush1.bf16.msra.mxu1 %v14183_v8 }
 0xd86   :  { %10884 = vmatprep.subr.bf16.mxu0 %v14197_v5  ;;  %10916 = vmatprep.subr.bf16.mxu1 %v14208_v18 }
 0xd89   :  { %10886 = vmatpush1.bf16.msra.mxu0 %v14210_v50  ;;  %10918 = vmatpush1.bf16.msra.mxu1 %v14219_v28 }
 0xd8a   :  { %10888 = vmatprep.subr.bf16.mxu0 %v14230_v12  ;;  %10920 = vmatprep.subr.bf16.mxu1 %v14330_v20 }
 0xd8d   :  { %10890 = vmatpush1.bf16.msra.mxu0 %v14239_v61  ;;  %10922 = vmatpush1.bf16.msra.mxu1 %v14338_v43 }
 0xd8e   :  { %10892 = vmatprep.subr.bf16.mxu0 %v14252_v56  ;;  %10924 = vmatprep.subr.bf16.mxu1 %v14351_v0 }
 0xd91   :  { %10894 = vmatpush1.bf16.msra.mxu0 %v14264_v10  ;;  %10926 = vmatpush1.bf16.msra.mxu1 %v14362_v52 }
 0xd92   :  { %10896 = vmatprep.subr.bf16.mxu0 %v14266_v38  ;;  %10928 = vmatprep.subr.bf16.mxu1 %v14364_v11 }
 0xd95   :  { %10898 = vmatpush1.bf16.msra.mxu0 %v14277_v45  ;;  %10930 = vmatpush1.bf16.msra.mxu1 %v14394_v25 }
 0xd96   :  { %10900 = vmatprep.subr.bf16.mxu0 %v14385_v37  ;;  %10932 = vmatprep.subr.bf16.mxu1 %v14400_v22 }
 0xd99   :  { %10902 = vmatpush1.bf16.msra.mxu0 %v14396_v26  ;;  %10934 = vmatpush1.bf16.msra.mxu1 %v14411_v62 }
 0xd9a   :  { %10936 = vmatprep.subr.bf16.mxu0 %v14529_v46 }
 0xe4f   :  { %v3936_v55 = vpop.f32.mrb[26].mxu0  ;;  %v4007_v48 = vpop.f32.mrb[26].mxu1 }
 0xe50   :  { %v12049_v42 = vadd.f32 %v3936_v55, %v13135_v35  ;;  %v3938_v14 = vpop.f32.mrb[27].mxu0  ;;  %v4009_v60 = vpop.f32.mrb[27].mxu1  ;;  %v12095_v5 = vadd.f32 %v4007_v48, %v13144_v63  ;;  %v4296_v55 = vld [vmem:[%s17012_s2 + $0x30] sm:$0xff] }
 0xe51   :  { %v12050_v31 = vadd.f32 %v3938_v14, %v13137_v40  ;;  %v12096_v17 = vadd.f32 %v4009_v60, %v13141_v58  ;;  %v14551_v48 = vpack.c.bf16 %v4296_v55, %v4292_v36  ;;  %v4303_v14 = vld [vmem:[%s17012_s2 + $0x68] sm:$0xff]  ;;  %v4301_v60 = vld [vmem:[%s17012_s2 + $0x58] sm:$0xff]  ;;  %v4314_v55 = vld [vmem:[%s17012_s2 + $0xc0] sm:$0xff] }
 0xe52   :  { %v8607_v4 = vmul.f32 -1.442695, %v12049_v42  ;;  %v4299_v42 = vld [vmem:[%s17012_s2 + $0x48] sm:$0xff]  ;;  %v4321_v36 = vld [vmem:[%s17012_s2 + $0xf8] sm:$0xff] }
 0xe53   :  { %v8608_v51 = vmul.f32 -1.442695, %v12050_v31  ;;  %v8609_v8 = vmul.f32 -1.442695, %v12096_v17  ;;  %v14565_v31 = vpack.c.bf16 %v4303_v14, %v4299_v42  ;;  %v4302_v17 = vld [vmem:[%s17012_s2 + $0x60] sm:$0xff]  ;;  %v14648_v14 = vpack.c.bf16 %v4321_v36, %v4317_v32 }
 0xe54   :  { %12420 = vpow2.f32 %v8607_v4  ;;  %v4305_v4 = vld [vmem:[%s17012_s2 + $0x78] sm:$0xff]  ;;  %v4318_v42 = vld [vmem:[%s17012_s2 + $0xe0] sm:$0xff] }
 0xe55   :  { %12422 = vpow2.f32 %v8608_v51  ;;  %v4298_v51 = vld [vmem:[%s17012_s2 + $0x40] sm:$0xff] }
 0xe56   :  { %12424 = vpow2.f32 %v8609_v8  ;;  %v14576_v8 = vpack.c.bf16 %v4305_v4, %v4301_v60  ;;  %v14650_v60 = vpack.c.bf16 %v4318_v42, %v4314_v55  ;;  %v4316_v4 = vld [vmem:[%s17012_s2 + $0xd0] sm:$0xff]  ;;  %v4338_v55 = vld [vmem:[%s17012_s2 + $0x180] sm:$0xff] }
 0xe57   :  { %12426 = vtanh.f32 %v12095_v5  ;;  %v14578_v5 = vpack.c.bf16 %v4302_v17, %v4298_v51  ;;  %v4320_v51 = vld [vmem:[%s17012_s2 + $0xf0] sm:$0xff]  ;;  %v4342_v42 = vld [vmem:[%s17012_s2 + $0x1a0] sm:$0xff] }
 0xe58   :  { %v14659_v17 = vpack.c.bf16 %v4320_v51, %v4316_v4  ;;  %v14717_v4 = vpack.c.bf16 %v4342_v42, %v4338_v55 }
 0xe5e   :  { %v12421_v18 = vpop.eup %12420 }
 0xe5f   :  { %v12423_v50 = vpop.eup %12422  ;;  %v4019_v28 = vadd.f32 1.0, %v12421_v18  ;;  %v4300_v18 = vld [vmem:[%s17012_s2 + $0x50] sm:$0xff] }
 0xe60   :  { %v4025_v12 = vadd.f32 1.0, %v12423_v50  ;;  %v12425_v61 = vpop.eup %12424  ;;  %v4304_v50 = vld [vmem:[%s17012_s2 + $0x70] sm:$0xff] }
 0xe61   :  { %12428 = vrcp.f32 %v4019_v28  ;;  %v12427_v56 = vpop.eup %12426  ;;  %v4032_v47 = vadd.f32 1.0, %v12425_v61  ;;  %v14587_v28 = vpack.c.bf16 %v4304_v50, %v4300_v18  ;;  %v4311_v61 = vld [vmem:[%s17012_s2 + $0xa8] sm:$0xff] }
 0xe62   :  { %12430 = vrcp.f32 %v4025_v12  ;;  %v4307_v12 = vld [vmem:[%s17012_s2 + $0x88] sm:$0xff] }
 0xe63   :  { %12432 = vrcp.f32 %v4032_v47  ;;  %v4310_v47 = vld [vmem:[%s17012_s2 + $0xa0] sm:$0xff]  ;;  %v4323_v18 = vld [vmem:[%s17012_s2 + $0x108] sm:$0xff] }
 0xe64   :  { %v4327_v50 = vld [vmem:[%s17012_s2 + $0x128] sm:$0xff] }
 0xe6b   :  { %v12429_v10 = vpop.eup %12428 }
 0xe6c   :  { %v12431_v38 = vpop.eup %12430  ;;  %v4036_v45 = vmul.f32 %v12429_v10, %v12427_v56  ;;  %v4309_v56 = vld [vmem:[%s17012_s2 + $0x98] sm:$0xff]  ;;  %v14601_v10 = vpack.c.bf16 %v4311_v61, %v4307_v12  ;;  %v14670_v12 = vpack.c.bf16 %v4327_v50, %v4323_v18  ;;  %v4322_v61 = vld [vmem:[%s17012_s2 + $0x100] sm:$0xff] }
 0xe6d   :  { %v4035_v49 = vmul.f32 %v12431_v38, %v14467_v6  ;;  %v12433_v19 = vpop.eup %12432  ;;  %v14540_v6 = vpack.c.bf16 %v4297_v23, %v4293_v30  ;;  %v4313_v38 = vld [vmem:[%s17012_s2 + $0xb8] sm:$0xff]  ;;  %v4315_v30 = vld [vmem:[%s17012_s2 + $0xc8] sm:$0xff] }
 0xe6e   :  { %v4319_v23 = vld [vmem:[%s17012_s2 + $0xe8] sm:$0xff] }
 0xe6f   :  { %v14511_v29 = vadd.f32 %v4036_v45, %v4035_v49  ;;  %10968 = vmatprep.subr.bf16.mxu1 %v14540_v6  ;;  %v4306_v45 = vld [vmem:[%s17012_s2 + $0x80] sm:$0xff]  ;;  %v14612_v49 = vpack.c.bf16 %v4313_v38, %v4309_v56  ;;  %v14637_v16 = vpack.c.bf16 %v4319_v23, %v4315_v30  ;;  %v4339_v30 = vld [vmem:[%s17012_s2 + $0x188] sm:$0xff] }
 0xe70   :  { %v4326_v56 = vld [vmem:[%s17012_s2 + $0x120] sm:$0xff]  ;;  %v4343_v23 = vld [vmem:[%s17012_s2 + $0x1a8] sm:$0xff] }
 0xe71   :  { %12434 = vtanh.f32 %v14511_v29  ;;  %v14679_v38 = vpack.c.bf16 %v4326_v56, %v4322_v61  ;;  %v14706_v36 = vpack.c.bf16 %v4343_v23, %v4339_v30 }
 0xe7b   :  { %v12435_v41 = vpop.eup %12434 }
 0xe7c   :  { %v14514_v53 = vmul.f32 %v12435_v41, %v12433_v19  ;;  %v14614_v19 = vpack.c.bf16 %v4310_v47, %v4306_v45  ;;  %v4308_v41 = vld [vmem:[%s17012_s2 + $0x90] sm:$0xff]  ;;  %v4331_v45 = vld [vmem:[%s17012_s2 + $0x148] sm:$0xff] }
 0xe7d   :  { %v14623_v59 = vpack.c.bf16 %v4312_v21, %v4308_v41  ;;  %v4335_v47 = vld [vmem:[%s17012_s2 + $0x168] sm:$0xff]  ;;  %v4330_v41 = vld [vmem:[%s17012_s2 + $0x140] sm:$0xff] }
 0xe7e   :  { %17034 = vst [vmem:[#allocation7_spill] sm:$0xff] %v14514_v53  ;;  %4177 = vmatmul.mubr.f32.vlgmr.msra.gmra.mrb[28].mxu0 %v14514_v53  ;;  %4248 = vmatmul.mubr.f32.vlgmr.msra.gmra.mrb[28].mxu1 %v14514_v53  ;;  %v14692_v21 = vpack.c.bf16 %v4335_v47, %v4331_v45 }
 0xe7f   :  { %4418 = vmatprep.mubr.f32.mxu0 %v17032_v2  ;;  %4489 = vmatprep.mubr.f32.mxu1 %v17032_v2 }
 0xe80   :  { %10938 = vmatpush1.bf16.msra.mxu0 %v14542_v27  ;;  %10970 = vmatpush1.bf16.msra.mxu1 %v14551_v48 }
 0xe81   :  { %10940 = vmatprep.subr.bf16.mxu0 %v14565_v31  ;;  %10972 = vmatprep.subr.bf16.mxu1 %v14576_v8 }
 0xe84   :  { %10942 = vmatpush1.bf16.msra.mxu0 %v14578_v5  ;;  %10974 = vmatpush1.bf16.msra.mxu1 %v14587_v28 }
 0xe85   :  { %10944 = vmatprep.subr.bf16.mxu0 %v14601_v10  ;;  %10976 = vmatprep.subr.bf16.mxu1 %v14612_v49 }
 0xe88   :  { %10946 = vmatpush1.bf16.msra.mxu0 %v14614_v19  ;;  %10978 = vmatpush1.bf16.msra.mxu1 %v14623_v59 }
 0xe89   :  { %10948 = vmatprep.subr.bf16.mxu0 %v14637_v16  ;;  %10980 = vmatprep.subr.bf16.mxu1 %v14648_v14 }
 0xe8c   :  { %10950 = vmatpush1.bf16.msra.mxu0 %v14650_v60  ;;  %10982 = vmatpush1.bf16.msra.mxu1 %v14659_v17 }
 0xe8d   :  { %10984 = vmatprep.subr.bf16.mxu1 %v14330_v20  ;;  %10952 = vmatprep.subr.bf16.mxu0 %v14670_v12  ;;  %v4334_v20 = vld [vmem:[%s17012_s2 + $0x160] sm:$0xff] }
 0xe8e   :  { %v14704_v32 = vpack.c.bf16 %v4334_v20, %v4330_v41 }
 0xe90   :  { %10954 = vmatpush1.bf16.msra.mxu0 %v14679_v38  ;;  %10986 = vmatpush1.bf16.msra.mxu1 %v14338_v43 }
 0xe91   :  { %10956 = vmatprep.subr.bf16.mxu0 %v14692_v21  ;;  %10988 = vmatprep.subr.bf16.mxu1 %v14351_v0 }
 0xe94   :  { %10958 = vmatpush1.bf16.msra.mxu0 %v14704_v32  ;;  %10990 = vmatpush1.bf16.msra.mxu1 %v14362_v52 }
 0xe95   :  { %10960 = vmatprep.subr.bf16.mxu0 %v14706_v36  ;;  %10992 = vmatprep.subr.bf16.mxu1 %v14364_v11 }
 0xe98   :  { %10962 = vmatpush1.bf16.msra.mxu0 %v14717_v4  ;;  %10994 = vmatpush1.bf16.msra.mxu1 %v14394_v25 }
 0xe99   :  { %10964 = vmatprep.subr.bf16.mxu0 %v14385_v37  ;;  %10996 = vmatprep.subr.bf16.mxu1 %v14400_v22 }
 0xe9c   :  { %10966 = vmatpush1.bf16.msra.mxu0 %v14396_v26  ;;  %10998 = vmatpush1.bf16.msra.mxu1 %v14411_v62 }
 0xe9d   :  { %11000 = vmatprep.subr.bf16.mxu0 %v14529_v46  ;;  %11032 = vmatprep.subr.bf16.mxu1 %v14540_v6 }
 0xf51   :  { %v4178_v43 = vpop.f32.mrb[28].mxu0  ;;  %v4249_v0 = vpop.f32.mrb[28].mxu1 }
 0xf52   :  { %v12051_v52 = vadd.f32 %v4178_v43, %v13135_v35  ;;  %v4180_v11 = vpop.f32.mrb[29].mxu0  ;;  %v4251_v51 = vpop.f32.mrb[29].mxu1  ;;  %v12097_v62 = vadd.f32 %v4249_v0, %v13144_v63 }
 0xf53   :  { %v12052_v25 = vadd.f32 %v4180_v11, %v13137_v40  ;;  %v12098_v26 = vadd.f32 %v4251_v51, %v13141_v58  ;;  %v4571_v51 = vld [vmem:[%s17012_s2 + $0x138] sm:$0xff] }
 0xf54   :  { %v8610_v18 = vmul.f32 -1.442695, %v12051_v52 }
 0xf55   :  { %v8611_v37 = vmul.f32 -1.442695, %v12052_v25  ;;  %v8612_v22 = vmul.f32 -1.442695, %v12098_v26 }
 0xf56   :  { %12436 = vpow2.f32 %v8610_v18  ;;  %v4566_v18 = vld [vmem:[%s17012_s2 + $0x110] sm:$0xff] }
 0xf57   :  { %12438 = vpow2.f32 %v8611_v37  ;;  %v4570_v37 = vld [vmem:[%s17012_s2 + $0x130] sm:$0xff] }
 0xf58   :  { %12440 = vpow2.f32 %v8612_v22  ;;  %v14778_v26 = vpack.c.bf16 %v4570_v37, %v4566_v18  ;;  %v4575_v22 = vld [vmem:[%s17012_s2 + $0x158] sm:$0xff]  ;;  %v4592_v18 = vld [vmem:[%s17012_s2 + $0x1e0] sm:$0xff] }
 0xf59   :  { %12442 = vtanh.f32 %v12097_v62  ;;  %v4579_v62 = vld [vmem:[%s17012_s2 + $0x178] sm:$0xff] }
 0xf60   :  { %v12437_v50 = vpop.eup %12436 }
 0xf61   :  { %v12439_v61 = vpop.eup %12438  ;;  %v4261_v56 = vadd.f32 1.0, %v12437_v50  ;;  %v4574_v50 = vld [vmem:[%s17012_s2 + $0x150] sm:$0xff] }
 0xf62   :  { %v4267_v45 = vadd.f32 1.0, %v12439_v61  ;;  %v12441_v47 = vpop.eup %12440  ;;  %v14791_v61 = vpack.c.bf16 %v4579_v62, %v4575_v22 }
 0xf63   :  { %12444 = vrcp.f32 %v4261_v56  ;;  %v12443_v41 = vpop.eup %12442  ;;  %v4274_v55 = vadd.f32 1.0, %v12441_v47  ;;  %v4578_v56 = vld [vmem:[%s17012_s2 + $0x170] sm:$0xff]  ;;  %v4587_v47 = vld [vmem:[%s17012_s2 + $0x1b8] sm:$0xff] }
 0xf64   :  { %12446 = vrcp.f32 %v4267_v45  ;;  %v4583_v45 = vld [vmem:[%s17012_s2 + $0x198] sm:$0xff] }
 0xf65   :  { %12448 = vrcp.f32 %v4274_v55  ;;  %v4589_v55 = vld [vmem:[%s17012_s2 + $0x1c8] sm:$0xff] }
 0xf6d   :  { %v12445_v20 = vpop.eup %12444 }
 0xf6e   :  { %v12447_v30 = vpop.eup %12446  ;;  %v4278_v23 = vmul.f32 %v12445_v20, %v12443_v41  ;;  %v14802_v41 = vpack.c.bf16 %v4578_v56, %v4574_v50  ;;  %v14804_v20 = vpack.c.bf16 %v4587_v47, %v4583_v45  ;;  %v4590_v50 = vld [vmem:[%s17012_s2 + $0x1d0] sm:$0xff] }
 0xf6f   :  { %v4277_v42 = vmul.f32 %v12447_v30, %v14511_v29  ;;  %v12449_v0 = vpop.eup %12448  ;;  %v4567_v29 = vld [vmem:[%s17012_s2 + $0x118] sm:$0xff]  ;;  %v4582_v30 = vld [vmem:[%s17012_s2 + $0x190] sm:$0xff] }
 0xf70   :  { %v14770_v25 = vpack.c.bf16 %v4571_v51, %v4567_v29  ;;  %v4588_v51 = vld [vmem:[%s17012_s2 + $0x1c0] sm:$0xff]  ;;  %v4594_v56 = vld [vmem:[%s17012_s2 + $0x1f0] sm:$0xff] }
 0xf71   :  { %v14735_v43 = vadd.f32 %v4278_v23, %v4277_v42  ;;  %v4586_v23 = vld [vmem:[%s17012_s2 + $0x1b0] sm:$0xff]  ;;  %v4593_v42 = vld [vmem:[%s17012_s2 + $0x1e8] sm:$0xff]  ;;  %v14836_v22 = vpack.c.bf16 %v4592_v18, %v4588_v51  ;;  %v14851_v45 = vpack.c.bf16 %v4594_v56, %v4590_v50 }
 0xf72   :  { %v14825_v29 = vpack.c.bf16 %v4593_v42, %v4589_v55  ;;  %v14834_v37 = vpack.c.bf16 %v4586_v23, %v4582_v30 }
 0xf73   :  { %12450 = vtanh.f32 %v14735_v43 }
 0xf7d   :  { %v12451_v52 = vpop.eup %12450 }
 0xf7e   :  { %v14738_v11 = vmul.f32 %v12451_v52, %v12449_v0  ;;  %v4591_v0 = vld [vmem:[%s17012_s2 + $0x1d8] sm:$0xff] }
 0xf7f   :  { %v4595_v52 = vld [vmem:[%s17012_s2 + $0x1f8] sm:$0xff] }
 0xf80   :  { %17035 = vst [vmem:[#allocation8_spill] sm:$0xff] %v14738_v11  ;;  %4419 = vmatmul.mubr.f32.vlgmr.msra.gmra.mrb[30].mxu0 %v14738_v11  ;;  %4490 = vmatmul.mubr.f32.vlgmr.msra.gmra.mrb[30].mxu1 %v14738_v11  ;;  %v14840_v62 = vpack.c.bf16 %v4595_v52, %v4591_v0 }
 0xf81   :  { %11002 = vmatpush1.bf16.msra.mxu0 %v14542_v27  ;;  %11034 = vmatpush1.bf16.msra.mxu1 %v14551_v48 }
 0xf82   :  { %11004 = vmatprep.subr.bf16.mxu0 %v14565_v31  ;;  %11036 = vmatprep.subr.bf16.mxu1 %v14576_v8 }
 0xf83   :  { %4660 = vmatprep.mubr.f32.mxu0 %v17032_v2  ;;  %4731 = vmatprep.mubr.f32.mxu1 %v17032_v2 }
 0xf85   :  { %11006 = vmatpush1.bf16.msra.mxu0 %v14578_v5  ;;  %11038 = vmatpush1.bf16.msra.mxu1 %v14587_v28 }
 0xf86   :  { %11008 = vmatprep.subr.bf16.mxu0 %v14601_v10  ;;  %11040 = vmatprep.subr.bf16.mxu1 %v14612_v49 }
 0xf89   :  { %11010 = vmatpush1.bf16.msra.mxu0 %v14614_v19  ;;  %11042 = vmatpush1.bf16.msra.mxu1 %v14623_v59 }
 0xf8a   :  { %11012 = vmatprep.subr.bf16.mxu0 %v14637_v16  ;;  %11044 = vmatprep.subr.bf16.mxu1 %v14648_v14 }
 0xf8d   :  { %11014 = vmatpush1.bf16.msra.mxu0 %v14650_v60  ;;  %11046 = vmatpush1.bf16.msra.mxu1 %v14659_v17 }
 0xf8e   :  { %11016 = vmatprep.subr.bf16.mxu0 %v14670_v12  ;;  %11048 = vmatprep.subr.bf16.mxu1 %v14770_v25 }
 0xf91   :  { %11018 = vmatpush1.bf16.msra.mxu0 %v14679_v38  ;;  %11050 = vmatpush1.bf16.msra.mxu1 %v14778_v26 }
 0xf92   :  { %11020 = vmatprep.subr.bf16.mxu0 %v14692_v21  ;;  %11052 = vmatprep.subr.bf16.mxu1 %v14791_v61 }
 0xf95   :  { %11022 = vmatpush1.bf16.msra.mxu0 %v14704_v32  ;;  %11054 = vmatpush1.bf16.msra.mxu1 %v14802_v41 }
 0xf96   :  { %11024 = vmatprep.subr.bf16.mxu0 %v14706_v36  ;;  %11056 = vmatprep.subr.bf16.mxu1 %v14804_v20 }
 0xf99   :  { %11026 = vmatpush1.bf16.msra.mxu0 %v14717_v4  ;;  %11058 = vmatpush1.bf16.msra.mxu1 %v14834_v37 }
 0xf9a   :  { %11028 = vmatprep.subr.bf16.mxu0 %v14825_v29  ;;  %11060 = vmatprep.subr.bf16.mxu1 %v14840_v62 }
 0xf9d   :  { %11030 = vmatpush1.bf16.msra.mxu0 %v14836_v22  ;;  %11062 = vmatpush1.bf16.msra.mxu1 %v14851_v45 }
 0xf9e   :  { %11064 = vmatprep.subr.bf16.mxu0 %v14529_v46  ;;  %11096 = vmatprep.subr.bf16.mxu1 %v14540_v6 }
0x1053   :  { %v4420_v47 = vpop.f32.mrb[30].mxu0  ;;  %v4491_v30 = vpop.f32.mrb[30].mxu1 }
0x1054   :  { %v12053_v23 = vadd.f32 %v4420_v47, %v13135_v35  ;;  %v4422_v55 = vpop.f32.mrb[31].mxu0  ;;  %v4493_v42 = vpop.f32.mrb[31].mxu1  ;;  %v12099_v56 = vadd.f32 %v4491_v30, %v13144_v63 }
0x1055   :  { %v12054_v0 = vadd.f32 %v4422_v55, %v13137_v40  ;;  %v12100_v18 = vadd.f32 %v4493_v42, %v13141_v58 }
0x1056   :  { %v8613_v52 = vmul.f32 -1.442695, %v12053_v23 }
0x1057   :  { %v8614_v51 = vmul.f32 -1.442695, %v12054_v0  ;;  %v8615_v50 = vmul.f32 -1.442695, %v12100_v18 }
0x1058   :  { %12452 = vpow2.f32 %v8613_v52 }
0x1059   :  { %12454 = vpow2.f32 %v8614_v51 }
0x105a   :  { %12456 = vpow2.f32 %v8615_v50 }
0x105b   :  { %12458 = vtanh.f32 %v12099_v56 }
0x1062   :  { %v12453_v11 = vpop.eup %12452 }
0x1063   :  { %v12455_v53 = vpop.eup %12454  ;;  %v4503_v54 = vadd.f32 1.0, %v12453_v11 }
0x1064   :  { %v4509_v13 = vadd.f32 1.0, %v12455_v53  ;;  %v12457_v47 = vpop.eup %12456 }
0x1065   :  { %12460 = vrcp.f32 %v4503_v54  ;;  %v12459_v39 = vpop.eup %12458  ;;  %v4516_v52 = vadd.f32 1.0, %v12457_v47 }
0x1066   :  { %12462 = vrcp.f32 %v4509_v13 }
0x1067   :  { %12464 = vrcp.f32 %v4516_v52 }
0x106f   :  { %v12461_v55 = vpop.eup %12460 }
0x1070   :  { %v12463_v23 = vpop.eup %12462  ;;  %v4520_v0 = vmul.f32 %v12461_v55, %v12459_v39 }
0x1071   :  { %v4519_v51 = vmul.f32 %v12463_v23, %v14735_v43  ;;  %v12465_v30 = vpop.eup %12464 }
0x1073   :  { %v14861_v42 = vadd.f32 %v4520_v0, %v4519_v51 }
0x1075   :  { %12466 = vtanh.f32 %v14861_v42 }
0x107f   :  { %v12467_v11 = vpop.eup %12466 }
0x1080   :  { %v14864_v18 = vmul.f32 %v12467_v11, %v12465_v30 }
0x1082   :  { %17036 = vst [vmem:[#allocation9_spill] sm:$0xff] %v14864_v18  ;;  %4661 = vmatmul.mubr.f32.vlgmr.msra.gmra.mrb[32].mxu0 %v14864_v18  ;;  %4732 = vmatmul.mubr.f32.vlgmr.msra.gmra.mrb[32].mxu1 %v14864_v18 }
0x1083   :  { %11066 = vmatpush1.bf16.msra.mxu0 %v14542_v27  ;;  %11098 = vmatpush1.bf16.msra.mxu1 %v14551_v48 }
0x1084   :  { %11068 = vmatprep.subr.bf16.mxu0 %v14565_v31  ;;  %11100 = vmatprep.subr.bf16.mxu1 %v14576_v8 }
0x1085   :  { %4902 = vmatprep.mubr.f32.mxu0 %v17032_v2  ;;  %4973 = vmatprep.mubr.f32.mxu1 %v17032_v2 }
0x1087   :  { %11070 = vmatpush1.bf16.msra.mxu0 %v14578_v5  ;;  %11102 = vmatpush1.bf16.msra.mxu1 %v14587_v28 }
0x1088   :  { %11072 = vmatprep.subr.bf16.mxu0 %v14601_v10  ;;  %11104 = vmatprep.subr.bf16.mxu1 %v14612_v49 }
0x108b   :  { %11074 = vmatpush1.bf16.msra.mxu0 %v14614_v19  ;;  %11106 = vmatpush1.bf16.msra.mxu1 %v14623_v59 }
0x108c   :  { %11076 = vmatprep.subr.bf16.mxu0 %v14637_v16  ;;  %11108 = vmatprep.subr.bf16.mxu1 %v14648_v14 }
0x108f   :  { %11078 = vmatpush1.bf16.msra.mxu0 %v14650_v60  ;;  %11110 = vmatpush1.bf16.msra.mxu1 %v14659_v17 }
0x1090   :  { %11080 = vmatprep.subr.bf16.mxu0 %v14670_v12  ;;  %11112 = vmatprep.subr.bf16.mxu1 %v14770_v25 }
0x1093   :  { %11082 = vmatpush1.bf16.msra.mxu0 %v14679_v38  ;;  %11114 = vmatpush1.bf16.msra.mxu1 %v14778_v26 }
0x1094   :  { %11084 = vmatprep.subr.bf16.mxu0 %v14692_v21  ;;  %11116 = vmatprep.subr.bf16.mxu1 %v14791_v61 }
0x1097   :  { %11086 = vmatpush1.bf16.msra.mxu0 %v14704_v32  ;;  %11118 = vmatpush1.bf16.msra.mxu1 %v14802_v41 }
0x1098   :  { %11088 = vmatprep.subr.bf16.mxu0 %v14706_v36  ;;  %11120 = vmatprep.subr.bf16.mxu1 %v14804_v20 }
0x109b   :  { %11090 = vmatpush1.bf16.msra.mxu0 %v14717_v4  ;;  %11122 = vmatpush1.bf16.msra.mxu1 %v14834_v37 }
0x109c   :  { %11092 = vmatprep.subr.bf16.mxu0 %v14825_v29  ;;  %11124 = vmatprep.subr.bf16.mxu1 %v14840_v62 }
0x109f   :  { %11094 = vmatpush1.bf16.msra.mxu0 %v14836_v22  ;;  %11126 = vmatpush1.bf16.msra.mxu1 %v14851_v45 }
0x10a0   :  { %11128 = vmatprep.subr.bf16.mxu0 %v14529_v46  ;;  %11160 = vmatprep.subr.bf16.mxu1 %v14540_v6 }
0x1155   :  { %v4662_v39 = vpop.f32.mrb[32].mxu0  ;;  %v4733_v13 = vpop.f32.mrb[32].mxu1 }
0x1156   :  { %v12055_v54 = vadd.f32 %v4662_v39, %v13135_v35  ;;  %v4664_v53 = vpop.f32.mrb[33].mxu0  ;;  %v4735_v43 = vpop.f32.mrb[33].mxu1  ;;  %v12101_v0 = vadd.f32 %v4733_v13, %v13144_v63 }
0x1157   :  { %v12056_v50 = vadd.f32 %v4664_v53, %v13137_v40  ;;  %v12102_v55 = vadd.f32 %v4735_v43, %v13141_v58 }
0x1158   :  { %v8616_v56 = vmul.f32 -1.442695, %v12055_v54 }
0x1159   :  { %v8617_v47 = vmul.f32 -1.442695, %v12056_v50  ;;  %v8618_v23 = vmul.f32 -1.442695, %v12102_v55 }
0x115a   :  { %12468 = vpow2.f32 %v8616_v56 }
0x115b   :  { %12470 = vpow2.f32 %v8617_v47 }
0x115c   :  { %12472 = vpow2.f32 %v8618_v23 }
0x115d   :  { %12474 = vtanh.f32 %v12101_v0 }
0x1164   :  { %v12469_v46 = vpop.eup %12468 }
0x1165   :  { %v12471_v52 = vpop.eup %12470  ;;  %v4745_v6 = vadd.f32 1.0, %v12469_v46 }
0x1166   :  { %v4751_v51 = vadd.f32 1.0, %v12471_v52  ;;  %v12473_v30 = vpop.eup %12472 }
0x1167   :  { %12476 = vrcp.f32 %v4745_v6  ;;  %v12475_v11 = vpop.eup %12474  ;;  %v4758_v50 = vadd.f32 1.0, %v12473_v30  ;;  %v5263_v30 = vld [vmem:[%s17012_s2 + $0x28] sm:$0xff] }
0x1168   :  { %12478 = vrcp.f32 %v4751_v51  ;;  %v5259_v51 = vld [vmem:[%s17012_s2 + $0x8] sm:$0xff] }
0x1169   :  { %12480 = vrcp.f32 %v4758_v50  ;;  %v5262_v50 = vld [vmem:[%s17012_s2 + $0x20] sm:$0xff] }
0x1171   :  { %v12477_v39 = vpop.eup %12476 }
0x1172   :  { %v12479_v54 = vpop.eup %12478  ;;  %v4762_v53 = vmul.f32 %v12477_v39, %v12475_v11  ;;  %v5261_v11 = vld [vmem:[%s17012_s2 + $0x18] sm:$0xff]  ;;  %v14969_v39 = vpack.c.bf16 %v5263_v30, %v5259_v51  ;;  %v5283_v30 = vld [vmem:[%s17012_s2 + $0xc8] sm:$0xff] }
0x1173   :  { %v4761_v56 = vmul.f32 %v12479_v54, %v14861_v42  ;;  %v12481_v13 = vpop.eup %12480  ;;  %v5265_v54 = vld [vmem:[%s17012_s2 + $0x38] sm:$0xff] }
0x1175   :  { %v14907_v43 = vadd.f32 %v4762_v53, %v4761_v56  ;;  %v5258_v53 = vld [vmem:[%s17012_s2] sm:$0xff]  ;;  %v14980_v56 = vpack.c.bf16 %v5265_v54, %v5261_v11  ;;  %v5287_v11 = vld [vmem:[%s17012_s2 + $0xe8] sm:$0xff]  ;;  %v5285_v54 = vld [vmem:[%s17012_s2 + $0xd8] sm:$0xff] }
0x1177   :  { %12482 = vtanh.f32 %v14907_v43 }
0x1181   :  { %v12483_v47 = vpop.eup %12482 }
0x1182   :  { %v14910_v55 = vmul.f32 %v12483_v47, %v12481_v13  ;;  %v5260_v13 = vld [vmem:[%s17012_s2 + $0x10] sm:$0xff] }
0x1183   :  { %v5264_v47 = vld [vmem:[%s17012_s2 + $0x30] sm:$0xff] }
0x1184   :  { %17037 = vst [vmem:[#allocation10_spill] sm:$0xff] %v14910_v55  ;;  %4903 = vmatmul.mubr.f32.vlgmr.msra.gmra.mrb[34].mxu0 %v14910_v55  ;;  %4974 = vmatmul.mubr.f32.vlgmr.msra.gmra.mrb[34].mxu1 %v14910_v55 }
0x1185   :  { %11130 = vmatpush1.bf16.msra.mxu0 %v14542_v27  ;;  %11162 = vmatpush1.bf16.msra.mxu1 %v14551_v48 }
0x1186   :  { %11132 = vmatprep.subr.bf16.mxu0 %v14565_v31  ;;  %11164 = vmatprep.subr.bf16.mxu1 %v14576_v8 }
0x1187   :  { %5144 = vmatprep.mubr.f32.mxu0 %v17032_v2  ;;  %5215 = vmatprep.mubr.f32.mxu1 %v17032_v2 }
0x1189   :  { %11134 = vmatpush1.bf16.msra.mxu0 %v14578_v5  ;;  %11166 = vmatpush1.bf16.msra.mxu1 %v14587_v28 }
0x118a   :  { %11136 = vmatprep.subr.bf16.mxu0 %v14601_v10  ;;  %11168 = vmatprep.subr.bf16.mxu1 %v14612_v49 }
0x118d   :  { %11138 = vmatpush1.bf16.msra.mxu0 %v14614_v19  ;;  %11170 = vmatpush1.bf16.msra.mxu1 %v14623_v59 }
0x118e   :  { %11140 = vmatprep.subr.bf16.mxu0 %v14637_v16  ;;  %11172 = vmatprep.subr.bf16.mxu1 %v14648_v14 }
0x1191   :  { %11142 = vmatpush1.bf16.msra.mxu0 %v14650_v60  ;;  %11174 = vmatpush1.bf16.msra.mxu1 %v14659_v17 }
0x1192   :  { %11144 = vmatprep.subr.bf16.mxu0 %v14670_v12  ;;  %11176 = vmatprep.subr.bf16.mxu1 %v14770_v25 }
0x1195   :  { %11146 = vmatpush1.bf16.msra.mxu0 %v14679_v38  ;;  %11178 = vmatpush1.bf16.msra.mxu1 %v14778_v26 }
0x1196   :  { %11148 = vmatprep.subr.bf16.mxu0 %v14692_v21  ;;  %11180 = vmatprep.subr.bf16.mxu1 %v14791_v61 }
0x1199   :  { %11150 = vmatpush1.bf16.msra.mxu0 %v14704_v32  ;;  %11182 = vmatpush1.bf16.msra.mxu1 %v14802_v41 }
0x119a   :  { %11152 = vmatprep.subr.bf16.mxu0 %v14706_v36  ;;  %11184 = vmatprep.subr.bf16.mxu1 %v14804_v20 }
0x119d   :  { %11154 = vmatpush1.bf16.msra.mxu0 %v14717_v4  ;;  %11186 = vmatpush1.bf16.msra.mxu1 %v14834_v37 }
0x119e   :  { %11156 = vmatprep.subr.bf16.mxu0 %v14825_v29  ;;  %11188 = vmatprep.subr.bf16.mxu1 %v14840_v62 }
0x11a1   :  { %11158 = vmatpush1.bf16.msra.mxu0 %v14836_v22  ;;  %11190 = vmatpush1.bf16.msra.mxu1 %v14851_v45 }
0x11a2   :  { %11192 = vmatprep.subr.bf16.mxu0 %v14969_v39  ;;  %11224 = vmatprep.subr.bf16.mxu1 %v14980_v56 }
0x1257   :  { %v4904_v27 = vpop.f32.mrb[34].mxu0  ;;  %v4975_v48 = vpop.f32.mrb[34].mxu1 }
0x1258   :  { %v12057_v31 = vadd.f32 %v4904_v27, %v13135_v35  ;;  %v4906_v8 = vpop.f32.mrb[35].mxu0  ;;  %v4977_v5 = vpop.f32.mrb[35].mxu1  ;;  %v12103_v16 = vadd.f32 %v4975_v48, %v13144_v63  ;;  %v14991_v27 = vpack.c.bf16 %v5264_v47, %v5260_v13  ;;  %v5267_v48 = vld [vmem:[%s17012_s2 + $0x48] sm:$0xff]  ;;  %v5282_v13 = vld [vmem:[%s17012_s2 + $0xc0] sm:$0xff] }
0x1259   :  { %v12058_v28 = vadd.f32 %v4906_v8, %v13137_v40  ;;  %v12104_v19 = vadd.f32 %v4977_v5, %v13141_v58  ;;  %v5269_v8 = vld [vmem:[%s17012_s2 + $0x58] sm:$0xff]  ;;  %v5286_v47 = vld [vmem:[%s17012_s2 + $0xe0] sm:$0xff] }
0x125a   :  { %v8619_v10 = vmul.f32 -1.442695, %v12057_v31  ;;  %v5271_v31 = vld [vmem:[%s17012_s2 + $0x68] sm:$0xff] }
0x125b   :  { %v8620_v49 = vmul.f32 -1.442695, %v12058_v28  ;;  %v8621_v59 = vmul.f32 -1.442695, %v12104_v19  ;;  %v15005_v5 = vpack.c.bf16 %v5271_v31, %v5267_v48  ;;  %v5273_v28 = vld [vmem:[%s17012_s2 + $0x78] sm:$0xff]  ;;  %v15090_v31 = vpack.c.bf16 %v5286_v47, %v5282_v13  ;;  %v5310_v13 = vld [vmem:[%s17012_s2 + $0x1a0] sm:$0xff] }
0x125c   :  { %12484 = vpow2.f32 %v8619_v10  ;;  %v5266_v10 = vld [vmem:[%s17012_s2 + $0x40] sm:$0xff]  ;;  %v15016_v19 = vpack.c.bf16 %v5273_v28, %v5269_v8  ;;  %v5284_v8 = vld [vmem:[%s17012_s2 + $0xd0] sm:$0xff] }
0x125d   :  { %12486 = vpow2.f32 %v8620_v49  ;;  %v5270_v49 = vld [vmem:[%s17012_s2 + $0x60] sm:$0xff]  ;;  %v5288_v28 = vld [vmem:[%s17012_s2 + $0xf0] sm:$0xff] }
0x125e   :  { %12488 = vpow2.f32 %v8621_v59  ;;  %v15018_v59 = vpack.c.bf16 %v5270_v49, %v5266_v10  ;;  %v15099_v10 = vpack.c.bf16 %v5288_v28, %v5284_v8  ;;  %v5291_v49 = vld [vmem:[%s17012_s2 + $0x108] sm:$0xff] }
0x125f   :  { %12490 = vtanh.f32 %v12103_v16  ;;  %v5268_v16 = vld [vmem:[%s17012_s2 + $0x50] sm:$0xff] }
0x1266   :  { %v12485_v14 = vpop.eup %12484 }
0x1267   :  { %v12487_v60 = vpop.eup %12486  ;;  %v4987_v17 = vadd.f32 1.0, %v12485_v14  ;;  %v5272_v14 = vld [vmem:[%s17012_s2 + $0x70] sm:$0xff] }
0x1268   :  { %v4993_v12 = vadd.f32 1.0, %v12487_v60  ;;  %v12489_v38 = vpop.eup %12488  ;;  %v15027_v60 = vpack.c.bf16 %v5272_v14, %v5268_v16  ;;  %v5295_v16 = vld [vmem:[%s17012_s2 + $0x128] sm:$0xff] }
0x1269   :  { %12492 = vrcp.f32 %v4987_v17  ;;  %v12491_v21 = vpop.eup %12490  ;;  %v5000_v42 = vadd.f32 1.0, %v12489_v38  ;;  %v5275_v17 = vld [vmem:[%s17012_s2 + $0x88] sm:$0xff]  ;;  %v5277_v38 = vld [vmem:[%s17012_s2 + $0x98] sm:$0xff]  ;;  %v15110_v14 = vpack.c.bf16 %v5295_v16, %v5291_v49 }
0x126a   :  { %12494 = vrcp.f32 %v4993_v12  ;;  %v5279_v12 = vld [vmem:[%s17012_s2 + $0xa8] sm:$0xff] }
0x126b   :  { %12496 = vrcp.f32 %v5000_v42 }
0x1273   :  { %v12493_v32 = vpop.eup %12492 }
0x1274   :  { %v12495_v36 = vpop.eup %12494  ;;  %v5004_v4 = vmul.f32 %v12493_v32, %v12491_v21  ;;  %v15041_v21 = vpack.c.bf16 %v5279_v12, %v5275_v17  ;;  %v5281_v32 = vld [vmem:[%s17012_s2 + $0xb8] sm:$0xff]  ;;  %v5290_v17 = vld [vmem:[%s17012_s2 + $0x100] sm:$0xff] }
0x1275   :  { %v5003_v23 = vmul.f32 %v12495_v36, %v14907_v43  ;;  %v12497_v46 = vpop.eup %12496  ;;  %v14982_v43 = vpack.c.bf16 %v5262_v50, %v5258_v53  ;;  %v5274_v36 = vld [vmem:[%s17012_s2 + $0x80] sm:$0xff]  ;;  %v15052_v42 = vpack.c.bf16 %v5281_v32, %v5277_v38  ;;  %v15077_v53 = vpack.c.bf16 %v5287_v11, %v5283_v30  ;;  %v5289_v50 = vld [vmem:[%s17012_s2 + $0xf8] sm:$0xff]  ;;  %v5299_v32 = vld [vmem:[%s17012_s2 + $0x148] sm:$0xff] }
0x1276   :  { %v15088_v48 = vpack.c.bf16 %v5289_v50, %v5285_v54  ;;  %v5294_v12 = vld [vmem:[%s17012_s2 + $0x120] sm:$0xff]  ;;  %v5311_v30 = vld [vmem:[%s17012_s2 + $0x1a8] sm:$0xff] }
0x1277   :  { %v14951_v0 = vadd.f32 %v5004_v4, %v5003_v23  ;;  %v5278_v4 = vld [vmem:[%s17012_s2 + $0xa0] sm:$0xff]  ;;  %v15119_v38 = vpack.c.bf16 %v5294_v12, %v5290_v17 }
0x1278   :  { %v15054_v23 = vpack.c.bf16 %v5278_v4, %v5274_v36  ;;  %v5303_v36 = vld [vmem:[%s17012_s2 + $0x168] sm:$0xff]  ;;  %v5298_v4 = vld [vmem:[%s17012_s2 + $0x140] sm:$0xff] }
0x1279   :  { %12498 = vtanh.f32 %v14951_v0  ;;  %v5306_v50 = vld [vmem:[%s17012_s2 + $0x180] sm:$0xff] }
0x127a   :  { %v15157_v47 = vpack.c.bf16 %v5310_v13, %v5306_v50 }
0x1283   :  { %v12499_v52 = vpop.eup %12498 }
0x1284   :  { %v14954_v6 = vmul.f32 %v12499_v52, %v12497_v46  ;;  %v5276_v46 = vld [vmem:[%s17012_s2 + $0x90] sm:$0xff] }
0x1285   :  { %v5280_v52 = vld [vmem:[%s17012_s2 + $0xb0] sm:$0xff] }
0x1286   :  { %17038 = vst [vmem:[#allocation11_spill] sm:$0xff] %v14954_v6  ;;  %5145 = vmatmul.mubr.f32.vlgmr.msra.gmra.mrb[36].mxu0 %v14954_v6  ;;  %5216 = vmatmul.mubr.f32.vlgmr.msra.gmra.mrb[36].mxu1 %v14954_v6  ;;  %v15063_v51 = vpack.c.bf16 %v5280_v52, %v5276_v46  ;;  %v15132_v46 = vpack.c.bf16 %v5303_v36, %v5299_v32  ;;  %v5307_v52 = vld [vmem:[%s17012_s2 + $0x188] sm:$0xff] }
0x1287   :  { %5386 = vmatprep.mubr.f32.mxu0 %v17032_v2  ;;  %5457 = vmatprep.mubr.f32.mxu1 %v17032_v2  ;;  %v15146_v54 = vpack.c.bf16 %v5311_v30, %v5307_v52 }
0x1288   :  { %11194 = vmatpush1.bf16.msra.mxu0 %v14982_v43  ;;  %11226 = vmatpush1.bf16.msra.mxu1 %v14991_v27 }
0x1289   :  { %11196 = vmatprep.subr.bf16.mxu0 %v15005_v5  ;;  %11228 = vmatprep.subr.bf16.mxu1 %v15016_v19 }
0x128c   :  { %11198 = vmatpush1.bf16.msra.mxu0 %v15018_v59  ;;  %11230 = vmatpush1.bf16.msra.mxu1 %v15027_v60 }
0x128d   :  { %11200 = vmatprep.subr.bf16.mxu0 %v15041_v21  ;;  %11232 = vmatprep.subr.bf16.mxu1 %v15052_v42 }
0x1290   :  { %11202 = vmatpush1.bf16.msra.mxu0 %v15054_v23  ;;  %11234 = vmatpush1.bf16.msra.mxu1 %v15063_v51 }
0x1291   :  { %11204 = vmatprep.subr.bf16.mxu0 %v15077_v53  ;;  %11236 = vmatprep.subr.bf16.mxu1 %v15088_v48 }
0x1294   :  { %11206 = vmatpush1.bf16.msra.mxu0 %v15090_v31  ;;  %11238 = vmatpush1.bf16.msra.mxu1 %v15099_v10 }
0x1295   :  { %11240 = vmatprep.subr.bf16.mxu1 %v14770_v25  ;;  %11208 = vmatprep.subr.bf16.mxu0 %v15110_v14  ;;  %v5302_v25 = vld [vmem:[%s17012_s2 + $0x160] sm:$0xff] }
0x1296   :  { %v15144_v11 = vpack.c.bf16 %v5302_v25, %v5298_v4 }
0x1298   :  { %11210 = vmatpush1.bf16.msra.mxu0 %v15119_v38  ;;  %11242 = vmatpush1.bf16.msra.mxu1 %v14778_v26 }
0x1299   :  { %11212 = vmatprep.subr.bf16.mxu0 %v15132_v46  ;;  %11244 = vmatprep.subr.bf16.mxu1 %v14791_v61 }
0x129c   :  { %11214 = vmatpush1.bf16.msra.mxu0 %v15144_v11  ;;  %11246 = vmatpush1.bf16.msra.mxu1 %v14802_v41 }
0x129d   :  { %11216 = vmatprep.subr.bf16.mxu0 %v15146_v54  ;;  %11248 = vmatprep.subr.bf16.mxu1 %v14804_v20 }
0x12a0   :  { %11218 = vmatpush1.bf16.msra.mxu0 %v15157_v47  ;;  %11250 = vmatpush1.bf16.msra.mxu1 %v14834_v37 }
0x12a1   :  { %11220 = vmatprep.subr.bf16.mxu0 %v14825_v29  ;;  %11252 = vmatprep.subr.bf16.mxu1 %v14840_v62 }
0x12a4   :  { %11222 = vmatpush1.bf16.msra.mxu0 %v14836_v22  ;;  %11254 = vmatpush1.bf16.msra.mxu1 %v14851_v45 }
0x12a5   :  { %11256 = vmatprep.subr.bf16.mxu0 %v14969_v39  ;;  %11288 = vmatprep.subr.bf16.mxu1 %v14980_v56 }
0x1359   :  { %v5146_v26 = vpop.f32.mrb[36].mxu0  ;;  %v5217_v61 = vpop.f32.mrb[36].mxu1 }
0x135a   :  { %v12059_v41 = vadd.f32 %v5146_v26, %v13135_v35  ;;  %v5148_v20 = vpop.f32.mrb[37].mxu0  ;;  %v5219_v8 = vpop.f32.mrb[37].mxu1  ;;  %v12105_v45 = vadd.f32 %v5217_v61, %v13144_v63 }
0x135b   :  { %v12060_v37 = vadd.f32 %v5148_v20, %v13137_v40  ;;  %v12106_v22 = vadd.f32 %v5219_v8, %v13141_v58  ;;  %v5539_v20 = vld [vmem:[%s17012_s2 + $0x138] sm:$0xff] }
0x135c   :  { %v8622_v28 = vmul.f32 -1.442695, %v12059_v41 }
0x135d   :  { %v8623_v29 = vmul.f32 -1.442695, %v12060_v37  ;;  %v8624_v62 = vmul.f32 -1.442695, %v12106_v22  ;;  %v5534_v37 = vld [vmem:[%s17012_s2 + $0x110] sm:$0xff]  ;;  %v5543_v22 = vld [vmem:[%s17012_s2 + $0x158] sm:$0xff] }
0x135e   :  { %12500 = vpow2.f32 %v8622_v28  ;;  %v5538_v28 = vld [vmem:[%s17012_s2 + $0x130] sm:$0xff] }
0x135f   :  { %12502 = vpow2.f32 %v8623_v29  ;;  %v15218_v29 = vpack.c.bf16 %v5538_v28, %v5534_v37 }
0x1360   :  { %12504 = vpow2.f32 %v8624_v62  ;;  %v5547_v62 = vld [vmem:[%s17012_s2 + $0x178] sm:$0xff] }
0x1361   :  { %12506 = vtanh.f32 %v12105_v45  ;;  %v5542_v45 = vld [vmem:[%s17012_s2 + $0x150] sm:$0xff] }
0x1368   :  { %v12501_v49 = vpop.eup %12500 }
0x1369   :  { %v12503_v16 = vpop.eup %12502  ;;  %v5229_v17 = vadd.f32 1.0, %v12501_v49  ;;  %v15231_v49 = vpack.c.bf16 %v5547_v62, %v5543_v22  ;;  %v5558_v62 = vld [vmem:[%s17012_s2 + $0x1d0] sm:$0xff] }
0x136a   :  { %v5235_v12 = vadd.f32 1.0, %v12503_v16  ;;  %v12505_v32 = vpop.eup %12504  ;;  %v5546_v16 = vld [vmem:[%s17012_s2 + $0x170] sm:$0xff] }
0x136b   :  { %12508 = vrcp.f32 %v5229_v17  ;;  %v12507_v36 = vpop.eup %12506  ;;  %v5242_v30 = vadd.f32 1.0, %v12505_v32  ;;  %v5551_v17 = vld [vmem:[%s17012_s2 + $0x198] sm:$0xff]  ;;  %v15242_v32 = vpack.c.bf16 %v5546_v16, %v5542_v45  ;;  %v5562_v45 = vld [vmem:[%s17012_s2 + $0x1f0] sm:$0xff] }
0x136c   :  { %12510 = vrcp.f32 %v5235_v12  ;;  %v5555_v12 = vld [vmem:[%s17012_s2 + $0x1b8] sm:$0xff]  ;;  %v15291_v16 = vpack.c.bf16 %v5562_v45, %v5558_v62 }
0x136d   :  { %12512 = vrcp.f32 %v5242_v30  ;;  %v5561_v30 = vld [vmem:[%s17012_s2 + $0x1e8] sm:$0xff] }
0x1375   :  { %v12509_v4 = vpop.eup %12508 }
0x1376   :  { %v12511_v25 = vpop.eup %12510  ;;  %v5246_v52 = vmul.f32 %v12509_v4, %v12507_v36  ;;  %v15244_v36 = vpack.c.bf16 %v5555_v12, %v5551_v17  ;;  %v5550_v4 = vld [vmem:[%s17012_s2 + $0x190] sm:$0xff] }
0x1377   :  { %v5245_v50 = vmul.f32 %v12511_v25, %v14951_v0  ;;  %v12513_v26 = vpop.eup %12512  ;;  %v5535_v0 = vld [vmem:[%s17012_s2 + $0x118] sm:$0xff]  ;;  %v5554_v25 = vld [vmem:[%s17012_s2 + $0x1b0] sm:$0xff] }
0x1378   :  { %v15210_v8 = vpack.c.bf16 %v5539_v20, %v5535_v0  ;;  %v5556_v0 = vld [vmem:[%s17012_s2 + $0x1c0] sm:$0xff]  ;;  %v15274_v37 = vpack.c.bf16 %v5554_v25, %v5550_v4 }
0x1379   :  { %v15175_v13 = vadd.f32 %v5246_v52, %v5245_v50  ;;  %v5557_v52 = vld [vmem:[%s17012_s2 + $0x1c8] sm:$0xff]  ;;  %v5559_v50 = vld [vmem:[%s17012_s2 + $0x1d8] sm:$0xff]  ;;  %v5560_v20 = vld [vmem:[%s17012_s2 + $0x1e0] sm:$0xff] }
0x137a   :  { %v15276_v28 = vpack.c.bf16 %v5560_v20, %v5556_v0 }
0x137b   :  { %12514 = vtanh.f32 %v15175_v13 }
0x1385   :  { %v12515_v61 = vpop.eup %12514 }
0x1386   :  { %v15178_v41 = vmul.f32 %v12515_v61, %v12513_v26  ;;  %v5563_v26 = vld [vmem:[%s17012_s2 + $0x1f8] sm:$0xff]  ;;  %v15265_v61 = vpack.c.bf16 %v5561_v30, %v5557_v52 }
0x1387   :  { %v15280_v22 = vpack.c.bf16 %v5563_v26, %v5559_v50 }
0x1388   :  { %17039 = vst [vmem:[#allocation12_spill] sm:$0xff] %v15178_v41  ;;  %5387 = vmatmul.mubr.f32.vlgmr.msra.gmra.mrb[38].mxu0 %v15178_v41  ;;  %5458 = vmatmul.mubr.f32.vlgmr.msra.gmra.mrb[38].mxu1 %v15178_v41 }
0x1389   :  { %11258 = vmatpush1.bf16.msra.mxu0 %v14982_v43  ;;  %11290 = vmatpush1.bf16.msra.mxu1 %v14991_v27 }
0x138a   :  { %11260 = vmatprep.subr.bf16.mxu0 %v15005_v5  ;;  %11292 = vmatprep.subr.bf16.mxu1 %v15016_v19 }
0x138b   :  { %5628 = vmatprep.mubr.f32.mxu0 %v17032_v2  ;;  %5699 = vmatprep.mubr.f32.mxu1 %v17032_v2 }
0x138d   :  { %11262 = vmatpush1.bf16.msra.mxu0 %v15018_v59  ;;  %11294 = vmatpush1.bf16.msra.mxu1 %v15027_v60 }
0x138e   :  { %11264 = vmatprep.subr.bf16.mxu0 %v15041_v21  ;;  %11296 = vmatprep.subr.bf16.mxu1 %v15052_v42 }
0x1391   :  { %11266 = vmatpush1.bf16.msra.mxu0 %v15054_v23  ;;  %11298 = vmatpush1.bf16.msra.mxu1 %v15063_v51 }
0x1392   :  { %11268 = vmatprep.subr.bf16.mxu0 %v15077_v53  ;;  %11300 = vmatprep.subr.bf16.mxu1 %v15088_v48 }
0x1395   :  { %11270 = vmatpush1.bf16.msra.mxu0 %v15090_v31  ;;  %11302 = vmatpush1.bf16.msra.mxu1 %v15099_v10 }
0x1396   :  { %11272 = vmatprep.subr.bf16.mxu0 %v15110_v14  ;;  %11304 = vmatprep.subr.bf16.mxu1 %v15210_v8 }
0x1399   :  { %11274 = vmatpush1.bf16.msra.mxu0 %v15119_v38  ;;  %11306 = vmatpush1.bf16.msra.mxu1 %v15218_v29 }
0x139a   :  { %11276 = vmatprep.subr.bf16.mxu0 %v15132_v46  ;;  %11308 = vmatprep.subr.bf16.mxu1 %v15231_v49 }
0x139d   :  { %11278 = vmatpush1.bf16.msra.mxu0 %v15144_v11  ;;  %11310 = vmatpush1.bf16.msra.mxu1 %v15242_v32 }
0x139e   :  { %11280 = vmatprep.subr.bf16.mxu0 %v15146_v54  ;;  %11312 = vmatprep.subr.bf16.mxu1 %v15244_v36 }
0x13a1   :  { %11282 = vmatpush1.bf16.msra.mxu0 %v15157_v47  ;;  %11314 = vmatpush1.bf16.msra.mxu1 %v15274_v37 }
0x13a2   :  { %11284 = vmatprep.subr.bf16.mxu0 %v15265_v61  ;;  %11316 = vmatprep.subr.bf16.mxu1 %v15280_v22 }
0x13a5   :  { %11286 = vmatpush1.bf16.msra.mxu0 %v15276_v28  ;;  %11318 = vmatpush1.bf16.msra.mxu1 %v15291_v16 }
0x13a6   :  { %11320 = vmatprep.subr.bf16.mxu0 %v14969_v39  ;;  %11352 = vmatprep.subr.bf16.mxu1 %v14980_v56 }
0x145b   :  { %v5388_v17 = vpop.f32.mrb[38].mxu0  ;;  %v5459_v12 = vpop.f32.mrb[38].mxu1 }
0x145c   :  { %v12061_v4 = vadd.f32 %v5388_v17, %v13135_v35  ;;  %v5390_v25 = vpop.f32.mrb[39].mxu0  ;;  %v5461_v52 = vpop.f32.mrb[39].mxu1  ;;  %v12107_v62 = vadd.f32 %v5459_v12, %v13144_v63 }
0x145d   :  { %v12062_v30 = vadd.f32 %v5390_v25, %v13137_v40  ;;  %v12108_v0 = vadd.f32 %v5461_v52, %v13141_v58 }
0x145e   :  { %v8625_v50 = vmul.f32 -1.442695, %v12061_v4 }
0x145f   :  { %v8626_v26 = vmul.f32 -1.442695, %v12062_v30  ;;  %v8627_v20 = vmul.f32 -1.442695, %v12108_v0 }
0x1460   :  { %12516 = vpow2.f32 %v8625_v50 }
0x1461   :  { %12518 = vpow2.f32 %v8626_v26 }
0x1462   :  { %12520 = vpow2.f32 %v8627_v20 }
0x1463   :  { %12522 = vtanh.f32 %v12107_v62 }
0x146a   :  { %v12517_v45 = vpop.eup %12516 }
0x146b   :  { %v12519_v41 = vpop.eup %12518  ;;  %v5471_v6 = vadd.f32 1.0, %v12517_v45 }
0x146c   :  { %v5477_v55 = vadd.f32 1.0, %v12519_v41  ;;  %v12521_v17 = vpop.eup %12520 }
0x146d   :  { %12524 = vrcp.f32 %v5471_v6  ;;  %v12523_v18 = vpop.eup %12522  ;;  %v5484_v50 = vadd.f32 1.0, %v12521_v17 }
0x146e   :  { %12526 = vrcp.f32 %v5477_v55 }
0x146f   :  { %12528 = vrcp.f32 %v5484_v50 }
0x1477   :  { %v12525_v25 = vpop.eup %12524 }
0x1478   :  { %v12527_v4 = vpop.eup %12526  ;;  %v5488_v30 = vmul.f32 %v12525_v25, %v12523_v18 }
0x1479   :  { %v5487_v26 = vmul.f32 %v12527_v4, %v15175_v13  ;;  %v12529_v12 = vpop.eup %12528 }
0x147b   :  { %v15301_v52 = vadd.f32 %v5488_v30, %v5487_v26 }
0x147d   :  { %12530 = vtanh.f32 %v15301_v52 }
0x1487   :  { %v12531_v0 = vpop.eup %12530 }
0x1488   :  { %v15304_v20 = vmul.f32 %v12531_v0, %v12529_v12 }
0x148a   :  { %5629 = vmatmul.mubr.f32.vlgmr.msra.gmra.mrb[40].mxu0 %v15304_v20  ;;  %5700 = vmatmul.mubr.f32.vlgmr.msra.gmra.mrb[40].mxu1 %v15304_v20 }
0x148b   :  { %11322 = vmatpush1.bf16.msra.mxu0 %v14982_v43  ;;  %11354 = vmatpush1.bf16.msra.mxu1 %v14991_v27 }
0x148c   :  { %11324 = vmatprep.subr.bf16.mxu0 %v15005_v5  ;;  %11356 = vmatprep.subr.bf16.mxu1 %v15016_v19 }
0x148d   :  { %5870 = vmatprep.mubr.f32.mxu0 %v17032_v2  ;;  %5941 = vmatprep.mubr.f32.mxu1 %v17032_v2 }
0x148f   :  { %11326 = vmatpush1.bf16.msra.mxu0 %v15018_v59  ;;  %11358 = vmatpush1.bf16.msra.mxu1 %v15027_v60 }
0x1490   :  { %11328 = vmatprep.subr.bf16.mxu0 %v15041_v21  ;;  %11360 = vmatprep.subr.bf16.mxu1 %v15052_v42 }
0x1493   :  { %11330 = vmatpush1.bf16.msra.mxu0 %v15054_v23  ;;  %11362 = vmatpush1.bf16.msra.mxu1 %v15063_v51 }
0x1494   :  { %11332 = vmatprep.subr.bf16.mxu0 %v15077_v53  ;;  %11364 = vmatprep.subr.bf16.mxu1 %v15088_v48 }
0x1497   :  { %11334 = vmatpush1.bf16.msra.mxu0 %v15090_v31  ;;  %11366 = vmatpush1.bf16.msra.mxu1 %v15099_v10 }
0x1498   :  { %11336 = vmatprep.subr.bf16.mxu0 %v15110_v14  ;;  %11368 = vmatprep.subr.bf16.mxu1 %v15210_v8 }
0x149b   :  { %11338 = vmatpush1.bf16.msra.mxu0 %v15119_v38  ;;  %11370 = vmatpush1.bf16.msra.mxu1 %v15218_v29 }
0x149c   :  { %11340 = vmatprep.subr.bf16.mxu0 %v15132_v46  ;;  %11372 = vmatprep.subr.bf16.mxu1 %v15231_v49 }
0x149f   :  { %11342 = vmatpush1.bf16.msra.mxu0 %v15144_v11  ;;  %11374 = vmatpush1.bf16.msra.mxu1 %v15242_v32 }
0x14a0   :  { %11344 = vmatprep.subr.bf16.mxu0 %v15146_v54  ;;  %11376 = vmatprep.subr.bf16.mxu1 %v15244_v36 }
0x14a3   :  { %11346 = vmatpush1.bf16.msra.mxu0 %v15157_v47  ;;  %11378 = vmatpush1.bf16.msra.mxu1 %v15274_v37 }
0x14a4   :  { %11348 = vmatprep.subr.bf16.mxu0 %v15265_v61  ;;  %11380 = vmatprep.subr.bf16.mxu1 %v15280_v22 }
0x14a7   :  { %11350 = vmatpush1.bf16.msra.mxu0 %v15276_v28  ;;  %11382 = vmatpush1.bf16.msra.mxu1 %v15291_v16 }
0x14a8   :  { %11384 = vmatprep.subr.bf16.mxu0 %v14969_v39  ;;  %11416 = vmatprep.subr.bf16.mxu1 %v14980_v56 }
0x155d   :  { %v5630_v18 = vpop.f32.mrb[40].mxu0  ;;  %v5701_v55 = vpop.f32.mrb[40].mxu1 }
0x155e   :  { %v12063_v6 = vadd.f32 %v5630_v18, %v13135_v35  ;;  %v5632_v13 = vpop.f32.mrb[41].mxu0  ;;  %v5703_v41 = vpop.f32.mrb[41].mxu1  ;;  %v12109_v30 = vadd.f32 %v5701_v55, %v13144_v63 }
0x155f   :  { %v12064_v62 = vadd.f32 %v5632_v13, %v13137_v40  ;;  %v12110_v25 = vadd.f32 %v5703_v41, %v13141_v58 }
0x1560   :  { %v8628_v45 = vmul.f32 -1.442695, %v12063_v6 }
0x1561   :  { %v8629_v17 = vmul.f32 -1.442695, %v12064_v62  ;;  %v8630_v4 = vmul.f32 -1.442695, %v12110_v25 }
0x1562   :  { %12532 = vpow2.f32 %v8628_v45 }
0x1563   :  { %12534 = vpow2.f32 %v8629_v17 }
0x1564   :  { %12536 = vpow2.f32 %v8630_v4  ;;  %v6247_v4 = vld [vmem:[%s17014_s4 + $0x18] sm:$0xff] }
0x1565   :  { %12538 = vtanh.f32 %v12109_v30 }
0x156c   :  { %v12533_v39 = vpop.eup %12532 }
0x156d   :  { %v12535_v50 = vpop.eup %12534  ;;  %v5713_v56 = vadd.f32 1.0, %v12533_v39  ;;  %v6248_v39 = vld [vmem:[%s17014_s4 + $0x20] sm:$0xff] }
0x156e   :  { %v5719_v26 = vadd.f32 1.0, %v12535_v50  ;;  %v12537_v12 = vpop.eup %12536  ;;  %v6249_v50 = vld [vmem:[%s17014_s4 + $0x28] sm:$0xff] }
0x156f   :  { %12540 = vrcp.f32 %v5713_v56  ;;  %v12539_v0 = vpop.eup %12538  ;;  %v5726_v62 = vadd.f32 1.0, %v12537_v12  ;;  %v11454_v56 = vpack.c.bf16 %v6249_v50, %v6248_v39  ;;  %v6251_v12 = vld [vmem:[%s17014_s4 + $0x38] sm:$0xff] }
0x1570   :  { %12542 = vrcp.f32 %v5719_v26  ;;  %v6250_v26 = vld [vmem:[%s17014_s4 + $0x30] sm:$0xff] }
0x1571   :  { %12544 = vrcp.f32 %v5726_v62  ;;  %v6254_v62 = vld [vmem:[%s17014_s4 + $0x50] sm:$0xff] }
0x1579   :  { %v12541_v18 = vpop.eup %12540 }
0x157a   :  { %v12543_v6 = vpop.eup %12542  ;;  %v5730_v13 = vmul.f32 %v12541_v18, %v12539_v0  ;;  %v11457_v0 = vpack.c.bf16 %v6251_v12, %v6250_v26  ;;  %v6252_v18 = vld [vmem:[%s17014_s4 + $0x40] sm:$0xff]  ;;  %v6479_v26 = vld [vmem:[%s17015_s6 + $0x48] sm:$0xff]  ;;  %v17048_v12 = vld [vmem:[#allocation12_spill] sm:$0xff] }
0x157b   :  { %v5729_v45 = vmul.f32 %v12543_v6, %v15301_v52  ;;  %v12545_v55 = vpop.eup %12544  ;;  %v6246_v52 = vld [vmem:[%s17014_s4 + $0x10] sm:$0xff]  ;;  %v6253_v6 = vld [vmem:[%s17014_s4 + $0x48] sm:$0xff] }
0x157c   :  { %v11451_v30 = vpack.c.bf16 %v6247_v4, %v6246_v52  ;;  %v6476_v52 = vld [vmem:[%s17015_s6 + $0x30] sm:$0xff]  ;;  %v6477_v4 = vld [vmem:[%s17015_s6 + $0x38] sm:$0xff] }
0x157d   :  { %v15347_v41 = vadd.f32 %v5730_v13, %v5729_v45  ;;  %v11460_v13 = vpack.c.bf16 %v6253_v6, %v6252_v18  ;;  %v6255_v45 = vld [vmem:[%s17014_s4 + $0x58] sm:$0xff]  ;;  %v11481_v50 = vpack.c.bf16 %v6477_v4, %v6476_v52  ;;  %v6518_v6 = vld [vmem:[%s17015_s6 + $0x180] sm:$0xff] }
0x157f   :  { %12546 = vtanh.f32 %v15347_v41 }
0x1589   :  { %v12547_v17 = vpop.eup %12546 }
0x158a   :  { %v15350_v25 = vmul.f32 %v12547_v17, %v12545_v55  ;;  %v6256_v55 = vld [vmem:[%s17014_s4 + $0x60] sm:$0xff]  ;;  %v6257_v17 = vld [vmem:[%s17014_s4 + $0x68] sm:$0xff] }
0x158c   :  { %5871 = vmatmul.mubr.f32.vlgmr.msra.gmra.mrb[42].mxu0 %v15350_v25  ;;  %5942 = vmatmul.mubr.f32.vlgmr.msra.gmra.mrb[42].mxu1 %v15350_v25 }
0x158d   :  { %11386 = vmatpush1.bf16.msra.mxu0 %v14982_v43  ;;  %11418 = vmatpush1.bf16.msra.mxu1 %v14991_v27  ;;  %v12586_v43 = vmov 0.0|0.0  }
0x158e   :  { %11388 = vmatprep.subr.bf16.mxu0 %v15005_v5  ;;  %11420 = vmatprep.subr.bf16.mxu1 %v15016_v19 }
0x158f   :  { %6112 = vmatprep.mubr.f32.mxu0 %v17032_v2  ;;  %6183 = vmatprep.mubr.f32.mxu1 %v17032_v2 }
0x1591   :  { %11390 = vmatpush1.bf16.msra.mxu0 %v15018_v59  ;;  %11422 = vmatpush1.bf16.msra.mxu1 %v15027_v60 }
0x1592   :  { %11392 = vmatprep.subr.bf16.mxu0 %v15041_v21  ;;  %11424 = vmatprep.subr.bf16.mxu1 %v15052_v42 }
0x1595   :  { %11394 = vmatpush1.bf16.msra.mxu0 %v15054_v23  ;;  %11426 = vmatpush1.bf16.msra.mxu1 %v15063_v51 }
0x1596   :  { %11396 = vmatprep.subr.bf16.mxu0 %v15077_v53  ;;  %11428 = vmatprep.subr.bf16.mxu1 %v15088_v48 }
0x1599   :  { %11398 = vmatpush1.bf16.msra.mxu0 %v15090_v31  ;;  %11430 = vmatpush1.bf16.msra.mxu1 %v15099_v10 }
0x159a   :  { %11400 = vmatprep.subr.bf16.mxu0 %v15110_v14  ;;  %11432 = vmatprep.subr.bf16.mxu1 %v15210_v8 }
0x159d   :  { %11402 = vmatpush1.bf16.msra.mxu0 %v15119_v38  ;;  %11434 = vmatpush1.bf16.msra.mxu1 %v15218_v29 }
0x159e   :  { %11404 = vmatprep.subr.bf16.mxu0 %v15132_v46  ;;  %11436 = vmatprep.subr.bf16.mxu1 %v15231_v49 }
0x15a1   :  { %11406 = vmatpush1.bf16.msra.mxu0 %v15144_v11  ;;  %11438 = vmatpush1.bf16.msra.mxu1 %v15242_v32 }
0x15a2   :  { %11408 = vmatprep.subr.bf16.mxu0 %v15146_v54  ;;  %11440 = vmatprep.subr.bf16.mxu1 %v15244_v36  ;;  %v6244_v36 = vld [vmem:[%s17014_s4] sm:$0xff] }
0x15a5   :  { %11410 = vmatpush1.bf16.msra.mxu0 %v15157_v47  ;;  %11442 = vmatpush1.bf16.msra.mxu1 %v15274_v37 }
0x15a6   :  { %11412 = vmatprep.subr.bf16.mxu0 %v15265_v61  ;;  %11444 = vmatprep.subr.bf16.mxu1 %v15280_v22  ;;  %v6245_v61 = vld [vmem:[%s17014_s4 + $0x8] sm:$0xff] }
0x15a7   :  { %v11448_v22 = vpack.c.bf16 %v6245_v61, %v6244_v36  ;;  %v6474_v36 = vld [vmem:[%s17015_s6 + $0x20] sm:$0xff]  ;;  %v6475_v61 = vld [vmem:[%s17015_s6 + $0x28] sm:$0xff] }
0x15a9   :  { %11414 = vmatpush1.bf16.msra.mxu0 %v15276_v28  ;;  %11446 = vmatpush1.bf16.msra.mxu1 %v15291_v16 }
0x15aa   :  { %11447 = vmatprep.subr.bf16.mxu0 %v12586_v43  ;;  %11471 = vmatprep.subr.bf16.mxu1 %v12586_v43 }
0x165f   :  { %v5872_v27 = vpop.f32.mrb[42].mxu0  ;;  %v5943_v5 = vpop.f32.mrb[42].mxu1 }
0x1660   :  { %v12065_v19 = vadd.f32 %v5872_v27, %v13135_v35  ;;  %v5874_v59 = vpop.f32.mrb[43].mxu0  ;;  %v5945_v60 = vpop.f32.mrb[43].mxu1  ;;  %v12111_v48 = vadd.f32 %v5943_v5, %v13144_v63  ;;  %v11466_v27 = vpack.c.bf16 %v6257_v17, %v6256_v55  ;;  %v6258_v5 = vld [vmem:[%s17014_s4 + $0x70] sm:$0xff]  ;;  %v5492_v55 = vmax.f32 %v15304_v20, 0.0  ;;  %v6482_v20 = vld [vmem:[%s17015_s6 + $0x60] sm:$0xff] }
0x1661   :  { %v12066_v21 = vadd.f32 %v5874_v59, %v13137_v40  ;;  %v12112_v51 = vadd.f32 %v5945_v60, %v13141_v58  ;;  %v895_v60 = vmax.f32 %v13150_v33, 0.0  ;;  %v1620_v33 = vmax.f32 %v13544_v3, 0.0 }
0x1662   :  { %v8631_v42 = vmul.f32 -1.442695, %v12065_v19  ;;  %v6259_v19 = vld [vmem:[%s17014_s4 + $0x78] sm:$0xff]  ;;  %v2588_v3 = vmax.f32 %v13984_v1, 0.0 }
0x1663   :  { %v8632_v23 = vmul.f32 -1.442695, %v12066_v21  ;;  %v8633_v53 = vmul.f32 -1.442695, %v12112_v51  ;;  %v11469_v59 = vpack.c.bf16 %v6259_v19, %v6258_v5  ;;  %v1136_v21 = vmax.f32 %v13194_v9, 0.0  ;;  %v17041_v1 = vld [vmem:[#allocation5_spill] sm:$0xff] }
0x1664   :  { %12548 = vpow2.f32 %v8631_v42  ;;  %v1378_v42 = vmax.f32 %v13418_v7, 0.0  ;;  %v2104_v9 = vmax.f32 %v13634_v24, 0.0  ;;  %v2346_v7 = vmax.f32 %v13858_v15, 0.0  ;;  %v17040_v15 = vld [vmem:[#allocation4_spill] sm:$0xff]  ;;  %v6521_v5 = vld [vmem:[%s17015_s6 + $0x198] sm:$0xff] }
0x1665   :  { %12550 = vpow2.f32 %v8632_v23  ;;  %v1862_v23 = vmax.f32 %v13590_v44, 0.0  ;;  %v2830_v44 = vmax.f32 %v14030_v34, 0.0  ;;  %v3072_v24 = vmax.f32 %v14074_v57, 0.0  ;;  %v17042_v34 = vld [vmem:[#allocation6_spill] sm:$0xff]  ;;  %v17043_v57 = vld [vmem:[#allocation7_spill] sm:$0xff] }
0x1666   :  { %12552 = vpow2.f32 %v8633_v53  ;;  %v3314_v51 = vmax.f32 %v17040_v15, 0.0  ;;  %v3556_v53 = vmax.f32 %v17041_v1, 0.0 }
0x1667   :  { %12554 = vtanh.f32 %v12111_v48  ;;  %v3798_v48 = vmax.f32 %v17042_v34, 0.0  ;;  %v6529_v34 = vld [vmem:[%s17015_s6 + $0x1d8] sm:$0xff] }
0x166e   :  { %v12549_v31 = vpop.eup %12548 }
0x166f   :  { %v12551_v10 = vpop.eup %12550  ;;  %v5955_v14 = vadd.f32 1.0, %v12549_v31  ;;  %v4040_v31 = vmax.f32 %v17043_v57, 0.0  ;;  %v6530_v57 = vld [vmem:[%s17015_s6 + $0x1e0] sm:$0xff] }
0x1670   :  { %v5961_v38 = vadd.f32 1.0, %v12551_v10  ;;  %v12553_v46 = vpop.eup %12552  ;;  %v6470_v10 = vld [vmem:[%s17015_s6] sm:$0xff] }
0x1671   :  { %12556 = vrcp.f32 %v5955_v14  ;;  %v12555_v11 = vpop.eup %12554  ;;  %v5968_v29 = vadd.f32 1.0, %v12553_v46  ;;  %v6471_v14 = vld [vmem:[%s17015_s6 + $0x8] sm:$0xff] }
0x1672   :  { %12558 = vrcp.f32 %v5961_v38  ;;  %v17044_v38 = vld [vmem:[#allocation8_spill] sm:$0xff] }
0x1673   :  { %12560 = vrcp.f32 %v5968_v29  ;;  %v4282_v46 = vmax.f32 %v17044_v38, 0.0  ;;  %v6533_v38 = vld [vmem:[%s17015_s6 + $0x1f8] sm:$0xff] }
0x167b   :  { %v12557_v54 = vpop.eup %12556 }
0x167c   :  { %v12559_v47 = vpop.eup %12558  ;;  %v5972_v8 = vmul.f32 %v12557_v54, %v12555_v11  ;;  %v11472_v11 = vpack.c.bf16 %v6471_v14, %v6470_v10  ;;  %v6472_v54 = vld [vmem:[%s17015_s6 + $0x10] sm:$0xff] }
0x167d   :  { %v5971_v49 = vmul.f32 %v12559_v47, %v15347_v41  ;;  %v12561_v37 = vpop.eup %12560  ;;  %v11463_v41 = vpack.c.bf16 %v6255_v45, %v6254_v62  ;;  %v6473_v47 = vld [vmem:[%s17015_s6 + $0x18] sm:$0xff]  ;;  %v6480_v45 = vld [vmem:[%s17015_s6 + $0x50] sm:$0xff] }
0x167e   :  { %v6532_v14 = vld [vmem:[%s17015_s6 + $0x1f0] sm:$0xff] }
0x167f   :  { %v15393_v32 = vadd.f32 %v5972_v8, %v5971_v49  ;;  %v17045_v8 = vld [vmem:[#allocation9_spill] sm:$0xff]  ;;  %v11475_v49 = vpack.c.bf16 %v6473_v47, %v6472_v54 }
0x1680   :  { %v4524_v29 = vmax.f32 %v17045_v8, 0.0 }
0x1681   :  { %12562 = vtanh.f32 %v15393_v32 }
0x168b   :  { %v12563_v28 = vpop.eup %12562 }
0x168c   :  { %v15402_v16 = vmul.f32 %v12563_v28, %v12561_v37  ;;  %v17046_v37 = vld [vmem:[#allocation10_spill] sm:$0xff] }
0x168d   :  { %v4766_v28 = vmax.f32 %v17046_v37, 0.0 }
0x168e   :  { %6113 = vmatmul.mubr.f32.vlgmr.msra.gmra.mrb[44].mxu0 %v15402_v16  ;;  %6184 = vmatmul.mubr.f32.vlgmr.msra.gmra.mrb[44].mxu1 %v15402_v16 }
0x168f   :  { %11449 = vmatpush3.bf16.msra.mxu0 %v11448_v22  ;;  %9101 = vmatprep.mubr.msk.f32.mxu0 %vm12587_vm2, %v17032_v2  ;;  %v11478_v22 = vpack.c.bf16 %v6475_v61, %v6474_v36 }
0x1690   :  { %11450 = vmatprep.subr.bf16.mxu0 %v12586_v43  ;;  %9202 = vmatprep.mubr.msk.f32.mxu1 %vm12587_vm2, %v17032_v2 }
0x1691   :  { %11473 = vmatpush3.bf16.msra.mxu1 %v11472_v11 }
0x1692   :  { %11474 = vmatprep.subr.bf16.mxu1 %v12586_v43 }
0x1693   :  { %11452 = vmatpush3.bf16.msra.mxu0 %v11451_v30  ;;  %v17047_v30 = vld [vmem:[#allocation11_spill] sm:$0xff] }
0x1694   :  { %11453 = vmatprep.subr.bf16.mxu0 %v12586_v43  ;;  %v5008_v39 = vmax.f32 %v17047_v30, 0.0 }
0x1695   :  { %11476 = vmatpush3.bf16.msra.mxu1 %v11475_v49 }
0x1696   :  { %11477 = vmatprep.subr.bf16.mxu1 %v12586_v43 }
0x1697   :  { %11455 = vmatpush3.bf16.msra.mxu0 %v11454_v56  ;;  %v6478_v56 = vld [vmem:[%s17015_s6 + $0x40] sm:$0xff] }
0x1698   :  { %11456 = vmatprep.subr.bf16.mxu0 %v12586_v43  ;;  %v11484_v18 = vpack.c.bf16 %v6479_v26, %v6478_v56 }
0x1699   :  { %11479 = vmatpush3.bf16.msra.mxu1 %v11478_v22 }
0x169a   :  { %11480 = vmatprep.subr.bf16.mxu1 %v12586_v43 }
0x169b   :  { %11458 = vmatpush3.bf16.msra.mxu0 %v11457_v0  ;;  %v5250_v0 = vmax.f32 %v17048_v12, 0.0 }
0x169c   :  { %11459 = vmatprep.subr.bf16.mxu0 %v12586_v43 }
0x169d   :  { %11482 = vmatpush3.bf16.msra.mxu1 %v11481_v50 }
0x169e   :  { %11483 = vmatprep.subr.bf16.mxu1 %v12586_v43 }
0x169f   :  { %11461 = vmatpush3.bf16.msra.mxu0 %v11460_v13  ;;  %v6519_v13 = vld [vmem:[%s17015_s6 + $0x188] sm:$0xff] }
0x16a0   :  { %11462 = vmatprep.subr.bf16.mxu0 %v12586_v43  ;;  %v11544_v62 = vpack.c.bf16 %v6519_v13, %v6518_v6 }
0x16a1   :  { %11485 = vmatpush3.bf16.msra.mxu1 %v11484_v18  ;;  %v6487_v18 = vld [vmem:[%s17015_s6 + $0x88] sm:$0xff] }
0x16a2   :  { %11486 = vmatprep.subr.bf16.mxu1 %v12586_v43 }
0x16a3   :  { %11464 = vmatpush3.bf16.msra.mxu0 %v11463_v41  ;;  %v6481_v41 = vld [vmem:[%s17015_s6 + $0x58] sm:$0xff] }
0x16a4   :  { %11465 = vmatprep.subr.bf16.mxu0 %v12586_v43  ;;  %v11487_v17 = vpack.c.bf16 %v6481_v41, %v6480_v45 }
0x16a6   :  { %11488 = vmatpush3.bf16.msra.mxu1 %v11487_v17  ;;  %v6489_v17 = vld [vmem:[%s17015_s6 + $0x98] sm:$0xff] }
0x16a7   :  { %11467 = vmatpush3.bf16.msra.mxu0 %v11466_v27  ;;  %v6520_v27 = vld [vmem:[%s17015_s6 + $0x190] sm:$0xff]  ;;  %11489 = vmatprep.subr.bf16.mxu1 %v12586_v43 }
0x16a8   :  { %11468 = vmatprep.subr.bf16.mxu0 %v12586_v43  ;;  %v11547_v19 = vpack.c.bf16 %v6521_v5, %v6520_v27 }
0x16ab   :  { %11470 = vmatpush3.bf16.msra.mxu0 %v11469_v59  ;;  %v6483_v59 = vld [vmem:[%s17015_s6 + $0x68] sm:$0xff] }
0x16ac   :  { %11543 = vmatprep.subr.bf16.mxu0 %v12586_v43 }
0x16ae   :  { %9102 = vmatmul.mubr.f32.vlgmr.msra.gmra.mrb[46].mxu0 %v895_v60  ;;  %v5734_v60 = vmax.f32 %v15350_v25, 0.0  ;;  %v6484_v25 = vld [vmem:[%s17015_s6 + $0x70] sm:$0xff] }
0x16af   :  { %9104 = vmatprep.mubr.msk.f32.mxu0 %vm12587_vm2, %v17032_v2  ;;  %11545 = vmatpush3.bf16.msra.mxu0 %v11544_v62 }
0x16b0   :  { %11546 = vmatprep.subr.bf16.mxu0 %v12586_v43 }
0x16b2   :  { %9105 = vmatmul.mubr.f32.gmra.mrb[48].mxu0 %v1136_v21  ;;  %v11490_v21 = vpack.c.bf16 %v6483_v59, %v6482_v20  ;;  %v6490_v20 = vld [vmem:[%s17015_s6 + $0xa0] sm:$0xff]  ;;  %v6491_v59 = vld [vmem:[%s17015_s6 + $0xa8] sm:$0xff] }
0x16b3   :  { %9107 = vmatprep.mubr.msk.f32.mxu0 %vm12587_vm2, %v17032_v2  ;;  %11548 = vmatpush3.bf16.msra.mxu0 %v11547_v19 }
0x16b4   :  { %11549 = vmatprep.subr.bf16.mxu0 %v12586_v43  ;;  %11491 = vmatpush3.bf16.msra.mxu1 %v11490_v21 }
0x16b5   :  { %11492 = vmatprep.subr.bf16.mxu1 %v12586_v43 }
0x16b6   :  { %9108 = vmatmul.mubr.f32.gmra.mrb[50].mxu0 %v1378_v42  ;;  %v6522_v42 = vld [vmem:[%s17015_s6 + $0x1a0] sm:$0xff] }
0x16b7   :  { %9110 = vmatprep.mubr.msk.f32.mxu0 %vm12587_vm2, %v17032_v2 }
0x16ba   :  { %9111 = vmatmul.mubr.f32.gmra.mrb[52].mxu0 %v1620_v33  ;;  %v6523_v33 = vld [vmem:[%s17015_s6 + $0x1a8] sm:$0xff] }
0x16bb   :  { %9113 = vmatprep.mubr.msk.f32.mxu0 %vm12587_vm2, %v17032_v2 }
0x16be   :  { %9114 = vmatmul.mubr.f32.gmra.mrb[54].mxu0 %v1862_v23  ;;  %v11550_v23 = vpack.c.bf16 %v6523_v33, %v6522_v42  ;;  %v11502_v42 = vpack.c.bf16 %v6491_v59, %v6490_v20  ;;  %v6561_v20 = vld [vmem:[%s17015_s6 + $0x2d8] sm:$0xff] }
0x16bf   :  { %9116 = vmatprep.mubr.msk.f32.mxu0 %vm12587_vm2, %v17032_v2 }
0x16c0   :  { %11551 = vmatpush3.bf16.msra.mxu0 %v11550_v23  ;;  %v6492_v23 = vld [vmem:[%s17015_s6 + $0xb0] sm:$0xff] }
0x16c1   :  { %11552 = vmatprep.subr.bf16.mxu0 %v12586_v43 }
0x16c2   :  { %9117 = vmatmul.mubr.f32.gmra.mrb[56].mxu0 %v2104_v9  ;;  %v6485_v9 = vld [vmem:[%s17015_s6 + $0x78] sm:$0xff] }
0x16c3   :  { %9119 = vmatprep.mubr.msk.f32.mxu0 %vm12587_vm2, %v17032_v2 }
0x16c6   :  { %9120 = vmatmul.mubr.f32.gmra.mrb[58].mxu0 %v2346_v7  ;;  %v5976_v7 = vmax.f32 %v15402_v16, 0.0  ;;  %v6526_v16 = vld [vmem:[%s17015_s6 + $0x1c0] sm:$0xff] }
0x16c7   :  { %9122 = vmatprep.mubr.msk.f32.mxu0 %vm12587_vm2, %v17032_v2 }
0x16ca   :  { %9123 = vmatmul.mubr.f32.gmra.mrb[60].mxu0 %v2588_v3  ;;  %v11493_v3 = vpack.c.bf16 %v6485_v9, %v6484_v25  ;;  %v6493_v25 = vld [vmem:[%s17015_s6 + $0xb8] sm:$0xff] }
0x16cb   :  { %9125 = vmatprep.mubr.msk.f32.mxu0 %vm12587_vm2, %v17032_v2 }
0x16cc   :  { %11494 = vmatpush3.bf16.msra.mxu1 %v11493_v3 }
0x16cd   :  { %11495 = vmatprep.subr.bf16.mxu1 %v12586_v43 }
0x16ce   :  { %9126 = vmatmul.mubr.f32.gmra.mrb[62].mxu0 %v2830_v44  ;;  %v6524_v44 = vld [vmem:[%s17015_s6 + $0x1b0] sm:$0xff] }
0x16cf   :  { %9128 = vmatprep.mubr.msk.f32.mxu0 %vm12587_vm2, %v17032_v2 }
0x16d2   :  { %9129 = vmatmul.mubr.f32.gmra.mrb[64].mxu0 %v3072_v24  ;;  %v6525_v24 = vld [vmem:[%s17015_s6 + $0x1b8] sm:$0xff] }
0x16d3   :  { %9131 = vmatprep.mubr.msk.f32.mxu0 %vm12587_vm2, %v17032_v2  ;;  %v11553_v15 = vpack.c.bf16 %v6525_v24, %v6524_v44  ;;  %v11505_v24 = vpack.c.bf16 %v6493_v25, %v6492_v23  ;;  %v6506_v23 = vld [vmem:[%s17015_s6 + $0x120] sm:$0xff]  ;;  %v6507_v25 = vld [vmem:[%s17015_s6 + $0x128] sm:$0xff] }
0x16d5   :  { %11554 = vmatpush3.bf16.msra.mxu0 %v11553_v15  ;;  %v6494_v15 = vld [vmem:[%s17015_s6 + $0xc0] sm:$0xff] }
0x16d6   :  { %9132 = vmatmul.mubr.f32.gmra.mrb[66].mxu0 %v3314_v51  ;;  %11555 = vmatprep.subr.bf16.mxu0 %v12586_v43  ;;  %v6527_v51 = vld [vmem:[%s17015_s6 + $0x1c8] sm:$0xff] }
0x16d7   :  { %9134 = vmatprep.mubr.msk.f32.mxu0 %vm12587_vm2, %v17032_v2  ;;  %v11556_v1 = vpack.c.bf16 %v6527_v51, %v6526_v16 }
0x16d9   :  { %11557 = vmatpush3.bf16.msra.mxu0 %v11556_v1  ;;  %v6495_v1 = vld [vmem:[%s17015_s6 + $0xc8] sm:$0xff] }
0x16da   :  { %9135 = vmatmul.mubr.f32.gmra.mrb[68].mxu0 %v3556_v53  ;;  %11558 = vmatprep.subr.bf16.mxu0 %v12586_v43  ;;  %v6528_v53 = vld [vmem:[%s17015_s6 + $0x1d0] sm:$0xff] }
0x16db   :  { %9137 = vmatprep.mubr.msk.f32.mxu0 %vm12587_vm2, %v17032_v2 }
0x16de   :  { %9138 = vmatmul.mubr.f32.gmra.mrb[70].mxu0 %v3798_v48  ;;  %v11559_v48 = vpack.c.bf16 %v6529_v34, %v6528_v53  ;;  %v6550_v53 = vld [vmem:[%s17015_s6 + $0x280] sm:$0xff]  ;;  %v6551_v34 = vld [vmem:[%s17015_s6 + $0x288] sm:$0xff] }
0x16df   :  { %9140 = vmatprep.mubr.msk.f32.mxu0 %vm12587_vm2, %v17032_v2 }
0x16e0   :  { %11560 = vmatpush3.bf16.msra.mxu0 %v11559_v48 }
0x16e1   :  { %11561 = vmatprep.subr.bf16.mxu0 %v12586_v43 }
0x16e2   :  { %9141 = vmatmul.mubr.f32.gmra.mrb[72].mxu0 %v4040_v31  ;;  %v6531_v31 = vld [vmem:[%s17015_s6 + $0x1e8] sm:$0xff] }
0x16e3   :  { %9143 = vmatprep.mubr.msk.f32.mxu0 %vm12587_vm2, %v17032_v2  ;;  %v11562_v10 = vpack.c.bf16 %v6531_v31, %v6530_v57  ;;  %v11508_v31 = vpack.c.bf16 %v6495_v1, %v6494_v15  ;;  %v6564_v1 = vld [vmem:[%s17015_s6 + $0x2f0] sm:$0xff] }
0x16e5   :  { %11563 = vmatpush3.bf16.msra.mxu0 %v11562_v10  ;;  %v11592_v10 = vpack.c.bf16 %v6551_v34, %v6550_v53  ;;  %v6565_v53 = vld [vmem:[%s17015_s6 + $0x2f8] sm:$0xff] }
0x16e6   :  { %9144 = vmatmul.mubr.f32.gmra.mrb[74].mxu0 %v4282_v46  ;;  %11564 = vmatprep.subr.bf16.mxu0 %v12586_v43  ;;  %v11565_v46 = vpack.c.bf16 %v6533_v38, %v6532_v14  ;;  %v6496_v14 = vld [vmem:[%s17015_s6 + $0xd0] sm:$0xff] }
0x16e7   :  { %9146 = vmatprep.mubr.msk.f32.mxu0 %vm12587_vm2, %v17032_v2 }
0x16e9   :  { %11566 = vmatpush3.bf16.msra.mxu0 %v11565_v46  ;;  %v6497_v46 = vld [vmem:[%s17015_s6 + $0xd8] sm:$0xff] }
0x16ea   :  { %9147 = vmatmul.mubr.f32.gmra.mrb[76].mxu0 %v4524_v29  ;;  %11591 = vmatprep.subr.bf16.mxu0 %v12586_v43 }
0x16eb   :  { %9149 = vmatprep.mubr.msk.f32.mxu0 %vm12587_vm2, %v17032_v2 }
0x16ee   :  { %9150 = vmatmul.mubr.f32.gmra.mrb[78].mxu0 %v4766_v28 }
0x16ef   :  { %9152 = vmatprep.mubr.msk.f32.mxu0 %vm12587_vm2, %v17032_v2 }
0x16f2   :  { %9153 = vmatmul.mubr.f32.gmra.mrb[80].mxu0 %v5008_v39 }
0x16f3   :  { %9155 = vmatprep.mubr.msk.f32.mxu0 %vm12587_vm2, %v17032_v2 }
0x16f6   :  { %9156 = vmatmul.mubr.f32.gmra.mrb[82].mxu0 %v5250_v0 }
0x16f7   :  { %9158 = vmatprep.mubr.msk.f32.mxu0 %vm12587_vm2, %v17032_v2 }
0x16fa   :  { %9159 = vmatmul.mubr.f32.gmra.mrb[84].mxu0 %v5492_v55  ;;  %v6488_v55 = vld [vmem:[%s17015_s6 + $0x90] sm:$0xff] }
0x16fb   :  { %9161 = vmatprep.mubr.msk.f32.mxu0 %vm12587_vm2, %v17032_v2  ;;  %v11499_v19 = vpack.c.bf16 %v6489_v17, %v6488_v55  ;;  %v6504_v17 = vld [vmem:[%s17015_s6 + $0x110] sm:$0xff] }
0x16fe   :  { %9162 = vmatmul.mubr.f32.gmra.mrb[86].mxu0 %v5734_v60 }
0x16ff   :  { %9164 = vmatprep.mubr.msk.f32.mxu0 %vm12587_vm2, %v17032_v2 }
0x1702   :  { %9165 = vmatmul.mubr.f32.gmra.mrb[88].mxu0 %v5976_v7 }
0x1703   :  { %9167 = vmatprep.mubr.msk.f32.mxu0 %vm12587_vm2, %v17032_v2 }
0x1761   :  { %v6114_v11 = vpop.f32.mrb[44].mxu0  ;;  %v6185_v54 = vpop.f32.mrb[44].mxu1 }
0x1762   :  { %v12067_v47 = vadd.f32 %v6114_v11, %v13135_v35  ;;  %v6116_v8 = vpop.f32.mrb[45].mxu0  ;;  %v6187_v29 = vpop.f32.mrb[45].mxu1  ;;  %v12113_v22 = vadd.f32 %v6185_v54, %v13144_v63  ;;  %v6486_v63 = vld [vmem:[%s17015_s6 + $0x80] sm:$0xff]  ;;  %v6552_v11 = vld [vmem:[%s17015_s6 + $0x290] sm:$0xff]  ;;  %v6553_v54 = vld [vmem:[%s17015_s6 + $0x298] sm:$0xff] }
0x1763   :  { %v12068_v49 = vadd.f32 %v6116_v8, %v13137_v40  ;;  %v12114_v37 = vadd.f32 %v6187_v29, %v13141_v58  ;;  %v15646_v58 = vld [vmem:[%s17016_s5] ss:$0 sm:$0xff]  ;;  %v11511_v29 = vpack.c.bf16 %v6497_v46, %v6496_v14  ;;  %v6511_v46 = vld [vmem:[%s17015_s6 + $0x148] sm:$0xff] }
0x1764   :  { %v8634_v36 = vmul.f32 -1.442695, %v12067_v47  ;;  %v6510_v14 = vld [vmem:[%s17015_s6 + $0x140] sm:$0xff] }
0x1765   :  { %v8635_v61 = vmul.f32 -1.442695, %v12068_v49  ;;  %v8636_v28 = vmul.f32 -1.442695, %v12114_v37  ;;  %v11595_v49 = vpack.c.bf16 %v6553_v54, %v6552_v11  ;;  %v6554_v37 = vld [vmem:[%s17015_s6 + $0x2a0] sm:$0xff]  ;;  %v6583_v54 = vld [vmem:[%s17015_s6 + $0x388] sm:$0xff] }
0x1766   :  { %12564 = vpow2.f32 %v8634_v36  ;;  %v6498_v36 = vld [vmem:[%s17015_s6 + $0xe0] sm:$0xff] }
0x1767   :  { %12566 = vpow2.f32 %v8635_v61  ;;  %v6499_v61 = vld [vmem:[%s17015_s6 + $0xe8] sm:$0xff]  ;;  %v6582_v11 = vld [vmem:[%s17015_s6 + $0x380] sm:$0xff] }
0x1768   :  { %12568 = vpow2.f32 %v8636_v28  ;;  %v6555_v28 = vld [vmem:[%s17015_s6 + $0x2a8] sm:$0xff] }
0x1769   :  { %12570 = vtanh.f32 %v12113_v22 }
0x1770   :  { %v12565_v52 = vpop.eup %12564 }
0x1771   :  { %v12567_v4 = vpop.eup %12566  ;;  %v6197_v30 = vadd.f32 1.0, %v12565_v52 }
0x1772   :  { %v6203_v39 = vadd.f32 1.0, %v12567_v4  ;;  %v12569_v35 = vpop.eup %12568  ;;  %v11514_v4 = vpack.c.bf16 %v6499_v61, %v6498_v36  ;;  %v6512_v36 = vld [vmem:[%s17015_s6 + $0x150] sm:$0xff] }
0x1773   :  { %12572 = vrcp.f32 %v6197_v30  ;;  %v12571_v50 = vpop.eup %12570  ;;  %v6210_v12 = vadd.f32 1.0, %v12569_v35  ;;  %v11598_v30 = vpack.c.bf16 %v6555_v28, %v6554_v37  ;;  %v6501_v35 = vld [vmem:[%s17015_s6 + $0xf8] sm:$0xff]  ;;  %v6584_v28 = vld [vmem:[%s17015_s6 + $0x390] sm:$0xff] }
0x1774   :  { %12574 = vrcp.f32 %v6203_v39  ;;  %v6500_v39 = vld [vmem:[%s17015_s6 + $0xf0] sm:$0xff]  ;;  %v6513_v37 = vld [vmem:[%s17015_s6 + $0x158] sm:$0xff] }
0x1775   :  { %12576 = vrcp.f32 %v6210_v12  ;;  %v11517_v12 = vpack.c.bf16 %v6501_v35, %v6500_v39  ;;  %v11535_v39 = vpack.c.bf16 %v6513_v37, %v6512_v36  ;;  %v6596_v36 = vld [vmem:[%s17015_s6 + $0x3f0] sm:$0xff] }
0x177d   :  { %v12573_v40 = vpop.eup %12572 }
0x177e   :  { %v12575_v56 = vpop.eup %12574  ;;  %v6214_v26 = vmul.f32 %v12573_v40, %v12571_v50  ;;  %v6556_v50 = vld [vmem:[%s17015_s6 + $0x2b0] sm:$0xff]  ;;  %v6557_v40 = vld [vmem:[%s17015_s6 + $0x2b8] sm:$0xff] }
0x177f   :  { %v6213_v0 = vmul.f32 %v12575_v56, %v15393_v32  ;;  %v11496_v32 = vpack.c.bf16 %v6487_v18, %v6486_v63  ;;  %v12577_v33 = vpop.eup %12576  ;;  %v6502_v63 = vld [vmem:[%s17015_s6 + $0x100] sm:$0xff] }
0x1781   :  { %v6333_v6 = vpop.f32.mrb[46].mxu0  ;;  %v6215_v13 = vadd.f32 %v6214_v26, %v6213_v0  ;;  %v11601_v0 = vpack.c.bf16 %v6557_v40, %v6556_v50  ;;  %v6514_v50 = vld [vmem:[%s17015_s6 + $0x160] sm:$0xff]  ;;  %v6515_v40 = vld [vmem:[%s17015_s6 + $0x168] sm:$0xff] }
0x1782   :  { %v6334_v62 = vadd.f32 %v15646_v58, %v6333_v6  ;;  %v9103_v45 = vpop.f32.mrb[47].mxu0  ;;  %v6503_v6 = vld [vmem:[%s17015_s6 + $0x108] sm:$0xff] }
0x1783   :  { %12578 = vtanh.f32 %v6215_v13  ;;  %v6558_v13 = vld [vmem:[%s17015_s6 + $0x2c0] sm:$0xff] }
0x1784   :  { %v6447_v41 = vmax.f32 %v6334_v62, 0.0  ;;  %v6559_v62 = vld [vmem:[%s17015_s6 + $0x2c8] sm:$0xff] }
0x1785   :  { %v15661_v27 = vpop.f32.mrb[48].mxu0  ;;  %v11604_v55 = vpack.c.bf16 %v6559_v62, %v6558_v13  ;;  %v6516_v13 = vld [vmem:[%s17015_s6 + $0x170] sm:$0xff]  ;;  %v6517_v62 = vld [vmem:[%s17015_s6 + $0x178] sm:$0xff] }
0x1786   :  { %v9106_v5 = vpop.f32.mrb[49].mxu0  ;;  %9203 = vmatmul.mubr.f32.vlgmr.msra.gmra.mrb[46].mxu1 %v6447_v41  ;;  %v6339_v18 = vadd.f32 %v15646_v58, %v15661_v27  ;;  %v11520_v41 = vpack.c.bf16 %v6503_v6, %v6502_v63 }
0x1787   :  { %11497 = vmatpush3.bf16.msra.mxu1 %v11496_v32  ;;  %9237 = vmatprep.mubr.msk.f32.mxu1 %vm12587_vm2, %v17032_v2  ;;  %v6505_v5 = vld [vmem:[%s17015_s6 + $0x118] sm:$0xff] }
0x1788   :  { %11498 = vmatprep.subr.bf16.mxu1 %v12586_v43  ;;  %v6448_v27 = vmax.f32 %v6339_v18, 0.0  ;;  %v11538_v18 = vpack.c.bf16 %v6515_v40, %v6514_v50  ;;  %v6543_v50 = vld [vmem:[%s17015_s6 + $0x248] sm:$0xff]  ;;  %v6614_v40 = vld [vmem:[%s17015_s6 + $0x480] sm:$0xff] }
0x1789   :  { %v15672_v60 = vpop.f32.mrb[50].mxu0 }
0x178a   :  { %v9109_v21 = vpop.f32.mrb[51].mxu0 }
0x178b   :  { %11500 = vmatpush3.bf16.msra.mxu1 %v11499_v19  ;;  %v6560_v19 = vld [vmem:[%s17015_s6 + $0x2d0] sm:$0xff] }
0x178c   :  { %11501 = vmatprep.subr.bf16.mxu1 %v12586_v43 }
0x178d   :  { %v12579_v9 = vpop.eup %12578  ;;  %v6348_v7 = vpop.f32.mrb[52].mxu0 }
0x178e   :  { %v9112_v3 = vpop.f32.mrb[53].mxu0  ;;  %v6217_v44 = vmul.f32 %v12579_v9, %v12577_v33  ;;  %v6349_v16 = vadd.f32 %v15646_v58, %v6348_v7  ;;  %v11607_v33 = vpack.c.bf16 %v6561_v20, %v6560_v19  ;;  %v6562_v9 = vld [vmem:[%s17015_s6 + $0x2e0] sm:$0xff]  ;;  %v6563_v7 = vld [vmem:[%s17015_s6 + $0x2e8] sm:$0xff]  ;;  %v6344_v20 = vadd.f32 %v15646_v58, %v15672_v60 }
0x178f   :  { %11503 = vmatpush3.bf16.msra.mxu1 %v11502_v42  ;;  %v11523_v42 = vpack.c.bf16 %v6505_v5, %v6504_v17  ;;  %v11610_v15 = vpack.c.bf16 %v6563_v7, %v6562_v9  ;;  %v6534_v19 = vld [vmem:[%s17015_s6 + $0x200] sm:$0xff]  ;;  %v6536_v7 = vld [vmem:[%s17015_s6 + $0x210] sm:$0xff] }
0x1790   :  { %11504 = vmatprep.subr.bf16.mxu1 %v12586_v43  ;;  %v6218_v51 = vmax.f32 %v6217_v44, 0.0  ;;  %v6450_v38 = vmax.f32 %v6349_v16, 0.0  ;;  %v6508_v16 = vld [vmem:[%s17015_s6 + $0x130] sm:$0xff] }
0x1791   :  { %v15695_v48 = vpop.f32.mrb[54].mxu0 }
0x1792   :  { %v9115_v57 = vpop.f32.mrb[55].mxu0  ;;  %9168 = vmatmul.mubr.f32.gmra.mrb[90].mxu0 %v6218_v51  ;;  %v6509_v51 = vld [vmem:[%s17015_s6 + $0x138] sm:$0xff] }
0x1793   :  { %11506 = vmatpush3.bf16.msra.mxu1 %v11505_v24  ;;  %9307 = vmatprep.mubr.msk.f32.mxu0 %vm12587_vm2, %v17032_v2  ;;  %v11526_v24 = vpack.c.bf16 %v6507_v25, %v6506_v23 }
0x1794   :  { %11507 = vmatprep.subr.bf16.mxu1 %v12586_v43 }
0x1795   :  { %v15712_v47 = vpop.f32.mrb[56].mxu0 }
0x1796   :  { %v9118_v8 = vpop.f32.mrb[57].mxu0  ;;  %9308 = vmatmul.mubr.f32.vlgmr.msra.gmra.mrb[92].mxu0 %v6450_v38  ;;  %v6359_v38 = vadd.f32 %v15646_v58, %v15712_v47  ;;  %v11532_v47 = vpack.c.bf16 %v6511_v46, %v6510_v14  ;;  %v6594_v14 = vld [vmem:[%s17015_s6 + $0x3e0] sm:$0xff] }
0x1797   :  { %11509 = vmatpush3.bf16.msra.mxu1 %v11508_v31  ;;  %11593 = vmatpush3.bf16.msra.mxu0 %v11592_v10  ;;  %v11529_v31 = vpack.c.bf16 %v6509_v51, %v6508_v16  ;;  %v11613_v10 = vpack.c.bf16 %v6565_v53, %v6564_v1  ;;  %v6593_v16 = vld [vmem:[%s17015_s6 + $0x3d8] sm:$0xff] }
0x1798   :  { %11510 = vmatprep.subr.bf16.mxu1 %v12586_v43  ;;  %11594 = vmatprep.subr.bf16.mxu0 %v12586_v43  ;;  %v6452_v61 = vmax.f32 %v6359_v38, 0.0  ;;  %v6595_v38 = vld [vmem:[%s17015_s6 + $0x3e8] sm:$0xff] }
0x1799   :  { %v15728_v22 = vpop.f32.mrb[58].mxu0  ;;  %9377 = vmatprep.mubr.msk.f32.mxu0 %vm12587_vm2, %v17032_v2 }
0x179a   :  { %v9121_v52 = vpop.f32.mrb[59].mxu0 }
0x179b   :  { %11512 = vmatpush3.bf16.msra.mxu1 %v11511_v29  ;;  %11596 = vmatpush3.bf16.msra.mxu0 %v11595_v49  ;;  %v11640_v49 = vpack.c.bf16 %v6583_v54, %v6582_v11  ;;  %v6585_v52 = vld [vmem:[%s17015_s6 + $0x398] sm:$0xff] }
0x179c   :  { %11513 = vmatprep.subr.bf16.mxu1 %v12586_v43  ;;  %11597 = vmatprep.subr.bf16.mxu0 %v12586_v43  ;;  %v11643_v35 = vpack.c.bf16 %v6585_v52, %v6584_v28 }
0x179d   :  { %v15746_v56 = vpop.f32.mrb[60].mxu0 }
0x179e   :  { %v9124_v26 = vpop.f32.mrb[61].mxu0 }
0x179f   :  { %11515 = vmatpush3.bf16.msra.mxu1 %v11514_v4  ;;  %11599 = vmatpush3.bf16.msra.mxu0 %v11598_v30  ;;  %v6586_v26 = vld [vmem:[%s17015_s6 + $0x3a0] sm:$0xff] }
0x17a0   :  { %11516 = vmatprep.subr.bf16.mxu1 %v12586_v43  ;;  %11600 = vmatprep.subr.bf16.mxu0 %v12586_v43 }
0x17a1   :  { %v15764_v45 = vpop.f32.mrb[62].mxu0 }
0x17a2   :  { %v9127_v32 = vpop.f32.mrb[63].mxu0 }
0x17a3   :  { %11518 = vmatpush3.bf16.msra.mxu1 %v11517_v12  ;;  %11602 = vmatpush3.bf16.msra.mxu0 %v11601_v0  ;;  %v6587_v12 = vld [vmem:[%s17015_s6 + $0x3a8] sm:$0xff]  ;;  %v6588_v32 = vld [vmem:[%s17015_s6 + $0x3b0] sm:$0xff] }
0x17a4   :  { %11519 = vmatprep.subr.bf16.mxu1 %v12586_v43  ;;  %11603 = vmatprep.subr.bf16.mxu0 %v12586_v43  ;;  %v11646_v6 = vpack.c.bf16 %v6587_v12, %v6586_v26  ;;  %v6615_v26 = vld [vmem:[%s17015_s6 + $0x488] sm:$0xff] }
0x17a5   :  { %v15780_v59 = vpop.f32.mrb[64].mxu0 }
0x17a6   :  { %9238 = vmatmul.mubr.f32.vlgmr.msra.gmra.mrb[48].mxu1 %v6448_v27  ;;  %v9130_v21 = vpop.f32.mrb[65].mxu0  ;;  %v11541_v27 = vpack.c.bf16 %v6517_v62, %v6516_v13  ;;  %v6545_v62 = vld [vmem:[%s17015_s6 + $0x258] sm:$0xff] }
0x17a7   :  { %11521 = vmatpush3.bf16.msra.mxu1 %v11520_v41  ;;  %11605 = vmatpush3.bf16.msra.mxu0 %v11604_v55  ;;  %v6589_v41 = vld [vmem:[%s17015_s6 + $0x3b8] sm:$0xff]  ;;  %v6535_v21 = vld [vmem:[%s17015_s6 + $0x208] sm:$0xff] }
0x17a8   :  { %11522 = vmatprep.subr.bf16.mxu1 %v12586_v43  ;;  %11606 = vmatprep.subr.bf16.mxu0 %v12586_v43  ;;  %v11649_v5 = vpack.c.bf16 %v6589_v41, %v6588_v32  ;;  %v11568_v60 = vpack.c.bf16 %v6535_v21, %v6534_v19  ;;  %v6616_v32 = vld [vmem:[%s17015_s6 + $0x490] sm:$0xff]  ;;  %v6617_v41 = vld [vmem:[%s17015_s6 + $0x498] sm:$0xff]  ;;  %v6547_v21 = vld [vmem:[%s17015_s6 + $0x268] sm:$0xff] }
0x17a9   :  { %v15796_v3 = vpop.f32.mrb[66].mxu0  ;;  %9272 = vmatprep.mubr.msk.f32.mxu1 %vm12587_vm2, %v17032_v2  ;;  %v11691_v19 = vpack.c.bf16 %v6617_v41, %v6616_v32  ;;  %v6646_v32 = vld [vmem:[%s17015_s6 + $0x580] sm:$0xff]  ;;  %v6647_v41 = vld [vmem:[%s17015_s6 + $0x588] sm:$0xff] }
0x17aa   :  { %v9133_v44 = vpop.f32.mrb[67].mxu0 }
0x17ab   :  { %11524 = vmatpush3.bf16.msra.mxu1 %v11523_v42  ;;  %11608 = vmatpush3.bf16.msra.mxu0 %v11607_v33  ;;  %v6590_v42 = vld [vmem:[%s17015_s6 + $0x3c0] sm:$0xff]  ;;  %v6591_v33 = vld [vmem:[%s17015_s6 + $0x3c8] sm:$0xff]  ;;  %v6449_v44 = vmax.f32 %v6344_v20, 0.0 }
0x17ac   :  { %11525 = vmatprep.subr.bf16.mxu1 %v12586_v43  ;;  %11609 = vmatprep.subr.bf16.mxu0 %v12586_v43  ;;  %v11652_v9 = vpack.c.bf16 %v6591_v33, %v6590_v42  ;;  %v6546_v20 = vld [vmem:[%s17015_s6 + $0x260] sm:$0xff]  ;;  %v6619_v33 = vld [vmem:[%s17015_s6 + $0x4a8] sm:$0xff] }
0x17ad   :  { %v15814_v34 = vpop.f32.mrb[68].mxu0  ;;  %v6618_v42 = vld [vmem:[%s17015_s6 + $0x4a0] sm:$0xff] }
0x17ae   :  { %v9136_v57 = vpop.f32.mrb[69].mxu0 }
0x17af   :  { %11527 = vmatpush3.bf16.msra.mxu1 %v11526_v24  ;;  %11611 = vmatpush3.bf16.msra.mxu0 %v11610_v15  ;;  %v6537_v24 = vld [vmem:[%s17015_s6 + $0x218] sm:$0xff]  ;;  %v6592_v15 = vld [vmem:[%s17015_s6 + $0x3d0] sm:$0xff] }
0x17b0   :  { %11528 = vmatprep.subr.bf16.mxu1 %v12586_v43  ;;  %11612 = vmatprep.subr.bf16.mxu0 %v12586_v43  ;;  %v11571_v53 = vpack.c.bf16 %v6537_v24, %v6536_v7  ;;  %v11655_v57 = vpack.c.bf16 %v6593_v16, %v6592_v15  ;;  %v6549_v7 = vld [vmem:[%s17015_s6 + $0x278] sm:$0xff] }
0x17b1   :  { %v15832_v8 = vpop.f32.mrb[70].mxu0  ;;  %v6621_v24 = vld [vmem:[%s17015_s6 + $0x4b8] sm:$0xff] }
0x17b2   :  { %v9139_v29 = vpop.f32.mrb[71].mxu0 }
0x17b3   :  { %11530 = vmatpush3.bf16.msra.mxu1 %v11529_v31  ;;  %11614 = vmatpush3.bf16.msra.mxu0 %v11613_v10  ;;  %v6538_v31 = vld [vmem:[%s17015_s6 + $0x220] sm:$0xff]  ;;  %v6539_v10 = vld [vmem:[%s17015_s6 + $0x228] sm:$0xff]  ;;  %v11658_v29 = vpack.c.bf16 %v6595_v38, %v6594_v14  ;;  %v6568_v38 = vld [vmem:[%s17015_s6 + $0x310] sm:$0xff] }
0x17b4   :  { %11531 = vmatprep.subr.bf16.mxu1 %v12586_v43  ;;  %11639 = vmatprep.subr.bf16.mxu0 %v12586_v43  ;;  %v11574_v54 = vpack.c.bf16 %v6539_v10, %v6538_v31  ;;  %v6622_v31 = vld [vmem:[%s17015_s6 + $0x4c0] sm:$0xff]  ;;  %v6623_v10 = vld [vmem:[%s17015_s6 + $0x4c8] sm:$0xff] }
0x17b5   :  { %v15848_v4 = vpop.f32.mrb[72].mxu0 }
0x17b6   :  { %v9142_v30 = vpop.f32.mrb[73].mxu0  ;;  %9378 = vmatmul.mubr.f32.vlgmr.msra.gmra.mrb[94].mxu0 %v6452_v61  ;;  %v6597_v61 = vld [vmem:[%s17015_s6 + $0x3f8] sm:$0xff] }
0x17b7   :  { %11533 = vmatpush3.bf16.msra.mxu1 %v11532_v47  ;;  %11641 = vmatpush3.bf16.msra.mxu0 %v11640_v49  ;;  %v6540_v47 = vld [vmem:[%s17015_s6 + $0x230] sm:$0xff]  ;;  %v6541_v49 = vld [vmem:[%s17015_s6 + $0x238] sm:$0xff]  ;;  %v11661_v30 = vpack.c.bf16 %v6597_v61, %v6596_v36  ;;  %v6570_v61 = vld [vmem:[%s17015_s6 + $0x320] sm:$0xff] }
0x17b8   :  { %11534 = vmatprep.subr.bf16.mxu1 %v12586_v43  ;;  %11642 = vmatprep.subr.bf16.mxu0 %v12586_v43  ;;  %v11577_v52 = vpack.c.bf16 %v6541_v49, %v6540_v47  ;;  %v6625_v47 = vld [vmem:[%s17015_s6 + $0x4d8] sm:$0xff] }
0x17b9   :  { %v15864_v0 = vpop.f32.mrb[74].mxu0  ;;  %9447 = vmatprep.mubr.msk.f32.mxu0 %vm12587_vm2, %v17032_v2 }
0x17ba   :  { %v9145_v63 = vpop.f32.mrb[75].mxu0 }
0x17bb   :  { %11536 = vmatpush3.bf16.msra.mxu1 %v11535_v39  ;;  %11644 = vmatpush3.bf16.msra.mxu0 %v11643_v35  ;;  %v6542_v39 = vld [vmem:[%s17015_s6 + $0x240] sm:$0xff]  ;;  %v6369_v35 = vadd.f32 %v15646_v58, %v15746_v56 }
0x17bc   :  { %11537 = vmatprep.subr.bf16.mxu1 %v12586_v43  ;;  %11645 = vmatprep.subr.bf16.mxu0 %v12586_v43  ;;  %v11580_v56 = vpack.c.bf16 %v6543_v50, %v6542_v39  ;;  %v6572_v50 = vld [vmem:[%s17015_s6 + $0x330] sm:$0xff] }
0x17bd   :  { %v15882_v55 = vpop.f32.mrb[76].mxu0  ;;  %v6454_v13 = vmax.f32 %v6369_v35, 0.0 }
0x17be   :  { %v9148_v17 = vpop.f32.mrb[77].mxu0 }
0x17bf   :  { %11539 = vmatpush3.bf16.msra.mxu1 %v11538_v18  ;;  %11647 = vmatpush3.bf16.msra.mxu0 %v11646_v6  ;;  %v11688_v18 = vpack.c.bf16 %v6615_v26, %v6614_v40  ;;  %v6544_v6 = vld [vmem:[%s17015_s6 + $0x250] sm:$0xff]  ;;  %v6573_v40 = vld [vmem:[%s17015_s6 + $0x338] sm:$0xff] }
0x17c0   :  { %11540 = vmatprep.subr.bf16.mxu1 %v12586_v43  ;;  %11648 = vmatprep.subr.bf16.mxu0 %v12586_v43  ;;  %v6628_v26 = vld [vmem:[%s17015_s6 + $0x4f0] sm:$0xff] }
0x17c1   :  { %v15900_v23 = vpop.f32.mrb[78].mxu0 }
0x17c2   :  { %v9151_v25 = vpop.f32.mrb[79].mxu0 }
0x17c3   :  { %11542 = vmatpush3.bf16.msra.mxu1 %v11541_v27  ;;  %11650 = vmatpush3.bf16.msra.mxu0 %v11649_v5  ;;  %v11583_v5 = vpack.c.bf16 %v6545_v62, %v6544_v6  ;;  %v11586_v25 = vpack.c.bf16 %v6547_v21, %v6546_v20  ;;  %v6574_v6 = vld [vmem:[%s17015_s6 + $0x340] sm:$0xff]  ;;  %v6575_v62 = vld [vmem:[%s17015_s6 + $0x348] sm:$0xff]  ;;  %v6577_v20 = vld [vmem:[%s17015_s6 + $0x358] sm:$0xff] }
0x17c4   :  { %11567 = vmatprep.subr.bf16.mxu1 %v12586_v43  ;;  %11651 = vmatprep.subr.bf16.mxu0 %v12586_v43  ;;  %v6648_v21 = vld [vmem:[%s17015_s6 + $0x590] sm:$0xff] }
0x17c5   :  { %v15916_v51 = vpop.f32.mrb[80].mxu0 }
0x17c6   :  { %9273 = vmatmul.mubr.f32.vlgmr.msra.gmra.mrb[50].mxu1 %v6449_v44  ;;  %v9154_v1 = vpop.f32.mrb[81].mxu0  ;;  %v6620_v44 = vld [vmem:[%s17015_s6 + $0x4b0] sm:$0xff] }
0x17c7   :  { %11569 = vmatpush3.bf16.msra.mxu1 %v11568_v60  ;;  %11653 = vmatpush3.bf16.msra.mxu0 %v11652_v9  ;;  %v11694_v60 = vpack.c.bf16 %v6619_v33, %v6618_v42  ;;  %v6548_v9 = vld [vmem:[%s17015_s6 + $0x270] sm:$0xff]  ;;  %v11697_v16 = vpack.c.bf16 %v6621_v24, %v6620_v44  ;;  %v6566_v1 = vld [vmem:[%s17015_s6 + $0x300] sm:$0xff]  ;;  %v6649_v42 = vld [vmem:[%s17015_s6 + $0x598] sm:$0xff] }
0x17c8   :  { %11570 = vmatprep.subr.bf16.mxu1 %v12586_v43  ;;  %11654 = vmatprep.subr.bf16.mxu0 %v12586_v43  ;;  %v11589_v15 = vpack.c.bf16 %v6549_v7, %v6548_v9  ;;  %v6579_v9 = vld [vmem:[%s17015_s6 + $0x368] sm:$0xff]  ;;  %v6650_v7 = vld [vmem:[%s17015_s6 + $0x5a0] sm:$0xff] }
0x17c9   :  { %v15932_v46 = vpop.f32.mrb[82].mxu0  ;;  %9342 = vmatprep.mubr.msk.f32.mxu1 %vm12587_vm2, %v17032_v2  ;;  %v6651_v44 = vld [vmem:[%s17015_s6 + $0x5a8] sm:$0xff] }
0x17ca   :  { %v9157_v11 = vpop.f32.mrb[83].mxu0 }
0x17cb   :  { %11572 = vmatpush3.bf16.msra.mxu1 %v11571_v53  ;;  %11656 = vmatpush3.bf16.msra.mxu0 %v11655_v57  ;;  %v6354_v53 = vadd.f32 %v15646_v58, %v15695_v48  ;;  %v6567_v57 = vld [vmem:[%s17015_s6 + $0x308] sm:$0xff]  ;;  %v11700_v48 = vpack.c.bf16 %v6623_v10, %v6622_v31 }
0x17cc   :  { %11573 = vmatprep.subr.bf16.mxu1 %v12586_v43  ;;  %11657 = vmatprep.subr.bf16.mxu0 %v12586_v43  ;;  %v11616_v14 = vpack.c.bf16 %v6567_v57, %v6566_v1  ;;  %v6581_v1 = vld [vmem:[%s17015_s6 + $0x378] sm:$0xff] }
0x17cd   :  { %v15950_v37 = vpop.f32.mrb[84].mxu0  ;;  %v6451_v11 = vmax.f32 %v6354_v53, 0.0  ;;  %v6652_v53 = vld [vmem:[%s17015_s6 + $0x5b0] sm:$0xff]  ;;  %v6653_v57 = vld [vmem:[%s17015_s6 + $0x5b8] sm:$0xff] }
0x17ce   :  { %v9160_v28 = vpop.f32.mrb[85].mxu0  ;;  %v11745_v10 = vpack.c.bf16 %v6653_v57, %v6652_v53  ;;  %v6612_v57 = vld [vmem:[%s17015_s6 + $0x470] sm:$0xff] }
0x17cf   :  { %11575 = vmatpush3.bf16.msra.mxu1 %v11574_v54  ;;  %11659 = vmatpush3.bf16.msra.mxu0 %v11658_v29  ;;  %v6569_v54 = vld [vmem:[%s17015_s6 + $0x318] sm:$0xff]  ;;  %v6624_v29 = vld [vmem:[%s17015_s6 + $0x4d0] sm:$0xff]  ;;  %v6571_v28 = vld [vmem:[%s17015_s6 + $0x328] sm:$0xff] }
0x17d0   :  { %11576 = vmatprep.subr.bf16.mxu1 %v12586_v43  ;;  %11660 = vmatprep.subr.bf16.mxu0 %v12586_v43  ;;  %v11619_v49 = vpack.c.bf16 %v6569_v54, %v6568_v38  ;;  %v11703_v36 = vpack.c.bf16 %v6625_v47, %v6624_v29  ;;  %v11622_v39 = vpack.c.bf16 %v6571_v28, %v6570_v61  ;;  %v6599_v38 = vld [vmem:[%s17015_s6 + $0x408] sm:$0xff]  ;;  %v6600_v47 = vld [vmem:[%s17015_s6 + $0x410] sm:$0xff]  ;;  %v6657_v28 = vld [vmem:[%s17015_s6 + $0x5d8] sm:$0xff] }
0x17d1   :  { %v15968_v12 = vpop.f32.mrb[86].mxu0  ;;  %v6655_v54 = vld [vmem:[%s17015_s6 + $0x5c8] sm:$0xff]  ;;  %v6656_v61 = vld [vmem:[%s17015_s6 + $0x5d0] sm:$0xff] }
0x17d2   :  { %v9163_v63 = vpop.f32.mrb[87].mxu0 }
0x17d3   :  { %11578 = vmatpush3.bf16.msra.mxu1 %v11577_v52  ;;  %11662 = vmatpush3.bf16.msra.mxu0 %v11661_v30  ;;  %v6626_v52 = vld [vmem:[%s17015_s6 + $0x4e0] sm:$0xff]  ;;  %v6627_v30 = vld [vmem:[%s17015_s6 + $0x4e8] sm:$0xff]  ;;  %v6629_v63 = vld [vmem:[%s17015_s6 + $0x4f8] sm:$0xff] }
0x17d4   :  { %11579 = vmatprep.subr.bf16.mxu1 %v12586_v43  ;;  %11687 = vmatprep.subr.bf16.mxu0 %v12586_v43  ;;  %v11706_v35 = vpack.c.bf16 %v6627_v30, %v6626_v52  ;;  %v11751_v30 = vpack.c.bf16 %v6657_v28, %v6656_v61  ;;  %v6633_v61 = vld [vmem:[%s17015_s6 + $0x518] sm:$0xff]  ;;  %v6688_v28 = vld [vmem:[%s17015_s6 + $0x6d0] sm:$0xff] }
0x17d5   :  { %v15984_v17 = vpop.f32.mrb[88].mxu0 }
0x17d6   :  { %v9166_v27 = vpop.f32.mrb[89].mxu0  ;;  %9448 = vmatmul.mubr.f32.vlgmr.msra.gmra.mrb[96].mxu0 %v6454_v13  ;;  %v6379_v13 = vadd.f32 %v15646_v58, %v15780_v59  ;;  %v11736_v59 = vpack.c.bf16 %v6647_v41, %v6646_v32  ;;  %v6606_v41 = vld [vmem:[%s17015_s6 + $0x440] sm:$0xff] }
0x17d7   :  { %11581 = vmatpush3.bf16.msra.mxu1 %v11580_v56  ;;  %11689 = vmatpush3.bf16.msra.mxu0 %v11688_v18  ;;  %v11625_v56 = vpack.c.bf16 %v6573_v40, %v6572_v50  ;;  %v11709_v18 = vpack.c.bf16 %v6629_v63, %v6628_v26  ;;  %v11628_v27 = vpack.c.bf16 %v6575_v62, %v6574_v6  ;;  %v6658_v50 = vld [vmem:[%s17015_s6 + $0x5e0] sm:$0xff]  ;;  %v6659_v40 = vld [vmem:[%s17015_s6 + $0x5e8] sm:$0xff]  ;;  %v6660_v6 = vld [vmem:[%s17015_s6 + $0x5f0] sm:$0xff] }
0x17d8   :  { %11582 = vmatprep.subr.bf16.mxu1 %v12586_v43  ;;  %11690 = vmatprep.subr.bf16.mxu0 %v12586_v43  ;;  %v11754_v63 = vpack.c.bf16 %v6659_v40, %v6658_v50  ;;  %v6635_v50 = vld [vmem:[%s17015_s6 + $0x528] sm:$0xff]  ;;  %v6690_v40 = vld [vmem:[%s17015_s6 + $0x6e0] sm:$0xff] }
0x17d9   :  { %9517 = vmatprep.mubr.msk.f32.mxu0 %vm12587_vm2, %v17032_v2 }
0x17db   :  { %11584 = vmatpush3.bf16.msra.mxu1 %v11583_v5  ;;  %11692 = vmatpush3.bf16.msra.mxu0 %v11691_v19  ;;  %v6576_v5 = vld [vmem:[%s17015_s6 + $0x350] sm:$0xff]  ;;  %v6456_v19 = vmax.f32 %v6379_v13, 0.0  ;;  %v6661_v13 = vld [vmem:[%s17015_s6 + $0x5f8] sm:$0xff] }
0x17dc   :  { %11585 = vmatprep.subr.bf16.mxu1 %v12586_v43  ;;  %11693 = vmatprep.subr.bf16.mxu0 %v12586_v43  ;;  %v11631_v33 = vpack.c.bf16 %v6577_v20, %v6576_v5  ;;  %v11757_v32 = vpack.c.bf16 %v6661_v13, %v6660_v6  ;;  %v6678_v5 = vld [vmem:[%s17015_s6 + $0x680] sm:$0xff]  ;;  %v6637_v6 = vld [vmem:[%s17015_s6 + $0x538] sm:$0xff]  ;;  %v6692_v13 = vld [vmem:[%s17015_s6 + $0x6f0] sm:$0xff] }
0x17df   :  { %11587 = vmatpush3.bf16.msra.mxu1 %v11586_v25  ;;  %11695 = vmatpush3.bf16.msra.mxu0 %v11694_v60  ;;  %v11739_v25 = vpack.c.bf16 %v6649_v42, %v6648_v21  ;;  %v6578_v60 = vld [vmem:[%s17015_s6 + $0x360] sm:$0xff]  ;;  %v6608_v21 = vld [vmem:[%s17015_s6 + $0x450] sm:$0xff] }
0x17e0   :  { %11588 = vmatprep.subr.bf16.mxu1 %v12586_v43  ;;  %11696 = vmatprep.subr.bf16.mxu0 %v12586_v43  ;;  %v11634_v24 = vpack.c.bf16 %v6579_v9, %v6578_v60  ;;  %v6681_v60 = vld [vmem:[%s17015_s6 + $0x698] sm:$0xff] }
0x17e3   :  { %11590 = vmatpush3.bf16.msra.mxu1 %v11589_v15  ;;  %11698 = vmatpush3.bf16.msra.mxu0 %v11697_v16  ;;  %v11742_v15 = vpack.c.bf16 %v6651_v44, %v6650_v7  ;;  %v6580_v16 = vld [vmem:[%s17015_s6 + $0x370] sm:$0xff]  ;;  %v6610_v44 = vld [vmem:[%s17015_s6 + $0x460] sm:$0xff] }
0x17e4   :  { %11615 = vmatprep.subr.bf16.mxu1 %v12586_v43  ;;  %11699 = vmatprep.subr.bf16.mxu0 %v12586_v43  ;;  %v11637_v31 = vpack.c.bf16 %v6581_v1, %v6580_v16  ;;  %v6683_v16 = vld [vmem:[%s17015_s6 + $0x6a8] sm:$0xff] }
0x17e6   :  { %9343 = vmatmul.mubr.f32.vlgmr.msra.gmra.mrb[52].mxu1 %v6451_v11  ;;  %v6654_v11 = vld [vmem:[%s17015_s6 + $0x5c0] sm:$0xff] }
0x17e7   :  { %11617 = vmatpush3.bf16.msra.mxu1 %v11616_v14  ;;  %11701 = vmatpush3.bf16.msra.mxu0 %v11700_v48  ;;  %v6598_v14 = vld [vmem:[%s17015_s6 + $0x400] sm:$0xff]  ;;  %v6364_v48 = vadd.f32 %v15646_v58, %v15728_v22  ;;  %v11748_v22 = vpack.c.bf16 %v6655_v54, %v6654_v11  ;;  %v6374_v54 = vadd.f32 %v15646_v58, %v15764_v45  ;;  %v6632_v45 = vld [vmem:[%s17015_s6 + $0x510] sm:$0xff] }
0x17e8   :  { %11618 = vmatprep.subr.bf16.mxu1 %v12586_v43  ;;  %11702 = vmatprep.subr.bf16.mxu0 %v12586_v43  ;;  %v11664_v29 = vpack.c.bf16 %v6599_v38, %v6598_v14  ;;  %v6685_v14 = vld [vmem:[%s17015_s6 + $0x6b8] sm:$0xff]  ;;  %v6630_v11 = vld [vmem:[%s17015_s6 + $0x500] sm:$0xff] }
0x17e9   :  { %9412 = vmatprep.mubr.msk.f32.mxu1 %vm12587_vm2, %v17032_v2 }
0x17eb   :  { %11620 = vmatpush3.bf16.msra.mxu1 %v11619_v49  ;;  %11704 = vmatpush3.bf16.msra.mxu0 %v11703_v36  ;;  %v6453_v49 = vmax.f32 %v6364_v48, 0.0  ;;  %v6601_v36 = vld [vmem:[%s17015_s6 + $0x418] sm:$0xff] }
0x17ec   :  { %11621 = vmatprep.subr.bf16.mxu1 %v12586_v43  ;;  %11705 = vmatprep.subr.bf16.mxu0 %v12586_v43  ;;  %v11667_v52 = vpack.c.bf16 %v6601_v36, %v6600_v47  ;;  %v6687_v47 = vld [vmem:[%s17015_s6 + $0x6c8] sm:$0xff]  ;;  %v6455_v36 = vmax.f32 %v6374_v54, 0.0  ;;  %v6662_v54 = vld [vmem:[%s17015_s6 + $0x600] sm:$0xff] }
0x17ef   :  { %11623 = vmatpush3.bf16.msra.mxu1 %v11622_v39  ;;  %11707 = vmatpush3.bf16.msra.mxu0 %v11706_v35  ;;  %v6602_v39 = vld [vmem:[%s17015_s6 + $0x420] sm:$0xff]  ;;  %v6603_v35 = vld [vmem:[%s17015_s6 + $0x428] sm:$0xff] }
0x17f0   :  { %11624 = vmatprep.subr.bf16.mxu1 %v12586_v43  ;;  %11708 = vmatprep.subr.bf16.mxu0 %v12586_v43  ;;  %v11670_v26 = vpack.c.bf16 %v6603_v35, %v6602_v39  ;;  %v6634_v35 = vld [vmem:[%s17015_s6 + $0x520] sm:$0xff] }
0x17f3   :  { %11626 = vmatpush3.bf16.msra.mxu1 %v11625_v56  ;;  %11710 = vmatpush3.bf16.msra.mxu0 %v11709_v18  ;;  %v6604_v56 = vld [vmem:[%s17015_s6 + $0x430] sm:$0xff]  ;;  %v6605_v18 = vld [vmem:[%s17015_s6 + $0x438] sm:$0xff] }
0x17f4   :  { %11627 = vmatprep.subr.bf16.mxu1 %v12586_v43  ;;  %11735 = vmatprep.subr.bf16.mxu0 %v12586_v43  ;;  %v11673_v62 = vpack.c.bf16 %v6605_v18, %v6604_v56  ;;  %v6636_v18 = vld [vmem:[%s17015_s6 + $0x530] sm:$0xff] }
0x17f6   :  { %9518 = vmatmul.mubr.f32.vlgmr.msra.gmra.mrb[98].mxu0 %v6456_v19  ;;  %v6679_v19 = vld [vmem:[%s17015_s6 + $0x688] sm:$0xff] }
0x17f7   :  { %11629 = vmatpush3.bf16.msra.mxu1 %v11628_v27  ;;  %11737 = vmatpush3.bf16.msra.mxu0 %v11736_v59  ;;  %v6389_v27 = vadd.f32 %v15646_v58, %v15814_v34  ;;  %v6607_v59 = vld [vmem:[%s17015_s6 + $0x448] sm:$0xff]  ;;  %v11784_v34 = vpack.c.bf16 %v6679_v19, %v6678_v5 }
0x17f8   :  { %11630 = vmatprep.subr.bf16.mxu1 %v12586_v43  ;;  %11738 = vmatprep.subr.bf16.mxu0 %v12586_v43  ;;  %v11676_v20 = vpack.c.bf16 %v6607_v59, %v6606_v41  ;;  %v16322_v59 = vld [vmem:[%s17016_s5] ss:$0 sm:$0xff]  ;;  %v6639_v19 = vld [vmem:[%s17015_s6 + $0x548] sm:$0xff] }
0x17f9   :  { %9587 = vmatprep.mubr.msk.f32.mxu0 %vm12587_vm2, %v17032_v2  ;;  %v6458_v42 = vmax.f32 %v6389_v27, 0.0  ;;  %v6638_v27 = vld [vmem:[%s17015_s6 + $0x540] sm:$0xff]  ;;  %v6399_v5 = vadd.f32 %v16322_v59, %v15848_v4 }
0x17fb   :  { %11632 = vmatpush3.bf16.msra.mxu1 %v11631_v33  ;;  %11740 = vmatpush3.bf16.msra.mxu0 %v11739_v25  ;;  %v6609_v33 = vld [vmem:[%s17015_s6 + $0x458] sm:$0xff]  ;;  %v6680_v25 = vld [vmem:[%s17015_s6 + $0x690] sm:$0xff] }
0x17fc   :  { %11633 = vmatprep.subr.bf16.mxu1 %v12586_v43  ;;  %11741 = vmatprep.subr.bf16.mxu0 %v12586_v43  ;;  %v11679_v9 = vpack.c.bf16 %v6609_v33, %v6608_v21  ;;  %v11787_v7 = vpack.c.bf16 %v6681_v60, %v6680_v25  ;;  %v11724_v21 = vpack.c.bf16 %v6639_v19, %v6638_v27  ;;  %v6460_v33 = vmax.f32 %v6399_v5, 0.0  ;;  %v6641_v25 = vld [vmem:[%s17015_s6 + $0x558] sm:$0xff]  ;;  %v6712_v60 = vld [vmem:[%s17015_s6 + $0x790] sm:$0xff]  ;;  %v6670_v27 = vld [vmem:[%s17015_s6 + $0x640] sm:$0xff] }
0x17fd   :  { %v6409_v5 = vadd.f32 %v16322_v59, %v15882_v55  ;;  %v6671_v19 = vld [vmem:[%s17015_s6 + $0x648] sm:$0xff] }
0x17ff   :  { %11635 = vmatpush3.bf16.msra.mxu1 %v11634_v24  ;;  %11743 = vmatpush3.bf16.msra.mxu0 %v11742_v15  ;;  %v6611_v24 = vld [vmem:[%s17015_s6 + $0x468] sm:$0xff]  ;;  %v6682_v15 = vld [vmem:[%s17015_s6 + $0x6a0] sm:$0xff] }
0x1800   :  { %11636 = vmatprep.subr.bf16.mxu1 %v12586_v43  ;;  %11744 = vmatprep.subr.bf16.mxu0 %v12586_v43  ;;  %v11682_v1 = vpack.c.bf16 %v6611_v24, %v6610_v44  ;;  %v11790_v53 = vpack.c.bf16 %v6683_v16, %v6682_v15  ;;  %v6642_v24 = vld [vmem:[%s17015_s6 + $0x560] sm:$0xff]  ;;  %v6643_v15 = vld [vmem:[%s17015_s6 + $0x568] sm:$0xff] }
0x1801   :  { %v6714_v16 = vld [vmem:[%s17015_s6 + $0x7a0] sm:$0xff] }
0x1803   :  { %11638 = vmatpush3.bf16.msra.mxu1 %v11637_v31  ;;  %11746 = vmatpush3.bf16.msra.mxu0 %v11745_v10  ;;  %v6613_v31 = vld [vmem:[%s17015_s6 + $0x478] sm:$0xff]  ;;  %v6684_v10 = vld [vmem:[%s17015_s6 + $0x6b0] sm:$0xff] }
0x1804   :  { %11663 = vmatprep.subr.bf16.mxu1 %v12586_v43  ;;  %11747 = vmatprep.subr.bf16.mxu0 %v12586_v43  ;;  %v11685_v48 = vpack.c.bf16 %v6613_v31, %v6612_v57  ;;  %v11793_v38 = vpack.c.bf16 %v6685_v14, %v6684_v10  ;;  %v6644_v31 = vld [vmem:[%s17015_s6 + $0x570] sm:$0xff]  ;;  %v6645_v10 = vld [vmem:[%s17015_s6 + $0x578] sm:$0xff] }
0x1805   :  { %v6716_v14 = vld [vmem:[%s17015_s6 + $0x7b0] sm:$0xff] }
0x1806   :  { %9413 = vmatmul.mubr.f32.vlgmr.msra.gmra.mrb[54].mxu1 %v6453_v49 }
0x1807   :  { %11665 = vmatpush3.bf16.msra.mxu1 %v11664_v29  ;;  %11749 = vmatpush3.bf16.msra.mxu0 %v11748_v22  ;;  %v6631_v29 = vld [vmem:[%s17015_s6 + $0x508] sm:$0xff]  ;;  %v6686_v22 = vld [vmem:[%s17015_s6 + $0x6c0] sm:$0xff] }
0x1808   :  { %11666 = vmatprep.subr.bf16.mxu1 %v12586_v43  ;;  %11750 = vmatprep.subr.bf16.mxu0 %v12586_v43  ;;  %v11712_v49 = vpack.c.bf16 %v6631_v29, %v6630_v11  ;;  %v11796_v58 = vpack.c.bf16 %v6687_v47, %v6686_v22  ;;  %v6384_v29 = vadd.f32 %v16322_v59, %v15796_v3  ;;  %v6663_v22 = vld [vmem:[%s17015_s6 + $0x608] sm:$0xff]  ;;  %v6718_v47 = vld [vmem:[%s17015_s6 + $0x7c0] sm:$0xff] }
0x1809   :  { %9482 = vmatprep.mubr.msk.f32.mxu1 %vm12587_vm2, %v17032_v2 }
0x180b   :  { %11668 = vmatpush3.bf16.msra.mxu1 %v11667_v52  ;;  %11752 = vmatpush3.bf16.msra.mxu0 %v11751_v30  ;;  %v6689_v52 = vld [vmem:[%s17015_s6 + $0x6d8] sm:$0xff]  ;;  %v11715_v30 = vpack.c.bf16 %v6633_v61, %v6632_v45  ;;  %v6664_v45 = vld [vmem:[%s17015_s6 + $0x610] sm:$0xff] }
0x180c   :  { %11669 = vmatprep.subr.bf16.mxu1 %v12586_v43  ;;  %11753 = vmatprep.subr.bf16.mxu0 %v12586_v43  ;;  %v11799_v39 = vpack.c.bf16 %v6689_v52, %v6688_v28  ;;  %v6665_v61 = vld [vmem:[%s17015_s6 + $0x618] sm:$0xff]  ;;  %v6720_v28 = vld [vmem:[%s17015_s6 + $0x7d0] sm:$0xff] }
0x180d   :  { %v6721_v52 = vld [vmem:[%s17015_s6 + $0x7d8] sm:$0xff] }
0x180f   :  { %11671 = vmatpush3.bf16.msra.mxu1 %v11670_v26  ;;  %11755 = vmatpush3.bf16.msra.mxu0 %v11754_v63  ;;  %v6691_v26 = vld [vmem:[%s17015_s6 + $0x6e8] sm:$0xff]  ;;  %v11718_v63 = vpack.c.bf16 %v6635_v50, %v6634_v35  ;;  %v6666_v35 = vld [vmem:[%s17015_s6 + $0x620] sm:$0xff] }
0x1810   :  { %11672 = vmatprep.subr.bf16.mxu1 %v12586_v43  ;;  %11756 = vmatprep.subr.bf16.mxu0 %v12586_v43  ;;  %v11802_v56 = vpack.c.bf16 %v6691_v26, %v6690_v40  ;;  %v6667_v50 = vld [vmem:[%s17015_s6 + $0x628] sm:$0xff]  ;;  %v6722_v40 = vld [vmem:[%s17015_s6 + $0x7e0] sm:$0xff] }
0x1811   :  { %v6723_v26 = vld [vmem:[%s17015_s6 + $0x7e8] sm:$0xff] }
0x1813   :  { %11674 = vmatpush3.bf16.msra.mxu1 %v11673_v62  ;;  %11758 = vmatpush3.bf16.msra.mxu0 %v11757_v32  ;;  %v6693_v62 = vld [vmem:[%s17015_s6 + $0x6f8] sm:$0xff]  ;;  %v11721_v32 = vpack.c.bf16 %v6637_v6, %v6636_v18  ;;  %v6668_v18 = vld [vmem:[%s17015_s6 + $0x630] sm:$0xff] }
0x1814   :  { %11675 = vmatprep.subr.bf16.mxu1 %v12586_v43  ;;  %11783 = vmatprep.subr.bf16.mxu0 %v12586_v43  ;;  %v11805_v41 = vpack.c.bf16 %v6693_v62, %v6692_v13  ;;  %v6669_v6 = vld [vmem:[%s17015_s6 + $0x638] sm:$0xff]  ;;  %v6724_v13 = vld [vmem:[%s17015_s6 + $0x7f0] sm:$0xff] }
0x1815   :  { %v6725_v62 = vld [vmem:[%s17015_s6 + $0x7f8] sm:$0xff] }
0x1816   :  { %9588 = vmatmul.mubr.f32.vlgmr.msra.gmra.mrb[100].mxu0 %v6458_v42  ;;  %v6640_v42 = vld [vmem:[%s17015_s6 + $0x550] sm:$0xff] }
0x1817   :  { %11677 = vmatpush3.bf16.msra.mxu1 %v11676_v20  ;;  %11785 = vmatpush3.bf16.msra.mxu0 %v11784_v34  ;;  %v6710_v20 = vld [vmem:[%s17015_s6 + $0x780] sm:$0xff]  ;;  %v6711_v34 = vld [vmem:[%s17015_s6 + $0x788] sm:$0xff] }
0x1818   :  { %11678 = vmatprep.subr.bf16.mxu1 %v12586_v43  ;;  %11786 = vmatprep.subr.bf16.mxu0 %v12586_v43  ;;  %v11832_v4 = vpack.c.bf16 %v6711_v34, %v6710_v20  ;;  %v6742_v20 = vld [vmem:[%s17015_s6 + $0x880] sm:$0xff]  ;;  %v6743_v34 = vld [vmem:[%s17015_s6 + $0x888] sm:$0xff] }
0x1819   :  { %9657 = vmatprep.mubr.msk.f32.mxu0 %vm12587_vm2, %v17032_v2  ;;  %v11880_v55 = vpack.c.bf16 %v6743_v34, %v6742_v20  ;;  %v6702_v34 = vld [vmem:[%s17015_s6 + $0x740] sm:$0xff] }
0x181b   :  { %11680 = vmatpush3.bf16.msra.mxu1 %v11679_v9  ;;  %11788 = vmatpush3.bf16.msra.mxu0 %v11787_v7  ;;  %v6713_v9 = vld [vmem:[%s17015_s6 + $0x798] sm:$0xff]  ;;  %v11727_v7 = vpack.c.bf16 %v6641_v25, %v6640_v42  ;;  %v6462_v42 = vmax.f32 %v6409_v5, 0.0  ;;  %v6744_v25 = vld [vmem:[%s17015_s6 + $0x890] sm:$0xff] }
0x181c   :  { %11681 = vmatprep.subr.bf16.mxu1 %v12586_v43  ;;  %11789 = vmatprep.subr.bf16.mxu0 %v12586_v43  ;;  %v11835_v44 = vpack.c.bf16 %v6713_v9, %v6712_v60  ;;  %v6745_v60 = vld [vmem:[%s17015_s6 + $0x898] sm:$0xff] }
0x181d   :  { %v6757_v5 = vld [vmem:[%s17015_s6 + $0x8f8] sm:$0xff] }
0x181f   :  { %11683 = vmatpush3.bf16.msra.mxu1 %v11682_v1  ;;  %11791 = vmatpush3.bf16.msra.mxu0 %v11790_v53  ;;  %v6715_v1 = vld [vmem:[%s17015_s6 + $0x7a8] sm:$0xff]  ;;  %v11730_v53 = vpack.c.bf16 %v6643_v15, %v6642_v24  ;;  %v6746_v15 = vld [vmem:[%s17015_s6 + $0x8a0] sm:$0xff] }
0x1820   :  { %11684 = vmatprep.subr.bf16.mxu1 %v12586_v43  ;;  %11792 = vmatprep.subr.bf16.mxu0 %v12586_v43  ;;  %v11838_v57 = vpack.c.bf16 %v6715_v1, %v6714_v16  ;;  %v6675_v24 = vld [vmem:[%s17015_s6 + $0x668] sm:$0xff] }
0x1821   :  { %v6747_v16 = vld [vmem:[%s17015_s6 + $0x8a8] sm:$0xff] }
0x1823   :  { %11686 = vmatpush3.bf16.msra.mxu1 %v11685_v48  ;;  %11794 = vmatpush3.bf16.msra.mxu0 %v11793_v38  ;;  %v6717_v48 = vld [vmem:[%s17015_s6 + $0x7b8] sm:$0xff]  ;;  %v11733_v38 = vpack.c.bf16 %v6645_v10, %v6644_v31  ;;  %v11886_v31 = vpack.c.bf16 %v6747_v16, %v6746_v15  ;;  %v6676_v10 = vld [vmem:[%s17015_s6 + $0x670] sm:$0xff]  ;;  %v6706_v16 = vld [vmem:[%s17015_s6 + $0x760] sm:$0xff] }
0x1824   :  { %11711 = vmatprep.subr.bf16.mxu1 %v12586_v43  ;;  %11795 = vmatprep.subr.bf16.mxu0 %v12586_v43  ;;  %v11841_v11 = vpack.c.bf16 %v6717_v48, %v6716_v14  ;;  %v6677_v14 = vld [vmem:[%s17015_s6 + $0x678] sm:$0xff]  ;;  %v6748_v48 = vld [vmem:[%s17015_s6 + $0x8b0] sm:$0xff] }
0x1826   :  { %9483 = vmatmul.mubr.f32.vlgmr.msra.gmra.mrb[56].mxu1 %v6455_v36  ;;  %v6457_v36 = vmax.f32 %v6384_v29, 0.0  ;;  %v6694_v29 = vld [vmem:[%s17015_s6 + $0x700] sm:$0xff] }
0x1827   :  { %11713 = vmatpush3.bf16.msra.mxu1 %v11712_v49  ;;  %11797 = vmatpush3.bf16.msra.mxu0 %v11796_v58  ;;  %v6719_v49 = vld [vmem:[%s17015_s6 + $0x7c8] sm:$0xff]  ;;  %v11760_v58 = vpack.c.bf16 %v6663_v22, %v6662_v54  ;;  %v6394_v22 = vadd.f32 %v16322_v59, %v15832_v8 }
0x1828   :  { %11714 = vmatprep.subr.bf16.mxu1 %v12586_v43  ;;  %11798 = vmatprep.subr.bf16.mxu0 %v12586_v43  ;;  %v11844_v3 = vpack.c.bf16 %v6719_v49, %v6718_v47  ;;  %v6695_v47 = vld [vmem:[%s17015_s6 + $0x708] sm:$0xff]  ;;  %v6750_v49 = vld [vmem:[%s17015_s6 + $0x8c0] sm:$0xff] }
0x1829   :  { %9552 = vmatprep.mubr.msk.f32.mxu1 %vm12587_vm2, %v17032_v2 }
0x182b   :  { %11716 = vmatpush3.bf16.msra.mxu1 %v11715_v30  ;;  %11800 = vmatpush3.bf16.msra.mxu0 %v11799_v39  ;;  %v11763_v30 = vpack.c.bf16 %v6665_v61, %v6664_v45  ;;  %v11847_v39 = vpack.c.bf16 %v6721_v52, %v6720_v28  ;;  %v6696_v45 = vld [vmem:[%s17015_s6 + $0x710] sm:$0xff]  ;;  %v6697_v61 = vld [vmem:[%s17015_s6 + $0x718] sm:$0xff] }
0x182c   :  { %11717 = vmatprep.subr.bf16.mxu1 %v12586_v43  ;;  %11801 = vmatprep.subr.bf16.mxu0 %v12586_v43  ;;  %v6752_v28 = vld [vmem:[%s17015_s6 + $0x8d0] sm:$0xff]  ;;  %v6753_v52 = vld [vmem:[%s17015_s6 + $0x8d8] sm:$0xff] }
0x182f   :  { %11719 = vmatpush3.bf16.msra.mxu1 %v11718_v63  ;;  %11803 = vmatpush3.bf16.msra.mxu0 %v11802_v56  ;;  %v11766_v63 = vpack.c.bf16 %v6667_v50, %v6666_v35  ;;  %v11850_v56 = vpack.c.bf16 %v6723_v26, %v6722_v40  ;;  %v11811_v35 = vpack.c.bf16 %v6697_v61, %v6696_v45  ;;  %v6698_v40 = vld [vmem:[%s17015_s6 + $0x720] sm:$0xff]  ;;  %v6699_v26 = vld [vmem:[%s17015_s6 + $0x728] sm:$0xff] }
0x1830   :  { %11720 = vmatprep.subr.bf16.mxu1 %v12586_v43  ;;  %11804 = vmatprep.subr.bf16.mxu0 %v12586_v43  ;;  %v11895_v50 = vpack.c.bf16 %v6753_v52, %v6752_v28  ;;  %v6404_v45 = vadd.f32 %v16322_v59, %v15864_v0  ;;  %v6782_v61 = vld [vmem:[%s17015_s6 + $0x9c0] sm:$0xff]  ;;  %v6783_v28 = vld [vmem:[%s17015_s6 + $0x9c8] sm:$0xff] }
0x1831   :  { %v11940_v0 = vpack.c.bf16 %v6783_v28, %v6782_v61  ;;  %v6758_v28 = vld [vmem:[%s17015_s6 + $0x900] sm:$0xff] }
0x1833   :  { %11722 = vmatpush3.bf16.msra.mxu1 %v11721_v32  ;;  %11806 = vmatpush3.bf16.msra.mxu0 %v11805_v41  ;;  %v11769_v32 = vpack.c.bf16 %v6669_v6, %v6668_v18  ;;  %v11853_v41 = vpack.c.bf16 %v6725_v62, %v6724_v13  ;;  %v11814_v13 = vpack.c.bf16 %v6699_v26, %v6698_v40  ;;  %v6784_v40 = vld [vmem:[%s17015_s6 + $0x9d0] sm:$0xff]  ;;  %v6785_v26 = vld [vmem:[%s17015_s6 + $0x9d8] sm:$0xff] }
0x1834   :  { %11723 = vmatprep.subr.bf16.mxu1 %v12586_v43  ;;  %11831 = vmatprep.subr.bf16.mxu0 %v12586_v43 }
0x1836   :  { %9658 = vmatmul.mubr.f32.vlgmr.msra.gmra.mrb[102].mxu0 %v6460_v33  ;;  %v6673_v33 = vld [vmem:[%s17015_s6 + $0x658] sm:$0xff] }
0x1837   :  { %11725 = vmatpush3.bf16.msra.mxu1 %v11724_v21  ;;  %11833 = vmatpush3.bf16.msra.mxu0 %v11832_v4  ;;  %v11772_v21 = vpack.c.bf16 %v6671_v19, %v6670_v27  ;;  %v6672_v4 = vld [vmem:[%s17015_s6 + $0x650] sm:$0xff] }
0x1838   :  { %11726 = vmatprep.subr.bf16.mxu1 %v12586_v43  ;;  %11834 = vmatprep.subr.bf16.mxu0 %v12586_v43  ;;  %v11775_v9 = vpack.c.bf16 %v6673_v33, %v6672_v4  ;;  %v6756_v27 = vld [vmem:[%s17015_s6 + $0x8f0] sm:$0xff]  ;;  %v6774_v4 = vld [vmem:[%s17015_s6 + $0x980] sm:$0xff] }
0x1839   :  { %9727 = vmatprep.mubr.msk.f32.mxu0 %vm12587_vm2, %v17032_v2  ;;  %v11901_v20 = vpack.c.bf16 %v6757_v5, %v6756_v27 }
0x183b   :  { %11728 = vmatpush3.bf16.msra.mxu1 %v11727_v7  ;;  %11836 = vmatpush3.bf16.msra.mxu0 %v11835_v44  ;;  %v11883_v7 = vpack.c.bf16 %v6745_v60, %v6744_v25  ;;  %v6674_v44 = vld [vmem:[%s17015_s6 + $0x660] sm:$0xff]  ;;  %v6704_v25 = vld [vmem:[%s17015_s6 + $0x750] sm:$0xff] }
0x183c   :  { %11729 = vmatprep.subr.bf16.mxu1 %v12586_v43  ;;  %11837 = vmatprep.subr.bf16.mxu0 %v12586_v43 }
0x183f   :  { %11731 = vmatpush3.bf16.msra.mxu1 %v11730_v53  ;;  %11839 = vmatpush3.bf16.msra.mxu0 %v11838_v57  ;;  %v11778_v57 = vpack.c.bf16 %v6675_v24, %v6674_v44  ;;  %v6777_v44 = vld [vmem:[%s17015_s6 + $0x998] sm:$0xff] }
0x1840   :  { %11732 = vmatprep.subr.bf16.mxu1 %v12586_v43  ;;  %11840 = vmatprep.subr.bf16.mxu0 %v12586_v43 }
0x1843   :  { %11734 = vmatpush3.bf16.msra.mxu1 %v11733_v38  ;;  %11842 = vmatpush3.bf16.msra.mxu0 %v11841_v11  ;;  %v6749_v38 = vld [vmem:[%s17015_s6 + $0x8b8] sm:$0xff]  ;;  %v11781_v11 = vpack.c.bf16 %v6677_v14, %v6676_v10 }
0x1844   :  { %11759 = vmatprep.subr.bf16.mxu1 %v12586_v43  ;;  %11843 = vmatprep.subr.bf16.mxu0 %v12586_v43  ;;  %v11889_v54 = vpack.c.bf16 %v6749_v38, %v6748_v48 }
0x1846   :  { %9553 = vmatmul.mubr.f32.vlgmr.msra.gmra.mrb[58].mxu1 %v6457_v36  ;;  %v6459_v36 = vmax.f32 %v6394_v22, 0.0  ;;  %v6708_v22 = vld [vmem:[%s17015_s6 + $0x770] sm:$0xff] }
0x1847   :  { %11761 = vmatpush3.bf16.msra.mxu1 %v11760_v58  ;;  %11845 = vmatpush3.bf16.msra.mxu0 %v11844_v3  ;;  %v6751_v58 = vld [vmem:[%s17015_s6 + $0x8c8] sm:$0xff]  ;;  %v11808_v3 = vpack.c.bf16 %v6695_v47, %v6694_v29  ;;  %v6780_v47 = vld [vmem:[%s17015_s6 + $0x9b0] sm:$0xff] }
0x1848   :  { %11762 = vmatprep.subr.bf16.mxu1 %v12586_v43  ;;  %11846 = vmatprep.subr.bf16.mxu0 %v12586_v43  ;;  %v11892_v8 = vpack.c.bf16 %v6751_v58, %v6750_v49  ;;  %v6781_v49 = vld [vmem:[%s17015_s6 + $0x9b8] sm:$0xff] }
0x1849   :  { %9622 = vmatprep.mubr.msk.f32.mxu1 %vm12587_vm2, %v17032_v2 }
0x184b   :  { %11764 = vmatpush3.bf16.msra.mxu1 %v11763_v30  ;;  %11848 = vmatpush3.bf16.msra.mxu0 %v11847_v39 }
0x184c   :  { %11765 = vmatprep.subr.bf16.mxu1 %v12586_v43  ;;  %11849 = vmatprep.subr.bf16.mxu0 %v12586_v43 }
0x184f   :  { %11767 = vmatpush3.bf16.msra.mxu1 %v11766_v63  ;;  %11851 = vmatpush3.bf16.msra.mxu0 %v11850_v56  ;;  %v6754_v63 = vld [vmem:[%s17015_s6 + $0x8e0] sm:$0xff]  ;;  %v6755_v56 = vld [vmem:[%s17015_s6 + $0x8e8] sm:$0xff] }
0x1850   :  { %11768 = vmatprep.subr.bf16.mxu1 %v12586_v43  ;;  %11852 = vmatprep.subr.bf16.mxu0 %v12586_v43  ;;  %v11898_v62 = vpack.c.bf16 %v6755_v56, %v6754_v63  ;;  %v11943_v56 = vpack.c.bf16 %v6785_v26, %v6784_v40  ;;  %v6760_v40 = vld [vmem:[%s17015_s6 + $0x910] sm:$0xff] }
0x1853   :  { %11770 = vmatpush3.bf16.msra.mxu1 %v11769_v32  ;;  %11854 = vmatpush3.bf16.msra.mxu0 %v11853_v41  ;;  %v6700_v32 = vld [vmem:[%s17015_s6 + $0x730] sm:$0xff]  ;;  %v6701_v41 = vld [vmem:[%s17015_s6 + $0x738] sm:$0xff] }
0x1854   :  { %11771 = vmatprep.subr.bf16.mxu1 %v12586_v43  ;;  %11879 = vmatprep.subr.bf16.mxu0 %v12586_v43  ;;  %v11817_v19 = vpack.c.bf16 %v6701_v41, %v6700_v32  ;;  %v6787_v32 = vld [vmem:[%s17015_s6 + $0x9e8] sm:$0xff] }
0x1856   :  { %9728 = vmatmul.mubr.f32.vlgmr.msra.gmra.mrb[104].mxu0 %v6462_v42  ;;  %v6775_v42 = vld [vmem:[%s17015_s6 + $0x988] sm:$0xff] }
0x1857   :  { %11773 = vmatpush3.bf16.msra.mxu1 %v11772_v21  ;;  %11881 = vmatpush3.bf16.msra.mxu0 %v11880_v55  ;;  %v6419_v21 = vadd.f32 %v16322_v59, %v15916_v51  ;;  %v6703_v55 = vld [vmem:[%s17015_s6 + $0x748] sm:$0xff]  ;;  %v11928_v51 = vpack.c.bf16 %v6775_v42, %v6774_v4 }
0x1858   :  { %11774 = vmatprep.subr.bf16.mxu1 %v12586_v43  ;;  %11882 = vmatprep.subr.bf16.mxu0 %v12586_v43  ;;  %v11820_v33 = vpack.c.bf16 %v6703_v55, %v6702_v34  ;;  %v6733_v34 = vld [vmem:[%s17015_s6 + $0x838] sm:$0xff] }
0x1859   :  { %v16485_v1 = vpop.f32.mrb[46].mxu1  ;;  %9797 = vmatprep.mubr.msk.f32.mxu0 %vm12587_vm2, %v17032_v2  ;;  %v6464_v60 = vmax.f32 %v6419_v21, 0.0  ;;  %v6788_v21 = vld [vmem:[%s17015_s6 + $0x9f0] sm:$0xff]  ;;  %v6789_v55 = vld [vmem:[%s17015_s6 + $0x9f8] sm:$0xff] }
0x185a   :  { %v9204_v53 = vpop.f32.mrb[47].mxu1  ;;  %v8449_v14 = vsel %vm8448_vm3, %v16485_v1, 0.0  ;;  %v6709_v1 = vld [vmem:[%s17015_s6 + $0x778] sm:$0xff]  ;;  %v11949_v42 = vpack.c.bf16 %v6789_v55, %v6788_v21 }
0x185b   :  { %11776 = vmatpush3.bf16.msra.mxu1 %v11775_v9  ;;  %11884 = vmatpush3.bf16.msra.mxu0 %v11883_v7  ;;  %v6705_v9 = vld [vmem:[%s17015_s6 + $0x758] sm:$0xff]  ;;  %v6776_v7 = vld [vmem:[%s17015_s6 + $0x990] sm:$0xff]  ;;  %v6707_v53 = vld [vmem:[%s17015_s6 + $0x768] sm:$0xff]  ;;  %v11829_v58 = vpack.c.bf16 %v6709_v1, %v6708_v22 }
0x185c   :  { %11777 = vmatprep.subr.bf16.mxu1 %v12586_v43  ;;  %11885 = vmatprep.subr.bf16.mxu0 %v12586_v43  ;;  %v11823_v24 = vpack.c.bf16 %v6705_v9, %v6704_v25  ;;  %v11931_v15 = vpack.c.bf16 %v6777_v44, %v6776_v7  ;;  %v6735_v25 = vld [vmem:[%s17015_s6 + $0x848] sm:$0xff]  ;;  %v6736_v44 = vld [vmem:[%s17015_s6 + $0x850] sm:$0xff] }
0x185d   :  { %v6807_v9 = vld [vmem:[%s17015_s6 + $0xa88] sm:$0xff] }
0x185f   :  { %11779 = vmatpush3.bf16.msra.mxu1 %v11778_v57  ;;  %11887 = vmatpush3.bf16.msra.mxu0 %v11886_v31  ;;  %v6778_v57 = vld [vmem:[%s17015_s6 + $0x9a0] sm:$0xff]  ;;  %v6779_v31 = vld [vmem:[%s17015_s6 + $0x9a8] sm:$0xff] }
0x1860   :  { %11780 = vmatprep.subr.bf16.mxu1 %v12586_v43  ;;  %11888 = vmatprep.subr.bf16.mxu0 %v12586_v43  ;;  %v11934_v29 = vpack.c.bf16 %v6779_v31, %v6778_v57 }
0x1863   :  { %11782 = vmatpush3.bf16.msra.mxu1 %v11781_v11  ;;  %11890 = vmatpush3.bf16.msra.mxu0 %v11889_v54  ;;  %v11826_v54 = vpack.c.bf16 %v6707_v53, %v6706_v16  ;;  %v6808_v16 = vld [vmem:[%s17015_s6 + $0xa90] sm:$0xff]  ;;  %v6809_v53 = vld [vmem:[%s17015_s6 + $0xa98] sm:$0xff] }
0x1864   :  { %11807 = vmatprep.subr.bf16.mxu1 %v12586_v43  ;;  %11891 = vmatprep.subr.bf16.mxu0 %v12586_v43  ;;  %v11979_v31 = vpack.c.bf16 %v6809_v53, %v6808_v16  ;;  %v6770_v53 = vld [vmem:[%s17015_s6 + $0x960] sm:$0xff] }
0x1865   :  { %v16533_v30 = vpop.f32.mrb[90].mxu0 }
0x1866   :  { %9623 = vmatmul.mubr.f32.vlgmr.msra.gmra.mrb[60].mxu1 %v6459_v36  ;;  %v9169_v39 = vpop.f32.mrb[91].mxu0  ;;  %v6727_v36 = vld [vmem:[%s17015_s6 + $0x808] sm:$0xff] }
0x1867   :  { %11809 = vmatpush3.bf16.msra.mxu1 %v11808_v3  ;;  %11893 = vmatpush3.bf16.msra.mxu0 %v11892_v8  ;;  %v11937_v3 = vpack.c.bf16 %v6781_v49, %v6780_v47  ;;  %v6726_v8 = vld [vmem:[%s17015_s6 + $0x800] sm:$0xff]  ;;  %v6728_v39 = vld [vmem:[%s17015_s6 + $0x810] sm:$0xff] }
0x1868   :  { %11810 = vmatprep.subr.bf16.mxu1 %v12586_v43  ;;  %11894 = vmatprep.subr.bf16.mxu0 %v12586_v43  ;;  %v11856_v52 = vpack.c.bf16 %v6727_v36, %v6726_v8  ;;  %v6741_v8 = vld [vmem:[%s17015_s6 + $0x878] sm:$0xff] }
0x1869   :  { %v16549_v18 = vpop.f32.mrb[92].mxu0  ;;  %9692 = vmatprep.mubr.msk.f32.mxu1 %vm12587_vm2, %v17032_v2 }
0x186a   :  { %v9309_v6 = vpop.f32.mrb[93].mxu0 }
0x186b   :  { %11812 = vmatpush3.bf16.msra.mxu1 %v11811_v35  ;;  %11896 = vmatpush3.bf16.msra.mxu0 %v11895_v50  ;;  %v6461_v35 = vmax.f32 %v6404_v45, 0.0  ;;  %v6729_v50 = vld [vmem:[%s17015_s6 + $0x818] sm:$0xff]  ;;  %v6730_v6 = vld [vmem:[%s17015_s6 + $0x820] sm:$0xff] }
0x186c   :  { %11813 = vmatprep.subr.bf16.mxu1 %v12586_v43  ;;  %11897 = vmatprep.subr.bf16.mxu0 %v12586_v43  ;;  %v11859_v63 = vpack.c.bf16 %v6729_v50, %v6728_v39  ;;  %v6813_v45 = vld [vmem:[%s17015_s6 + $0xab8] sm:$0xff]  ;;  %v6814_v39 = vld [vmem:[%s17015_s6 + $0xac0] sm:$0xff] }
0x186f   :  { %11815 = vmatpush3.bf16.msra.mxu1 %v11814_v13  ;;  %11899 = vmatpush3.bf16.msra.mxu0 %v11898_v62  ;;  %v6731_v13 = vld [vmem:[%s17015_s6 + $0x828] sm:$0xff]  ;;  %v6786_v62 = vld [vmem:[%s17015_s6 + $0x9e0] sm:$0xff] }
0x1870   :  { %11816 = vmatprep.subr.bf16.mxu1 %v12586_v43  ;;  %11900 = vmatprep.subr.bf16.mxu0 %v12586_v43  ;;  %v11862_v5 = vpack.c.bf16 %v6731_v13, %v6730_v6  ;;  %v6817_v6 = vld [vmem:[%s17015_s6 + $0xad8] sm:$0xff] }
0x1873   :  { %11818 = vmatpush3.bf16.msra.mxu1 %v11817_v19  ;;  %11902 = vmatpush3.bf16.msra.mxu0 %v11901_v20  ;;  %v11946_v19 = vpack.c.bf16 %v6787_v32, %v6786_v62  ;;  %v6732_v20 = vld [vmem:[%s17015_s6 + $0x830] sm:$0xff]  ;;  %v6762_v32 = vld [vmem:[%s17015_s6 + $0x920] sm:$0xff] }
0x1874   :  { %11819 = vmatprep.subr.bf16.mxu1 %v12586_v43  ;;  %11927 = vmatprep.subr.bf16.mxu0 %v12586_v43  ;;  %v11865_v4 = vpack.c.bf16 %v6733_v34, %v6732_v20 }
0x1876   :  { %9798 = vmatmul.mubr.f32.vlgmr.msra.gmra.mrb[106].mxu0 %v6464_v60  ;;  %v6806_v60 = vld [vmem:[%s17015_s6 + $0xa80] sm:$0xff] }
0x1877   :  { %11821 = vmatpush3.bf16.msra.mxu1 %v11820_v33  ;;  %11929 = vmatpush3.bf16.msra.mxu0 %v11928_v51  ;;  %v6734_v33 = vld [vmem:[%s17015_s6 + $0x840] sm:$0xff]  ;;  %v6429_v51 = vadd.f32 %v16322_v59, %v15950_v37  ;;  %v11976_v37 = vpack.c.bf16 %v6807_v9, %v6806_v60  ;;  %v6439_v9 = vadd.f32 %v16322_v59, %v15984_v17  ;;  %v6768_v17 = vld [vmem:[%s17015_s6 + $0x950] sm:$0xff] }
0x1878   :  { %11822 = vmatprep.subr.bf16.mxu1 %v12586_v43  ;;  %11930 = vmatprep.subr.bf16.mxu0 %v12586_v43  ;;  %v11868_v7 = vpack.c.bf16 %v6735_v25, %v6734_v33  ;;  %v6820_v33 = vld [vmem:[%s17015_s6 + $0xaf0] sm:$0xff] }
0x1879   :  { %v6974_v10 = vpop.f32.mrb[48].mxu1  ;;  %9867 = vmatprep.mubr.msk.f32.mxu0 %vm12587_vm2, %v17032_v2 }
0x187a   :  { %v8450_v48 = vsel %vm8448_vm3, %v6974_v10, 0.0  ;;  %v9239_v38 = vpop.f32.mrb[49].mxu1  ;;  %v6738_v10 = vld [vmem:[%s17015_s6 + $0x860] sm:$0xff] }
0x187b   :  { %v16616_v11 = vadd.f32 %v8450_v48, %v8449_v14  ;;  %11824 = vmatpush3.bf16.msra.mxu1 %v11823_v24  ;;  %11932 = vmatpush3.bf16.msra.mxu0 %v11931_v15  ;;  %v6466_v24 = vmax.f32 %v6429_v51, 0.0  ;;  %v6737_v15 = vld [vmem:[%s17015_s6 + $0x858] sm:$0xff]  ;;  %v6739_v14 = vld [vmem:[%s17015_s6 + $0x868] sm:$0xff]  ;;  %v6810_v48 = vld [vmem:[%s17015_s6 + $0xaa0] sm:$0xff] }
0x187c   :  { %11825 = vmatprep.subr.bf16.mxu1 %v12586_v43  ;;  %11933 = vmatprep.subr.bf16.mxu0 %v12586_v43  ;;  %v11871_v57 = vpack.c.bf16 %v6737_v15, %v6736_v44  ;;  %v6811_v38 = vld [vmem:[%s17015_s6 + $0xaa8] sm:$0xff]  ;;  %v11874_v47 = vpack.c.bf16 %v6739_v14, %v6738_v10  ;;  %v6821_v51 = vld [vmem:[%s17015_s6 + $0xaf8] sm:$0xff] }
0x187d   :  { %v11982_v49 = vpack.c.bf16 %v6811_v38, %v6810_v48  ;;  %v11997_v60 = vpack.c.bf16 %v6821_v51, %v6820_v33  ;;  %v6769_v15 = vld [vmem:[%s17015_s6 + $0x958] sm:$0xff]  ;;  %v6434_v33 = vadd.f32 %v16322_v59, %v15968_v12  ;;  %v6823_v51 = vld [vmem:[%s17015_s6 + $0xb08] sm:$0xff] }
0x187e   :  { %v11919_v16 = vpack.c.bf16 %v6769_v15, %v6768_v17  ;;  %v6825_v12 = vld [vmem:[%s17015_s6 + $0xb18] sm:$0xff] }
0x187f   :  { %11827 = vmatpush3.bf16.msra.mxu1 %v11826_v54  ;;  %11935 = vmatpush3.bf16.msra.mxu0 %v11934_v29 }
0x1880   :  { %11828 = vmatprep.subr.bf16.mxu1 %v12586_v43  ;;  %11936 = vmatprep.subr.bf16.mxu0 %v12586_v43 }
0x1883   :  { %11830 = vmatpush3.bf16.msra.mxu1 %v11829_v58  ;;  %11938 = vmatpush3.bf16.msra.mxu0 %v11937_v3  ;;  %v6740_v58 = vld [vmem:[%s17015_s6 + $0x870] sm:$0xff]  ;;  %v8454_v3 = vsel %vm8448_vm3, %v16549_v18, 0.0 }
0x1884   :  { %11855 = vmatprep.subr.bf16.mxu1 %v12586_v43  ;;  %11939 = vmatprep.subr.bf16.mxu0 %v12586_v43  ;;  %v11877_v18 = vpack.c.bf16 %v6741_v8, %v6740_v58  ;;  %v6791_v58 = vld [vmem:[%s17015_s6 + $0xa08] sm:$0xff] }
0x1886   :  { %9693 = vmatmul.mubr.f32.vlgmr.msra.gmra.mrb[62].mxu1 %v6461_v35  ;;  %v6815_v35 = vld [vmem:[%s17015_s6 + $0xac8] sm:$0xff] }
0x1887   :  { %11857 = vmatpush3.bf16.msra.mxu1 %v11856_v52  ;;  %11941 = vmatpush3.bf16.msra.mxu0 %v11940_v0  ;;  %v6414_v52 = vadd.f32 %v16322_v59, %v15900_v23  ;;  %v6759_v0 = vld [vmem:[%s17015_s6 + $0x908] sm:$0xff]  ;;  %v11988_v23 = vpack.c.bf16 %v6815_v35, %v6814_v39  ;;  %v6797_v39 = vld [vmem:[%s17015_s6 + $0xa38] sm:$0xff] }
0x1888   :  { %11858 = vmatprep.subr.bf16.mxu1 %v12586_v43  ;;  %11942 = vmatprep.subr.bf16.mxu0 %v12586_v43  ;;  %v11904_v50 = vpack.c.bf16 %v6759_v0, %v6758_v28  ;;  %v6796_v0 = vld [vmem:[%s17015_s6 + $0xa30] sm:$0xff] }
0x1889   :  { %v16676_v41 = vpop.f32.mrb[94].mxu0  ;;  %9762 = vmatprep.mubr.msk.f32.mxu1 %vm12587_vm2, %v17032_v2  ;;  %v6463_v26 = vmax.f32 %v6414_v52, 0.0  ;;  %v11961_v35 = vpack.c.bf16 %v6797_v39, %v6796_v0 }
0x188a   :  { %v9379_v27 = vpop.f32.mrb[95].mxu0 }
0x188b   :  { %11860 = vmatpush3.bf16.msra.mxu1 %v11859_v63  ;;  %11944 = vmatpush3.bf16.msra.mxu0 %v11943_v56  ;;  %v6761_v63 = vld [vmem:[%s17015_s6 + $0x918] sm:$0xff]  ;;  %v6816_v56 = vld [vmem:[%s17015_s6 + $0xad0] sm:$0xff]  ;;  %v6763_v27 = vld [vmem:[%s17015_s6 + $0x928] sm:$0xff] }
0x188c   :  { %11861 = vmatprep.subr.bf16.mxu1 %v12586_v43  ;;  %11945 = vmatprep.subr.bf16.mxu0 %v12586_v43  ;;  %v11907_v13 = vpack.c.bf16 %v6761_v63, %v6760_v40  ;;  %v11991_v62 = vpack.c.bf16 %v6817_v6, %v6816_v56  ;;  %v11910_v21 = vpack.c.bf16 %v6763_v27, %v6762_v32  ;;  %v6801_v63 = vld [vmem:[%s17015_s6 + $0xa58] sm:$0xff]  ;;  %v6802_v6 = vld [vmem:[%s17015_s6 + $0xa60] sm:$0xff] }
0x188f   :  { %11863 = vmatpush3.bf16.msra.mxu1 %v11862_v5  ;;  %11947 = vmatpush3.bf16.msra.mxu0 %v11946_v19  ;;  %v6818_v5 = vld [vmem:[%s17015_s6 + $0xae0] sm:$0xff]  ;;  %v6819_v19 = vld [vmem:[%s17015_s6 + $0xae8] sm:$0xff] }
0x1890   :  { %11864 = vmatprep.subr.bf16.mxu1 %v12586_v43  ;;  %11948 = vmatprep.subr.bf16.mxu0 %v12586_v43  ;;  %v11994_v55 = vpack.c.bf16 %v6819_v19, %v6818_v5 }
0x1893   :  { %11866 = vmatpush3.bf16.msra.mxu1 %v11865_v4  ;;  %11950 = vmatpush3.bf16.msra.mxu0 %v11949_v42  ;;  %v6764_v4 = vld [vmem:[%s17015_s6 + $0x930] sm:$0xff]  ;;  %v6765_v42 = vld [vmem:[%s17015_s6 + $0x938] sm:$0xff] }
0x1894   :  { %11867 = vmatprep.subr.bf16.mxu1 %v12586_v43  ;;  %11975 = vmatprep.subr.bf16.mxu0 %v12586_v43  ;;  %v11913_v25 = vpack.c.bf16 %v6765_v42, %v6764_v4 }
0x1896   :  { %9868 = vmatmul.mubr.f32.vlgmr.msra.gmra.mrb[108].mxu0 %v6466_v24  ;;  %v6468_v24 = vmax.f32 %v6439_v9, 0.0  ;;  %v6824_v9 = vld [vmem:[%s17015_s6 + $0xb10] sm:$0xff] }
0x1897   :  { %11869 = vmatpush3.bf16.msra.mxu1 %v11868_v7  ;;  %11977 = vmatpush3.bf16.msra.mxu0 %v11976_v37  ;;  %v6766_v7 = vld [vmem:[%s17015_s6 + $0x940] sm:$0xff]  ;;  %v6767_v37 = vld [vmem:[%s17015_s6 + $0x948] sm:$0xff] }
0x1898   :  { %11870 = vmatprep.subr.bf16.mxu1 %v12586_v43  ;;  %11978 = vmatprep.subr.bf16.mxu0 %v12586_v43  ;;  %v11916_v44 = vpack.c.bf16 %v6767_v37, %v6766_v7  ;;  %v12003_v7 = vpack.c.bf16 %v6825_v12, %v6824_v9  ;;  %v6826_v37 = vld [vmem:[%s17015_s6 + $0xb20] sm:$0xff] }
0x1899   :  { %v7044_v54 = vpop.f32.mrb[50].mxu1  ;;  %9937 = vmatprep.mubr.msk.f32.mxu0 %vm12587_vm2, %v17032_v2 }
0x189a   :  { %v8452_v29 = vsel %vm8448_vm3, %v7044_v54, 0.0  ;;  %v9274_v22 = vpop.f32.mrb[51].mxu1  ;;  %v8458_v54 = vsel %vm8448_vm3, %v16676_v41, 0.0  ;;  %v6790_v41 = vld [vmem:[%s17015_s6 + $0xa00] sm:$0xff] }
0x189b   :  { %v8453_v1 = vadd.f32 %v8452_v29, %v16616_v11  ;;  %11872 = vmatpush3.bf16.msra.mxu1 %v11871_v57  ;;  %11980 = vmatpush3.bf16.msra.mxu0 %v11979_v31  ;;  %v6812_v11 = vld [vmem:[%s17015_s6 + $0xab0] sm:$0xff]  ;;  %v6771_v57 = vld [vmem:[%s17015_s6 + $0x968] sm:$0xff]  ;;  %v6773_v22 = vld [vmem:[%s17015_s6 + $0x978] sm:$0xff] }
0x189c   :  { %11873 = vmatprep.subr.bf16.mxu1 %v12586_v43  ;;  %11981 = vmatprep.subr.bf16.mxu0 %v12586_v43  ;;  %v11985_v61 = vpack.c.bf16 %v6813_v45, %v6812_v11  ;;  %v11922_v38 = vpack.c.bf16 %v6771_v57, %v6770_v53  ;;  %v6772_v29 = vld [vmem:[%s17015_s6 + $0x970] sm:$0xff]  ;;  %v6830_v57 = vld [vmem:[%s17015_s6 + $0xb40] sm:$0xff] }
0x189d   :  { %v16758_v36 = vadd.f32 %v8454_v3, %v8453_v1  ;;  %v11952_v3 = vpack.c.bf16 %v6791_v58, %v6790_v41  ;;  %v6792_v11 = vld [vmem:[%s17015_s6 + $0xa10] sm:$0xff] }
0x189f   :  { %11875 = vmatpush3.bf16.msra.mxu1 %v11874_v47  ;;  %11983 = vmatpush3.bf16.msra.mxu0 %v11982_v49  ;;  %v11925_v47 = vpack.c.bf16 %v6773_v22, %v6772_v29  ;;  %v6424_v49 = vadd.f32 %v16322_v59, %v15932_v46  ;;  %v6793_v46 = vld [vmem:[%s17015_s6 + $0xa18] sm:$0xff]  ;;  %v6835_v29 = vld [vmem:[%s17015_s6 + $0xb68] sm:$0xff] }
0x18a0   :  { %11876 = vmatprep.subr.bf16.mxu1 %v12586_v43  ;;  %11984 = vmatprep.subr.bf16.mxu0 %v12586_v43  ;;  %v11955_v45 = vpack.c.bf16 %v6793_v46, %v6792_v11 }
0x18a1   :  { %v6465_v8 = vmax.f32 %v6424_v49, 0.0 }
0x18a3   :  { %11878 = vmatpush3.bf16.msra.mxu1 %v11877_v18  ;;  %11986 = vmatpush3.bf16.msra.mxu0 %v11985_v61  ;;  %v6795_v18 = vld [vmem:[%s17015_s6 + $0xa28] sm:$0xff] }
0x18a4   :  { %11903 = vmatprep.subr.bf16.mxu1 %v12586_v43  ;;  %11987 = vmatprep.subr.bf16.mxu0 %v12586_v43 }
0x18a6   :  { %9763 = vmatmul.mubr.f32.vlgmr.msra.gmra.mrb[64].mxu1 %v6463_v26  ;;  %v6800_v26 = vld [vmem:[%s17015_s6 + $0xa50] sm:$0xff] }
0x18a7   :  { %11905 = vmatpush3.bf16.msra.mxu1 %v11904_v50  ;;  %11989 = vmatpush3.bf16.msra.mxu0 %v11988_v23  ;;  %v6798_v50 = vld [vmem:[%s17015_s6 + $0xa40] sm:$0xff]  ;;  %v6799_v23 = vld [vmem:[%s17015_s6 + $0xa48] sm:$0xff]  ;;  %v11967_v56 = vpack.c.bf16 %v6801_v63, %v6800_v26 }
0x18a8   :  { %11906 = vmatprep.subr.bf16.mxu1 %v12586_v43  ;;  %11990 = vmatprep.subr.bf16.mxu0 %v12586_v43  ;;  %v11964_v40 = vpack.c.bf16 %v6799_v23, %v6798_v50 }
0x18a9   :  { %v16804_v20 = vpop.f32.mrb[96].mxu0  ;;  %9832 = vmatprep.mubr.msk.f32.mxu1 %vm12587_vm2, %v17032_v2 }
0x18aa   :  { %v9449_v34 = vpop.f32.mrb[97].mxu0 }
0x18ab   :  { %11908 = vmatpush3.bf16.msra.mxu1 %v11907_v13  ;;  %11992 = vmatpush3.bf16.msra.mxu0 %v11991_v62  ;;  %v6803_v13 = vld [vmem:[%s17015_s6 + $0xa68] sm:$0xff]  ;;  %v8462_v34 = vsel %vm8448_vm3, %v16804_v20, 0.0  ;;  %v6822_v20 = vld [vmem:[%s17015_s6 + $0xb00] sm:$0xff] }
0x18ac   :  { %11909 = vmatprep.subr.bf16.mxu1 %v12586_v43  ;;  %11993 = vmatprep.subr.bf16.mxu0 %v12586_v43  ;;  %v11970_v19 = vpack.c.bf16 %v6803_v13, %v6802_v6 }
0x18af   :  { %11911 = vmatpush3.bf16.msra.mxu1 %v11910_v21  ;;  %11995 = vmatpush3.bf16.msra.mxu0 %v11994_v55  ;;  %v6804_v21 = vld [vmem:[%s17015_s6 + $0xa70] sm:$0xff]  ;;  %v6805_v55 = vld [vmem:[%s17015_s6 + $0xa78] sm:$0xff] }
0x18b0   :  { %11912 = vmatprep.subr.bf16.mxu1 %v12586_v43  ;;  %11996 = vmatprep.subr.bf16.mxu0 %v12586_v43  ;;  %v11973_v42 = vpack.c.bf16 %v6805_v55, %v6804_v21 }
0x18b3   :  { %11914 = vmatpush3.bf16.msra.mxu1 %v11913_v25  ;;  %11998 = vmatpush3.bf16.msra.mxu0 %v11997_v60  ;;  %v12000_v25 = vpack.c.bf16 %v6823_v51, %v6822_v20  ;;  %v6467_v60 = vmax.f32 %v6434_v33, 0.0 }
0x18b4   :  { %11915 = vmatprep.subr.bf16.mxu1 %v12586_v43 }
0x18b6   :  { %9938 = vmatmul.mubr.f32.vlgmr.msra.gmra.mrb[110].mxu0 %v6468_v24 }
0x18b7   :  { %11917 = vmatpush3.bf16.msra.mxu1 %v11916_v44  ;;  %v6827_v44 = vld [vmem:[%s17015_s6 + $0xb28] sm:$0xff] }
0x18b8   :  { %11918 = vmatprep.subr.bf16.mxu1 %v12586_v43  ;;  %v12006_v15 = vpack.c.bf16 %v6827_v44, %v6826_v37 }
0x18b9   :  { %v7184_v31 = vpop.f32.mrb[52].mxu1 }
0x18ba   :  { %v8456_v10 = vsel %vm8448_vm3, %v7184_v31, 0.0  ;;  %v9344_v14 = vpop.f32.mrb[53].mxu1  ;;  %v6831_v31 = vld [vmem:[%s17015_s6 + $0xb48] sm:$0xff] }
0x18bb   :  { %v8457_v48 = vadd.f32 %v8456_v10, %v16758_v36  ;;  %11920 = vmatpush3.bf16.msra.mxu1 %v11919_v16  ;;  %v6794_v36 = vld [vmem:[%s17015_s6 + $0xa20] sm:$0xff]  ;;  %v6829_v16 = vld [vmem:[%s17015_s6 + $0xb38] sm:$0xff]  ;;  %v12012_v10 = vpack.c.bf16 %v6831_v31, %v6830_v57  ;;  %v6832_v14 = vld [vmem:[%s17015_s6 + $0xb50] sm:$0xff] }
0x18bc   :  { %11921 = vmatprep.subr.bf16.mxu1 %v12586_v43  ;;  %v11958_v52 = vpack.c.bf16 %v6795_v18, %v6794_v36 }
0x18bd   :  { %v8459_v1 = vadd.f32 %v8458_v54, %v8457_v48  ;;  %v6833_v48 = vld [vmem:[%s17015_s6 + $0xb58] sm:$0xff]  ;;  %v6834_v54 = vld [vmem:[%s17015_s6 + $0xb60] sm:$0xff] }
0x18be   :  { %v12018_v41 = vpack.c.bf16 %v6835_v29, %v6834_v54 }
0x18bf   :  { %11923 = vmatpush3.bf16.msra.mxu1 %v11922_v38  ;;  %v12015_v38 = vpack.c.bf16 %v6833_v48, %v6832_v14 }
0x18c0   :  { %11924 = vmatprep.subr.bf16.mxu1 %v12586_v43 }
0x18c3   :  { %11926 = vmatpush3.bf16.msra.mxu1 %v11925_v47 }
0x18c4   :  { %11951 = vmatprep.subr.bf16.mxu1 %v12586_v43 }
0x18c6   :  { %9833 = vmatmul.mubr.f32.vlgmr.msra.gmra.mrb[66].mxu1 %v6465_v8  ;;  %v6837_v8 = vld [vmem:[%s17015_s6 + $0xb78] sm:$0xff] }
0x18c7   :  { %11953 = vmatpush3.bf16.msra.mxu1 %v11952_v3  ;;  %9902 = vmatprep.mubr.msk.f32.mxu1 %vm12587_vm2, %v17032_v2  ;;  %v6836_v3 = vld [vmem:[%s17015_s6 + $0xb70] sm:$0xff] }
0x18c8   :  { %11954 = vmatprep.subr.bf16.mxu1 %v12586_v43  ;;  %v12021_v46 = vpack.c.bf16 %v6837_v8, %v6836_v3 }
0x18c9   :  { %v16882_v61 = vpop.f32.mrb[98].mxu0 }
0x18ca   :  { %v9519_v28 = vpop.f32.mrb[99].mxu0  ;;  %v8466_v58 = vsel %vm8448_vm3, %v16882_v61, 0.0 }
0x18cb   :  { %11956 = vmatpush3.bf16.msra.mxu1 %v11955_v45  ;;  %v6444_v45 = vadd.f32 %v16322_v59, %v16533_v30 }
0x18cc   :  { %11957 = vmatprep.subr.bf16.mxu1 %v12586_v43 }
0x18cd   :  { %v6469_v36 = vmax.f32 %v6444_v45, 0.0 }
0x18cf   :  { %11959 = vmatpush3.bf16.msra.mxu1 %v11958_v52 }
0x18d0   :  { %11960 = vmatprep.subr.bf16.mxu1 %v12586_v43 }
0x18d3   :  { %11962 = vmatpush3.bf16.msra.mxu1 %v11961_v35 }
0x18d4   :  { %11963 = vmatprep.subr.bf16.mxu1 %v12586_v43 }
0x18d7   :  { %11965 = vmatpush3.bf16.msra.mxu1 %v11964_v40 }
0x18d8   :  { %11966 = vmatprep.subr.bf16.mxu1 %v12586_v43 }
0x18d9   :  { %v7324_v62 = vpop.f32.mrb[54].mxu1 }
0x18da   :  { %v8460_v32 = vsel %vm8448_vm3, %v7324_v62, 0.0  ;;  %v9414_v27 = vpop.f32.mrb[55].mxu1 }
0x18db   :  { %v8461_v5 = vadd.f32 %v8460_v32, %v8459_v1  ;;  %11968 = vmatpush3.bf16.msra.mxu1 %v11967_v56 }
0x18dc   :  { %11969 = vmatprep.subr.bf16.mxu1 %v12586_v43 }
0x18dd   :  { %v8463_v4 = vadd.f32 %v8462_v34, %v8461_v5 }
0x18df   :  { %11971 = vmatpush3.bf16.msra.mxu1 %v11970_v19 }
0x18e0   :  { %11972 = vmatprep.subr.bf16.mxu1 %v12586_v43 }
0x18e3   :  { %11974 = vmatpush3.bf16.msra.mxu1 %v11973_v42 }
0x18e4   :  { %11999 = vmatprep.subr.bf16.mxu1 %v12586_v43 }
0x18e6   :  { %9903 = vmatmul.mubr.f32.vlgmr.msra.gmra.mrb[68].mxu1 %v6467_v60 }
0x18e7   :  { %12001 = vmatpush3.bf16.msra.mxu1 %v12000_v25  ;;  %9972 = vmatprep.mubr.msk.f32.mxu1 %vm12587_vm2, %v17032_v2  ;;  %v6828_v2 = vld [vmem:[%s17015_s6 + $0xb30] sm:$0xff] }
0x18e8   :  { %12002 = vmatprep.subr.bf16.mxu1 %v12586_v43  ;;  %v12009_v53 = vpack.c.bf16 %v6829_v16, %v6828_v2 }
0x18e9   :  { %v7674_v24 = vpop.f32.mrb[100].mxu0 }
0x18ea   :  { %v9589_v17 = vpop.f32.mrb[101].mxu0  ;;  %v8470_v35 = vsel %vm8448_vm3, %v7674_v24, 0.0 }
0x18eb   :  { %12004 = vmatpush3.bf16.msra.mxu1 %v12003_v7 }
0x18ec   :  { %12005 = vmatprep.subr.bf16.mxu1 %v12586_v43 }
0x18ef   :  { %12007 = vmatpush3.bf16.msra.mxu1 %v12006_v15 }
0x18f0   :  { %12008 = vmatprep.subr.bf16.mxu1 %v12586_v43 }
0x18f3   :  { %12010 = vmatpush3.bf16.msra.mxu1 %v12009_v53 }
0x18f4   :  { %12011 = vmatprep.subr.bf16.mxu1 %v12586_v43 }
0x18f7   :  { %12013 = vmatpush3.bf16.msra.mxu1 %v12012_v10 }
0x18f8   :  { %12014 = vmatprep.subr.bf16.mxu1 %v12586_v43 }
0x18f9   :  { %v7464_v22 = vpop.f32.mrb[56].mxu1 }
0x18fa   :  { %v8464_v1 = vsel %vm8448_vm3, %v7464_v22, 0.0  ;;  %v9484_v47 = vpop.f32.mrb[57].mxu1 }
0x18fb   :  { %v8465_v49 = vadd.f32 %v8464_v1, %v8463_v4  ;;  %12016 = vmatpush3.bf16.msra.mxu1 %v12015_v38  ;;  %v8638_v38 = vld [vmem:[%s17017_s7] ss:$0 sm:$0xff] }
0x18fc   :  { %12017 = vmatprep.subr.bf16.mxu1 %v12586_v43 }
0x18fd   :  { %v8467_v11 = vadd.f32 %v8466_v58, %v8465_v49 }
0x18ff   :  { %12019 = vmatpush3.bf16.msra.mxu1 %v12018_v41 }
0x1900   :  { %12020 = vmatprep.subr.bf16.mxu1 %v12586_v43 }
0x1903   :  { %12022 = vmatpush3.bf16.msra.mxu1 %v12021_v46 }
0x1906   :  { %9973 = vmatmul.mubr.f32.vlgmr.msra.gmra.mrb[70].mxu1 %v6469_v36 }
0x1909   :  { %v7814_v18 = vpop.f32.mrb[102].mxu0 }
0x190a   :  { %v9659_v61 = vpop.f32.mrb[103].mxu0  ;;  %v8474_v63 = vsel %vm8448_vm3, %v7814_v18, 0.0 }
0x1919   :  { %v7604_v28 = vpop.f32.mrb[58].mxu1 }
0x191a   :  { %v8468_v52 = vsel %vm8448_vm3, %v7604_v28, 0.0  ;;  %v9554_v0 = vpop.f32.mrb[59].mxu1 }
0x191b   :  { %v8469_v39 = vadd.f32 %v8468_v52, %v8467_v11 }
0x191d   :  { %v8471_v50 = vadd.f32 %v8470_v35, %v8469_v39 }
0x1929   :  { %v7954_v23 = vpop.f32.mrb[104].mxu0 }
0x192a   :  { %v9729_v40 = vpop.f32.mrb[105].mxu0  ;;  %v8478_v19 = vsel %vm8448_vm3, %v7954_v23, 0.0 }
0x1939   :  { %v7744_v26 = vpop.f32.mrb[60].mxu1 }
0x193a   :  { %v8472_v59 = vsel %vm8448_vm3, %v7744_v26, 0.0  ;;  %v9624_v30 = vpop.f32.mrb[61].mxu1 }
0x193b   :  { %v8473_v43 = vadd.f32 %v8472_v59, %v8471_v50 }
0x193d   :  { %v8475_v56 = vadd.f32 %v8474_v63, %v8473_v43 }
0x1949   :  { %v8094_v6 = vpop.f32.mrb[106].mxu0 }
0x194a   :  { %v9799_v13 = vpop.f32.mrb[107].mxu0  ;;  %v8482_v51 = vsel %vm8448_vm3, %v8094_v6, 0.0 }
0x1959   :  { %v7884_v62 = vpop.f32.mrb[62].mxu1 }
0x195a   :  { %v8476_v32 = vsel %vm8448_vm3, %v7884_v62, 0.0  ;;  %v9694_v27 = vpop.f32.mrb[63].mxu1 }
0x195b   :  { %v8477_v5 = vadd.f32 %v8476_v32, %v8475_v56 }
0x195d   :  { %v8479_v34 = vadd.f32 %v8478_v19, %v8477_v5 }
0x1969   :  { %v8234_v21 = vpop.f32.mrb[108].mxu0 }
0x196a   :  { %v9869_v55 = vpop.f32.mrb[109].mxu0  ;;  %v8486_v24 = vsel %vm8448_vm3, %v8234_v21, 0.0 }
0x1979   :  { %v8024_v4 = vpop.f32.mrb[64].mxu1 }
0x197a   :  { %v8480_v42 = vsel %vm8448_vm3, %v8024_v4, 0.0  ;;  %v9764_v33 = vpop.f32.mrb[65].mxu1 }
0x197b   :  { %v8481_v20 = vadd.f32 %v8480_v42, %v8479_v34 }
0x197d   :  { %v8483_v25 = vadd.f32 %v8482_v51, %v8481_v20 }
0x1989   :  { %v8374_v60 = vpop.f32.mrb[110].mxu0 }
0x198a   :  { %v9939_v9 = vpop.f32.mrb[111].mxu0  ;;  %v8490_v57 = vsel %vm8448_vm3, %v8374_v60, 0.0 }
0x1999   :  { %v8164_v12 = vpop.f32.mrb[66].mxu1 }
0x199a   :  { %v8484_v7 = vsel %vm8448_vm3, %v8164_v12, 0.0  ;;  %v9834_v37 = vpop.f32.mrb[67].mxu1 }
0x199b   :  { %v8485_v44 = vadd.f32 %v8484_v7, %v8483_v25 }
0x199d   :  { %v8487_v17 = vadd.f32 %v8486_v24, %v8485_v44 }
0x19b9   :  { %v8304_v15 = vpop.f32.mrb[68].mxu1 }
0x19ba   :  { %v8488_v2 = vsel %vm8448_vm3, %v8304_v15, 0.0  ;;  %v9904_v16 = vpop.f32.mrb[69].mxu1 }
0x19bb   :  { %v8489_v53 = vadd.f32 %v8488_v2, %v8487_v17 }
0x19bd   :  { %v8491_v31 = vadd.f32 %v8490_v57, %v8489_v53 }
0x19d9   :  { %v8444_v10 = vpop.f32.mrb[70].mxu1 }
0x19da   :  { %v8492_v14 = vsel %vm8448_vm3, %v8444_v10, 0.0  ;;  %v9974_v48 = vpop.f32.mrb[71].mxu1 }
0x19db   :  { %v8493_v54 = vadd.f32 %v8492_v14, %v8491_v31 }
0x19dd   :  { %v8501_v29 = vadd.f32 %v8638_v38, %v8493_v54 }
0x19df   :  { %v8502_v22 = vsel %vm8448_vm3, %v8501_v29, -inf }
0x19e0   :  { %8503 = vmax.xlane.f32.xlu0 %v8502_v22 }
0x1a6d   :  { %v8504_v1 = vpop.xlane.xlu0 %8503 }
0x1a6e   :  { %v8505_v47 = vsub.f32 %v8501_v29, %v8504_v1 }
0x1a70   :  { %v8506_v49 = vmul.f32 1.442695, %v8505_v47 }
0x1a72   :  { %12580 = vpow2.f32 %v8506_v49 }
0x1a7c   :  { %v12581_v41 = vpop.eup %12580 }
0x1a7d   :  { %v8508_v58 = vsel %vm8448_vm3, %v12581_v41, 0.0 }
0x1a7e   :  { %8509 = vadd.xlane.f32.xlu0 %v8508_v58 }
0x1b0b   :  { %v8510_v3 = vpop.xlane.xlu0 %8509 }
0x1b0c   :  { %12582 = vrcp.f32 %v8510_v3 }
0x1b16   :  { %v12583_v8 = vpop.eup %12582 }
0x1b17   :  { %v8512_v11 = vmul.f32 %v12583_v8, %v12581_v41 }
0x1b19   :  { %8513 = vst.msk [vmem:[%s17018_s8] sm:$0xff] %vm8448_vm3, %v8512_v11 }

</bundles_post_ra>
